<compile_context>
chip_gen: v6e
topology: v6e:2x2x1
jax: 0.10.0
libtpu: 0.0.40
codegen_flags: <defaults>
</compile_context>

<pallas_src>
import jax
import jax.numpy as jnp
from jax.experimental import pallas as pl
from jax.experimental.pallas import tpu as pltpu

LANE = 128                      # channel dims padded to multiples of this
TM = 1024                       # row tile for the frame-stage kernels (HBM-bound)
TM_DOWN = 512                   # row tile for the (wide-K) downsample matmul
VMEM_LIMIT = 48 * 1024 * 1024   # < v7x 64 MiB physical, > default elsewhere


def _rup(a, b):
    return (a + b - 1) // b * b


def _cpad(c):
    return _rup(max(int(c), 1), LANE)


def _compiler_params(sem):
    return pltpu.CompilerParams(dimension_semantics=sem,
                                vmem_limit_bytes=VMEM_LIMIT)


def _pw_cost(m, k, n):
    return pl.CostEstimate(flops=2 * m * k * n,
                           transcendentals=2 * m * n,
                           bytes_accessed=2 * (m * k + k * n + m * n) + 4 * m)


# ------------------------------ Pallas kernels ------------------------------

def _mish(y):
    # mish(y) = y * tanh(softplus(y)); tanh(softplus(y)) = 1 - 2/((1+e^y)^2 + 1)
    e = jnp.exp(jnp.minimum(y, 20.0))
    q = (1.0 + e) * (1.0 + e)
    t = 1.0 - 2.0 * pl.reciprocal(q + 1.0, approx=True)
    return y * jnp.where(y > 20.0, 1.0, t)


def _pw_kernel(x_ref, w_ref, b_ref, m_ref, o_ref):
    # fused 1x1 conv (matmul) + folded-BN bias + Mish + row-validity select
    acc = jnp.dot(x_ref[...], w_ref[...], preferred_element_type=jnp.float32)
    y = _mish(acc + b_ref[...])
    o_ref[...] = jnp.where(m_ref[...] > 0.5, y, 0.0).astype(o_ref.dtype)


def _pw2_kernel(xa_ref, xb_ref, wa_ref, wb_ref, b_ref, m_ref, o_ref):
    # fused concat conv: mish(xa @ Wa + xb @ Wb + b), no HBM channel concat
    acc = jnp.dot(xa_ref[...], wa_ref[...], preferred_element_type=jnp.float32)
    acc = acc + jnp.dot(xb_ref[...], wb_ref[...], preferred_element_type=jnp.float32)
    y = _mish(acc + b_ref[...])
    o_ref[...] = jnp.where(m_ref[...] > 0.5, y, 0.0).astype(o_ref.dtype)


def _make_split_kernel(cp0):
    def kernel(x_ref, w_ref, b_ref, m_ref, o0_ref, o1_ref):
        # split_conv0 + split_conv1 fused: one pass over x, two lane-dense outputs
        acc = jnp.dot(x_ref[...], w_ref[...], preferred_element_type=jnp.float32)
        y = _mish(acc + b_ref[...])
        y = jnp.where(m_ref[...] > 0.5, y, 0.0)
        o0_ref[...] = y[:, :cp0].astype(o0_ref.dtype)
        o1_ref[...] = y[:, cp0:].astype(o1_ref.dtype)
    return kernel


def _make_resblock_kernel(tm, guard, win, shifts, cout, m_total, n_steps):
    """One whole Resblock: h = mish(x1_win @ W1 + b1); y = mish(conv3x3(h)); y + x1.

    The x1 slab (and the row mask) stay in HBM (pl.ANY); each grid step manually
    DMAs an overlapping (win, Cin) row window (clipped at the slab ends -- the
    uncovered halo rows are only ever read for masked outputs, which are selected
    away).  Buffer offset (guard + r + s) always maps to slab row i*tm + r + s.
    """
    lead = tm + guard

    def kernel(x_any, m_any, w1_ref, b1_ref, w9_ref, b2_ref, mask_ref, res_ref,
               o_ref, xbuf, mbuf, sem):

        def fetch(src_off, dst_off, rows):
            cx = pltpu.make_async_copy(x_any.at[pl.ds(src_off, rows)],
                                       xbuf.at[pl.ds(dst_off, rows)], sem.at[0])
            cm = pltpu.make_async_copy(m_any.at[pl.ds(src_off, rows)],
                                       mbuf.at[pl.ds(dst_off, rows)], sem.at[1])
            cx.start()
            cm.start()
            cx.wait()
            cm.wait()

        if n_steps == 1:
            fetch(0, guard, tm)
        else:
            i = pl.program_id(0)

            @pl.when(i == 0)
            def _():
                fetch(0, guard, lead)

            @pl.when(i == n_steps - 1)
            def _():
                fetch(m_total - lead, 0, lead)

            @pl.when(jnp.logical_and(i > 0, i < n_steps - 1))
            def _():
                fetch(i * tm - guard, 0, win)

        # fused 1x1 conv + BN + Mish over the halo window (h never hits HBM);
        # ring / pad rows of h are forced to exactly zero via the window mask.
        h = jnp.dot(xbuf[...], w1_ref[...], preferred_element_type=jnp.float32)
        h = jnp.where(mbuf[...] > 0.5, _mish(h + b1_ref[...]), 0.0)
        h = h.astype(jnp.bfloat16)

        acc = jnp.zeros((tm, cout), jnp.float32)
        for t, s in enumerate(shifts):          # unrolled: 9 MXU taps
            acc = acc + jnp.dot(h[guard + s:guard + s + tm, :], w9_ref[t],
                                preferred_element_type=jnp.float32)

        y = _mish(acc + b2_ref[...])
        out = jnp.where(mask_ref[...] > 0.5, y, 0.0) + res_ref[...].astype(jnp.float32)
        o_ref[...] = out.astype(o_ref.dtype)

    return kernel


# ------------------------------ kernel wrappers ------------------------------

def pointwise_conv(x, w, b, mask, tm):
    M, K = x.shape
    cout = w.shape[1]
    assert M % tm == 0
    return pl.pallas_call(
        _pw_kernel,
        out_shape=jax.ShapeDtypeStruct((M, cout), jnp.bfloat16),
        grid=(M // tm,),
        in_specs=[
            pl.BlockSpec((tm, K), lambda i: (i, 0)),
            pl.BlockSpec((K, cout), lambda i: (0, 0)),     # weights resident
            pl.BlockSpec((1, cout), lambda i: (0, 0)),     # folded-BN bias
            pl.BlockSpec((tm, 1), lambda i: (i, 0)),       # row validity mask
        ],
        out_specs=pl.BlockSpec((tm, cout), lambda i: (i, 0)),
        compiler_params=_compiler_params(("parallel",)),
        cost_estimate=_pw_cost(M, K, cout),
    )(x, w, b, mask)


def pointwise_conv2(xa, xb, wa, wb, b, mask, tm):
    """torch.cat([xa, xb], C) + 1x1 conv fused: mish(xa@Wa + xb@Wb + b)."""
    M = mask.shape[0]
    Ka, cout = wa.shape
    Kb = wb.shape[0]
    assert M % tm == 0
    return pl.pallas_call(
        _pw2_kernel,
        out_shape=jax.ShapeDtypeStruct((M, cout), jnp.bfloat16),
        grid=(M // tm,),
        in_specs=[
            pl.BlockSpec((tm, Ka), lambda i: (i, 0)),
            pl.BlockSpec((tm, Kb), lambda i: (i, 0)),
            pl.BlockSpec((Ka, cout), lambda i: (0, 0)),
            pl.BlockSpec((Kb, cout), lambda i: (0, 0)),
            pl.BlockSpec((1, cout), lambda i: (0, 0)),
            pl.BlockSpec((tm, 1), lambda i: (i, 0)),
        ],
        out_specs=pl.BlockSpec((tm, cout), lambda i: (i, 0)),
        compiler_params=_compiler_params(("parallel",)),
        cost_estimate=_pw_cost(M, Ka + Kb, cout),
    )(xa, xb, wa, wb, b, mask)


def split_conv(x, w, b, mask, cp0, tm):
    """Fused split_conv0/split_conv1: x read once, two lane-dense outputs."""
    M, K = x.shape
    ctot = w.shape[1]
    cp1 = ctot - cp0
    assert M % tm == 0
    return pl.pallas_call(
        _make_split_kernel(cp0),
        out_shape=(jax.ShapeDtypeStruct((M, cp0), jnp.bfloat16),
                   jax.ShapeDtypeStruct((M, cp1), jnp.bfloat16)),
        grid=(M // tm,),
        in_specs=[
            pl.BlockSpec((tm, K), lambda i: (i, 0)),
            pl.BlockSpec((K, ctot), lambda i: (0, 0)),
            pl.BlockSpec((1, ctot), lambda i: (0, 0)),
            pl.BlockSpec((tm, 1), lambda i: (i, 0)),
        ],
        out_specs=(pl.BlockSpec((tm, cp0), lambda i: (i, 0)),
                   pl.BlockSpec((tm, cp1), lambda i: (i, 0))),
        compiler_params=_compiler_params(("parallel",)),
        cost_estimate=_pw_cost(M, K, ctot),
    )(x, w, b, mask)


def resblock_fused(x1, mask, w1, b1, w9, b2, tm, guard, wf):
    """Whole Resblock (1x1 conv -> 3x3 conv -> residual) in one Pallas kernel."""
    M, cin = x1.shape
    ch = w1.shape[1]
    cout = w9.shape[-1]
    assert M % tm == 0
    n_steps = M // tm
    if n_steps > 1:
        assert tm >= guard
    win = tm + 2 * guard
    shifts = [(dy - 1) * wf + (dx - 1) for dy in range(3) for dx in range(3)]
    kernel = _make_resblock_kernel(tm, guard, win, shifts, cout, M, n_steps)
    m_eff = M + n_steps * 2 * guard
    cost = pl.CostEstimate(
        flops=2 * m_eff * cin * ch + 18 * M * ch * cout,
        transcendentals=2 * (m_eff * ch + M * cout),
        bytes_accessed=2 * (m_eff * cin + 2 * M * cout + cin * ch + 9 * ch * cout))
    return pl.pallas_call(
        kernel,
        out_shape=jax.ShapeDtypeStruct((M, cout), jnp.bfloat16),
        grid=(n_steps,),
        in_specs=[
            pl.BlockSpec(memory_space=pl.ANY),                  # x1 slab (manual windows)
            pl.BlockSpec(memory_space=pl.ANY),                  # mask slab (manual windows)
            pl.BlockSpec((cin, ch), lambda i: (0, 0)),          # 1x1 weights resident
            pl.BlockSpec((1, ch), lambda i: (0, 0)),
            pl.BlockSpec((9, ch, cout), lambda i: (0, 0, 0)),   # 9-tap weights resident
            pl.BlockSpec((1, cout), lambda i: (0, 0)),
            pl.BlockSpec((tm, 1), lambda i: (i, 0)),            # output-row mask
            pl.BlockSpec((tm, cout), lambda i: (i, 0)),         # residual (x1 tile)
        ],
        out_specs=pl.BlockSpec((tm, cout), lambda i: (i, 0)),
        scratch_shapes=[
            pltpu.VMEM((win, cin), jnp.bfloat16),
            pltpu.VMEM((win, 1), jnp.float32),
            pltpu.SemaphoreType.DMA((2,)),
        ],
        # every step's window DMA is self-contained => safe to shard across cores
        compiler_params=_compiler_params(("parallel",)),
        cost_estimate=cost,
    )(x1, mask, w1, b1, w9, b2, mask, x1)


# ------------------------------ parameters ----------------------------------

def init_basic_conv(key, cin, cout, k):
    kw_, kg, kb, km, kv = jax.random.split(key, 5)
    w = jax.random.normal(kw_, (k, k, cin, cout), jnp.float32) / jnp.sqrt(k * k * cin)
    gamma = 1.0 + 0.1 * jax.random.normal(kg, (cout,), jnp.float32)
    beta = 0.1 * jax.random.normal(kb, (cout,), jnp.float32)
    mean = 0.1 * jax.random.normal(km, (cout,), jnp.float32)
    var = 1.0 + 0.1 * jnp.abs(jax.random.normal(kv, (cout,), jnp.float32))
    eps = 1e-5
    scale = gamma / jnp.sqrt(var + eps)   # inference-mode BN fold
    bias = beta - mean * scale
    return {"w": w, "scale": scale, "bias": bias}


def init_resblock_body(key, in_channels, out_channels, num_blocks, first):
    keys = jax.random.split(key, 8)
    p = {"first": first}
    p["downsample"] = init_basic_conv(keys[0], in_channels, out_channels, 3)
    if first:
        p["split0"] = init_basic_conv(keys[1], out_channels, out_channels, 1)
        p["split1"] = init_basic_conv(keys[2], out_channels, out_channels, 1)
        p["res"] = [{
            "c1": init_basic_conv(keys[3], out_channels, out_channels // 2, 1),
            "c2": init_basic_conv(keys[4], out_channels // 2, out_channels, 3),
        }]
        p["blocks_tail"] = init_basic_conv(keys[5], out_channels, out_channels, 1)
        p["concat"] = init_basic_conv(keys[6], out_channels * 2, out_channels, 1)
    else:
        c = out_channels // 2
        p["split0"] = init_basic_conv(keys[1], out_channels, c, 1)
        p["split1"] = init_basic_conv(keys[2], out_channels, c, 1)
        rkeys = jax.random.split(keys[3], 2 * num_blocks)
        p["res"] = [{
            "c1": init_basic_conv(rkeys[2 * i], c, c, 1),
            "c2": init_basic_conv(rkeys[2 * i + 1], c, c, 3),
        } for i in range(num_blocks)]
        p["blocks_tail"] = init_basic_conv(keys[4], c, c, 1)
        p["concat"] = init_basic_conv(keys[5], out_channels, out_channels, 1)
    return p


def _fold(p):
    # fold the BN scale into the conv weights; bias stays separate (f32)
    return p["w"] * p["scale"].reshape(1, 1, 1, -1), p["bias"]


def _pack_pw(p, cin_pad):
    w, b = _fold(p)
    _, _, cin, cout = w.shape
    cp = _cpad(cout)
    w2 = jnp.pad(w.reshape(cin, cout), ((0, cin_pad - cin), (0, cp - cout)))
    b2 = jnp.pad(b, (0, cp - cout)).reshape(1, cp)
    return w2.astype(jnp.bfloat16), b2.astype(jnp.float32), cp


def _pack_3x3_taps(p, cin_pad):
    w, b = _fold(p)
    _, _, cin, cout = w.shape
    cp = _cpad(cout)
    w9 = jnp.pad(w, ((0, 0), (0, 0), (0, cin_pad - cin), (0, cp - cout)))
    w9 = w9.reshape(9, cin_pad, cp).astype(jnp.bfloat16)
    b2 = jnp.pad(b, (0, cp - cout)).reshape(1, cp).astype(jnp.float32)
    return w9, b2, cp


def pack_params(p):
    """Fold BN, pad channels to the 128-lane grid, fuse split / concat convs."""
    packed = {}

    # downsample conv: keep raw Cin for its (one-off) im2col matmul
    w, b = _fold(p["downsample"])
    _, _, cin, cout = w.shape
    cp_down = _cpad(cout)
    w = jnp.pad(w, ((0, 0), (0, 0), (0, 0), (0, cp_down - cout)))
    packed["down_w"] = w.reshape(9 * cin, cp_down).astype(jnp.bfloat16)
    packed["down_b"] = jnp.pad(b, (0, cp_down - cout)).reshape(1, cp_down).astype(jnp.float32)

    # split_conv0 + split_conv1 fused along the output-channel (lane) axis
    w0, b0, cp0 = _pack_pw(p["split0"], cp_down)
    w1, b1, cp1 = _pack_pw(p["split1"], cp_down)
    packed["split_w"] = jnp.concatenate([w0, w1], axis=1)    # columns: [x0 | x1]
    packed["split_b"] = jnp.concatenate([b0, b1], axis=1)

    res = []
    cp_blk = cp1
    for rb in p["res"]:
        w1p, b1p, cp_h = _pack_pw(rb["c1"], cp_blk)
        w9p, b2p, cp_blk = _pack_3x3_taps(rb["c2"], cp_h)
        res.append({"w1": w1p, "b1": b1p, "w9": w9p, "b2": b2p})
    packed["res"] = res

    wt, bt, cp_tail = _pack_pw(p["blocks_tail"], cp_blk)
    packed["tail_w"], packed["tail_b"] = wt, bt

    # concat conv: split its input channels into x1 / x0 halves so that
    # torch.cat([x1, x0], dim=1) + 1x1 conv becomes x1 @ W_hi + x0 @ W_lo + b
    wc, bc = _fold(p["concat"])
    _, _, cin_cat, cout_cat = wc.shape
    c1_raw = p["blocks_tail"]["w"].shape[-1]       # channels of x1 (come first)
    c0_raw = p["split0"]["w"].shape[-1]            # channels of x0
    cp_out = _cpad(cout_cat)
    w2d = wc.reshape(cin_cat, cout_cat)
    w_hi = jnp.pad(w2d[:c1_raw], ((0, cp_tail - c1_raw), (0, cp_out - cout_cat)))
    w_lo = jnp.pad(w2d[c1_raw:], ((0, cp0 - c0_raw), (0, cp_out - cout_cat)))
    packed["cat_w1"] = w_hi.astype(jnp.bfloat16)
    packed["cat_w0"] = w_lo.astype(jnp.bfloat16)
    packed["cat_b"] = jnp.pad(bc, (0, cp_out - cout_cat)).reshape(1, cp_out).astype(jnp.float32)
    return packed


# ------------------------------ forward pass --------------------------------

def _im2col_3x3_s2(x):
    """3x3 / stride 2 / pad 1 patches for the downsample conv (tap order dy, dx, cin)."""
    n, h, w, c = x.shape
    xp = jnp.pad(x, ((0, 0), (1, 1), (1, 1), (0, 0)))
    ho = (h + 2 - 3) // 2 + 1
    wo = (w + 2 - 3) // 2 + 1
    cols = [xp[:, dy:dy + 2 * ho:2, dx:dx + 2 * wo:2, :]
            for dy in range(3) for dx in range(3)]
    patches = jnp.concatenate(cols, axis=-1)
    return patches.reshape(n * ho * wo, 9 * c), (n, ho, wo)


def resblock_body_forward(packed, x_nchw, out_channels):
    x = jnp.transpose(x_nchw, (0, 2, 3, 1)).astype(jnp.bfloat16)   # NHWC, bf16

    # ---- downsample_conv (3x3, stride 2) -----------------------------------
    patches, (n, ho, wo) = _im2col_3x3_s2(x)
    md = n * ho * wo
    tm_d = min(TM_DOWN, _rup(md, 8))
    mdp = _rup(md, tm_d)
    patches = jnp.pad(patches, ((0, mdp - md), (0, 0)))
    ones = jnp.ones((mdp, 1), jnp.float32)
    down = pointwise_conv(patches, packed["down_w"], packed["down_b"], ones, tm_d)
    cp_down = packed["down_w"].shape[1]

    # ---- guarded frame layout, built ONCE and carried through the whole stage --
    hf, wf = ho + 2, wo + 2
    guard = _rup(wf + 1, 8)                 # covers the max tap row shift (wf+1)
    mframe = n * hf * wf
    need = guard + mframe + guard
    tm = min(_rup(need, 8), max(TM, _rup(4 * guard, 8)))   # halo <= ~50% of a tile
    M = _rup(need, tm)

    frame = down[:md].reshape(n, ho, wo, cp_down)
    frame = jnp.pad(frame, ((0, 0), (1, 1), (1, 1), (0, 0)))       # spatial zero ring
    frame = frame.reshape(mframe, cp_down)
    frame = jnp.pad(frame, ((guard, M - guard - mframe), (0, 0)))  # single guard pad

    idx = jnp.arange(M)
    inframe = (idx >= guard) & (idx < guard + mframe)
    rel = jnp.clip(idx - guard, 0, mframe - 1) % (hf * wf)
    py, px = rel // wf, rel % wf
    valid = inframe & (py >= 1) & (py <= ho) & (px >= 1) & (px <= wo)
    mask = valid.astype(jnp.float32).reshape(M, 1)

    # ---- split_conv0 + split_conv1 (one fused kernel, frame read once) --------
    cp0 = packed["cat_w0"].shape[0]
    x0, x1 = split_conv(frame, packed["split_w"], packed["split_b"], mask, cp0, tm)

    # ---- Resblocks: x1 <- x1 + conv3x3(conv1x1(x1))  (everything in one kernel) -
    for rb in packed["res"]:
        x1 = resblock_fused(x1, mask, rb["w1"], rb["b1"], rb["w9"], rb["b2"],
                            tm, guard, wf)
    x1 = pointwise_conv(x1, packed["tail_w"], packed["tail_b"], mask, tm)

    # ---- torch.cat([x1, x0], 1) + concat_conv as one two-operand kernel -------
    out = pointwise_conv2(x1, x0, packed["cat_w1"], packed["cat_w0"],
                          packed["cat_b"], mask, tm)

    # ---- drop guard / frame / channel padding once, back to NCHW --------------
    out = out[guard:guard + mframe].reshape(n, hf, wf, -1)
    out = out[:, 1:1 + ho, 1:1 + wo, :out_channels]
    return jnp.transpose(out.astype(jnp.float32), (0, 3, 1, 2))


# ---------------------------------- main ------------------------------------

if __name__ == "__main__":
    key = jax.random.PRNGKey(0)
    k_x, k_p = jax.random.split(key)

    # Resblock_body(in_channels=4, out_channels=8, num_blocks=2, first=False)
    in_channels, out_channels, num_blocks, first = 4, 8, 2, False
    x = jax.random.normal(k_x, (2, in_channels, 16, 16), jnp.float32)

    raw_params = init_resblock_body(k_p, in_channels, out_channels, num_blocks, first)
    packed = pack_params(raw_params)   # fold BN + pad lanes + fuse, once, offline

    fwd = jax.jit(lambda p, xx: resblock_body_forward(p, xx, out_channels))
    y = fwd(packed, x)
    jax.block_until_ready(y)

    assert y.shape == (2, out_channels, 8, 8), y.shape
    print("KERNEL_OK")
</pallas_src>

<mosaic_0001>
module attributes {stable_mosaic.version = 11 : i64} {
  func.func @_pw_kernel(%arg0: i32, %arg1: memref<128x36xbf16, #tpu.memory_space<vmem>>, %arg2: memref<36x128xbf16, #tpu.memory_space<vmem>>, %arg3: memref<1x128xf32, #tpu.memory_space<vmem>>, %arg4: memref<128x1xf32, #tpu.memory_space<vmem>>, %arg5: memref<128x128xbf16, #tpu.memory_space<vmem>>) attributes {dimension_semantics = [#tpu.dimension_semantics<parallel>], iteration_bounds = array<i64: 1>, scalar_prefetch = 0 : i64, scratch_operands = 0 : i64, tpu.core_type = #tpu.core_type<tc>, window_params = [{transform_indices = @transform_0, window_bounds = array<i64: 128, 36>}, {pipeline_mode = #tpu.pipeline_mode<synchronous>, transform_indices = @transform_1, window_bounds = array<i64: 36, 128>}, {pipeline_mode = #tpu.pipeline_mode<synchronous>, transform_indices = @transform_2, window_bounds = array<i64: 1, 128>}, {transform_indices = @transform_3, window_bounds = array<i64: 128, 1>}, {transform_indices = @transform_4, window_bounds = array<i64: 128, 128>}]} {
    %c0 = arith.constant 0 : index
    %c0_0 = arith.constant 0 : index
    %0 = vector.load %arg1[%c0, %c0_0] : memref<128x36xbf16, #tpu.memory_space<vmem>>, vector<128x36xbf16>
    %c0_1 = arith.constant 0 : index
    %c0_2 = arith.constant 0 : index
    %1 = vector.load %arg2[%c0_1, %c0_2] : memref<36x128xbf16, #tpu.memory_space<vmem>>, vector<36x128xbf16>
    %cst = arith.constant dense<0.000000e+00> : vector<128x128xf32>
    %2 = tpu.matmul %0, %1, %cst {dimension_numbers = #tpu.dot_dimension_numbers<[1], [0], [0], [1], [0, 0, 1, 1], [], []>} : vector<128x36xbf16>, vector<36x128xbf16>, vector<128x128xf32> -> vector<128x128xf32>
    %c0_3 = arith.constant 0 : index
    %c0_4 = arith.constant 0 : index
    %3 = vector.load %arg3[%c0_3, %c0_4] : memref<1x128xf32, #tpu.memory_space<vmem>>, vector<1x128xf32>
    %4 = vector.broadcast %3 : vector<1x128xf32> to vector<128x128xf32>
    %5 = arith.addf %2, %4 : vector<128x128xf32>
    %cst_5 = arith.constant 2.000000e+01 : f32
    %6 = vector.broadcast %cst_5 : f32 to vector<128x128xf32>
    %7 = arith.minimumf %5, %6 : vector<128x128xf32>
    %8 = math.exp %7 : vector<128x128xf32>
    %cst_6 = arith.constant 1.000000e+00 : f32
    %9 = vector.broadcast %cst_6 : f32 to vector<128x128xf32>
    %10 = arith.addf %9, %8 : vector<128x128xf32>
    %cst_7 = arith.constant 1.000000e+00 : f32
    %11 = vector.broadcast %cst_7 : f32 to vector<128x128xf32>
    %12 = arith.addf %11, %8 : vector<128x128xf32>
    %13 = arith.mulf %10, %12 : vector<128x128xf32>
    %cst_8 = arith.constant 1.000000e+00 : f32
    %14 = vector.broadcast %cst_8 : f32 to vector<128x128xf32>
    %15 = arith.addf %13, %14 : vector<128x128xf32>
    %16 = tpu.reciprocal %15 {approx = true} : vector<128x128xf32> -> vector<128x128xf32>
    %cst_9 = arith.constant 2.000000e+00 : f32
    %17 = vector.broadcast %cst_9 : f32 to vector<128x128xf32>
    %18 = arith.mulf %17, %16 : vector<128x128xf32>
    %cst_10 = arith.constant 1.000000e+00 : f32
    %19 = vector.broadcast %cst_10 : f32 to vector<128x128xf32>
    %20 = arith.subf %19, %18 : vector<128x128xf32>
    %cst_11 = arith.constant 2.000000e+01 : f32
    %21 = vector.broadcast %cst_11 : f32 to vector<128x128xf32>
    %22 = arith.cmpf ogt, %5, %21 : vector<128x128xf32>
    %cst_12 = arith.constant 1.000000e+00 : f32
    %23 = vector.broadcast %cst_12 : f32 to vector<128x128xf32>
    %24 = arith.select %22, %23, %20 : vector<128x128xi1>, vector<128x128xf32>
    %25 = arith.mulf %5, %24 : vector<128x128xf32>
    %c0_13 = arith.constant 0 : index
    %c0_14 = arith.constant 0 : index
    %26 = vector.load %arg4[%c0_13, %c0_14] : memref<128x1xf32, #tpu.memory_space<vmem>>, vector<128x1xf32>
    %cst_15 = arith.constant 5.000000e-01 : f32
    %27 = vector.broadcast %cst_15 : f32 to vector<128x1xf32>
    %28 = arith.cmpf ogt, %26, %27 : vector<128x1xf32>
    %cst_16 = arith.constant 0.000000e+00 : f32
    %29 = vector.shape_cast %28 : vector<128x1xi1> to vector<128x1xi1>
    %30 = vector.broadcast %29 : vector<128x1xi1> to vector<128x128xi1>
    %31 = vector.broadcast %cst_16 : f32 to vector<128x128xf32>
    %32 = arith.select %30, %25, %31 : vector<128x128xi1>, vector<128x128xf32>
    %33 = arith.truncf %32 : vector<128x128xf32> to vector<128x128xbf16>
    %c0_17 = arith.constant 0 : index
    %c0_18 = arith.constant 0 : index
    %34 = vector.load %arg5[%c0_17, %c0_18] : memref<128x128xbf16, #tpu.memory_space<vmem>>, vector<128x128xbf16>
    tpu.vector_store %arg5[%c0_17, %c0_18], %33 {strides = array<i32>} : memref<128x128xbf16, #tpu.memory_space<vmem>>, vector<128x128xbf16>,
    return
  }
  func.func @transform_0(%arg0: i32) -> (i32, i32) {
    %c0_i32 = arith.constant 0 : i32
    %c0_i32_0 = arith.constant 0 : i32
    return %arg0, %c0_i32 : i32, i32
  }
  func.func @transform_1(%arg0: i32) -> (i32, i32) {
    %c0_i32 = arith.constant 0 : i32
    %c0_i32_0 = arith.constant 0 : i32
    %c0_i32_1 = arith.constant 0 : i32
    return %c0_i32, %c0_i32_0 : i32, i32
  }
  func.func @transform_2(%arg0: i32) -> (i32, i32) {
    %c0_i32 = arith.constant 0 : i32
    %c0_i32_0 = arith.constant 0 : i32
    %c0_i32_1 = arith.constant 0 : i32
    return %c0_i32, %c0_i32_0 : i32, i32
  }
  func.func @transform_3(%arg0: i32) -> (i32, i32) {
    %c0_i32 = arith.constant 0 : i32
    %c0_i32_0 = arith.constant 0 : i32
    return %arg0, %c0_i32 : i32, i32
  }
  func.func @transform_4(%arg0: i32) -> (i32, i32) {
    %c0_i32 = arith.constant 0 : i32
    %c0_i32_0 = arith.constant 0 : i32
    return %arg0, %c0_i32 : i32, i32
  }
}

module attributes {stable_mosaic.version = 11 : i64} {
  func.func @kernel(%arg0: i32, %arg1: memref<232x128xbf16, #tpu.memory_space<vmem>>, %arg2: memref<128x256xbf16, #tpu.memory_space<vmem>>, %arg3: memref<1x256xf32, #tpu.memory_space<vmem>>, %arg4: memref<232x1xf32, #tpu.memory_space<vmem>>, %arg5: memref<232x128xbf16, #tpu.memory_space<vmem>>, %arg6: memref<232x128xbf16, #tpu.memory_space<vmem>>) attributes {dimension_semantics = [#tpu.dimension_semantics<parallel>], iteration_bounds = array<i64: 1>, scalar_prefetch = 0 : i64, scratch_operands = 0 : i64, tpu.core_type = #tpu.core_type<tc>, window_params = [{transform_indices = @transform_0, window_bounds = array<i64: 232, 128>}, {pipeline_mode = #tpu.pipeline_mode<synchronous>, transform_indices = @transform_1, window_bounds = array<i64: 128, 256>}, {pipeline_mode = #tpu.pipeline_mode<synchronous>, transform_indices = @transform_2, window_bounds = array<i64: 1, 256>}, {transform_indices = @transform_3, window_bounds = array<i64: 232, 1>}, {transform_indices = @transform_4, window_bounds = array<i64: 232, 128>}, {transform_indices = @transform_5, window_bounds = array<i64: 232, 128>}]} {
    %c0 = arith.constant 0 : index
    %c0_0 = arith.constant 0 : index
    %0 = vector.load %arg1[%c0, %c0_0] : memref<232x128xbf16, #tpu.memory_space<vmem>>, vector<232x128xbf16>
    %c0_1 = arith.constant 0 : index
    %c0_2 = arith.constant 0 : index
    %1 = vector.load %arg2[%c0_1, %c0_2] : memref<128x256xbf16, #tpu.memory_space<vmem>>, vector<128x256xbf16>
    %cst = arith.constant dense<0.000000e+00> : vector<232x256xf32>
    %2 = tpu.matmul %0, %1, %cst {dimension_numbers = #tpu.dot_dimension_numbers<[1], [0], [0], [1], [0, 0, 1, 1], [], []>} : vector<232x128xbf16>, vector<128x256xbf16>, vector<232x256xf32> -> vector<232x256xf32>
    %c0_3 = arith.constant 0 : index
    %c0_4 = arith.constant 0 : index
    %3 = vector.load %arg3[%c0_3, %c0_4] : memref<1x256xf32, #tpu.memory_space<vmem>>, vector<1x256xf32>
    %4 = vector.broadcast %3 : vector<1x256xf32> to vector<232x256xf32>
    %5 = arith.addf %2, %4 : vector<232x256xf32>
    %cst_5 = arith.constant 2.000000e+01 : f32
    %6 = vector.broadcast %cst_5 : f32 to vector<232x256xf32>
    %7 = arith.minimumf %5, %6 : vector<232x256xf32>
    %8 = math.exp %7 : vector<232x256xf32>
    %cst_6 = arith.constant 1.000000e+00 : f32
    %9 = vector.broadcast %cst_6 : f32 to vector<232x256xf32>
    %10 = arith.addf %9, %8 : vector<232x256xf32>
    %cst_7 = arith.constant 1.000000e+00 : f32
    %11 = vector.broadcast %cst_7 : f32 to vector<232x256xf32>
    %12 = arith.addf %11, %8 : vector<232x256xf32>
    %13 = arith.mulf %10, %12 : vector<232x256xf32>
    %cst_8 = arith.constant 1.000000e+00 : f32
    %14 = vector.broadcast %cst_8 : f32 to vector<232x256xf32>
    %15 = arith.addf %13, %14 : vector<232x256xf32>
    %16 = tpu.reciprocal %15 {approx = true} : vector<232x256xf32> -> vector<232x256xf32>
    %cst_9 = arith.constant 2.000000e+00 : f32
    %17 = vector.broadcast %cst_9 : f32 to vector<232x256xf32>
    %18 = arith.mulf %17, %16 : vector<232x256xf32>
    %cst_10 = arith.constant 1.000000e+00 : f32
    %19 = vector.broadcast %cst_10 : f32 to vector<232x256xf32>
    %20 = arith.subf %19, %18 : vector<232x256xf32>
    %cst_11 = arith.constant 2.000000e+01 : f32
    %21 = vector.broadcast %cst_11 : f32 to vector<232x256xf32>
    %22 = arith.cmpf ogt, %5, %21 : vector<232x256xf32>
    %cst_12 = arith.constant 1.000000e+00 : f32
    %23 = vector.broadcast %cst_12 : f32 to vector<232x256xf32>
    %24 = arith.select %22, %23, %20 : vector<232x256xi1>, vector<232x256xf32>
    %25 = arith.mulf %5, %24 : vector<232x256xf32>
    %c0_13 = arith.constant 0 : index
    %c0_14 = arith.constant 0 : index
    %26 = vector.load %arg4[%c0_13, %c0_14] : memref<232x1xf32, #tpu.memory_space<vmem>>, vector<232x1xf32>
    %cst_15 = arith.constant 5.000000e-01 : f32
    %27 = vector.broadcast %cst_15 : f32 to vector<232x1xf32>
    %28 = arith.cmpf ogt, %26, %27 : vector<232x1xf32>
    %cst_16 = arith.constant 0.000000e+00 : f32
    %29 = vector.shape_cast %28 : vector<232x1xi1> to vector<232x1xi1>
    %30 = vector.broadcast %29 : vector<232x1xi1> to vector<232x256xi1>
    %31 = vector.broadcast %cst_16 : f32 to vector<232x256xf32>
    %32 = arith.select %30, %25, %31 : vector<232x256xi1>, vector<232x256xf32>
    %33 = vector.extract_strided_slice %32 {offsets = [0, 0], sizes = [232, 128], strides = [1, 1]} : vector<232x256xf32> to vector<232x128xf32>
    %34 = arith.truncf %33 : vector<232x128xf32> to vector<232x128xbf16>
    %c0_17 = arith.constant 0 : index
    %c0_18 = arith.constant 0 : index
    %35 = vector.load %arg5[%c0_17, %c0_18] : memref<232x128xbf16, #tpu.memory_space<vmem>>, vector<232x128xbf16>
    tpu.vector_store %arg5[%c0_17, %c0_18], %34 {strides = array<i32>} : memref<232x128xbf16, #tpu.memory_space<vmem>>, vector<232x128xbf16>,
    %36 = vector.extract_strided_slice %32 {offsets = [0, 128], sizes = [232, 128], strides = [1, 1]} : vector<232x256xf32> to vector<232x128xf32>
    %37 = arith.truncf %36 : vector<232x128xf32> to vector<232x128xbf16>
    %c0_19 = arith.constant 0 : index
    %c0_20 = arith.constant 0 : index
    %38 = vector.load %arg6[%c0_19, %c0_20] : memref<232x128xbf16, #tpu.memory_space<vmem>>, vector<232x128xbf16>
    tpu.vector_store %arg6[%c0_19, %c0_20], %37 {strides = array<i32>} : memref<232x128xbf16, #tpu.memory_space<vmem>>, vector<232x128xbf16>,
    return
  }
  func.func @transform_0(%arg0: i32) -> (i32, i32) {
    %c0_i32 = arith.constant 0 : i32
    %c0_i32_0 = arith.constant 0 : i32
    return %arg0, %c0_i32 : i32, i32
  }
  func.func @transform_1(%arg0: i32) -> (i32, i32) {
    %c0_i32 = arith.constant 0 : i32
    %c0_i32_0 = arith.constant 0 : i32
    %c0_i32_1 = arith.constant 0 : i32
    return %c0_i32, %c0_i32_0 : i32, i32
  }
  func.func @transform_2(%arg0: i32) -> (i32, i32) {
    %c0_i32 = arith.constant 0 : i32
    %c0_i32_0 = arith.constant 0 : i32
    %c0_i32_1 = arith.constant 0 : i32
    return %c0_i32, %c0_i32_0 : i32, i32
  }
  func.func @transform_3(%arg0: i32) -> (i32, i32) {
    %c0_i32 = arith.constant 0 : i32
    %c0_i32_0 = arith.constant 0 : i32
    return %arg0, %c0_i32 : i32, i32
  }
  func.func @transform_4(%arg0: i32) -> (i32, i32) {
    %c0_i32 = arith.constant 0 : i32
    %c0_i32_0 = arith.constant 0 : i32
    return %arg0, %c0_i32 : i32, i32
  }
  func.func @transform_5(%arg0: i32) -> (i32, i32) {
    %c0_i32 = arith.constant 0 : i32
    %c0_i32_0 = arith.constant 0 : i32
    return %arg0, %c0_i32 : i32, i32
  }
}

module attributes {stable_mosaic.version = 11 : i64} {
  func.func @kernel(%arg0: i32, %arg1: memref<232x128xbf16, #tpu.memory_space<any>>, %arg2: memref<232x1xf32, #tpu.memory_space<any>>, %arg3: memref<128x128xbf16, #tpu.memory_space<vmem>>, %arg4: memref<1x128xf32, #tpu.memory_space<vmem>>, %arg5: memref<9x128x128xbf16, #tpu.memory_space<vmem>>, %arg6: memref<1x128xf32, #tpu.memory_space<vmem>>, %arg7: memref<232x1xf32, #tpu.memory_space<vmem>>, %arg8: memref<232x128xbf16, #tpu.memory_space<vmem>>, %arg9: memref<232x128xbf16, #tpu.memory_space<vmem>>, %arg10: memref<264x128xbf16, #tpu.memory_space<vmem>>, %arg11: memref<264x1xf32, #tpu.memory_space<vmem>>, %arg12: memref<2x!tpu.dma_semaphore, #tpu.memory_space<semaphore_mem>>) attributes {dimension_semantics = [#tpu.dimension_semantics<parallel>], iteration_bounds = array<i64: 1>, scalar_prefetch = 0 : i64, scratch_operands = 3 : i64, tpu.core_type = #tpu.core_type<tc>, window_params = [{}, {}, {pipeline_mode = #tpu.pipeline_mode<synchronous>, transform_indices = @transform_2, window_bounds = array<i64: 128, 128>}, {pipeline_mode = #tpu.pipeline_mode<synchronous>, transform_indices = @transform_3, window_bounds = array<i64: 1, 128>}, {pipeline_mode = #tpu.pipeline_mode<synchronous>, transform_indices = @transform_4, window_bounds = array<i64: 9, 128, 128>}, {pipeline_mode = #tpu.pipeline_mode<synchronous>, transform_indices = @transform_5, window_bounds = array<i64: 1, 128>}, {transform_indices = @transform_6, window_bounds = array<i64: 232, 1>}, {transform_indices = @transform_7, window_bounds = array<i64: 232, 128>}, {transform_indices = @transform_8, window_bounds = array<i64: 232, 128>}]} {
    %c0_i32 = arith.constant 0 : i32
    %c0_i32_0 = arith.constant 0 : i32
    %c0_i32_1 = arith.constant 0 : i32
    %0 = tpu.memref_slice %arg1[%c0_i32_0, %c0_i32_1] : memref<232x128xbf16, #tpu.memory_space<any>> -> memref<232x128xbf16, #tpu.memory_space<any>>
    %c16_i32 = arith.constant 16 : i32
    %c0_i32_2 = arith.constant 0 : i32
    %1 = tpu.memref_slice %arg10[%c16_i32, %c0_i32_2] : memref<264x128xbf16, #tpu.memory_space<vmem>> -> memref<232x128xbf16, #tpu.memory_space<vmem>>
    %2 = tpu.memref_slice %arg12[%c0_i32] : memref<2x!tpu.dma_semaphore, #tpu.memory_space<semaphore_mem>> -> memref<1x!tpu.dma_semaphore, #tpu.memory_space<semaphore_mem>>
    %3 = tpu.memref_squeeze %2 : memref<1x!tpu.dma_semaphore, #tpu.memory_space<semaphore_mem>> -> memref<!tpu.dma_semaphore, #tpu.memory_space<semaphore_mem>>
    tpu.enqueue_dma source(%0 : memref<232x128xbf16, #tpu.memory_space<any>>) target(%1 : memref<232x128xbf16, #tpu.memory_space<vmem>>) target_semaphore(%3 : memref<!tpu.dma_semaphore, #tpu.memory_space<semaphore_mem>>)
    %c1_i32 = arith.constant 1 : i32
    %c0_i32_3 = arith.constant 0 : i32
    %c0_i32_4 = arith.constant 0 : i32
    %4 = tpu.memref_slice %arg2[%c0_i32_3, %c0_i32_4] : memref<232x1xf32, #tpu.memory_space<any>> -> memref<232x1xf32, #tpu.memory_space<any>>
    %c16_i32_5 = arith.constant 16 : i32
    %c0_i32_6 = arith.constant 0 : i32
    %5 = tpu.memref_slice %arg11[%c16_i32_5, %c0_i32_6] : memref<264x1xf32, #tpu.memory_space<vmem>> -> memref<232x1xf32, #tpu.memory_space<vmem>>
    %6 = tpu.memref_slice %arg12[%c1_i32] : memref<2x!tpu.dma_semaphore, #tpu.memory_space<semaphore_mem>> -> memref<1x!tpu.dma_semaphore, #tpu.memory_space<semaphore_mem>>
    %7 = tpu.memref_squeeze %6 : memref<1x!tpu.dma_semaphore, #tpu.memory_space<semaphore_mem>> -> memref<!tpu.dma_semaphore, #tpu.memory_space<semaphore_mem>>
    tpu.enqueue_dma source(%4 : memref<232x1xf32, #tpu.memory_space<any>>) target(%5 : memref<232x1xf32, #tpu.memory_space<vmem>>) target_semaphore(%7 : memref<!tpu.dma_semaphore, #tpu.memory_space<semaphore_mem>>)
    %c0_i32_7 = arith.constant 0 : i32
    %c0_i32_8 = arith.constant 0 : i32
    %c0_i32_9 = arith.constant 0 : i32
    %8 = tpu.memref_slice %arg1[%c0_i32_8, %c0_i32_9] : memref<232x128xbf16, #tpu.memory_space<any>> -> memref<232x128xbf16, #tpu.memory_space<any>>
    %c16_i32_10 = arith.constant 16 : i32
    %c0_i32_11 = arith.constant 0 : i32
    %9 = tpu.memref_slice %arg10[%c16_i32_10, %c0_i32_11] : memref<264x128xbf16, #tpu.memory_space<vmem>> -> memref<232x128xbf16, #tpu.memory_space<vmem>>
    %10 = tpu.memref_slice %arg12[%c0_i32_7] : memref<2x!tpu.dma_semaphore, #tpu.memory_space<semaphore_mem>> -> memref<1x!tpu.dma_semaphore, #tpu.memory_space<semaphore_mem>>
    %11 = tpu.memref_squeeze %10 : memref<1x!tpu.dma_semaphore, #tpu.memory_space<semaphore_mem>> -> memref<!tpu.dma_semaphore, #tpu.memory_space<semaphore_mem>>
    tpu.wait_dma2 semaphore(%11 : memref<!tpu.dma_semaphore, #tpu.memory_space<semaphore_mem>>) src(%8 : memref<232x128xbf16, #tpu.memory_space<any>>) dst(%9 : memref<232x128xbf16, #tpu.memory_space<vmem>>)
    %c1_i32_12 = arith.constant 1 : i32
    %c0_i32_13 = arith.constant 0 : i32
    %c0_i32_14 = arith.constant 0 : i32
    %12 = tpu.memref_slice %arg2[%c0_i32_13, %c0_i32_14] : memref<232x1xf32, #tpu.memory_space<any>> -> memref<232x1xf32, #tpu.memory_space<any>>
    %c16_i32_15 = arith.constant 16 : i32
    %c0_i32_16 = arith.constant 0 : i32
    %13 = tpu.memref_slice %arg11[%c16_i32_15, %c0_i32_16] : memref<264x1xf32, #tpu.memory_space<vmem>> -> memref<232x1xf32, #tpu.memory_space<vmem>>
    %14 = tpu.memref_slice %arg12[%c1_i32_12] : memref<2x!tpu.dma_semaphore, #tpu.memory_space<semaphore_mem>> -> memref<1x!tpu.dma_semaphore, #tpu.memory_space<semaphore_mem>>
    %15 = tpu.memref_squeeze %14 : memref<1x!tpu.dma_semaphore, #tpu.memory_space<semaphore_mem>> -> memref<!tpu.dma_semaphore, #tpu.memory_space<semaphore_mem>>
    tpu.wait_dma2 semaphore(%15 : memref<!tpu.dma_semaphore, #tpu.memory_space<semaphore_mem>>) src(%12 : memref<232x1xf32, #tpu.memory_space<any>>) dst(%13 : memref<232x1xf32, #tpu.memory_space<vmem>>)
    %c0 = arith.constant 0 : index
    %c0_17 = arith.constant 0 : index
    %16 = vector.load %arg10[%c0, %c0_17] : memref<264x128xbf16, #tpu.memory_space<vmem>>, vector<264x128xbf16>
    %c0_18 = arith.constant 0 : index
    %c0_19 = arith.constant 0 : index
    %17 = vector.load %arg3[%c0_18, %c0_19] : memref<128x128xbf16, #tpu.memory_space<vmem>>, vector<128x128xbf16>
    %cst = arith.constant dense<0.000000e+00> : vector<264x128xf32>
    %18 = tpu.matmul %16, %17, %cst {dimension_numbers = #tpu.dot_dimension_numbers<[1], [0], [0], [1], [0, 0, 1, 1], [], []>} : vector<264x128xbf16>, vector<128x128xbf16>, vector<264x128xf32> -> vector<264x128xf32>
    %c0_20 = arith.constant 0 : index
    %c0_21 = arith.constant 0 : index
    %19 = vector.load %arg11[%c0_20, %c0_21] : memref<264x1xf32, #tpu.memory_space<vmem>>, vector<264x1xf32>
    %cst_22 = arith.constant 5.000000e-01 : f32
    %20 = vector.broadcast %cst_22 : f32 to vector<264x1xf32>
    %21 = arith.cmpf ogt, %19, %20 : vector<264x1xf32>
    %c0_23 = arith.constant 0 : index
    %c0_24 = arith.constant 0 : index
    %22 = vector.load %arg4[%c0_23, %c0_24] : memref<1x128xf32, #tpu.memory_space<vmem>>, vector<1x128xf32>
    %23 = vector.broadcast %22 : vector<1x128xf32> to vector<264x128xf32>
    %24 = arith.addf %18, %23 : vector<264x128xf32>
    %cst_25 = arith.constant 2.000000e+01 : f32
    %25 = vector.broadcast %cst_25 : f32 to vector<264x128xf32>
    %26 = arith.minimumf %24, %25 : vector<264x128xf32>
    %27 = math.exp %26 : vector<264x128xf32>
    %cst_26 = arith.constant 1.000000e+00 : f32
    %28 = vector.broadcast %cst_26 : f32 to vector<264x128xf32>
    %29 = arith.addf %28, %27 : vector<264x128xf32>
    %cst_27 = arith.constant 1.000000e+00 : f32
    %30 = vector.broadcast %cst_27 : f32 to vector<264x128xf32>
    %31 = arith.addf %30, %27 : vector<264x128xf32>
    %32 = arith.mulf %29, %31 : vector<264x128xf32>
    %cst_28 = arith.constant 1.000000e+00 : f32
    %33 = vector.broadcast %cst_28 : f32 to vector<264x128xf32>
    %34 = arith.addf %32, %33 : vector<264x128xf32>
    %35 = tpu.reciprocal %34 {approx = true} : vector<264x128xf32> -> vector<264x128xf32>
    %cst_29 = arith.constant 2.000000e+00 : f32
    %36 = vector.broadcast %cst_29 : f32 to vector<264x128xf32>
    %37 = arith.mulf %36, %35 : vector<264x128xf32>
    %cst_30 = arith.constant 1.000000e+00 : f32
    %38 = vector.broadcast %cst_30 : f32 to vector<264x128xf32>
    %39 = arith.subf %38, %37 : vector<264x128xf32>
    %cst_31 = arith.constant 2.000000e+01 : f32
    %40 = vector.broadcast %cst_31 : f32 to vector<264x128xf32>
    %41 = arith.cmpf ogt, %24, %40 : vector<264x128xf32>
    %cst_32 = arith.constant 1.000000e+00 : f32
    %42 = vector.broadcast %cst_32 : f32 to vector<264x128xf32>
    %43 = arith.select %41, %42, %39 : vector<264x128xi1>, vector<264x128xf32>
    %44 = arith.mulf %24, %43 : vector<264x128xf32>
    %cst_33 = arith.constant 0.000000e+00 : f32
    %45 = vector.shape_cast %21 : vector<264x1xi1> to vector<264x1xi1>
    %46 = vector.broadcast %45 : vector<264x1xi1> to vector<264x128xi1>
    %47 = vector.broadcast %cst_33 : f32 to vector<264x128xf32>
    %48 = arith.select %46, %44, %47 : vector<264x128xi1>, vector<264x128xf32>
    %49 = arith.truncf %48 : vector<264x128xf32> to vector<264x128xbf16>
    %cst_34 = arith.constant 0.000000e+00 : f32
    %50 = vector.broadcast %cst_34 : f32 to vector<232x128xf32>
    %51 = vector.extract_strided_slice %49 {offsets = [5, 0], sizes = [232, 128], strides = [1, 1]} : vector<264x128xbf16> to vector<232x128xbf16>
    %c0_35 = arith.constant 0 : index
    %c0_36 = arith.constant 0 : index
    %c0_37 = arith.constant 0 : index
    %52 = vector.load %arg5[%c0_35, %c0_36, %c0_37] : memref<9x128x128xbf16, #tpu.memory_space<vmem>>, vector<1x128x128xbf16>
    %53 = vector.shape_cast %52 : vector<1x128x128xbf16> to vector<128x128xbf16>
    %cst_38 = arith.constant dense<0.000000e+00> : vector<232x128xf32>
    %54 = tpu.matmul %51, %53, %cst_38 {dimension_numbers = #tpu.dot_dimension_numbers<[1], [0], [0], [1], [0, 0, 1, 1], [], []>} : vector<232x128xbf16>, vector<128x128xbf16>, vector<232x128xf32> -> vector<232x128xf32>
    %55 = arith.addf %50, %54 : vector<232x128xf32>
    %56 = vector.extract_strided_slice %49 {offsets = [6, 0], sizes = [232, 128], strides = [1, 1]} : vector<264x128xbf16> to vector<232x128xbf16>
    %c1 = arith.constant 1 : index
    %c0_39 = arith.constant 0 : index
    %c0_40 = arith.constant 0 : index
    %57 = vector.load %arg5[%c1, %c0_39, %c0_40] : memref<9x128x128xbf16, #tpu.memory_space<vmem>>, vector<1x128x128xbf16>
    %58 = vector.shape_cast %57 : vector<1x128x128xbf16> to vector<128x128xbf16>
    %cst_41 = arith.constant dense<0.000000e+00> : vector<232x128xf32>
    %59 = tpu.matmul %56, %58, %cst_41 {dimension_numbers = #tpu.dot_dimension_numbers<[1], [0], [0], [1], [0, 0, 1, 1], [], []>} : vector<232x128xbf16>, vector<128x128xbf16>, vector<232x128xf32> -> vector<232x128xf32>
    %60 = arith.addf %55, %59 : vector<232x128xf32>
    %61 = vector.extract_strided_slice %49 {offsets = [7, 0], sizes = [232, 128], strides = [1, 1]} : vector<264x128xbf16> to vector<232x128xbf16>
    %c2 = arith.constant 2 : index
    %c0_42 = arith.constant 0 : index
    %c0_43 = arith.constant 0 : index
    %62 = vector.load %arg5[%c2, %c0_42, %c0_43] : memref<9x128x128xbf16, #tpu.memory_space<vmem>>, vector<1x128x128xbf16>
    %63 = vector.shape_cast %62 : vector<1x128x128xbf16> to vector<128x128xbf16>
    %cst_44 = arith.constant dense<0.000000e+00> : vector<232x128xf32>
    %64 = tpu.matmul %61, %63, %cst_44 {dimension_numbers = #tpu.dot_dimension_numbers<[1], [0], [0], [1], [0, 0, 1, 1], [], []>} : vector<232x128xbf16>, vector<128x128xbf16>, vector<232x128xf32> -> vector<232x128xf32>
    %65 = arith.addf %60, %64 : vector<232x128xf32>
    %66 = vector.extract_strided_slice %49 {offsets = [15, 0], sizes = [232, 128], strides = [1, 1]} : vector<264x128xbf16> to vector<232x128xbf16>
    %c3 = arith.constant 3 : index
    %c0_45 = arith.constant 0 : index
    %c0_46 = arith.constant 0 : index
    %67 = vector.load %arg5[%c3, %c0_45, %c0_46] : memref<9x128x128xbf16, #tpu.memory_space<vmem>>, vector<1x128x128xbf16>
    %68 = vector.shape_cast %67 : vector<1x128x128xbf16> to vector<128x128xbf16>
    %cst_47 = arith.constant dense<0.000000e+00> : vector<232x128xf32>
    %69 = tpu.matmul %66, %68, %cst_47 {dimension_numbers = #tpu.dot_dimension_numbers<[1], [0], [0], [1], [0, 0, 1, 1], [], []>} : vector<232x128xbf16>, vector<128x128xbf16>, vector<232x128xf32> -> vector<232x128xf32>
    %70 = arith.addf %65, %69 : vector<232x128xf32>
    %71 = vector.extract_strided_slice %49 {offsets = [16, 0], sizes = [232, 128], strides = [1, 1]} : vector<264x128xbf16> to vector<232x128xbf16>
    %c4 = arith.constant 4 : index
    %c0_48 = arith.constant 0 : index
    %c0_49 = arith.constant 0 : index
    %72 = vector.load %arg5[%c4, %c0_48, %c0_49] : memref<9x128x128xbf16, #tpu.memory_space<vmem>>, vector<1x128x128xbf16>
    %73 = vector.shape_cast %72 : vector<1x128x128xbf16> to vector<128x128xbf16>
    %cst_50 = arith.constant dense<0.000000e+00> : vector<232x128xf32>
    %74 = tpu.matmul %71, %73, %cst_50 {dimension_numbers = #tpu.dot_dimension_numbers<[1], [0], [0], [1], [0, 0, 1, 1], [], []>} : vector<232x128xbf16>, vector<128x128xbf16>, vector<232x128xf32> -> vector<232x128xf32>
    %75 = arith.addf %70, %74 : vector<232x128xf32>
    %76 = vector.extract_strided_slice %49 {offsets = [17, 0], sizes = [232, 128], strides = [1, 1]} : vector<264x128xbf16> to vector<232x128xbf16>
    %c5 = arith.constant 5 : index
    %c0_51 = arith.constant 0 : index
    %c0_52 = arith.constant 0 : index
    %77 = vector.load %arg5[%c5, %c0_51, %c0_52] : memref<9x128x128xbf16, #tpu.memory_space<vmem>>, vector<1x128x128xbf16>
    %78 = vector.shape_cast %77 : vector<1x128x128xbf16> to vector<128x128xbf16>
    %cst_53 = arith.constant dense<0.000000e+00> : vector<232x128xf32>
    %79 = tpu.matmul %76, %78, %cst_53 {dimension_numbers = #tpu.dot_dimension_numbers<[1], [0], [0], [1], [0, 0, 1, 1], [], []>} : vector<232x128xbf16>, vector<128x128xbf16>, vector<232x128xf32> -> vector<232x128xf32>
    %80 = arith.addf %75, %79 : vector<232x128xf32>
    %81 = vector.extract_strided_slice %49 {offsets = [25, 0], sizes = [232, 128], strides = [1, 1]} : vector<264x128xbf16> to vector<232x128xbf16>
    %c6 = arith.constant 6 : index
    %c0_54 = arith.constant 0 : index
    %c0_55 = arith.constant 0 : index
    %82 = vector.load %arg5[%c6, %c0_54, %c0_55] : memref<9x128x128xbf16, #tpu.memory_space<vmem>>, vector<1x128x128xbf16>
    %83 = vector.shape_cast %82 : vector<1x128x128xbf16> to vector<128x128xbf16>
    %cst_56 = arith.constant dense<0.000000e+00> : vector<232x128xf32>
    %84 = tpu.matmul %81, %83, %cst_56 {dimension_numbers = #tpu.dot_dimension_numbers<[1], [0], [0], [1], [0, 0, 1, 1], [], []>} : vector<232x128xbf16>, vector<128x128xbf16>, vector<232x128xf32> -> vector<232x128xf32>
    %85 = arith.addf %80, %84 : vector<232x128xf32>
    %86 = vector.extract_strided_slice %49 {offsets = [26, 0], sizes = [232, 128], strides = [1, 1]} : vector<264x128xbf16> to vector<232x128xbf16>
    %c7 = arith.constant 7 : index
    %c0_57 = arith.constant 0 : index
    %c0_58 = arith.constant 0 : index
    %87 = vector.load %arg5[%c7, %c0_57, %c0_58] : memref<9x128x128xbf16, #tpu.memory_space<vmem>>, vector<1x128x128xbf16>
    %88 = vector.shape_cast %87 : vector<1x128x128xbf16> to vector<128x128xbf16>
    %cst_59 = arith.constant dense<0.000000e+00> : vector<232x128xf32>
    %89 = tpu.matmul %86, %88, %cst_59 {dimension_numbers = #tpu.dot_dimension_numbers<[1], [0], [0], [1], [0, 0, 1, 1], [], []>} : vector<232x128xbf16>, vector<128x128xbf16>, vector<232x128xf32> -> vector<232x128xf32>
    %90 = arith.addf %85, %89 : vector<232x128xf32>
    %91 = vector.extract_strided_slice %49 {offsets = [27, 0], sizes = [232, 128], strides = [1, 1]} : vector<264x128xbf16> to vector<232x128xbf16>
    %c8 = arith.constant 8 : index
    %c0_60 = arith.constant 0 : index
    %c0_61 = arith.constant 0 : index
    %92 = vector.load %arg5[%c8, %c0_60, %c0_61] : memref<9x128x128xbf16, #tpu.memory_space<vmem>>, vector<1x128x128xbf16>
    %93 = vector.shape_cast %92 : vector<1x128x128xbf16> to vector<128x128xbf16>
    %cst_62 = arith.constant dense<0.000000e+00> : vector<232x128xf32>
    %94 = tpu.matmul %91, %93, %cst_62 {dimension_numbers = #tpu.dot_dimension_numbers<[1], [0], [0], [1], [0, 0, 1, 1], [], []>} : vector<232x128xbf16>, vector<128x128xbf16>, vector<232x128xf32> -> vector<232x128xf32>
    %95 = arith.addf %90, %94 : vector<232x128xf32>
    %c0_63 = arith.constant 0 : index
    %c0_64 = arith.constant 0 : index
    %96 = vector.load %arg6[%c0_63, %c0_64] : memref<1x128xf32, #tpu.memory_space<vmem>>, vector<1x128xf32>
    %97 = vector.broadcast %96 : vector<1x128xf32> to vector<232x128xf32>
    %98 = arith.addf %95, %97 : vector<232x128xf32>
    %cst_65 = arith.constant 2.000000e+01 : f32
    %99 = vector.broadcast %cst_65 : f32 to vector<232x128xf32>
    %100 = arith.minimumf %98, %99 : vector<232x128xf32>
    %101 = math.exp %100 : vector<232x128xf32>
    %cst_66 = arith.constant 1.000000e+00 : f32
    %102 = vector.broadcast %cst_66 : f32 to vector<232x128xf32>
    %103 = arith.addf %102, %101 : vector<232x128xf32>
    %cst_67 = arith.constant 1.000000e+00 : f32
    %104 = vector.broadcast %cst_67 : f32 to vector<232x128xf32>
    %105 = arith.addf %104, %101 : vector<232x128xf32>
    %106 = arith.mulf %103, %105 : vector<232x128xf32>
    %cst_68 = arith.constant 1.000000e+00 : f32
    %107 = vector.broadcast %cst_68 : f32 to vector<232x128xf32>
    %108 = arith.addf %106, %107 : vector<232x128xf32>
    %109 = tpu.reciprocal %108 {approx = true} : vector<232x128xf32> -> vector<232x128xf32>
    %cst_69 = arith.constant 2.000000e+00 : f32
    %110 = vector.broadcast %cst_69 : f32 to vector<232x128xf32>
    %111 = arith.mulf %110, %109 : vector<232x128xf32>
    %cst_70 = arith.constant 1.000000e+00 : f32
    %112 = vector.broadcast %cst_70 : f32 to vector<232x128xf32>
    %113 = arith.subf %112, %111 : vector<232x128xf32>
    %cst_71 = arith.constant 2.000000e+01 : f32
    %114 = vector.broadcast %cst_71 : f32 to vector<232x128xf32>
    %115 = arith.cmpf ogt, %98, %114 : vector<232x128xf32>
    %cst_72 = arith.constant 1.000000e+00 : f32
    %116 = vector.broadcast %cst_72 : f32 to vector<232x128xf32>
    %117 = arith.select %115, %116, %113 : vector<232x128xi1>, vector<232x128xf32>
    %118 = arith.mulf %98, %117 : vector<232x128xf32>
    %c0_73 = arith.constant 0 : index
    %c0_74 = arith.constant 0 : index
    %119 = vector.load %arg7[%c0_73, %c0_74] : memref<232x1xf32, #tpu.memory_space<vmem>>, vector<232x1xf32>
    %cst_75 = arith.constant 5.000000e-01 : f32
    %120 = vector.broadcast %cst_75 : f32 to vector<232x1xf32>
    %121 = arith.cmpf ogt, %119, %120 : vector<232x1xf32>
    %cst_76 = arith.constant 0.000000e+00 : f32
    %122 = vector.shape_cast %121 : vector<232x1xi1> to vector<232x1xi1>
    %123 = vector.broadcast %122 : vector<232x1xi1> to vector<232x128xi1>
    %124 = vector.broadcast %cst_76 : f32 to vector<232x128xf32>
    %125 = arith.select %123, %118, %124 : vector<232x128xi1>, vector<232x128xf32>
    %c0_77 = arith.constant 0 : index
    %c0_78 = arith.constant 0 : index
    %126 = vector.load %arg8[%c0_77, %c0_78] : memref<232x128xbf16, #tpu.memory_space<vmem>>, vector<232x128xbf16>
    %127 = arith.extf %126 : vector<232x128xbf16> to vector<232x128xf32>
    %128 = arith.addf %125, %127 : vector<232x128xf32>
    %129 = arith.truncf %128 : vector<232x128xf32> to vector<232x128xbf16>
    %c0_79 = arith.constant 0 : index
    %c0_80 = arith.constant 0 : index
    %130 = vector.load %arg9[%c0_79, %c0_80] : memref<232x128xbf16, #tpu.memory_space<vmem>>, vector<232x128xbf16>
    tpu.vector_store %arg9[%c0_79, %c0_80], %129 {strides = array<i32>} : memref<232x128xbf16, #tpu.memory_space<vmem>>, vector<232x128xbf16>,
    return
  }
  func.func @transform_2(%arg0: i32) -> (i32, i32) {
    %c0_i32 = arith.constant 0 : i32
    %c0_i32_0 = arith.constant 0 : i32
    %c0_i32_1 = arith.constant 0 : i32
    return %c0_i32, %c0_i32_0 : i32, i32
  }
  func.func @transform_3(%arg0: i32) -> (i32, i32) {
    %c0_i32 = arith.constant 0 : i32
    %c0_i32_0 = arith.constant 0 : i32
    %c0_i32_1 = arith.constant 0 : i32
    return %c0_i32, %c0_i32_0 : i32, i32
  }
  func.func @transform_4(%arg0: i32) -> (i32, i32, i32) {
    %c0_i32 = arith.constant 0 : i32
    %c0_i32_0 = arith.constant 0 : i32
    %c0_i32_1 = arith.constant 0 : i32
    %c0_i32_2 = arith.constant 0 : i32
    return %c0_i32, %c0_i32_0, %c0_i32_1 : i32, i32, i32
  }
  func.func @transform_5(%arg0: i32) -> (i32, i32) {
    %c0_i32 = arith.constant 0 : i32
    %c0_i32_0 = arith.constant 0 : i32
    %c0_i32_1 = arith.constant 0 : i32
    return %c0_i32, %c0_i32_0 : i32, i32
  }
  func.func @transform_6(%arg0: i32) -> (i32, i32) {
    %c0_i32 = arith.constant 0 : i32
    %c0_i32_0 = arith.constant 0 : i32
    return %arg0, %c0_i32 : i32, i32
  }
  func.func @transform_7(%arg0: i32) -> (i32, i32) {
    %c0_i32 = arith.constant 0 : i32
    %c0_i32_0 = arith.constant 0 : i32
    return %arg0, %c0_i32 : i32, i32
  }
  func.func @transform_8(%arg0: i32) -> (i32, i32) {
    %c0_i32 = arith.constant 0 : i32
    %c0_i32_0 = arith.constant 0 : i32
    return %arg0, %c0_i32 : i32, i32
  }
}

module attributes {stable_mosaic.version = 11 : i64} {
  func.func @_pw_kernel(%arg0: i32, %arg1: memref<232x128xbf16, #tpu.memory_space<vmem>>, %arg2: memref<128x128xbf16, #tpu.memory_space<vmem>>, %arg3: memref<1x128xf32, #tpu.memory_space<vmem>>, %arg4: memref<232x1xf32, #tpu.memory_space<vmem>>, %arg5: memref<232x128xbf16, #tpu.memory_space<vmem>>) attributes {dimension_semantics = [#tpu.dimension_semantics<parallel>], iteration_bounds = array<i64: 1>, scalar_prefetch = 0 : i64, scratch_operands = 0 : i64, tpu.core_type = #tpu.core_type<tc>, window_params = [{transform_indices = @transform_0, window_bounds = array<i64: 232, 128>}, {pipeline_mode = #tpu.pipeline_mode<synchronous>, transform_indices = @transform_1, window_bounds = array<i64: 128, 128>}, {pipeline_mode = #tpu.pipeline_mode<synchronous>, transform_indices = @transform_2, window_bounds = array<i64: 1, 128>}, {transform_indices = @transform_3, window_bounds = array<i64: 232, 1>}, {transform_indices = @transform_4, window_bounds = array<i64: 232, 128>}]} {
    %c0 = arith.constant 0 : index
    %c0_0 = arith.constant 0 : index
    %0 = vector.load %arg1[%c0, %c0_0] : memref<232x128xbf16, #tpu.memory_space<vmem>>, vector<232x128xbf16>
    %c0_1 = arith.constant 0 : index
    %c0_2 = arith.constant 0 : index
    %1 = vector.load %arg2[%c0_1, %c0_2] : memref<128x128xbf16, #tpu.memory_space<vmem>>, vector<128x128xbf16>
    %cst = arith.constant dense<0.000000e+00> : vector<232x128xf32>
    %2 = tpu.matmul %0, %1, %cst {dimension_numbers = #tpu.dot_dimension_numbers<[1], [0], [0], [1], [0, 0, 1, 1], [], []>} : vector<232x128xbf16>, vector<128x128xbf16>, vector<232x128xf32> -> vector<232x128xf32>
    %c0_3 = arith.constant 0 : index
    %c0_4 = arith.constant 0 : index
    %3 = vector.load %arg3[%c0_3, %c0_4] : memref<1x128xf32, #tpu.memory_space<vmem>>, vector<1x128xf32>
    %4 = vector.broadcast %3 : vector<1x128xf32> to vector<232x128xf32>
    %5 = arith.addf %2, %4 : vector<232x128xf32>
    %cst_5 = arith.constant 2.000000e+01 : f32
    %6 = vector.broadcast %cst_5 : f32 to vector<232x128xf32>
    %7 = arith.minimumf %5, %6 : vector<232x128xf32>
    %8 = math.exp %7 : vector<232x128xf32>
    %cst_6 = arith.constant 1.000000e+00 : f32
    %9 = vector.broadcast %cst_6 : f32 to vector<232x128xf32>
    %10 = arith.addf %9, %8 : vector<232x128xf32>
    %cst_7 = arith.constant 1.000000e+00 : f32
    %11 = vector.broadcast %cst_7 : f32 to vector<232x128xf32>
    %12 = arith.addf %11, %8 : vector<232x128xf32>
    %13 = arith.mulf %10, %12 : vector<232x128xf32>
    %cst_8 = arith.constant 1.000000e+00 : f32
    %14 = vector.broadcast %cst_8 : f32 to vector<232x128xf32>
    %15 = arith.addf %13, %14 : vector<232x128xf32>
    %16 = tpu.reciprocal %15 {approx = true} : vector<232x128xf32> -> vector<232x128xf32>
    %cst_9 = arith.constant 2.000000e+00 : f32
    %17 = vector.broadcast %cst_9 : f32 to vector<232x128xf32>
    %18 = arith.mulf %17, %16 : vector<232x128xf32>
    %cst_10 = arith.constant 1.000000e+00 : f32
    %19 = vector.broadcast %cst_10 : f32 to vector<232x128xf32>
    %20 = arith.subf %19, %18 : vector<232x128xf32>
    %cst_11 = arith.constant 2.000000e+01 : f32
    %21 = vector.broadcast %cst_11 : f32 to vector<232x128xf32>
    %22 = arith.cmpf ogt, %5, %21 : vector<232x128xf32>
    %cst_12 = arith.constant 1.000000e+00 : f32
    %23 = vector.broadcast %cst_12 : f32 to vector<232x128xf32>
    %24 = arith.select %22, %23, %20 : vector<232x128xi1>, vector<232x128xf32>
    %25 = arith.mulf %5, %24 : vector<232x128xf32>
    %c0_13 = arith.constant 0 : index
    %c0_14 = arith.constant 0 : index
    %26 = vector.load %arg4[%c0_13, %c0_14] : memref<232x1xf32, #tpu.memory_space<vmem>>, vector<232x1xf32>
    %cst_15 = arith.constant 5.000000e-01 : f32
    %27 = vector.broadcast %cst_15 : f32 to vector<232x1xf32>
    %28 = arith.cmpf ogt, %26, %27 : vector<232x1xf32>
    %cst_16 = arith.constant 0.000000e+00 : f32
    %29 = vector.shape_cast %28 : vector<232x1xi1> to vector<232x1xi1>
    %30 = vector.broadcast %29 : vector<232x1xi1> to vector<232x128xi1>
    %31 = vector.broadcast %cst_16 : f32 to vector<232x128xf32>
    %32 = arith.select %30, %25, %31 : vector<232x128xi1>, vector<232x128xf32>
    %33 = arith.truncf %32 : vector<232x128xf32> to vector<232x128xbf16>
    %c0_17 = arith.constant 0 : index
    %c0_18 = arith.constant 0 : index
    %34 = vector.load %arg5[%c0_17, %c0_18] : memref<232x128xbf16, #tpu.memory_space<vmem>>, vector<232x128xbf16>
    tpu.vector_store %arg5[%c0_17, %c0_18], %33 {strides = array<i32>} : memref<232x128xbf16, #tpu.memory_space<vmem>>, vector<232x128xbf16>,
    return
  }
  func.func @transform_0(%arg0: i32) -> (i32, i32) {
    %c0_i32 = arith.constant 0 : i32
    %c0_i32_0 = arith.constant 0 : i32
    return %arg0, %c0_i32 : i32, i32
  }
  func.func @transform_1(%arg0: i32) -> (i32, i32) {
    %c0_i32 = arith.constant 0 : i32
    %c0_i32_0 = arith.constant 0 : i32
    %c0_i32_1 = arith.constant 0 : i32
    return %c0_i32, %c0_i32_0 : i32, i32
  }
  func.func @transform_2(%arg0: i32) -> (i32, i32) {
    %c0_i32 = arith.constant 0 : i32
    %c0_i32_0 = arith.constant 0 : i32
    %c0_i32_1 = arith.constant 0 : i32
    return %c0_i32, %c0_i32_0 : i32, i32
  }
  func.func @transform_3(%arg0: i32) -> (i32, i32) {
    %c0_i32 = arith.constant 0 : i32
    %c0_i32_0 = arith.constant 0 : i32
    return %arg0, %c0_i32 : i32, i32
  }
  func.func @transform_4(%arg0: i32) -> (i32, i32) {
    %c0_i32 = arith.constant 0 : i32
    %c0_i32_0 = arith.constant 0 : i32
    return %arg0, %c0_i32 : i32, i32
  }
}

module attributes {stable_mosaic.version = 11 : i64} {
  func.func @_pw2_kernel(%arg0: i32, %arg1: memref<232x128xbf16, #tpu.memory_space<vmem>>, %arg2: memref<232x128xbf16, #tpu.memory_space<vmem>>, %arg3: memref<128x128xbf16, #tpu.memory_space<vmem>>, %arg4: memref<128x128xbf16, #tpu.memory_space<vmem>>, %arg5: memref<1x128xf32, #tpu.memory_space<vmem>>, %arg6: memref<232x1xf32, #tpu.memory_space<vmem>>, %arg7: memref<232x128xbf16, #tpu.memory_space<vmem>>) attributes {dimension_semantics = [#tpu.dimension_semantics<parallel>], iteration_bounds = array<i64: 1>, scalar_prefetch = 0 : i64, scratch_operands = 0 : i64, tpu.core_type = #tpu.core_type<tc>, window_params = [{transform_indices = @transform_0, window_bounds = array<i64: 232, 128>}, {transform_indices = @transform_1, window_bounds = array<i64: 232, 128>}, {pipeline_mode = #tpu.pipeline_mode<synchronous>, transform_indices = @transform_2, window_bounds = array<i64: 128, 128>}, {pipeline_mode = #tpu.pipeline_mode<synchronous>, transform_indices = @transform_3, window_bounds = array<i64: 128, 128>}, {pipeline_mode = #tpu.pipeline_mode<synchronous>, transform_indices = @transform_4, window_bounds = array<i64: 1, 128>}, {transform_indices = @transform_5, window_bounds = array<i64: 232, 1>}, {transform_indices = @transform_6, window_bounds = array<i64: 232, 128>}]} {
    %c0 = arith.constant 0 : index
    %c0_0 = arith.constant 0 : index
    %0 = vector.load %arg1[%c0, %c0_0] : memref<232x128xbf16, #tpu.memory_space<vmem>>, vector<232x128xbf16>
    %c0_1 = arith.constant 0 : index
    %c0_2 = arith.constant 0 : index
    %1 = vector.load %arg3[%c0_1, %c0_2] : memref<128x128xbf16, #tpu.memory_space<vmem>>, vector<128x128xbf16>
    %cst = arith.constant dense<0.000000e+00> : vector<232x128xf32>
    %2 = tpu.matmul %0, %1, %cst {dimension_numbers = #tpu.dot_dimension_numbers<[1], [0], [0], [1], [0, 0, 1, 1], [], []>} : vector<232x128xbf16>, vector<128x128xbf16>, vector<232x128xf32> -> vector<232x128xf32>
    %c0_3 = arith.constant 0 : index
    %c0_4 = arith.constant 0 : index
    %3 = vector.load %arg2[%c0_3, %c0_4] : memref<232x128xbf16, #tpu.memory_space<vmem>>, vector<232x128xbf16>
    %c0_5 = arith.constant 0 : index
    %c0_6 = arith.constant 0 : index
    %4 = vector.load %arg4[%c0_5, %c0_6] : memref<128x128xbf16, #tpu.memory_space<vmem>>, vector<128x128xbf16>
    %cst_7 = arith.constant dense<0.000000e+00> : vector<232x128xf32>
    %5 = tpu.matmul %3, %4, %cst_7 {dimension_numbers = #tpu.dot_dimension_numbers<[1], [0], [0], [1], [0, 0, 1, 1], [], []>} : vector<232x128xbf16>, vector<128x128xbf16>, vector<232x128xf32> -> vector<232x128xf32>
    %6 = arith.addf %2, %5 : vector<232x128xf32>
    %c0_8 = arith.constant 0 : index
    %c0_9 = arith.constant 0 : index
    %7 = vector.load %arg5[%c0_8, %c0_9] : memref<1x128xf32, #tpu.memory_space<vmem>>, vector<1x128xf32>
    %8 = vector.broadcast %7 : vector<1x128xf32> to vector<232x128xf32>
    %9 = arith.addf %6, %8 : vector<232x128xf32>
    %cst_10 = arith.constant 2.000000e+01 : f32
    %10 = vector.broadcast %cst_10 : f32 to vector<232x128xf32>
    %11 = arith.minimumf %9, %10 : vector<232x128xf32>
    %12 = math.exp %11 : vector<232x128xf32>
    %cst_11 = arith.constant 1.000000e+00 : f32
    %13 = vector.broadcast %cst_11 : f32 to vector<232x128xf32>
    %14 = arith.addf %13, %12 : vector<232x128xf32>
    %cst_12 = arith.constant 1.000000e+00 : f32
    %15 = vector.broadcast %cst_12 : f32 to vector<232x128xf32>
    %16 = arith.addf %15, %12 : vector<232x128xf32>
    %17 = arith.mulf %14, %16 : vector<232x128xf32>
    %cst_13 = arith.constant 1.000000e+00 : f32
    %18 = vector.broadcast %cst_13 : f32 to vector<232x128xf32>
    %19 = arith.addf %17, %18 : vector<232x128xf32>
    %20 = tpu.reciprocal %19 {approx = true} : vector<232x128xf32> -> vector<232x128xf32>
    %cst_14 = arith.constant 2.000000e+00 : f32
    %21 = vector.broadcast %cst_14 : f32 to vector<232x128xf32>
    %22 = arith.mulf %21, %20 : vector<232x128xf32>
    %cst_15 = arith.constant 1.000000e+00 : f32
    %23 = vector.broadcast %cst_15 : f32 to vector<232x128xf32>
    %24 = arith.subf %23, %22 : vector<232x128xf32>
    %cst_16 = arith.constant 2.000000e+01 : f32
    %25 = vector.broadcast %cst_16 : f32 to vector<232x128xf32>
    %26 = arith.cmpf ogt, %9, %25 : vector<232x128xf32>
    %cst_17 = arith.constant 1.000000e+00 : f32
    %27 = vector.broadcast %cst_17 : f32 to vector<232x128xf32>
    %28 = arith.select %26, %27, %24 : vector<232x128xi1>, vector<232x128xf32>
    %29 = arith.mulf %9, %28 : vector<232x128xf32>
    %c0_18 = arith.constant 0 : index
    %c0_19 = arith.constant 0 : index
    %30 = vector.load %arg6[%c0_18, %c0_19] : memref<232x1xf32, #tpu.memory_space<vmem>>, vector<232x1xf32>
    %cst_20 = arith.constant 5.000000e-01 : f32
    %31 = vector.broadcast %cst_20 : f32 to vector<232x1xf32>
    %32 = arith.cmpf ogt, %30, %31 : vector<232x1xf32>
    %cst_21 = arith.constant 0.000000e+00 : f32
    %33 = vector.shape_cast %32 : vector<232x1xi1> to vector<232x1xi1>
    %34 = vector.broadcast %33 : vector<232x1xi1> to vector<232x128xi1>
    %35 = vector.broadcast %cst_21 : f32 to vector<232x128xf32>
    %36 = arith.select %34, %29, %35 : vector<232x128xi1>, vector<232x128xf32>
    %37 = arith.truncf %36 : vector<232x128xf32> to vector<232x128xbf16>
    %c0_22 = arith.constant 0 : index
    %c0_23 = arith.constant 0 : index
    %38 = vector.load %arg7[%c0_22, %c0_23] : memref<232x128xbf16, #tpu.memory_space<vmem>>, vector<232x128xbf16>
    tpu.vector_store %arg7[%c0_22, %c0_23], %37 {strides = array<i32>} : memref<232x128xbf16, #tpu.memory_space<vmem>>, vector<232x128xbf16>,
    return
  }
  func.func @transform_0(%arg0: i32) -> (i32, i32) {
    %c0_i32 = arith.constant 0 : i32
    %c0_i32_0 = arith.constant 0 : i32
    return %arg0, %c0_i32 : i32, i32
  }
  func.func @transform_1(%arg0: i32) -> (i32, i32) {
    %c0_i32 = arith.constant 0 : i32
    %c0_i32_0 = arith.constant 0 : i32
    return %arg0, %c0_i32 : i32, i32
  }
  func.func @transform_2(%arg0: i32) -> (i32, i32) {
    %c0_i32 = arith.constant 0 : i32
    %c0_i32_0 = arith.constant 0 : i32
    %c0_i32_1 = arith.constant 0 : i32
    return %c0_i32, %c0_i32_0 : i32, i32
  }
  func.func @transform_3(%arg0: i32) -> (i32, i32) {
    %c0_i32 = arith.constant 0 : i32
    %c0_i32_0 = arith.constant 0 : i32
    %c0_i32_1 = arith.constant 0 : i32
    return %c0_i32, %c0_i32_0 : i32, i32
  }
  func.func @transform_4(%arg0: i32) -> (i32, i32) {
    %c0_i32 = arith.constant 0 : i32
    %c0_i32_0 = arith.constant 0 : i32
    %c0_i32_1 = arith.constant 0 : i32
    return %c0_i32, %c0_i32_0 : i32, i32
  }
  func.func @transform_5(%arg0: i32) -> (i32, i32) {
    %c0_i32 = arith.constant 0 : i32
    %c0_i32_0 = arith.constant 0 : i32
    return %arg0, %c0_i32 : i32, i32
  }
  func.func @transform_6(%arg0: i32) -> (i32, i32) {
    %c0_i32 = arith.constant 0 : i32
    %c0_i32_0 = arith.constant 0 : i32
    return %arg0, %c0_i32 : i32, i32
  }
}

</mosaic_0001>

<bundles_post_ra>
// kernel: _lambda_.6
= control target key start
LH: loop header
LB: loop body
LE: loop exit
PB: predicated region body
PF: predicated region fallthrough
CT: control target
= control target key end

     0   :  { %vm126_vm0 = vcmask 1041408   ;;  %vm101_vm1 = vcmask 293888   ;;  %v849_v2 = vmov 0   ;;  %s1191_s1 = inlined_call_operand.vmem [shape: bf16[36,128], index: 1, kind: input, shape index: {}]   ;;  %s1192_s0 = inlined_call_operand.vmem [shape: bf16[128,36], index: 0, kind: input, shape index: {}]   ;;  %s1193_s3 = inlined_call_operand.vmem [shape: f32[128,1], index: 3, kind: input, shape index: {}]   ;;  %s1194_s2 = inlined_call_operand.vmem [shape: f32[1,128], index: 2, kind: input, shape index: {}]   ;;  %s1195_s4 = inlined_call_operand.vmem [shape: bf16[128,128], index: 4, kind: output, shape index: {}]  }
   0x1   :  { %v774_v0 = vld [vmem:[%s1191_s1 + $0x10] ss:$0 sps:$4 sm:$0x33]   ;;  %v775_v1 = vld [vmem:[%s1191_s1 + $0x8] sm:$0xff]   ;;  %773 = vset.pattern.permute.xlu1 %v849_v2  ;;  %772 = vset.pattern.permute.xlu0 %v849_v2  ;;  %v776_v4 = vld [vmem:[%s1191_s1] sm:$0xff]  }
   0x2   :  { %769 = vmatprep.subr.msk.bf16.mxu0 %vm126_vm0, %v774_v0  ;;  %770 = vmatprep.subr.msk.bf16.mxu1 %vm126_vm0, %v774_v0  ;;  %v128_v3 = vsel %vm126_vm0, %v774_v0, 0  ;;  %v777_v5 = vld [vmem:[%s1192_s0] sm:$0xff]   ;;  %v779_v7 = vld [vmem:[%s1192_s0 + $0x8] sm:$0xff]   ;;  %v781_v9 = vld [vmem:[%s1192_s0 + $0x10] sm:$0xff]  }
   0x3   :  { %742 = vmatpush3.bf16.msra.mxu0 %v128_v3  ;;  %766 = vmatpush3.bf16.msra.mxu1 %v128_v3  ;;  %v778_v6 = vld [vmem:[%s1192_s0 + $0x20] sm:$0xff]   ;;  %v780_v8 = vld [vmem:[%s1192_s0 + $0x28] sm:$0xff]   ;;  %v782_v10 = vld [vmem:[%s1192_s0 + $0x30] sm:$0xff]  }
   0x4   :  { %743 = vmatprep.subr.bf16.mxu0 %v775_v1  ;;  %764 = vmatprep.subr.bf16.mxu1 %v775_v1  ;;  %v421_v11 = vld [vmem:[%s1193_s3 + $0x10] sm:$0xff]  ;;  %v419_v12 = vld [vmem:[%s1193_s3] sm:$0xff]  ;;  %v422_v13 = vld [vmem:[%s1193_s3 + $0x18] sm:$0xff] }
   0x5   :  { %747 = vmatprep.mubr.msk.bf16.mxu0 %vm101_vm1, %v777_v5  ;;  %755 = vmatprep.mubr.msk.bf16.mxu1 %vm101_vm1, %v778_v6  ;;  %vm437_vm2 = vcmp.gt.f32.partialorder %v421_v11, 0.5  ;;  %v420_v14 = vld [vmem:[%s1193_s3 + $0x8] sm:$0xff]  ;;  %vm435_vm3 = vcmp.gt.f32.partialorder %v419_v12, 0.5  ;;  %vm438_vm4 = vcmp.gt.f32.partialorder %v422_v13, 0.5  ;;  %v423_v19 = vld [vmem:[%s1193_s3 + $0x20] sm:$0xff]  ;;  %v426_v20 = vld [vmem:[%s1193_s3 + $0x38] sm:$0xff] }
   0x6   :  { %v453_v15 = vsel %vm437_vm2, 1, %v849_v2  ;;  %v424_v16 = vld [vmem:[%s1193_s3 + $0x28] sm:$0xff]  ;;  %v451_v17 = vsel %vm435_vm3, 1, %v849_v2  ;;  %v454_v18 = vsel %vm438_vm4, 1, %v849_v2  ;;  %vm436_vm5 = vcmp.gt.f32.partialorder %v420_v14, 0.5  ;;  %v783_v22 = vld [vmem:[%s1192_s0 + $0x18] sm:$0xff]  }
   0x7   :  { %744 = vmatpush3.bf16.msra.mxu0 %v775_v1  ;;  %767 = vmatpush3.bf16.msra.mxu1 %v775_v1  ;;  %vm440_vm6 = vcmp.gt.f32.partialorder %v424_v16, 0.5  ;;  %v452_v21 = vsel %vm436_vm5, 1, %v849_v2  ;;  %v784_v23 = vld [vmem:[%s1192_s0 + $0x38] sm:$0xff]   ;;  %vm439_vm7 = vcmp.gt.f32.partialorder %v423_v19, 0.5  ;;  %vm442_vm8 = vcmp.gt.f32.partialorder %v426_v20, 0.5  ;;  %v425_v25 = vld [vmem:[%s1193_s3 + $0x30] sm:$0xff] }
   0x8   :  { %745 = vmatprep.subr.bf16.mxu0 %v776_v4  ;;  %765 = vmatprep.subr.bf16.mxu1 %v776_v4  ;;  %v456_v24 = vsel %vm440_vm6, 1, %v849_v2  ;;  %v428_v26 = vld [vmem:[%s1193_s3 + $0x48] sm:$0xff]  ;;  %v455_v27 = vsel %vm439_vm7, 1, %v849_v2  ;;  %v458_v28 = vsel %vm442_vm8, 1, %v849_v2  ;;  %vm441_vm9 = vcmp.gt.f32.partialorder %v425_v25, 0.5  ;;  %v427_v29 = vld [vmem:[%s1193_s3 + $0x40] sm:$0xff] }
   0x9   :  { %474 = vperm.xlu1 %773, %v453_v15   ;;  %468 = vperm.xlu0 %772, %v451_v17   ;;  %vm444_vm10 = vcmp.gt.f32.partialorder %v428_v26, 0.5  ;;  %v430_v30 = vld [vmem:[%s1193_s3 + $0x58] sm:$0xff]  ;;  %v457_v31 = vsel %vm441_vm9, 1, %v849_v2  ;;  %vm443_vm11 = vcmp.gt.f32.partialorder %v427_v29, 0.5  ;;  %v429_v33 = vld [vmem:[%s1193_s3 + $0x50] sm:$0xff]  ;;  %v432_v34 = vld [vmem:[%s1193_s3 + $0x68] sm:$0xff] }
   0xa   :  { %v460_v32 = vsel %vm444_vm10, 1, %v849_v2  ;;  %vm446_vm12 = vcmp.gt.f32.partialorder %v430_v30, 0.5  ;;  %v459_v35 = vsel %vm443_vm11, 1, %v849_v2  ;;  %vm445_vm13 = vcmp.gt.f32.partialorder %v429_v33, 0.5  ;;  %v431_v37 = vld [vmem:[%s1193_s3 + $0x60] sm:$0xff]  ;;  %v434_v38 = vld [vmem:[%s1193_s3 + $0x78] sm:$0xff] }
   0xb   :  { %746 = vmatpush3.bf16.msra.mxu0 %v776_v4  ;;  %768 = vmatpush3.bf16.msra.mxu1 %v776_v4  ;;  %v462_v36 = vsel %vm446_vm12, 1, %v849_v2  ;;  %vm448_vm14 = vcmp.gt.f32.partialorder %v432_v34, 0.5  ;;  %v461_v39 = vsel %vm445_vm13, 1, %v849_v2  ;;  %vm447_vm15 = vcmp.gt.f32.partialorder %v431_v37, 0.5  ;;  %v433_v41 = vld [vmem:[%s1193_s3 + $0x70] sm:$0xff] }
   0xc   :  { %v464_v40 = vsel %vm448_vm14, 1, %v849_v2  ;;  %vm450_vm0 = vcmp.gt.f32.partialorder %v434_v38, 0.5  ;;  %v463_v42 = vsel %vm447_vm15, 1, %v849_v2  ;;  %v985_v45 = vld [vmem:[%s1194_s2] ss:$0 sm:$0xff] }
   0xd   :  { %477 = vperm.xlu1 %773, %v454_v18   ;;  %471 = vperm.xlu0 %772, %v452_v21   ;;  %v466_v43 = vsel %vm450_vm0, 1, %v849_v2 }
   0xe   :  { %748 = vmatmul.mubr.msk.bf16.vlgmr.msra.gmra.mxu0 %vm101_vm1, %v779_v7  ;;  %756 = vmatmul.mubr.msk.bf16.vlgmr.msra.gmra.mxu1 %vm101_vm1, %v780_v8 }
   0xf   :  { %751 = vmatprep.mubr.msk.bf16.mxu0 %vm101_vm1, %v781_v9  ;;  %759 = vmatprep.mubr.msk.bf16.mxu1 %vm101_vm1, %v782_v10 }
  0x11   :  { %483 = vperm.xlu1 %773, %v456_v24   ;;  %480 = vperm.xlu0 %772, %v455_v27  }
  0x15   :  { %489 = vperm.xlu1 %773, %v458_v28   ;;  %486 = vperm.xlu0 %772, %v457_v31  }
  0x16   :  { %752 = vmatmul.mubr.msk.bf16.gmra.mxu0 %vm101_vm1, %v783_v22  ;;  %760 = vmatmul.mubr.msk.bf16.gmra.mxu1 %vm101_vm1, %v784_v23  ;;  %vm449_vm1 = vcmp.gt.f32.partialorder %v433_v41, 0.5 }
  0x17   :  { %v465_v44 = vsel %vm449_vm1, 1, %v849_v2 }
  0x19   :  { %495 = vperm.xlu1 %773, %v460_v32   ;;  %492 = vperm.xlu0 %772, %v459_v35  }
  0x1d   :  { %501 = vperm.xlu1 %773, %v462_v36   ;;  %498 = vperm.xlu0 %772, %v461_v39  }
  0x21   :  { %507 = vperm.xlu1 %773, %v464_v40   ;;  %504 = vperm.xlu0 %772, %v463_v42  }
  0x25   :  { %513 = vperm.xlu1 %773, %v466_v43   ;;  %510 = vperm.xlu0 %772, %v465_v44  }
  0x84   :  { %v1023_v16 = vpop.permute.xlu0 %468  ;;  %v1038_v30 = vpop.permute.xlu1 %474 }
  0x85   :  { %vm517_vm4 = vcmp.eq.s32.totalorder %v1038_v30, 1  ;;  %vm515_vm8 = vcmp.eq.s32.totalorder %v1023_v16, 1 }
  0x88   :  { %v1048_v37 = vpop.permute.xlu0 %471 }
  0x89   :  { %vm516_vm15 = vcmp.eq.s32.totalorder %v1048_v37, 1 }
  0xce   :  { %v749_v46 = vpop.f32.mrf.mxu0  ;;  %v757_v47 = vpop.f32.mrf.mxu1 }
  0xcf   :  { %v988_v48 = vadd.f32 %v749_v46, %v985_v45  ;;  %v991_v49 = vadd.f32 %v757_v47, %v985_v45 }
  0xd0   :  { %v164_v50 = vpop.f32.mrf.mxu0  ;;  %v196_v51 = vpop.f32.mrf.mxu1 }
  0xd1   :  { %v229_v52 = vmin.f32 %v988_v48, 20.0  ;;  %v237_v53 = vmin.f32 %v991_v49, 20.0  ;;  %v996_v54 = vadd.f32 %v985_v45, %v164_v50  ;;  %v999_v55 = vadd.f32 %v985_v45, %v196_v51 }
  0xd2   :  { %v750_v56 = vpop.f32.mrf.mxu0  ;;  %v758_v57 = vpop.f32.mrf.mxu1  ;;  %vm373_vm2 = vcmp.gt.f32.partialorder %v988_v48, 20.0  ;;  %vm381_vm3 = vcmp.gt.f32.partialorder %v991_v49, 20.0 }
  0xd3   :  { %v247_v58 = vmul.f32 1.442695, %v229_v52  ;;  %v263_v59 = vmul.f32 1.442695, %v237_v53  ;;  %v1002_v60 = vadd.f32 %v750_v56, %v985_v45  ;;  %v1005_v61 = vadd.f32 %v758_v57, %v985_v45  ;;  %v1056_v52 = vpop.permute.xlu1 %477 }
  0xd4   :  { %v227_v62 = vmin.f32 %v996_v54, 20.0  ;;  %v235_v63 = vmin.f32 %v999_v55, 20.0  ;;  %v167_v0 = vpop.f32.mrf.mxu0  ;;  %v199_v1 = vpop.f32.mrf.mxu1  ;;  %vm371_vm5 = vcmp.gt.f32.partialorder %v996_v54, 20.0  ;;  %vm379_vm7 = vcmp.gt.f32.partialorder %v999_v55, 20.0 }
  0xd5   :  { %785 = vpow2.f32 %v247_v58  ;;  %v230_v2 = vmin.f32 %v1002_v60, 20.0  ;;  %v238_v3 = vmin.f32 %v1005_v61, 20.0  ;;  %v1012_v10 = vadd.f32 %v985_v45, %v167_v0 }
  0xd6   :  { %787 = vpow2.f32 %v263_v59  ;;  %v243_v4 = vmul.f32 1.442695, %v227_v62  ;;  %v259_v5 = vmul.f32 1.442695, %v235_v63  ;;  %v753_v6 = vpop.f32.mrf.mxu0  ;;  %v761_v7 = vpop.f32.mrf.mxu1  ;;  %v1015_v11 = vadd.f32 %v985_v45, %v199_v1 }
  0xd7   :  { %v249_v8 = vmul.f32 1.442695, %v230_v2  ;;  %v265_v9 = vmul.f32 1.442695, %v238_v3  ;;  %v1018_v12 = vadd.f32 %v753_v6, %v985_v45  ;;  %v1021_v13 = vadd.f32 %v761_v7, %v985_v45  ;;  %v1059_v62 = vpop.permute.xlu0 %480 }
  0xd8   :  { %789 = vpow2.f32 %v243_v4  ;;  %v180_v14 = vpop.f32.mrf.mxu0  ;;  %v212_v15 = vpop.f32.mrf.mxu1  ;;  %v228_v17 = vmin.f32 %v1012_v10, 20.0  ;;  %v236_v18 = vmin.f32 %v1015_v11, 20.0  ;;  %vm374_vm10 = vcmp.gt.f32.partialorder %v1002_v60, 20.0 }
  0xd9   :  { %791 = vpow2.f32 %v259_v5  ;;  %v233_v19 = vmin.f32 %v1018_v12, 20.0  ;;  %v241_v24 = vmin.f32 %v1021_v13, 20.0  ;;  %v1030_v26 = vadd.f32 %v985_v45, %v180_v14 }
  0xda   :  { %793 = vpow2.f32 %v249_v8  ;;  %v754_v20 = vpop.f32.mrf.mxu0  ;;  %v762_v21 = vpop.f32.mrf.mxu1  ;;  %v245_v22 = vmul.f32 1.442695, %v228_v17  ;;  %v261_v23 = vmul.f32 1.442695, %v236_v18  ;;  %v1033_v27 = vadd.f32 %v985_v45, %v212_v15 }
  0xdb   :  { %795 = vpow2.f32 %v265_v9  ;;  %v255_v25 = vmul.f32 1.442695, %v233_v19  ;;  %v1036_v28 = vadd.f32 %v754_v20, %v985_v45  ;;  %v271_v31 = vmul.f32 1.442695, %v241_v24  ;;  %v1061_v15 = vpop.permute.xlu1 %483  ;;  %v1063_v24 = vpop.permute.xlu0 %486 }
  0xdc   :  { %v183_v29 = vpop.f32.mrf.mxu0  ;;  %797 = vpow2.f32 %v245_v22  ;;  %v1041_v32 = vadd.f32 %v762_v21, %v985_v45  ;;  %v231_v34 = vmin.f32 %v1030_v26, 20.0  ;;  %v239_v35 = vmin.f32 %v1033_v27, 20.0  ;;  %v215_v36 = vpop.f32.mrf.mxu1 }
  0xdd   :  { %v1044_v33 = vadd.f32 %v985_v45, %v183_v29  ;;  %799 = vpow2.f32 %v261_v23  ;;  %v234_v38 = vmin.f32 %v1036_v28, 20.0  ;;  %v1054_v44 = vadd.f32 %v985_v45, %v215_v36 }
  0xde   :  { %801 = vpow2.f32 %v255_v25  ;;  %v251_v39 = vmul.f32 1.442695, %v231_v34  ;;  %v267_v40 = vmul.f32 1.442695, %v239_v35  ;;  %v242_v41 = vmin.f32 %v1041_v32, 20.0 }
  0xdf   :  { %803 = vpow2.f32 %v271_v31  ;;  %v257_v42 = vmul.f32 1.442695, %v234_v38  ;;  %v232_v43 = vmin.f32 %v1044_v33, 20.0  ;;  %v240_v56 = vmin.f32 %v1054_v44, 20.0 }
  0xe0   :  { %805 = vpow2.f32 %v251_v39  ;;  %v273_v47 = vmul.f32 1.442695, %v242_v41  ;;  %vm518_vm11 = vcmp.eq.s32.totalorder %v1056_v52, 1  ;;  %vm382_vm12 = vcmp.gt.f32.partialorder %v1005_v61, 20.0 }
  0xe1   :  { %807 = vpow2.f32 %v267_v40  ;;  %v253_v53 = vmul.f32 1.442695, %v232_v43  ;;  %v269_v45 = vmul.f32 1.442695, %v240_v56  ;;  %vm372_vm14 = vcmp.gt.f32.partialorder %v1012_v10, 20.0 }
  0xe2   :  { %v786_v46 = vpop.eup %785  ;;  %809 = vpow2.f32 %v257_v42  ;;  %vm380_vm0 = vcmp.gt.f32.partialorder %v1015_v11, 20.0  ;;  %vm377_vm1 = vcmp.gt.f32.partialorder %v1018_v12, 20.0 }
  0xe3   :  { %v788_v50 = vpop.eup %787  ;;  %v277_v51 = vadd.f32 1.0, %v786_v46  ;;  %811 = vpow2.f32 %v273_v47  ;;  %v1065_v46 = vpop.permute.xlu1 %489 }
  0xe4   :  { %v285_v57 = vadd.f32 1.0, %v788_v50  ;;  %813 = vpow2.f32 %v253_v53 }
  0xe5   :  { %v790_v58 = vpop.eup %789  ;;  %v293_v59 = vmul.f32 %v277_v51, %v277_v51  ;;  %815 = vpow2.f32 %v269_v45 }
  0xe6   :  { %v792_v63 = vpop.eup %791  ;;  %v301_v0 = vmul.f32 %v285_v57, %v285_v57  ;;  %v275_v1 = vadd.f32 1.0, %v790_v58 }
  0xe7   :  { %v794_v2 = vpop.eup %793  ;;  %v309_v3 = vadd.f32 1.0, %v293_v59  ;;  %v283_v4 = vadd.f32 1.0, %v792_v63  ;;  %v1067_v59 = vpop.permute.xlu0 %492 }
  0xe8   :  { %v796_v5 = vpop.eup %795  ;;  %v317_v6 = vadd.f32 1.0, %v301_v0  ;;  %v291_v7 = vmul.f32 %v275_v1, %v275_v1  ;;  %v278_v8 = vadd.f32 1.0, %v794_v2  ;;  %vm523_vm9 = vcmp.eq.s32.totalorder %v1067_v59, 1 }
  0xe9   :  { %v299_v9 = vmul.f32 %v283_v4, %v283_v4  ;;  %817 = vrcp.f32 %v309_v3  ;;  %v286_v14 = vadd.f32 1.0, %v796_v5  ;;  %v798_v17 = vpop.eup %797 }
  0xea   :  { %v307_v18 = vadd.f32 1.0, %v291_v7  ;;  %v294_v19 = vmul.f32 %v278_v8, %v278_v8  ;;  %819 = vrcp.f32 %v317_v6  ;;  %v800_v20 = vpop.eup %799  ;;  %v276_v23 = vadd.f32 1.0, %v798_v17 }
  0xeb   :  { %v315_v21 = vadd.f32 1.0, %v299_v9  ;;  %v302_v22 = vmul.f32 %v286_v14, %v286_v14  ;;  %v802_v25 = vpop.eup %801  ;;  %v284_v31 = vadd.f32 1.0, %v800_v20 }
  0xec   :  { %821 = vrcp.f32 %v307_v18  ;;  %v310_v29 = vadd.f32 1.0, %v294_v19  ;;  %v804_v34 = vpop.eup %803  ;;  %v292_v36 = vmul.f32 %v276_v23, %v276_v23  ;;  %v281_v38 = vadd.f32 1.0, %v802_v25  ;;  %v1070_v18 = vpop.permute.xlu1 %495 }
  0xed   :  { %v318_v35 = vadd.f32 1.0, %v302_v22  ;;  %823 = vrcp.f32 %v315_v21  ;;  %v300_v39 = vmul.f32 %v284_v31, %v284_v31  ;;  %v289_v40 = vadd.f32 1.0, %v804_v34  ;;  %v806_v41 = vpop.eup %805 }
  0xee   :  { %825 = vrcp.f32 %v310_v29  ;;  %v308_v42 = vadd.f32 1.0, %v292_v36  ;;  %v297_v43 = vmul.f32 %v281_v38, %v281_v38  ;;  %v808_v47 = vpop.eup %807  ;;  %v279_v53 = vadd.f32 1.0, %v806_v41  ;;  %v499_v29 = vpop.permute.xlu0 %498 }
  0xef   :  { %827 = vrcp.f32 %v318_v35  ;;  %v316_v50 = vadd.f32 1.0, %v300_v39  ;;  %v305_v51 = vmul.f32 %v289_v40, %v289_v40  ;;  %v810_v56 = vpop.eup %809  ;;  %v287_v58 = vadd.f32 1.0, %v808_v47 }
  0xf0   :  { %829 = vrcp.f32 %v308_v42  ;;  %v313_v57 = vadd.f32 1.0, %v297_v43  ;;  %v812_v45 = vpop.eup %811  ;;  %v295_v63 = vmul.f32 %v279_v53, %v279_v53  ;;  %v282_v0 = vadd.f32 1.0, %v810_v56 }
  0xf1   :  { %831 = vrcp.f32 %v316_v50  ;;  %v321_v1 = vadd.f32 1.0, %v305_v51  ;;  %v814_v2 = vpop.eup %813  ;;  %v303_v3 = vmul.f32 %v287_v58, %v287_v58  ;;  %v290_v4 = vadd.f32 1.0, %v812_v45  ;;  %v502_v51 = vpop.permute.xlu1 %501 }
  0xf2   :  { %833 = vrcp.f32 %v313_v57  ;;  %v816_v5 = vpop.eup %815  ;;  %v311_v6 = vadd.f32 1.0, %v295_v63  ;;  %v298_v7 = vmul.f32 %v282_v0, %v282_v0  ;;  %v280_v8 = vadd.f32 1.0, %v814_v2 }
  0xf3   :  { %v319_v9 = vadd.f32 1.0, %v303_v3  ;;  %v306_v14 = vmul.f32 %v290_v4, %v290_v4  ;;  %v288_v17 = vadd.f32 1.0, %v816_v5  ;;  %835 = vrcp.f32 %v321_v1 }
  0xf4   :  { %837 = vrcp.f32 %v311_v6  ;;  %v314_v20 = vadd.f32 1.0, %v298_v7  ;;  %v296_v21 = vmul.f32 %v280_v8, %v280_v8  ;;  %vm525_vm6 = vcmp.eq.s32.totalorder %v499_v29, 1 }
  0xf5   :  { %v304_v25 = vmul.f32 %v288_v17, %v288_v17  ;;  %839 = vrcp.f32 %v319_v9  ;;  %v322_v31 = vadd.f32 1.0, %v306_v14  ;;  %vm526_vm13 = vcmp.eq.s32.totalorder %v502_v51, 1  ;;  %v505_v51 = vpop.permute.xlu0 %504 }
  0xf6   :  { %v818_v19 = vpop.eup %817  ;;  %v312_v34 = vadd.f32 1.0, %v296_v21  ;;  %841 = vrcp.f32 %v314_v20 }
  0xf7   :  { %v820_v22 = vpop.eup %819  ;;  %v341_v23 = vmul.f32 2.0, %v818_v19  ;;  %v320_v39 = vadd.f32 1.0, %v304_v25  ;;  %843 = vrcp.f32 %v322_v31 }
  0xf8   :  { %v349_v35 = vmul.f32 2.0, %v820_v22  ;;  %845 = vrcp.f32 %v312_v34 }
  0xf9   :  { %v822_v36 = vpop.eup %821  ;;  %v357_v38 = vsub.f32 1.0, %v341_v23  ;;  %847 = vrcp.f32 %v320_v39 }
  0xfa   :  { %v824_v40 = vpop.eup %823  ;;  %v339_v41 = vmul.f32 2.0, %v822_v36  ;;  %v365_v42 = vsub.f32 1.0, %v349_v35 }
  0xfb   :  { %v826_v43 = vpop.eup %825  ;;  %v389_v47 = vsel %vm373_vm2, 1.0, %v357_v38  ;;  %v347_v50 = vmul.f32 2.0, %v824_v40  ;;  %vm524_vm2 = vcmp.eq.s32.totalorder %v1070_v18, 1 }
  0xfc   :  { %v828_v53 = vpop.eup %827  ;;  %v405_v56 = vmul.f32 %v389_v47, %v988_v48  ;;  %v355_v57 = vsub.f32 1.0, %v339_v41  ;;  %v342_v58 = vmul.f32 2.0, %v826_v43  ;;  %v397_v45 = vsel %vm381_vm3, 1.0, %v365_v42 }
  0xfd   :  { %v363_v63 = vsub.f32 1.0, %v347_v50  ;;  %v350_v0 = vmul.f32 2.0, %v828_v53  ;;  %v413_v1 = vmul.f32 %v397_v45, %v991_v49  ;;  %v830_v2 = vpop.eup %829  ;;  %vm378_vm3 = vcmp.gt.f32.partialorder %v1036_v28, 20.0 }
  0xfe   :  { %v387_v3 = vsel %vm371_vm5, 1.0, %v355_v57  ;;  %v358_v48 = vsub.f32 1.0, %v342_v58  ;;  %v832_v4 = vpop.eup %831  ;;  %v340_v6 = vmul.f32 2.0, %v830_v2  ;;  %v533_v9 = vsel %vm517_vm4, %v405_v56, 0.0 }
  0xff   :  { %v403_v5 = vmul.f32 %v387_v3, %v996_v54  ;;  %v395_v49 = vsel %vm379_vm7, 1.0, %v363_v63  ;;  %v366_v7 = vsub.f32 1.0, %v350_v0  ;;  %v834_v8 = vpop.eup %833  ;;  %vm383_vm5 = vcmp.gt.f32.partialorder %v1033_v27, 20.0 }
 0x100   :  { %v390_v14 = vsel %vm374_vm10, 1.0, %v358_v48  ;;  %v348_v17 = vmul.f32 2.0, %v832_v4  ;;  %v411_v19 = vmul.f32 %v395_v49, %v999_v55  ;;  %v356_v20 = vsub.f32 1.0, %v340_v6  ;;  %v836_v23 = vpop.eup %835 }
 0x101   :  { %v406_v54 = vmul.f32 %v390_v14, %v1002_v60  ;;  %v345_v21 = vmul.f32 2.0, %v834_v8  ;;  %v541_v22 = vsel %vm525_vm6, %v413_v1, 0.0  ;;  %v531_v30 = vsel %vm515_vm8, %v403_v5, 0.0  ;;  %v838_v55 = vpop.eup %837 }
 0x102   :  { %v364_v25 = vsub.f32 1.0, %v348_v17  ;;  %v539_v31 = vsel %vm523_vm9, %v411_v19, 0.0  ;;  %v398_v34 = vsel %vm382_vm12, 1.0, %v366_v7  ;;  %v388_v35 = vsel %vm372_vm14, 1.0, %v356_v20  ;;  %v840_v36 = vpop.eup %839 }
 0x103   :  { %v534_v60 = vsel %vm518_vm11, %v406_v54, 0.0  ;;  %vm376_vm4 = vcmp.gt.f32.partialorder %v1044_v33, 20.0  ;;  %v361_v29 = vsub.f32 1.0, %v345_v21  ;;  %vm521_vm6 = vcmp.eq.s32.totalorder %v1063_v24, 1  ;;  %v842_v40 = vpop.eup %841 }
 0x104   :  { %v414_v16 = vmul.f32 %v398_v34, %v1005_v61  ;;  %v691_v59 = vpack.c.bf16 %v534_v60, %v533_v9  ;;  %v404_v38 = vmul.f32 %v388_v35, %v1012_v10  ;;  %v343_v39 = vmul.f32 2.0, %v838_v55  ;;  %v844_v61 = vpop.eup %843 }
 0x105   :  { %vm522_vm7 = vcmp.eq.s32.totalorder %v1065_v46, 1  ;;  %v396_v52 = vsel %vm380_vm0, 1.0, %v364_v25  ;;  %v393_v41 = vsel %vm377_vm1, 1.0, %v361_v29  ;;  %v351_v47 = vmul.f32 2.0, %v840_v36  ;;  %v846_v57 = vpop.eup %845 }
 0x106   :  { %v412_v42 = vmul.f32 %v396_v52, %v1015_v11  ;;  %v542_v43 = vsel %vm526_vm13, %v414_v16, 0.0  ;;  %vm386_vm8 = vcmp.gt.f32.partialorder %v1041_v32, 20.0  ;;  %723 = vst [vmem:[%s1195_s4 + $0x8] sm:$0xff] %v691_v59   ;;  %v532_v10 = vsel %vm516_vm15, %v404_v38, 0.0  ;;  %v508_v11 = vpop.permute.xlu1 %507  ;;  %v848_v37 = vpop.eup %847 }
 0x107   :  { %vm520_vm9 = vcmp.eq.s32.totalorder %v1061_v15, 1  ;;  %v359_v50 = vsub.f32 1.0, %v343_v39  ;;  %vm519_vm10 = vcmp.eq.s32.totalorder %v1059_v62, 1  ;;  %v346_v53 = vmul.f32 2.0, %v842_v40 }
 0x108   :  { %v353_v56 = vmul.f32 2.0, %v836_v23  ;;  %v686_v58 = vpack.c.bf16 %v532_v10, %v531_v30  ;;  %v540_v45 = vsel %vm524_vm2, %v412_v42, 0.0  ;;  %v711_v63 = vpack.c.bf16 %v542_v43, %v541_v22  ;;  %v511_v23 = vpop.permute.xlu0 %510 }
 0x109   :  { %vm528_vm11 = vcmp.eq.s32.totalorder %v508_v11, 1  ;;  %v367_v0 = vsub.f32 1.0, %v351_v47  ;;  %vm527_vm12 = vcmp.eq.s32.totalorder %v505_v51, 1  ;;  %vm1196_vm13 = vcmp.gt.f32.partialorder %v1030_v26, 20.0 }
 0x10a   :  { %v391_v1 = vsel %vm1196_vm13, 1.0, %v359_v50  ;;  %v344_v2 = vmul.f32 2.0, %v846_v57  ;;  %v362_v3 = vsub.f32 1.0, %v346_v53  ;;  %v409_v48 = vmul.f32 %v393_v41, %v1018_v12  ;;  %687 = vst [vmem:[%s1195_s4] sm:$0xff] %v686_v58   ;;  %727 = vst [vmem:[%s1195_s4 + $0x28] sm:$0xff] %v711_v63   ;;  %v514_v20 = vpop.permute.xlu1 %513 }
 0x10b   :  { %v706_v4 = vpack.c.bf16 %v540_v45, %v539_v31  ;;  %v352_v18 = vmul.f32 2.0, %v848_v37  ;;  %v399_v5 = vsel %vm383_vm5, 1.0, %v367_v0  ;;  %vm385_vm14 = vcmp.gt.f32.partialorder %v1021_v13, 20.0 }
 0x10c   :  { %v360_v6 = vsub.f32 1.0, %v344_v2  ;;  %vm384_vm15 = vcmp.gt.f32.partialorder %v1054_v44, 20.0  ;;  %v394_v12 = vsel %vm378_vm3, 1.0, %v362_v3  ;;  %v354_v49 = vmul.f32 2.0, %v844_v61 }
 0x10d   :  { %v407_v7 = vmul.f32 %v391_v1, %v1030_v26  ;;  %v410_v8 = vmul.f32 %v394_v12, %v1036_v28  ;;  %726 = vst [vmem:[%s1195_s4 + $0x20] sm:$0xff] %v706_v4   ;;  %v368_v9 = vsub.f32 1.0, %v352_v18  ;;  %v369_v14 = vsub.f32 1.0, %v353_v56 }
 0x10e   :  { %v392_v17 = vsel %vm376_vm4, 1.0, %v360_v6  ;;  %v537_v19 = vsel %vm521_vm6, %v409_v48, 0.0  ;;  %v415_v54 = vmul.f32 %v399_v5, %v1033_v27  ;;  %v370_v21 = vsub.f32 1.0, %v354_v49 }
 0x10f   :  { %v408_v26 = vmul.f32 %v392_v17, %v1044_v33  ;;  %v538_v28 = vsel %vm522_vm7, %v410_v8, 0.0  ;;  %v400_v22 = vsel %vm384_vm15, 1.0, %v368_v9  ;;  %v401_v30 = vsel %vm385_vm14, 1.0, %v369_v14 }
 0x110   :  { %v701_v25 = vpack.c.bf16 %v538_v28, %v537_v19  ;;  %v416_v31 = vmul.f32 %v400_v22, %v1054_v44  ;;  %v402_v24 = vsel %vm386_vm8, 1.0, %v370_v21  ;;  %v417_v27 = vmul.f32 %v401_v30, %v1021_v13 }
 0x111   :  { %v535_v34 = vsel %vm519_vm10, %v407_v7, 0.0  ;;  %v536_v33 = vsel %vm520_vm9, %v408_v26, 0.0  ;;  %v418_v46 = vmul.f32 %v402_v24, %v1041_v32  ;;  %vm530_vm0 = vcmp.eq.s32.totalorder %v514_v20, 1 }
 0x112   :  { %v696_v55 = vpack.c.bf16 %v536_v33, %v535_v34  ;;  %725 = vst [vmem:[%s1195_s4 + $0x18] sm:$0xff] %v701_v25   ;;  %v544_v44 = vsel %vm528_vm11, %v416_v31, 0.0  ;;  %v543_v60 = vsel %vm527_vm12, %v415_v54, 0.0  ;;  %vm529_vm1 = vcmp.eq.s32.totalorder %v511_v23, 1 }
 0x113   :  { %v716_v13 = vpack.c.bf16 %v544_v44, %v543_v60  ;;  %v546_v35 = vsel %vm530_vm0, %v418_v46, 0.0  ;;  %v545_v62 = vsel %vm529_vm1, %v417_v27, 0.0 }
 0x114   :  { %724 = vst [vmem:[%s1195_s4 + $0x10] sm:$0xff] %v696_v55   ;;  %v721_v15 = vpack.c.bf16 %v546_v35, %v545_v62 }
 0x115   :  { %728 = vst [vmem:[%s1195_s4 + $0x30] sm:$0xff] %v716_v13  }
 0x116   :  { %729 = vst [vmem:[%s1195_s4 + $0x38] sm:$0xff] %v721_v15  }

// kernel: _lambda_.7
= control target key start
LH: loop header
LB: loop body
LE: loop exit
PB: predicated region body
PF: predicated region fallthrough
CT: control target
= control target key end

     0   :  { %v2286_v1 = vmov 0   ;;  %s3405_s1 = inlined_call_operand.vmem [shape: bf16[128,256], index: 1, kind: input, shape index: {}]   ;;  %s3406_s0 = inlined_call_operand.vmem [shape: bf16[232,128], index: 0, kind: input, shape index: {}]   ;;  %s3407_s3 = inlined_call_operand.vmem [shape: f32[232,1], index: 3, kind: input, shape index: {}]   ;;  %s3408_s2 = inlined_call_operand.vmem [shape: f32[1,256], index: 2, kind: input, shape index: {}]   ;;  %s3409_s4 = inlined_call_operand.vmem [shape: bf16[232,128], index: 4, kind: output, shape index: {0}]   ;;  %s3410_s5 = inlined_call_operand.vmem [shape: bf16[232,128], index: 5, kind: output, shape index: {1}]  }
   0x1   :  { %v2015_v0 = vld [vmem:[%s3405_s1 + $0x74] ss:$8 sps:$4 sm:$0xff]   ;;  %277 = vmatprep.mubr.bf16.mxu0 %v2286_v1  ;;  %357 = vmatprep.mubr.bf16.mxu1 %v2286_v1  ;;  %v2017_v2 = vld [vmem:[%s3405_s1 + $0x70] ss:$8 sps:$4 sm:$0xff]   ;;  %v2018_v3 = vld [vmem:[%s3405_s1 + $0x64] ss:$8 sps:$4 sm:$0xff]  }
   0x2   :  { %2013 = vset.pattern.permute.xlu0 %v2286_v1  ;;  %2014 = vset.pattern.permute.xlu1 %v2286_v1  ;;  %v2020_v4 = vld [vmem:[%s3405_s1 + $0x60] ss:$8 sps:$4 sm:$0xff]   ;;  %v2021_v5 = vld [vmem:[%s3405_s1 + $0x54] ss:$8 sps:$4 sm:$0xff]   ;;  %v2023_v6 = vld [vmem:[%s3405_s1 + $0x50] ss:$8 sps:$4 sm:$0xff]  }
   0x3   :  { %245 = vmatprep.subr.bf16.mxu0 %v2015_v0  ;;  %1996 = vmatprep.subr.bf16.mxu1 %v2015_v0  ;;  %v2024_v7 = vld [vmem:[%s3405_s1 + $0x44] ss:$8 sps:$4 sm:$0xff]   ;;  %v2026_v8 = vld [vmem:[%s3405_s1 + $0x40] ss:$8 sps:$4 sm:$0xff]   ;;  %v2027_v9 = vld [vmem:[%s3405_s1 + $0x34] ss:$8 sps:$4 sm:$0xff]  }
   0x4   :  { %246 = vmatpush1.bf16.msra.mxu0 %v2017_v2  ;;  %2004 = vmatpush1.bf16.msra.mxu1 %v2017_v2  ;;  %v2029_v10 = vld [vmem:[%s3405_s1 + $0x30] ss:$8 sps:$4 sm:$0xff]   ;;  %v2030_v11 = vld [vmem:[%s3405_s1 + $0x24] ss:$8 sps:$4 sm:$0xff]   ;;  %v2032_v12 = vld [vmem:[%s3405_s1 + $0x20] ss:$8 sps:$4 sm:$0xff]  }
   0x5   :  { %247 = vmatprep.subr.bf16.mxu0 %v2018_v3  ;;  %1997 = vmatprep.subr.bf16.mxu1 %v2018_v3  ;;  %v2033_v13 = vld [vmem:[%s3405_s1 + $0x14] ss:$8 sps:$4 sm:$0xff]   ;;  %v2035_v14 = vld [vmem:[%s3405_s1 + $0x10] ss:$8 sps:$4 sm:$0xff]   ;;  %v2036_v15 = vld [vmem:[%s3405_s1 + $0x4] ss:$8 sps:$4 sm:$0xff]  }
   0x6   :  { %v1122_v16 = vld [vmem:[%s3407_s3] sm:$0xff]  ;;  %v1123_v17 = vld [vmem:[%s3407_s3 + $0x8] sm:$0xff]  ;;  %v1124_v18 = vld [vmem:[%s3407_s3 + $0x10] sm:$0xff] }
   0x7   :  { %vm1151_vm0 = vcmp.gt.f32.partialorder %v1122_v16, 0.5  ;;  %v1125_v19 = vld [vmem:[%s3407_s3 + $0x18] sm:$0xff]  ;;  %v2038_v20 = vld [vmem:[%s3405_s1] ss:$8 sps:$4 sm:$0xff]   ;;  %vm1152_vm1 = vcmp.gt.f32.partialorder %v1123_v17, 0.5  ;;  %vm1153_vm2 = vcmp.gt.f32.partialorder %v1124_v18, 0.5 }
   0x8   :  { %248 = vmatpush1.bf16.msra.mxu0 %v2020_v4  ;;  %2005 = vmatpush1.bf16.msra.mxu1 %v2020_v4  ;;  %v1180_v21 = vsel %vm1151_vm0, 1, %v2286_v1  ;;  %v1182_v22 = vsel %vm1153_vm2, 1, %v2286_v1  ;;  %v1126_v23 = vld [vmem:[%s3407_s3 + $0x20] sm:$0xff]  ;;  %vm1154_vm3 = vcmp.gt.f32.partialorder %v1125_v19, 0.5  ;;  %v1127_v24 = vld [vmem:[%s3407_s3 + $0x28] sm:$0xff]  ;;  %v1181_v27 = vsel %vm1152_vm1, 1, %v2286_v1 }
   0x9   :  { %249 = vmatprep.subr.bf16.mxu0 %v2021_v5  ;;  %1998 = vmatprep.subr.bf16.mxu1 %v2021_v5  ;;  %v2039_v25 = vld [vmem:[%s3406_s0] sm:$0xff]   ;;  %v1183_v28 = vsel %vm1154_vm3, 1, %v2286_v1  ;;  %vm1155_vm4 = vcmp.gt.f32.partialorder %v1126_v23, 0.5  ;;  %vm1156_vm5 = vcmp.gt.f32.partialorder %v1127_v24, 0.5  ;;  %v1128_v29 = vld [vmem:[%s3407_s3 + $0x30] sm:$0xff]  ;;  %v1129_v30 = vld [vmem:[%s3407_s3 + $0x38] sm:$0xff] }
   0xa   :  { %1210 = vperm.xlu0 %2013, %v1180_v21   ;;  %1216 = vperm.xlu1 %2014, %v1182_v22   ;;  %v2040_v26 = vld [vmem:[%s3406_s0 + $0x40] sm:$0xff]   ;;  %v1184_v31 = vsel %vm1155_vm4, 1, %v2286_v1  ;;  %v1185_v32 = vsel %vm1156_vm5, 1, %v2286_v1  ;;  %vm1157_vm6 = vcmp.gt.f32.partialorder %v1128_v29, 0.5  ;;  %vm1158_vm7 = vcmp.gt.f32.partialorder %v1129_v30, 0.5  ;;  %v1131_v34 = vld [vmem:[%s3407_s3 + $0x48] sm:$0xff] }
   0xb   :  { %v1130_v33 = vld [vmem:[%s3407_s3 + $0x40] sm:$0xff]  ;;  %v2041_v35 = vld [vmem:[%s3406_s0 + $0x8] sm:$0xff]   ;;  %v1186_v37 = vsel %vm1157_vm6, 1, %v2286_v1  ;;  %v1187_v38 = vsel %vm1158_vm7, 1, %v2286_v1  ;;  %vm1160_vm9 = vcmp.gt.f32.partialorder %v1131_v34, 0.5  ;;  %v1132_v39 = vld [vmem:[%s3407_s3 + $0x50] sm:$0xff] }
   0xc   :  { %250 = vmatpush1.bf16.msra.mxu0 %v2023_v6  ;;  %2006 = vmatpush1.bf16.msra.mxu1 %v2023_v6  ;;  %v2042_v36 = vld [vmem:[%s3406_s0 + $0x48] sm:$0xff]   ;;  %vm1159_vm8 = vcmp.gt.f32.partialorder %v1130_v33, 0.5  ;;  %v1133_v40 = vld [vmem:[%s3407_s3 + $0x58] sm:$0xff]  ;;  %v1189_v42 = vsel %vm1160_vm9, 1, %v2286_v1  ;;  %vm1161_vm10 = vcmp.gt.f32.partialorder %v1132_v39, 0.5  ;;  %v1134_v43 = vld [vmem:[%s3407_s3 + $0x60] sm:$0xff] }
   0xd   :  { %251 = vmatprep.subr.bf16.mxu0 %v2024_v7  ;;  %1999 = vmatprep.subr.bf16.mxu1 %v2024_v7  ;;  %v1188_v41 = vsel %vm1159_vm8, 1, %v2286_v1  ;;  %vm1162_vm11 = vcmp.gt.f32.partialorder %v1133_v40, 0.5  ;;  %v1135_v44 = vld [vmem:[%s3407_s3 + $0x68] sm:$0xff]  ;;  %v2043_v45 = vld [vmem:[%s3406_s0 + $0x10] sm:$0xff]   ;;  %v1190_v47 = vsel %vm1161_vm10, 1, %v2286_v1  ;;  %vm1163_vm12 = vcmp.gt.f32.partialorder %v1134_v43, 0.5 }
   0xe   :  { %1213 = vperm.xlu0 %2013, %v1181_v27   ;;  %1219 = vperm.xlu1 %2014, %v1183_v28   ;;  %v2044_v46 = vld [vmem:[%s3406_s0 + $0x50] sm:$0xff]   ;;  %v1191_v48 = vsel %vm1162_vm11, 1, %v2286_v1  ;;  %vm1164_vm13 = vcmp.gt.f32.partialorder %v1135_v44, 0.5  ;;  %v1137_v50 = vld [vmem:[%s3407_s3 + $0x78] sm:$0xff]  ;;  %v1192_v51 = vsel %vm1163_vm12, 1, %v2286_v1  ;;  %v1138_v53 = vld [vmem:[%s3407_s3 + $0x80] sm:$0xff]  ;;  %v67_v27 = vlaneseq }
   0xf   :  { %v1136_v49 = vld [vmem:[%s3407_s3 + $0x70] sm:$0xff]  ;;  %v1193_v52 = vsel %vm1164_vm13, 1, %v2286_v1  ;;  %vm1166_vm15 = vcmp.gt.f32.partialorder %v1137_v50, 0.5  ;;  %v1139_v54 = vld [vmem:[%s3407_s3 + $0x88] sm:$0xff]  ;;  %v2045_v55 = vld [vmem:[%s3406_s0 + $0x18] sm:$0xff]   ;;  %vm1167_vm0 = vcmp.gt.f32.partialorder %v1138_v53, 0.5 }
  0x10   :  { %252 = vmatpush1.bf16.msra.mxu0 %v2026_v8  ;;  %2007 = vmatpush1.bf16.msra.mxu1 %v2026_v8  ;;  %vm1165_vm14 = vcmp.gt.f32.partialorder %v1136_v49, 0.5  ;;  %v2046_v56 = vld [vmem:[%s3406_s0 + $0x58] sm:$0xff]   ;;  %v1195_v58 = vsel %vm1166_vm15, 1, %v2286_v1  ;;  %vm1168_vm1 = vcmp.gt.f32.partialorder %v1139_v54, 0.5  ;;  %v1140_v59 = vld [vmem:[%s3407_s3 + $0x90] sm:$0xff]  ;;  %v1196_v61 = vsel %vm1167_vm0, 1, %v2286_v1 }
  0x11   :  { %253 = vmatprep.subr.bf16.mxu0 %v2027_v9  ;;  %2000 = vmatprep.subr.bf16.mxu1 %v2027_v9  ;;  %v1194_v57 = vsel %vm1165_vm14, 1, %v2286_v1  ;;  %v1141_v60 = vld [vmem:[%s3407_s3 + $0x98] sm:$0xff]  ;;  %v1197_v62 = vsel %vm1168_vm1, 1, %v2286_v1  ;;  %vm1169_vm2 = vcmp.gt.f32.partialorder %v1140_v59, 0.5  ;;  %v1142_v63 = vld [vmem:[%s3407_s3 + $0xa0] sm:$0xff]  ;;  %v1143_v0 = vld [vmem:[%s3407_s3 + $0xa8] sm:$0xff] }
  0x12   :  { %1222 = vperm.xlu0 %2013, %v1184_v31   ;;  %1225 = vperm.xlu1 %2014, %v1185_v32   ;;  %vm1170_vm3 = vcmp.gt.f32.partialorder %v1141_v60, 0.5  ;;  %v2047_v2 = vld [vmem:[%s3406_s0 + $0x20] sm:$0xff]   ;;  %v1198_v4 = vsel %vm1169_vm2, 1, %v2286_v1  ;;  %vm1171_vm4 = vcmp.gt.f32.partialorder %v1142_v63, 0.5  ;;  %vm1172_vm5 = vcmp.gt.f32.partialorder %v1143_v0, 0.5  ;;  %v1144_v6 = vld [vmem:[%s3407_s3 + $0xb0] sm:$0xff] }
  0x13   :  { %v2048_v3 = vld [vmem:[%s3406_s0 + $0x60] sm:$0xff]   ;;  %v1199_v5 = vsel %vm1170_vm3, 1, %v2286_v1  ;;  %v1145_v7 = vld [vmem:[%s3407_s3 + $0xb8] sm:$0xff]  ;;  %v1200_v8 = vsel %vm1171_vm4, 1, %v2286_v1  ;;  %v1201_v9 = vsel %vm1172_vm5, 1, %v2286_v1  ;;  %vm1173_vm6 = vcmp.gt.f32.partialorder %v1144_v6, 0.5 }
  0x14   :  { %254 = vmatpush1.bf16.msra.mxu0 %v2029_v10  ;;  %2008 = vmatpush1.bf16.msra.mxu1 %v2029_v10  ;;  %vm1174_vm7 = vcmp.gt.f32.partialorder %v1145_v7, 0.5  ;;  %v1146_v10 = vld [vmem:[%s3407_s3 + $0xc0] sm:$0xff]  ;;  %v1148_v16 = vld [vmem:[%s3407_s3 + $0xd0] sm:$0xff]  ;;  %v1149_v17 = vld [vmem:[%s3407_s3 + $0xd8] sm:$0xff]  ;;  %v68_v28 = vshrl.u32 %v67_v27, 7 }
  0x15   :  { %255 = vmatprep.subr.bf16.mxu0 %v2030_v11  ;;  %2001 = vmatprep.subr.bf16.mxu1 %v2030_v11  ;;  %v1147_v11 = vld [vmem:[%s3407_s3 + $0xc8] sm:$0xff]  ;;  %vm1175_vm8 = vcmp.gt.f32.partialorder %v1146_v10, 0.5  ;;  %vm1177_vm10 = vcmp.gt.f32.partialorder %v1148_v16, 0.5  ;;  %vm1178_vm11 = vcmp.gt.f32.partialorder %v1149_v17, 0.5  ;;  %v2051_v21 = vld [vmem:[%s3406_s0 + $0x30] sm:$0xff]  }
  0x16   :  { %1228 = vperm.xlu0 %2013, %v1186_v37   ;;  %1231 = vperm.xlu1 %2014, %v1187_v38   ;;  %vm1176_vm9 = vcmp.gt.f32.partialorder %v1147_v11, 0.5  ;;  %v1204_v18 = vsel %vm1175_vm8, 1, %v2286_v1  ;;  %v2052_v22 = vld [vmem:[%s3406_s0 + $0x70] ss:$0 sps:$4 sm:$0xff]   ;;  %v1206_v23 = vsel %vm1177_vm10, 1, %v2286_v1  ;;  %v1207_v24 = vsel %vm1178_vm11, 1, %v2286_v1 }
  0x17   :  { %v1205_v19 = vsel %vm1176_vm9, 1, %v2286_v1  ;;  %v69_v29 = vsub.s32 0, %v68_v28  ;;  %v65_v30 = vld [vmem:[%s3408_s2] sm:$0x3]  ;;  %v73_v31 = vsub.s32 1, %v68_v28 }
  0x18   :  { %256 = vmatpush1.bf16.msra.mxu0 %v2032_v12  ;;  %2009 = vmatpush1.bf16.msra.mxu1 %v2032_v12  ;;  %v2049_v12 = vld [vmem:[%s3406_s0 + $0x28] sm:$0xff]  }
  0x19   :  { %257 = vmatprep.subr.bf16.mxu0 %v2033_v13  ;;  %2002 = vmatprep.subr.bf16.mxu1 %v2033_v13  ;;  %v2050_v13 = vld [vmem:[%s3406_s0 + $0x68] sm:$0xff]   ;;  %v2546_v32 = vrot.slane %v65_v30, %v69_v29 }
  0x1a   :  { %1234 = vperm.xlu0 %2013, %v1188_v41   ;;  %1237 = vperm.xlu1 %2014, %v1189_v42  }
  0x1c   :  { %258 = vmatpush1.bf16.msra.mxu0 %v2035_v14  ;;  %2010 = vmatpush1.bf16.msra.mxu1 %v2035_v14  ;;  %v1202_v14 = vsel %vm1173_vm6, 1, %v2286_v1 }
  0x1d   :  { %259 = vmatprep.subr.bf16.mxu0 %v2036_v15  ;;  %2003 = vmatprep.subr.bf16.mxu1 %v2036_v15  ;;  %v1203_v15 = vsel %vm1174_vm7, 1, %v2286_v1 }
  0x1e   :  { %1240 = vperm.xlu0 %2013, %v1190_v47   ;;  %1243 = vperm.xlu1 %2014, %v1191_v48  }
  0x20   :  { %260 = vmatpush1.bf16.msra.mxu0 %v2038_v20  ;;  %2011 = vmatpush1.bf16.msra.mxu1 %v2038_v20  ;;  %v1150_v20 = vld [vmem:[%s3407_s3 + $0xe0] sm:$0xff] }
  0x21   :  { %vm1179_vm12 = vcmp.gt.f32.partialorder %v1150_v20, 0.5 }
  0x22   :  { %1246 = vperm.xlu0 %2013, %v1192_v51   ;;  %1249 = vperm.xlu1 %2014, %v1193_v52  }
  0x23   :  { %278 = vmatmul.mubr.bf16.vlgmr.msra.gmra.mxu0 %v2039_v25  ;;  %358 = vmatmul.mubr.bf16.vlgmr.msra.gmra.mxu1 %v2040_v26  ;;  %v1208_v25 = vsel %vm1179_vm12, 1, %v2286_v1  ;;  %v2053_v26 = vld [vmem:[%s3406_s0 + $0x38] sm:$0xff]  }
  0x24   :  { %287 = vmatprep.mubr.bf16.mxu0 %v2286_v1  ;;  %367 = vmatprep.mubr.bf16.mxu1 %v2286_v1 }
  0x26   :  { %1252 = vperm.xlu0 %2013, %v1194_v57   ;;  %1255 = vperm.xlu1 %2014, %v1195_v58  }
  0x2a   :  { %1258 = vperm.xlu0 %2013, %v1196_v61   ;;  %1261 = vperm.xlu1 %2014, %v1197_v62  }
  0x2b   :  { %288 = vmatmul.mubr.bf16.gmra.mxu0 %v2041_v35  ;;  %368 = vmatmul.mubr.bf16.gmra.mxu1 %v2042_v36  ;;  %v2548_v35 = vrot.slane %v65_v30, %v73_v31 }
  0x2c   :  { %297 = vmatprep.mubr.bf16.mxu0 %v2286_v1  ;;  %377 = vmatprep.mubr.bf16.mxu1 %v2286_v1 }
  0x2e   :  { %1264 = vperm.xlu0 %2013, %v1198_v4   ;;  %1267 = vperm.xlu1 %2014, %v1199_v5  }
  0x32   :  { %1270 = vperm.xlu0 %2013, %v1200_v8   ;;  %1273 = vperm.xlu1 %2014, %v1201_v9  }
  0x33   :  { %298 = vmatmul.mubr.bf16.gmra.mxu0 %v2043_v45  ;;  %378 = vmatmul.mubr.bf16.gmra.mxu1 %v2044_v46 }
  0x34   :  { %307 = vmatprep.mubr.bf16.mxu0 %v2286_v1  ;;  %387 = vmatprep.mubr.bf16.mxu1 %v2286_v1 }
  0x36   :  { %1276 = vperm.xlu0 %2013, %v1202_v14   ;;  %1279 = vperm.xlu1 %2014, %v1203_v15  }
  0x3a   :  { %1282 = vperm.xlu0 %2013, %v1204_v18   ;;  %1285 = vperm.xlu1 %2014, %v1205_v19  }
  0x3b   :  { %308 = vmatmul.mubr.bf16.gmra.mxu0 %v2045_v55  ;;  %388 = vmatmul.mubr.bf16.gmra.mxu1 %v2046_v56 }
  0x3c   :  { %317 = vmatprep.mubr.bf16.mxu0 %v2286_v1  ;;  %397 = vmatprep.mubr.bf16.mxu1 %v2286_v1 }
  0x3e   :  { %1288 = vperm.xlu0 %2013, %v1206_v23   ;;  %1291 = vperm.xlu1 %2014, %v1207_v24  }
  0x42   :  { %1294 = vperm.xlu0 %2013, %v1208_v25  }
  0x43   :  { %318 = vmatmul.mubr.bf16.gmra.mxu0 %v2047_v2  ;;  %398 = vmatmul.mubr.bf16.gmra.mxu1 %v2048_v3 }
  0x44   :  { %327 = vmatprep.mubr.bf16.mxu0 %v2286_v1  ;;  %407 = vmatprep.mubr.bf16.mxu1 %v2286_v1 }
  0x4b   :  { %328 = vmatmul.mubr.bf16.gmra.mxu0 %v2049_v12  ;;  %408 = vmatmul.mubr.bf16.gmra.mxu1 %v2050_v13 }
  0x4c   :  { %337 = vmatprep.mubr.bf16.mxu0 %v2286_v1  ;;  %417 = vmatprep.mubr.bf16.mxu1 %v2286_v1 }
  0x53   :  { %338 = vmatmul.mubr.bf16.gmra.mxu0 %v2051_v21  ;;  %418 = vmatmul.mubr.bf16.gmra.mxu1 %v2052_v22 }
  0x54   :  { %347 = vmatprep.mubr.bf16.mxu0 %v2286_v1 }
  0x5b   :  { %348 = vmatmul.mubr.bf16.gmra.mxu0 %v2053_v26 }
  0xe3   :  { %v279_v33 = vpop.f32.mrf.mxu0  ;;  %v359_v34 = vpop.f32.mrf.mxu1 }
  0xe4   :  { %v2551_v1 = vadd.f32 %v279_v33, %v2546_v32  ;;  %v2576_v57 = vadd.f32 %v359_v34, %v2546_v32 }
  0xe5   :  { %v281_v36 = vpop.f32.mrf.mxu0  ;;  %v361_v37 = vpop.f32.mrf.mxu1 }
  0xe6   :  { %v426_v38 = vmin.f32 %v2551_v1, 20.0  ;;  %v2555_v39 = vadd.f32 %v281_v36, %v2548_v35  ;;  %v458_v4 = vmin.f32 %v2576_v57, 20.0  ;;  %v2597_v11 = vadd.f32 %v361_v37, %v2548_v35 }
  0xe7   :  { %v283_v40 = vpop.f32.mrf.mxu0  ;;  %v363_v41 = vpop.f32.mrf.mxu1  ;;  %vm948_vm13 = vcmp.gt.f32.partialorder %v2551_v1, 20.0 }
  0xe8   :  { %v484_v42 = vmul.f32 1.442695, %v426_v38  ;;  %v2558_v43 = vadd.f32 %v283_v40, %v2546_v32  ;;  %v427_v44 = vmin.f32 %v2555_v39, 20.0  ;;  %v548_v15 = vmul.f32 1.442695, %v458_v4 }
  0xe9   :  { %v285_v45 = vpop.f32.mrf.mxu0  ;;  %v2561_v46 = vpop.f32.mrf.mxu1  ;;  %v2609_v20 = vadd.f32 %v363_v41, %v2546_v32  ;;  %v459_v24 = vmin.f32 %v2597_v11, 20.0  ;;  %vm949_vm14 = vcmp.gt.f32.partialorder %v2555_v39, 20.0 }
  0xea   :  { %2054 = vpow2.f32 %v484_v42  ;;  %v428_v47 = vmin.f32 %v2558_v43, 20.0  ;;  %v486_v48 = vmul.f32 1.442695, %v427_v44  ;;  %v2567_v52 = vadd.f32 %v285_v45, %v2548_v35 }
  0xeb   :  { %v289_v49 = vpop.f32.mrf.mxu0  ;;  %v2564_v50 = vpop.f32.mrf.mxu1  ;;  %v460_v36 = vmin.f32 %v2609_v20, 20.0  ;;  %v550_v38 = vmul.f32 1.442695, %v459_v24  ;;  %v2622_v40 = vadd.f32 %v2561_v46, %v2548_v35  ;;  %vm950_vm0 = vcmp.gt.f32.partialorder %v2558_v43, 20.0 }
  0xec   :  { %v488_v51 = vmul.f32 1.442695, %v428_v47  ;;  %2056 = vpow2.f32 %v486_v48  ;;  %v2570_v53 = vadd.f32 %v289_v49, %v2546_v32  ;;  %v429_v56 = vmin.f32 %v2567_v52, 20.0 }
  0xed   :  { %v291_v54 = vpop.f32.mrf.mxu0  ;;  %v2572_v55 = vpop.f32.mrf.mxu1  ;;  %v2628_v49 = vadd.f32 %v2564_v50, %v2546_v32  ;;  %vm951_vm2 = vcmp.gt.f32.partialorder %v2567_v52, 20.0 }
  0xee   :  { %2058 = vpow2.f32 %v488_v51  ;;  %v430_v58 = vmin.f32 %v2570_v53, 20.0  ;;  %v490_v61 = vmul.f32 1.442695, %v429_v56  ;;  %v2582_v63 = vadd.f32 %v291_v54, %v2548_v35 }
  0xef   :  { %v293_v59 = vpop.f32.mrf.mxu0  ;;  %v2579_v60 = vpop.f32.mrf.mxu1  ;;  %v552_v56 = vmul.f32 1.442695, %v460_v36  ;;  %vm952_vm3 = vcmp.gt.f32.partialorder %v2570_v53, 20.0 }
  0xf0   :  { %v492_v62 = vmul.f32 1.442695, %v430_v58  ;;  %2060 = vpow2.f32 %v490_v61  ;;  %v2587_v3 = vadd.f32 %v293_v59, %v2546_v32  ;;  %v431_v5 = vmin.f32 %v2582_v63, 20.0 }
  0xf1   :  { %v295_v0 = vpop.f32.mrf.mxu0  ;;  %v2584_v2 = vpop.f32.mrf.mxu1  ;;  %v461_v61 = vmin.f32 %v2622_v40, 20.0  ;;  %v2650_v24 = vadd.f32 %v2579_v60, %v2546_v32  ;;  %vm953_vm4 = vcmp.gt.f32.partialorder %v2582_v63, 20.0 }
  0xf2   :  { %2062 = vpow2.f32 %v492_v62  ;;  %v432_v7 = vmin.f32 %v2587_v3, 20.0  ;;  %v494_v9 = vmul.f32 1.442695, %v431_v5  ;;  %v2600_v13 = vadd.f32 %v295_v0, %v2548_v35 }
  0xf3   :  { %v2591_v6 = vpop.f32.mrf.mxu1  ;;  %v299_v8 = vpop.f32.mrf.mxu0  ;;  %vm954_vm5 = vcmp.gt.f32.partialorder %v2587_v3, 20.0 }
  0xf4   :  { %v496_v12 = vmul.f32 1.442695, %v432_v7  ;;  %2064 = vpow2.f32 %v494_v9  ;;  %v2603_v16 = vadd.f32 %v299_v8, %v2546_v32  ;;  %v433_v19 = vmin.f32 %v2600_v13, 20.0 }
  0xf5   :  { %v2594_v10 = vpop.f32.mrf.mxu1  ;;  %v301_v41 = vpop.f32.mrf.mxu0  ;;  %v462_v8 = vmin.f32 %v2628_v49, 20.0  ;;  %vm955_vm8 = vcmp.gt.f32.partialorder %v2600_v13, 20.0 }
  0xf6   :  { %2066 = vpow2.f32 %v496_v12  ;;  %v498_v25 = vmul.f32 1.442695, %v433_v19  ;;  %v434_v26 = vmin.f32 %v2603_v16, 20.0  ;;  %v2631_v58 = vadd.f32 %v301_v41, %v2548_v35  ;;  %v2646_v19 = vpop.permute.xlu0 %1210 }
  0xf7   :  { %v2055_v14 = vpop.eup %2054  ;;  %v2605_v17 = vpop.f32.mrf.mxu1  ;;  %2068 = vpow2.f32 %v548_v15  ;;  %v2642_v12 = vadd.f32 %v2572_v55, %v2548_v35  ;;  %vm1296_vm15 = vcmp.eq.s32.totalorder %v2646_v19, 1  ;;  %vm956_vm9 = vcmp.gt.f32.partialorder %v2603_v16, 20.0 }
  0xf8   :  { %v600_v18 = vadd.f32 1.0, %v2055_v14  ;;  %2070 = vpow2.f32 %v498_v25  ;;  %v500_v31 = vmul.f32 1.442695, %v434_v26  ;;  %v435_v0 = vmin.f32 %v2631_v58, 20.0  ;;  %v303_v25 = vpop.f32.mrf.mxu0 }
  0xf9   :  { %v2611_v21 = vpop.f32.mrf.mxu1  ;;  %v2057_v22 = vpop.eup %2056  ;;  %v463_v60 = vmin.f32 %v2642_v12, 20.0  ;;  %vm957_vm12 = vcmp.gt.f32.partialorder %v2631_v58, 20.0 }
  0xfa   :  { %v658_v23 = vmul.f32 %v600_v18, %v600_v18  ;;  %v601_v27 = vadd.f32 1.0, %v2057_v22  ;;  %v502_v14 = vmul.f32 1.442695, %v435_v0  ;;  %v554_v22 = vmul.f32 1.442695, %v461_v61  ;;  %v2671_v61 = vpop.permute.xlu0 %1213 }
  0xfb   :  { %v2615_v28 = vpop.f32.mrf.mxu1  ;;  %v2059_v29 = vpop.eup %2058  ;;  %vm1297_vm1 = vcmp.eq.s32.totalorder %v2671_v61, 1 }
  0xfc   :  { %v716_v30 = vadd.f32 1.0, %v658_v23  ;;  %v659_v33 = vmul.f32 %v601_v27, %v601_v27  ;;  %v602_v34 = vadd.f32 1.0, %v2059_v29 }
  0xfd   :  { %v2618_v37 = vpop.f32.mrf.mxu1  ;;  %v2061_v42 = vpop.eup %2060 }
  0xfe   :  { %2072 = vrcp.f32 %v716_v30  ;;  %v717_v44 = vadd.f32 1.0, %v659_v33  ;;  %v660_v45 = vmul.f32 %v602_v34, %v602_v34  ;;  %v603_v48 = vadd.f32 1.0, %v2061_v42 }
  0xff   :  { %2074 = vpow2.f32 %v500_v31  ;;  %v2624_v47 = vpop.f32.mrf.mxu1  ;;  %v2063_v51 = vpop.eup %2062  ;;  %v556_v30 = vmul.f32 1.442695, %v462_v8  ;;  %v2657_v31 = vadd.f32 %v2584_v2, %v2548_v35  ;;  %v464_v42 = vmin.f32 %v2650_v24, 20.0 }
 0x100   :  { %2076 = vrcp.f32 %v717_v44  ;;  %v718_v54 = vadd.f32 1.0, %v660_v45  ;;  %v661_v59 = vmul.f32 %v603_v48, %v603_v48  ;;  %v604_v62 = vadd.f32 1.0, %v2063_v51 }
 0x101   :  { %v2633_v46 = vpop.f32.mrf.mxu1  ;;  %2078 = vpow2.f32 %v550_v38  ;;  %v2065_v50 = vpop.eup %2064  ;;  %v2661_v38 = vadd.f32 %v303_v25, %v2546_v32 }
 0x102   :  { %2080 = vrcp.f32 %v718_v54  ;;  %v719_v5 = vadd.f32 1.0, %v661_v59  ;;  %v662_v7 = vmul.f32 %v604_v62, %v604_v62  ;;  %v605_v9 = vadd.f32 1.0, %v2065_v50  ;;  %v305_v54 = vpop.f32.mrf.mxu0 }
 0x103   :  { %v2637_v4 = vpop.f32.mrf.mxu1  ;;  %2082 = vpow2.f32 %v552_v56  ;;  %v2067_v18 = vpop.eup %2066  ;;  %v436_v51 = vmin.f32 %v2661_v38, 20.0  ;;  %v465_v50 = vmin.f32 %v2657_v31, 20.0  ;;  %v2679_v25 = vadd.f32 %v305_v54, %v2548_v35 }
 0x104   :  { %2084 = vrcp.f32 %v719_v5  ;;  %v720_v23 = vadd.f32 1.0, %v662_v7  ;;  %v663_v26 = vmul.f32 %v605_v9, %v605_v9  ;;  %v606_v27 = vadd.f32 1.0, %v2067_v18  ;;  %v2069_v55 = vpop.eup %2068  ;;  %v2700_v54 = vpop.permute.xlu1 %1216 }
 0x105   :  { %v2644_v15 = vpop.f32.mrf.mxu1  ;;  %2086 = vpow2.f32 %v502_v14  ;;  %v2071_v33 = vpop.eup %2070  ;;  %v632_v48 = vadd.f32 1.0, %v2069_v55  ;;  %v558_v5 = vmul.f32 1.442695, %v463_v60  ;;  %v504_v8 = vmul.f32 1.442695, %v436_v51 }
 0x106   :  { %2088 = vrcp.f32 %v720_v23  ;;  %v721_v34 = vadd.f32 1.0, %v663_v26  ;;  %v664_v36 = vmul.f32 %v606_v27, %v606_v27  ;;  %v607_v44 = vadd.f32 1.0, %v2071_v33 }
 0x107   :  { %v2652_v29 = vpop.f32.mrf.mxu1  ;;  %2090 = vpow2.f32 %v554_v22  ;;  %v560_v22 = vmul.f32 1.442695, %v464_v42  ;;  %v690_v27 = vmul.f32 %v632_v48, %v632_v48  ;;  %v2692_v42 = vadd.f32 %v2594_v10, %v2548_v35 }
 0x108   :  { %2092 = vrcp.f32 %v721_v34  ;;  %v722_v2 = vadd.f32 1.0, %v664_v36  ;;  %v665_v0 = vmul.f32 %v607_v44, %v607_v44  ;;  %v562_v36 = vmul.f32 1.442695, %v465_v50 }
 0x109   :  { %v2663_v41 = vpop.f32.mrf.mxu1  ;;  %2094 = vpow2.f32 %v556_v30  ;;  %v2684_v30 = vadd.f32 %v2591_v6, %v2546_v32  ;;  %vm1298_vm6 = vcmp.eq.s32.totalorder %v2700_v54, 1 }
 0x10a   :  { %2096 = vrcp.f32 %v722_v2  ;;  %v723_v23 = vadd.f32 1.0, %v665_v0 }
 0x10b   :  { %v2073_v45 = vpop.eup %2072  ;;  %v2668_v56 = vpop.f32.mrf.mxu1  ;;  %2098 = vpow2.f32 %v504_v8 }
 0x10c   :  { %v2075_v59 = vpop.eup %2074  ;;  %v832_v62 = vmul.f32 2.0, %v2073_v45  ;;  %2100 = vrcp.f32 %v723_v23 }
 0x10d   :  { %v608_v7 = vadd.f32 1.0, %v2075_v59  ;;  %v2676_v9 = vpop.f32.mrf.mxu1  ;;  %v2077_v14 = vpop.eup %2076  ;;  %2102 = vpow2.f32 %v558_v5  ;;  %v437_v59 = vmin.f32 %v2679_v25, 20.0  ;;  %v466_v5 = vmin.f32 %v2684_v30, 20.0 }
 0x10e   :  { %v890_v18 = vsub.f32 1.0, %v832_v62  ;;  %v2079_v26 = vpop.eup %2078  ;;  %v833_v55 = vmul.f32 2.0, %v2077_v14  ;;  %2104 = vpow2.f32 %v560_v22  ;;  %v2710_v14 = vadd.f32 1.0, %v690_v27 }
 0x10f   :  { %v2686_v33 = vpop.f32.mrf.mxu1  ;;  %v2081_v34 = vpop.eup %2080  ;;  %v666_v48 = vmul.f32 %v608_v7, %v608_v7  ;;  %v2698_v51 = vadd.f32 1.0, %v2079_v26  ;;  %2106 = vpow2.f32 %v562_v36  ;;  %v467_v22 = vmin.f32 %v2692_v42, 20.0 }
 0x110   :  { %3421 = vst [vmem:[#allocation2_spill] sm:$0xff] %v2686_v33  ;;  %v1006_v60 = vsel %vm948_vm13, 1.0, %v890_v18  ;;  %v891_v44 = vsub.f32 1.0, %v833_v55  ;;  %v834_v45 = vmul.f32 2.0, %v2081_v34  ;;  %v2696_v6 = vpop.eup %2082  ;;  %v506_v34 = vmul.f32 1.442695, %v437_v59 }
 0x111   :  { %v2694_v2 = vpop.f32.mrf.mxu1  ;;  %v2085_v62 = vpop.eup %2084  ;;  %v1064_v10 = vmul.f32 %v1006_v60, %v2551_v1  ;;  %v724_v1 = vadd.f32 1.0, %v666_v48  ;;  %v564_v48 = vmul.f32 1.442695, %v466_v5  ;;  %v2730_v59 = vadd.f32 %v2605_v17, %v2546_v32 }
 0x112   :  { %3422 = vst [vmem:[#allocation3_spill] sm:$0xff] %v2694_v2  ;;  %v1007_v0 = vsel %vm949_vm14, 1.0, %v891_v44  ;;  %v892_v50 = vsub.f32 1.0, %v834_v45  ;;  %v2087_v8 = vpop.eup %2086  ;;  %v835_v18 = vmul.f32 2.0, %v2085_v62  ;;  %v2719_v45 = vpop.permute.xlu0 %1222  ;;  %2108 = vpow2.f32 %v506_v34 }
 0x113   :  { %v2708_v7 = vpop.f32.mrf.mxu1  ;;  %v2089_v23 = vpop.eup %2088  ;;  %v609_v55 = vadd.f32 1.0, %v2087_v8  ;;  %v1065_v44 = vmul.f32 %v1007_v0, %v2555_v39  ;;  %3425 = vst [vmem:[#allocation6_spill] sm:$0xff] %v2730_v59  ;;  %2110 = vrcp.f32 %v724_v1  ;;  %v566_v2 = vmul.f32 1.442695, %v467_v22 }
 0x114   :  { %3423 = vst [vmem:[#allocation4_spill] sm:$0xff] %v2708_v7  ;;  %v1008_v26 = vsel %vm950_vm0, 1.0, %v892_v50  ;;  %v893_v36 = vsub.f32 1.0, %v835_v18  ;;  %v836_v62 = vmul.f32 2.0, %v2089_v23  ;;  %v2723_v7 = vpop.eup %2090  ;;  %v1325_v50 = vsel %vm1296_vm15, %v1064_v10, 0.0  ;;  %v309_v39 = vpop.f32.mrf.mxu0 }
 0x115   :  { %v2716_v60 = vpop.f32.mrf.mxu1  ;;  %v1066_v27 = vmul.f32 %v1008_v26, %v2558_v43  ;;  %v2093_v43 = vpop.eup %2092  ;;  %v667_v26 = vmul.f32 %v609_v55, %v609_v55  ;;  %v2747_v55 = vadd.f32 %v2611_v21, %v2548_v35  ;;  %v691_v21 = vmul.f32 %v2698_v51, %v2698_v51 }
 0x116   :  { %3424 = vst [vmem:[#allocation5_spill] sm:$0xff] %v2716_v60  ;;  %v1009_v18 = vsel %vm951_vm2, 1.0, %v893_v36  ;;  %v2736_v23 = vpop.permute.xlu1 %1219  ;;  %v894_v10 = vsub.f32 1.0, %v836_v62  ;;  %v2738_v60 = vpop.eup %2094  ;;  %v837_v34 = vmul.f32 2.0, %v2093_v43  ;;  %v1326_v36 = vsel %vm1296_vm15, %v1065_v44, 0.0 }
 0x117   :  { %v423_v0 = vpop.f32.mrf.mxu1  ;;  %v1327_v8 = vsel %vm1297_vm1, %v1066_v27, 0.0  ;;  %v1067_v17 = vmul.f32 %v1009_v18, %v2567_v52  ;;  %vm1299_vm7 = vcmp.eq.s32.totalorder %v2736_v23, 1  ;;  %v2097_v27 = vpop.eup %2096  ;;  %3426 = vst [vmem:[#allocation7_spill] sm:$0xff] %v2747_v55  ;;  %v2750_v62 = vadd.f32 %v309_v39, %v2546_v32 }
 0x118   :  { %v1833_v5 = vpack.c.bf16 %v1327_v8, %v1325_v50  ;;  %v1010_v1 = vsel %vm952_vm3, 1.0, %v894_v10  ;;  %v895_v19 = vsub.f32 1.0, %v837_v34  ;;  %v838_v44 = vmul.f32 2.0, %v2097_v27  ;;  %v2099_v22 = vpop.eup %2098  ;;  %v2762_v43 = vpop.permute.xlu0 %1228 }
 0x119   :  { %v424_v0 = vpop.f32.mrf.mxu1  ;;  %v1328_v52 = vsel %vm1297_vm1, %v1067_v17, 0.0  ;;  %v634_v50 = vadd.f32 1.0, %v2696_v6  ;;  %v725_v8 = vadd.f32 1.0, %v667_v26  ;;  %v2101_v18 = vpop.eup %2100  ;;  %2112 = vpow2.f32 %v564_v48 }
 0x11a   :  { %1834 = vst [vmem:[%s3409_s4] sm:$0xff] %v1833_v5   ;;  %v1903_v39 = vpack.c.bf16 %v1328_v52, %v1326_v36  ;;  %v896_v5 = vsub.f32 1.0, %v838_v44  ;;  %v610_v61 = vadd.f32 1.0, %v2099_v22  ;;  %v468_v17 = vmin.f32 %v2730_v59, 20.0  ;;  %v2103_v0 = vpop.eup %2102  ;;  %v311_v52 = vpop.f32.mrf.mxu0 }
 0x11b   :  { %v1068_v10 = vmul.f32 %v1010_v1, %v2570_v53  ;;  %v1011_v6 = vsel %vm953_vm4, 1.0, %v895_v19  ;;  %v839_v51 = vmul.f32 2.0, %v2101_v18  ;;  %v438_v34 = vmin.f32 %v2750_v62, 20.0  ;;  %v2105_v26 = vpop.eup %2104 }
 0x11c   :  { %1904 = vst [vmem:[%s3410_s5] sm:$0xff] %v1903_v39   ;;  %v1012_v48 = vsel %vm954_vm5, 1.0, %v896_v5  ;;  %2114 = vpow2.f32 %v566_v2  ;;  %v668_v27 = vmul.f32 %v610_v61, %v610_v61  ;;  %v469_v36 = vmin.f32 %v2747_v55, 20.0  ;;  %v2107_v1 = vpop.eup %2106  ;;  %v2777_v39 = vpop.permute.xlu1 %1225 }
 0x11d   :  { %v1070_v44 = vmul.f32 %v1012_v48, %v2587_v3  ;;  %v897_v22 = vsub.f32 1.0, %v839_v51  ;;  %2116 = vrcp.f32 %v725_v8  ;;  %v508_v53 = vmul.f32 1.442695, %v438_v34  ;;  %v2785_v61 = vpop.permute.xlu0 %1234  ;;  %v313_v51 = vpop.f32.mrf.mxu0 }
 0x11e   :  { %v1069_v19 = vmul.f32 %v1011_v6, %v2582_v63  ;;  %v726_v18 = vadd.f32 1.0, %v668_v27  ;;  %v568_v59 = vmul.f32 1.442695, %v468_v17  ;;  %v2781_v5 = vadd.f32 %v2615_v28, %v2546_v32 }
 0x11f   :  { %v1329_v2 = vsel %vm1298_vm6, %v1068_v10, 0.0  ;;  %v1331_v3 = vsel %vm1299_vm7, %v1070_v44, 0.0  ;;  %v1013_v8 = vsel %vm955_vm8, 1.0, %v897_v22  ;;  %2118 = vpow2.f32 %v508_v53  ;;  %v2109_v28 = vpop.eup %2108  ;;  %v315_v23 = vpop.f32.mrf.mxu0 }
 0x120   :  { %v749_v63 = vadd.f32 1.0, %v691_v21  ;;  %v1838_v6 = vpack.c.bf16 %v1331_v3, %v1329_v2  ;;  %v1071_v17 = vmul.f32 %v1013_v8, %v2600_v13  ;;  %2120 = vrcp.f32 %v726_v18 }
 0x121   :  { %v635_v34 = vadd.f32 1.0, %v2723_v7  ;;  %v636_v10 = vadd.f32 1.0, %v2738_v60  ;;  %v570_v48 = vmul.f32 1.442695, %v469_v36  ;;  %v2795_v27 = vadd.f32 %v311_v52, %v2548_v35  ;;  %v2111_v7 = vpop.eup %2110  ;;  %v2805_v52 = vpop.permute.xlu1 %1231 }
 0x122   :  { %v1330_v44 = vsel %vm1298_vm6, %v1069_v19, 0.0  ;;  %1970 = vst [vmem:[%s3409_s4 + $0x8] sm:$0xff] %v1838_v6   ;;  %v1332_v13 = vsel %vm1299_vm7, %v1071_v17, 0.0  ;;  %v611_v21 = vadd.f32 1.0, %v2109_v28  ;;  %v470_v22 = vmin.f32 %v2781_v5, 20.0 }
 0x123   :  { %v692_v53 = vmul.f32 %v634_v50, %v634_v50  ;;  %v637_v60 = vadd.f32 1.0, %v2103_v0  ;;  %v1908_v36 = vpack.c.bf16 %v1332_v13, %v1330_v44  ;;  %2122 = vpow2.f32 %v568_v59  ;;  %v2816_v50 = vpop.permute.xlu0 %1240 }
 0x124   :  { %v669_v18 = vmul.f32 %v611_v21, %v611_v21  ;;  %v439_v54 = vmin.f32 %v2795_v27, 20.0  ;;  %v2810_v19 = vadd.f32 %v2618_v37, %v2548_v35  ;;  %2124 = vrcp.f32 %v2710_v14  ;;  %3428 = vst [vmem:[#allocation9_spill] sm:$0xff] %v2816_v50 }
 0x125   :  { %v693_v2 = vmul.f32 %v635_v34, %v635_v34  ;;  %v694_v3 = vmul.f32 %v636_v10, %v636_v10  ;;  %1983 = vst [vmem:[%s3410_s5 + $0x8] sm:$0xff] %v1908_v36   ;;  %2126 = vpow2.f32 %v570_v48  ;;  %v2819_v59 = vadd.f32 %v313_v51, %v2546_v32  ;;  %v2833_v36 = vpop.permute.xlu1 %1237 }
 0x126   :  { %3427 = vst [vmem:[#allocation8_spill] sm:$0xff] %v2810_v19  ;;  %v840_v0 = vmul.f32 2.0, %v2111_v7  ;;  %v727_v8 = vadd.f32 1.0, %v669_v18  ;;  %v572_v6 = vmul.f32 1.442695, %v470_v22  ;;  %v2113_v17 = vpop.eup %2112  ;;  %v638_v28 = vadd.f32 1.0, %v2105_v26  ;;  %v319_v26 = vpop.f32.mrf.mxu0 }
 0x127   :  { %v510_v37 = vmul.f32 1.442695, %v439_v54  ;;  %2128 = vrcp.f32 %v749_v63  ;;  %v440_v14 = vmin.f32 %v2819_v59, 20.0  ;;  %v2823_v34 = vadd.f32 %v315_v23, %v2548_v35  ;;  %v2838_v23 = vpop.permute.xlu0 %1246 }
 0x128   :  { %v695_v10 = vmul.f32 %v637_v60, %v637_v60  ;;  %v639_v44 = vadd.f32 1.0, %v2107_v1  ;;  %2130 = vrcp.f32 %v727_v8  ;;  %v471_v48 = vmin.f32 %v2810_v19, 20.0  ;;  %3430 = vst [vmem:[#allocation11_spill] sm:$0xff] %v2838_v23  ;;  %v321_v23 = vpop.f32.mrf.mxu0 }
 0x129   :  { %v2115_v13 = vpop.eup %2114  ;;  %2132 = vpow2.f32 %v510_v37  ;;  %v512_v51 = vmul.f32 1.442695, %v440_v14  ;;  %v2829_v21 = vadd.f32 %v2624_v47, %v2546_v32  ;;  %v2831_v22 = vadd.f32 1.0, %v692_v53 }
 0x12a   :  { %v2117_v63 = vpop.eup %2116  ;;  %v898_v7 = vsub.f32 1.0, %v840_v0  ;;  %2134 = vpow2.f32 %v572_v6  ;;  %v441_v1 = vmin.f32 %v2823_v34, 20.0  ;;  %v2836_v60 = vadd.f32 1.0, %v693_v2 }
 0x12b   :  { %3429 = vst [vmem:[#allocation10_spill] sm:$0xff] %v2829_v21  ;;  %v752_v18 = vadd.f32 1.0, %v694_v3  ;;  %v696_v54 = vmul.f32 %v638_v28, %v638_v28  ;;  %2136 = vpow2.f32 %v512_v51  ;;  %vm1300_vm10 = vcmp.eq.s32.totalorder %v2719_v45, 1 }
 0x12c   :  { %v2119_v8 = vpop.eup %2118  ;;  %v2841_v47 = vadd.f32 1.0, %v695_v10  ;;  %vm1301_vm11 = vcmp.eq.s32.totalorder %v2777_v39, 1  ;;  %v697_v53 = vmul.f32 %v639_v44, %v639_v44  ;;  %v574_v0 = vmul.f32 1.442695, %v471_v48 }
 0x12d   :  { %v514_v6 = vmul.f32 1.442695, %v441_v1  ;;  %v2121_v37 = vpop.eup %2120  ;;  %v640_v2 = vadd.f32 1.0, %v2113_v17  ;;  %v841_v14 = vmul.f32 2.0, %v2117_v63  ;;  %v612_v3 = vadd.f32 1.0, %v2119_v8  ;;  %v2854_v1 = vpop.permute.xlu1 %1243 }
 0x12e   :  { %v472_v28 = vmin.f32 %v2829_v21, 20.0  ;;  %v1014_v51 = vsel %vm956_vm9, 1.0, %v898_v7  ;;  %v842_v50 = vmul.f32 2.0, %v2121_v37  ;;  %v2849_v10 = vadd.f32 %v319_v26, %v2546_v32  ;;  %3431 = vst [vmem:[#allocation12_spill] sm:$0xff] %v2854_v1 }
 0x12f   :  { %2138 = vpow2.f32 %v514_v6  ;;  %v2851_v44 = vadd.f32 1.0, %v696_v54  ;;  %v641_v55 = vadd.f32 1.0, %v2115_v13  ;;  %vm958_vm13 = vcmp.gt.f32.partialorder %v2661_v38, 20.0  ;;  %v2861_v54 = vpop.permute.xlu0 %1252 }
 0x130   :  { %v670_v48 = vmul.f32 %v612_v3, %v612_v3  ;;  %v2123_v17 = vpop.eup %2122  ;;  %v900_v63 = vsub.f32 1.0, %v842_v50  ;;  %2140 = vpow2.f32 %v574_v0  ;;  %v442_v8 = vmin.f32 %v2849_v10, 20.0  ;;  %3432 = vst [vmem:[#allocation13_spill] sm:$0xff] %v2861_v54 }
 0x131   :  { %v2858_v7 = vadd.f32 %v321_v23, %v2548_v35  ;;  %v2125_v6 = vpop.eup %2124  ;;  %v1072_v26 = vmul.f32 %v1014_v51, %v2603_v16  ;;  %v899_v37 = vsub.f32 1.0, %v841_v14  ;;  %v576_v21 = vmul.f32 1.442695, %v472_v28 }
 0x132   :  { %v728_v13 = vadd.f32 1.0, %v670_v48  ;;  %v2127_v19 = vpop.eup %2126  ;;  %v2863_v3 = vadd.f32 1.0, %v697_v53  ;;  %v2865_v50 = vmul.f32 %v640_v2, %v640_v2  ;;  %v1016_v0 = vsel %vm958_vm13, 1.0, %v900_v63 }
 0x133   :  { %v516_v1 = vmul.f32 1.442695, %v442_v8  ;;  %vm980_vm14 = vcmp.gt.f32.partialorder %v2576_v57, 20.0  ;;  %v1074_v23 = vmul.f32 %v1016_v0, %v2661_v38  ;;  %vm959_vm15 = vcmp.gt.f32.partialorder %v2679_v25, 20.0  ;;  %v2887_v33 = vpop.permute.xlu0 %1258 }
 0x134   :  { %2142 = vrcp.f32 %v728_v13  ;;  %v2874_v16 = vadd.f32 %v2633_v46, %v2548_v35  ;;  %v2129_v14 = vpop.eup %2128  ;;  %v2876_v53 = vmul.f32 %v641_v55, %v641_v55  ;;  %v864_v2 = vmul.f32 2.0, %v2125_v6  ;;  %v2885_v55 = vpop.permute.xlu1 %1249 }
 0x135   :  { %2144 = vpow2.f32 %v516_v1  ;;  %v443_v28 = vmin.f32 %v2858_v7, 20.0  ;;  %v2131_v51 = vpop.eup %2130  ;;  %v1333_v48 = vsel %vm1300_vm10, %v1072_v26, 0.0  ;;  %v1015_v38 = vsel %vm957_vm12, 1.0, %v899_v37 }
 0x136   :  { %v1335_v63 = vsel %vm1301_vm11, %v1074_v23, 0.0  ;;  %2146 = vpow2.f32 %v576_v21  ;;  %v2133_v46 = vpop.eup %2132  ;;  %v843_v13 = vmul.f32 2.0, %v2131_v51  ;;  %v642_v0 = vadd.f32 1.0, %v2123_v17 }
 0x137   :  { %v1843_v8 = vpack.c.bf16 %v1335_v63, %v1333_v48  ;;  %2148 = vrcp.f32 %v752_v18  ;;  %v518_v1 = vmul.f32 1.442695, %v443_v28  ;;  %v2135_v6 = vpop.eup %2134  ;;  %v613_v54 = vadd.f32 1.0, %v2133_v46 }
 0x138   :  { %v473_v26 = vmin.f32 %v2874_v16, 20.0  ;;  %v2892_v37 = vadd.f32 %v2637_v4, %v2546_v32  ;;  %v2137_v23 = vpop.eup %2136  ;;  %vm981_vm0 = vcmp.gt.f32.partialorder %v2597_v11, 20.0  ;;  %v1073_v21 = vmul.f32 %v1015_v38, %v2631_v58 }
 0x139   :  { %1971 = vst [vmem:[%s3409_s4 + $0x10] sm:$0xff] %v1843_v8   ;;  %v901_v18 = vsub.f32 1.0, %v843_v13  ;;  %v922_v17 = vsub.f32 1.0, %v864_v2  ;;  %vm1312_vm1 = vcmp.eq.s32.totalorder %v2887_v33, 1  ;;  %2150 = vpow2.f32 %v518_v1 }
 0x13a   :  { %v671_v28 = vmul.f32 %v613_v54, %v613_v54  ;;  %v865_v51 = vmul.f32 2.0, %v2129_v14  ;;  %v614_v48 = vadd.f32 1.0, %v2137_v23  ;;  %2152 = vrcp.f32 %v2831_v22  ;;  %v2910_v23 = vpop.permute.xlu1 %1255 }
 0x13b   :  { %v1017_v4 = vsel %vm959_vm15, 1.0, %v901_v18  ;;  %v643_v63 = vadd.f32 1.0, %v2127_v19  ;;  %v644_v46 = vadd.f32 1.0, %v2135_v6  ;;  %2154 = vrcp.f32 %v2841_v47 }
 0x13c   :  { %v2139_v58 = vpop.eup %2138  ;;  %v1075_v38 = vmul.f32 %v1017_v4, %v2679_v25  ;;  %v729_v8 = vadd.f32 1.0, %v671_v28  ;;  %v672_v2 = vmul.f32 %v614_v48, %v614_v48  ;;  %v474_v13 = vmin.f32 %v2892_v37, 20.0 }
 0x13d   :  { %v1334_v54 = vsel %vm1300_vm10, %v1073_v21, 0.0  ;;  %v1038_v22 = vsel %vm980_vm14, 1.0, %v922_v17  ;;  %v615_v14 = vadd.f32 1.0, %v2139_v58  ;;  %v578_v1 = vmul.f32 1.442695, %v473_v26  ;;  %v2141_v19 = vpop.eup %2140 }
 0x13e   :  { %v1336_v47 = vsel %vm1301_vm11, %v1075_v38, 0.0  ;;  %2156 = vrcp.f32 %v729_v8  ;;  %v923_v25 = vsub.f32 1.0, %v865_v51  ;;  %v730_v6 = vadd.f32 1.0, %v672_v2 }
 0x13f   :  { %v700_v18 = vmul.f32 %v642_v0, %v642_v0  ;;  %v1913_v28 = vpack.c.bf16 %v1336_v47, %v1334_v54  ;;  %v701_v48 = vmul.f32 %v643_v63, %v643_v63  ;;  %v673_v4 = vmul.f32 %v615_v14, %v615_v14  ;;  %v323_v0 = vpop.f32.mrf.mxu0 }
 0x140   :  { %v702_v45 = vmul.f32 %v644_v46, %v644_v46  ;;  %v1096_v21 = vmul.f32 %v1038_v22, %v2576_v57  ;;  %2158 = vrcp.f32 %v730_v6  ;;  %v580_v17 = vmul.f32 1.442695, %v474_v13  ;;  %v2932_v13 = vpop.permute.xlu1 %1261 }
 0x141   :  { %v2143_v58 = vpop.eup %2142  ;;  %v756_v26 = vadd.f32 1.0, %v2865_v50  ;;  %1984 = vst [vmem:[%s3410_s5 + $0x10] sm:$0xff] %v1913_v28   ;;  %v645_v39 = vadd.f32 1.0, %v2141_v19  ;;  %v731_v38 = vadd.f32 1.0, %v673_v4  ;;  %2160 = vrcp.f32 %v2836_v60 }
 0x142   :  { %v2145_v51 = vpop.eup %2144  ;;  %v757_v63 = vadd.f32 1.0, %v2876_v53  ;;  %v1039_v57 = vsel %vm981_vm0, 1.0, %v923_v25  ;;  %2162 = vpow2.f32 %v578_v1  ;;  %v2925_v46 = vadd.f32 %v2644_v15, %v2548_v35  ;;  %v325_v25 = vpop.f32.mrf.mxu0 }
 0x143   :  { %v2147_v50 = vpop.eup %2146  ;;  %vm982_vm2 = vcmp.gt.f32.partialorder %v2609_v20, 20.0  ;;  %v2928_v8 = vadd.f32 1.0, %v700_v18  ;;  %v2930_v2 = vadd.f32 1.0, %v701_v48  ;;  %2164 = vrcp.f32 %v731_v38 }
 0x144   :  { %v616_v60 = vadd.f32 1.0, %v2145_v51  ;;  %v2149_v53 = vpop.eup %2148  ;;  %vm960_vm3 = vcmp.gt.f32.partialorder %v2750_v62, 20.0  ;;  %v2935_v54 = vadd.f32 1.0, %v702_v45  ;;  %v2939_v15 = vsel %vm1312_vm1, %v1096_v21, 0.0 }
 0x145   :  { %2166 = vpow2.f32 %v580_v17  ;;  %vm1313_vm4 = vcmp.eq.s32.totalorder %v2932_v13, 1  ;;  %v2943_v22 = vadd.f32 %v323_v0, %v2546_v32  ;;  %v844_v14 = vmul.f32 2.0, %v2143_v58 }
 0x146   :  { %v703_v1 = vmul.f32 %v645_v39, %v645_v39  ;;  %v1097_v19 = vmul.f32 %v1039_v57, %v2597_v11  ;;  %v674_v47 = vmul.f32 %v616_v60, %v616_v60  ;;  %v2151_v6 = vpop.eup %2150  ;;  %v646_v18 = vadd.f32 1.0, %v2147_v50 }
 0x147   :  { %v475_v28 = vmin.f32 %v2925_v46, 20.0  ;;  %2168 = vrcp.f32 %v756_v26  ;;  %v444_v48 = vmin.f32 %v2943_v22, 20.0  ;;  %v2153_v4 = vpop.eup %2152  ;;  %v2948_v45 = vmul.f32 2.0, %v2149_v53 }
 0x148   :  { %v732_v21 = vadd.f32 1.0, %v674_v47  ;;  %v617_v17 = vadd.f32 1.0, %v2151_v6  ;;  %2170 = vrcp.f32 %v757_v63  ;;  %v2155_v38 = vpop.eup %2154  ;;  %vm961_vm5 = vcmp.gt.f32.partialorder %v2795_v27, 20.0 }
 0x149   :  { %v866_v58 = vmul.f32 2.0, %v2153_v4  ;;  %v520_v11 = vmul.f32 1.442695, %v444_v48  ;;  %v2953_v39 = vadd.f32 %v2652_v29, %v2546_v32  ;;  %v2956_v0 = vadd.f32 %v325_v25, %v2548_v35 }
 0x14a   :  { %v902_v26 = vsub.f32 1.0, %v844_v14  ;;  %v2960_v51 = vsel %vm1312_vm1, %v1097_v19, 0.0  ;;  %vm962_vm6 = vcmp.gt.f32.partialorder %v2819_v59, 20.0  ;;  %2172 = vrcp.f32 %v732_v21 }
 0x14b   :  { %v675_v63 = vmul.f32 %v617_v17, %v617_v17  ;;  %vm983_vm7 = vcmp.gt.f32.partialorder %v2622_v40, 20.0  ;;  %vm984_vm8 = vcmp.gt.f32.partialorder %v2628_v49, 20.0  ;;  %v2965_v57 = vadd.f32 1.0, %v703_v1  ;;  %v2157_v60 = vpop.eup %2156 }
 0x14c   :  { %v582_v29 = vmul.f32 1.442695, %v475_v28  ;;  %v924_v50 = vsub.f32 1.0, %v866_v58  ;;  %2174 = vpow2.f32 %v520_v11  ;;  %vm1302_vm9 = vcmp.eq.s32.totalorder %v2762_v43, 1 }
 0x14d   :  { %vm985_vm10 = vcmp.gt.f32.partialorder %v2642_v12, 20.0  ;;  %v2969_v33 = vmul.f32 %v646_v18, %v646_v18  ;;  %v869_v53 = vmul.f32 2.0, %v2155_v38  ;;  %v926_v14 = vsub.f32 1.0, %v2948_v45  ;;  %v2159_v6 = vpop.eup %2158 }
 0x14e   :  { %v445_v19 = vmin.f32 %v2956_v0, 20.0  ;;  %vm1303_vm11 = vcmp.eq.s32.totalorder %v2805_v52, 1  ;;  %v845_v47 = vmul.f32 2.0, %v2157_v60  ;;  %vm963_vm12 = vcmp.gt.f32.partialorder %v2823_v34, 20.0  ;;  %v2161_v45 = vpop.eup %2160 }
 0x14f   :  { %v1040_v1 = vsel %vm982_vm2, 1.0, %v924_v50  ;;  %v476_v25 = vmin.f32 %v2953_v39, 20.0  ;;  %2176 = vrcp.f32 %v2851_v44  ;;  %v1018_v18 = vsel %vm960_vm3, 1.0, %v902_v26  ;;  %v2163_v58 = vpop.eup %2162 }
 0x150   :  { %v733_v28 = vadd.f32 1.0, %v675_v63  ;;  %v1098_v48 = vmul.f32 %v1040_v1, %v2609_v20  ;;  %v522_v4 = vmul.f32 1.442695, %v445_v19  ;;  %v903_v21 = vsub.f32 1.0, %v845_v47  ;;  %v2165_v26 = vpop.eup %2164 }
 0x151   :  { %v846_v17 = vmul.f32 2.0, %v2159_v6  ;;  %2178 = vpow2.f32 %v582_v29  ;;  %v2984_v38 = vadd.f32 %v2663_v41, %v2548_v35  ;;  %v927_v11 = vsub.f32 1.0, %v869_v53 }
 0x152   :  { %v867_v50 = vmul.f32 2.0, %v2161_v45  ;;  %v1359_v44 = vsel %vm1313_vm4, %v1098_v48, 0.0  ;;  %2180 = vpow2.f32 %v522_v4  ;;  %v1076_v63 = vmul.f32 %v1018_v18, %v2750_v62  ;;  %v2167_v47 = vpop.eup %2166  ;;  %v2994_v48 = vpop.permute.xlu0 %1264 }
 0x153   :  { %v904_v20 = vsub.f32 1.0, %v846_v17  ;;  %v1873_v60 = vpack.c.bf16 %v1359_v44, %v2939_v15  ;;  %v584_v19 = vmul.f32 1.442695, %v476_v25  ;;  %v1019_v29 = vsel %vm961_vm5, 1.0, %v903_v21  ;;  %v329_v15 = vpop.f32.mrf.mxu0 }
 0x154   :  { %v847_v41 = vmul.f32 2.0, %v2165_v26  ;;  %2182 = vrcp.f32 %v733_v28  ;;  %v925_v1 = vsub.f32 1.0, %v867_v50  ;;  %v647_v6 = vadd.f32 1.0, %v2163_v58  ;;  %v2169_v25 = vpop.eup %2168 }
 0x155   :  { %v1020_v53 = vsel %vm962_vm6, 1.0, %v904_v20  ;;  %1977 = vst [vmem:[%s3409_s4 + $0x40] sm:$0xff] %v1873_v60   ;;  %v477_v62 = vmin.f32 %v2984_v38, 20.0  ;;  %2184 = vrcp.f32 %v2863_v3  ;;  %v1042_v4 = vsel %vm984_vm8, 1.0, %v926_v14  ;;  %v2171_v21 = vpop.eup %2170 }
 0x156   :  { %v1078_v18 = vmul.f32 %v1020_v53, %v2819_v59  ;;  %v905_v28 = vsub.f32 1.0, %v847_v41  ;;  %vm1314_vm13 = vcmp.eq.s32.totalorder %v2994_v48, 1  ;;  %v1041_v45 = vsel %vm983_vm7, 1.0, %v925_v1  ;;  %v3030_v1 = vpop.permute.xlu1 %1267 }
 0x157   :  { %v1337_v17 = vsel %vm1302_vm9, %v1076_v63, 0.0  ;;  %v1077_v58 = vmul.f32 %v1019_v29, %v2795_v27  ;;  %v1043_v3 = vsel %vm985_vm10, 1.0, %v927_v11  ;;  %v1099_v59 = vmul.f32 %v1041_v45, %v2622_v40  ;;  %v2173_v26 = vpop.eup %2172 }
 0x158   :  { %vm986_vm14 = vcmp.gt.f32.partialorder %v2650_v24, 20.0  ;;  %v1339_v14 = vsel %vm1303_vm11, %v1078_v18, 0.0  ;;  %v1021_v50 = vsel %vm963_vm12, 1.0, %v905_v28  ;;  %2186 = vpow2.f32 %v584_v19 }
 0x159   :  { %v3019_v44 = vadd.f32 %v329_v15, %v2546_v32  ;;  %v1848_v63 = vpack.c.bf16 %v1339_v14, %v1337_v17  ;;  %v1079_v27 = vmul.f32 %v1021_v50, %v2823_v34  ;;  %v1360_v11 = vsel %vm1313_vm4, %v1099_v59, 0.0  ;;  %v2175_v20 = vpop.eup %2174  ;;  %v1271_v59 = vpop.permute.xlu0 %1270 }
 0x15a   :  { %v586_v40 = vmul.f32 1.442695, %v477_v62  ;;  %vm988_vm15 = vcmp.gt.f32.partialorder %v2684_v30, 20.0  ;;  %v3026_v60 = vadd.f32 1.0, %v2969_v33  ;;  %v705_v29 = vmul.f32 %v647_v6, %v647_v6 }
 0x15b   :  { %v1100_v19 = vmul.f32 %v1042_v4, %v2628_v49  ;;  %v1943_v41 = vpack.c.bf16 %v1360_v11, %v2960_v51  ;;  %vm989_vm0 = vcmp.gt.f32.partialorder %v2692_v42, 20.0  ;;  %v1338_v34 = vsel %vm1302_vm9, %v1077_v58, 0.0  ;;  %1972 = vst [vmem:[%s3409_s4 + $0x18] sm:$0xff] %v1848_v63  }
 0x15c   :  { %v1340_v13 = vsel %vm1303_vm11, %v1079_v27, 0.0  ;;  %v872_v33 = vmul.f32 2.0, %v2169_v25  ;;  %v618_v53 = vadd.f32 1.0, %v2175_v20  ;;  %vm1315_vm1 = vcmp.eq.s32.totalorder %v3030_v1, 1  ;;  %v2177_v49 = vpop.eup %2176 }
 0x15d   :  { %v1918_v51 = vpack.c.bf16 %v1340_v13, %v1338_v34  ;;  %v1101_v6 = vmul.f32 %v1043_v3, %v2642_v12  ;;  %vm964_vm2 = vcmp.gt.f32.partialorder %v2849_v10, 20.0  ;;  %1990 = vst [vmem:[%s3410_s5 + $0x40] sm:$0xff] %v1943_v41   ;;  %v873_v43 = vmul.f32 2.0, %v2171_v21  ;;  %v331_v34 = vpop.f32.mrf.mxu0 }
 0x15e   :  { %v446_v62 = vmin.f32 %v3019_v44, 20.0  ;;  %v848_v15 = vmul.f32 2.0, %v2173_v26  ;;  %v676_v52 = vmul.f32 %v618_v53, %v618_v53  ;;  %2188 = vpow2.f32 %v586_v40  ;;  %v2179_v18 = vpop.eup %2178 }
 0x15f   :  { %v870_v25 = vmul.f32 2.0, %v2177_v49  ;;  %vm987_vm3 = vcmp.gt.f32.partialorder %v2657_v31, 20.0  ;;  %1985 = vst [vmem:[%s3410_s5 + $0x18] sm:$0xff] %v1918_v51   ;;  %v3051_v12 = vadd.f32 1.0, %v705_v29  ;;  %v648_v28 = vadd.f32 1.0, %v2167_v47  ;;  %v2181_v45 = vpop.eup %2180 }
 0x160   :  { %2190 = vrcp.f32 %v2935_v54  ;;  %v524_v4 = vmul.f32 1.442695, %v446_v62  ;;  %v1361_v21 = vsel %vm1314_vm13, %v1100_v19, 0.0  ;;  %v930_v17 = vsub.f32 1.0, %v872_v33 }
 0x161   :  { %v734_v58 = vadd.f32 1.0, %v676_v52  ;;  %v928_v3 = vsub.f32 1.0, %v870_v25  ;;  %v931_v14 = vsub.f32 1.0, %v873_v43  ;;  %v619_v50 = vadd.f32 1.0, %v2181_v45  ;;  %v2183_v63 = vpop.eup %2182 }
 0x162   :  { %2192 = vpow2.f32 %v524_v4  ;;  %v3058_v26 = vadd.f32 %v2668_v56, %v2546_v32  ;;  %v3062_v54 = vsel %vm1314_vm13, %v1101_v6, 0.0  ;;  %v906_v47 = vsub.f32 1.0, %v848_v15  ;;  %v2185_v11 = vpop.eup %2184 }
 0x163   :  { %vm1316_vm4 = vcmp.eq.s32.totalorder %v1271_v59, 1  ;;  %2194 = vrcp.f32 %v734_v58  ;;  %v1044_v27 = vsel %vm986_vm14, 1.0, %v928_v3  ;;  %v706_v40 = vmul.f32 %v648_v28, %v648_v28  ;;  %v333_v3 = vpop.f32.mrf.mxu0 }
 0x164   :  { %v649_v20 = vadd.f32 1.0, %v2179_v18  ;;  %v677_v29 = vmul.f32 %v619_v50, %v619_v50  ;;  %v1102_v19 = vmul.f32 %v1044_v27, %v2650_v24  ;;  %vm1304_vm5 = vcmp.eq.s32.totalorder %v2785_v61, 1 }
 0x165   :  { %vm965_vm6 = vcmp.gt.f32.partialorder %v2858_v7, 20.0  ;;  %v1046_v56 = vsel %vm988_vm15, 1.0, %v930_v17  ;;  %v871_v48 = vmul.f32 2.0, %v2185_v11  ;;  %2196 = vrcp.f32 %v2965_v57  ;;  %v2187_v49 = vpop.eup %2186 }
 0x166   :  { %v478_v41 = vmin.f32 %v3058_v26, 20.0  ;;  %v849_v13 = vmul.f32 2.0, %v2183_v63  ;;  %v1047_v33 = vsel %vm989_vm0, 1.0, %v931_v14  ;;  %v735_v53 = vadd.f32 1.0, %v677_v29 }
 0x167   :  { %v1363_v24 = vsel %vm1315_vm1, %v1102_v19, 0.0  ;;  %v1022_v51 = vsel %vm964_vm2, 1.0, %v906_v47  ;;  %v929_v6 = vsub.f32 1.0, %v871_v48  ;;  %v707_v15 = vmul.f32 %v649_v20, %v649_v20  ;;  %v335_v19 = vpop.f32.mrf.mxu0 }
 0x168   :  { %v1878_v43 = vpack.c.bf16 %v1363_v24, %v1361_v21  ;;  %v588_v62 = vmul.f32 1.442695, %v478_v41  ;;  %v1104_v57 = vmul.f32 %v1046_v56, %v2684_v30  ;;  %2198 = vrcp.f32 %v735_v53 }
 0x169   :  { %v3081_v52 = vadd.f32 %v331_v34, %v2548_v35  ;;  %v1105_v25 = vmul.f32 %v1047_v33, %v2692_v42  ;;  %v1045_v18 = vsel %vm987_vm3, 1.0, %v929_v6  ;;  %v3091_v28 = vadd.f32 %v2676_v9, %v2548_v35 }
 0x16a   :  { %1978 = vst [vmem:[%s3409_s4 + $0x48] sm:$0xff] %v1878_v43   ;;  %2200 = vpow2.f32 %v588_v62  ;;  %v1080_v30 = vmul.f32 %v1022_v51, %v2849_v10  ;;  %v907_v4 = vsub.f32 1.0, %v849_v13  ;;  %v1103_v45 = vmul.f32 %v1045_v18, %v2657_v31  ;;  %v3434_v43 = vld [vmem:[#allocation3_spill] sm:$0xff] }
 0x16b   :  { %v447_v21 = vmin.f32 %v3081_v52, 20.0  ;;  %v764_v42 = vadd.f32 1.0, %v706_v40  ;;  %v650_v17 = vadd.f32 1.0, %v2187_v49  ;;  %v479_v58 = vmin.f32 %v3091_v28, 20.0  ;;  %v2189_v14 = vpop.eup %2188 }
 0x16c   :  { %2202 = vrcp.f32 %v2928_v8  ;;  %v765_v50 = vadd.f32 1.0, %v707_v15  ;;  %v3099_v63 = vsel %vm1316_vm4, %v1104_v57, 0.0  ;;  %vm966_vm7 = vcmp.gt.f32.partialorder %v2943_v22, 20.0 }
 0x16d   :  { %v1364_v9 = vsel %vm1315_vm1, %v1103_v45, 0.0  ;;  %v526_v31 = vmul.f32 1.442695, %v447_v21  ;;  %v2191_v10 = vpop.eup %2190  ;;  %v3105_v47 = vsel %vm1316_vm4, %v1105_v25, 0.0  ;;  %v590_v11 = vmul.f32 1.442695, %v479_v58 }
 0x16e   :  { %v1948_v27 = vpack.c.bf16 %v1364_v9, %v3062_v54  ;;  %2204 = vrcp.f32 %v2930_v2  ;;  %v3111_v8 = vsel %vm1304_vm5, %v1080_v30, 0.0  ;;  %v1023_v40 = vsel %vm965_vm6, 1.0, %v907_v4  ;;  %v3433_v2 = vld [vmem:[#allocation2_spill] sm:$0xff]  ;;  %v3436_v21 = vld [vmem:[#allocation8_spill] sm:$0xff] }
 0x16f   :  { %2206 = vpow2.f32 %v526_v31  ;;  %v3116_v1 = vadd.f32 %v333_v3, %v2546_v32  ;;  %v2193_v20 = vpop.eup %2192  ;;  %vm1305_vm8 = vcmp.eq.s32.totalorder %v2833_v36, 1  ;;  %vm992_vm9 = vcmp.gt.f32.partialorder %v2781_v5, 20.0  ;;  %v3435_v25 = vld [vmem:[#allocation6_spill] sm:$0xff] }
 0x170   :  { %v708_v59 = vmul.f32 %v650_v17, %v650_v17  ;;  %v651_v54 = vadd.f32 1.0, %v2189_v14  ;;  %1991 = vst [vmem:[%s3410_s5 + $0x48] sm:$0xff] %v1948_v27   ;;  %2208 = vpow2.f32 %v590_v11  ;;  %v3125_v29 = vadd.f32 %v3433_v2, %v2546_v32  ;;  %v2195_v56 = vpop.eup %2194  ;;  %v3437_v14 = vld [vmem:[#allocation7_spill] sm:$0xff]  ;;  %v339_v11 = vpop.f32.mrf.mxu0 }
 0x171   :  { %v876_v48 = vmul.f32 2.0, %v2191_v10  ;;  %v620_v41 = vadd.f32 1.0, %v2193_v20  ;;  %2210 = vrcp.f32 %v764_v42  ;;  %v448_v34 = vmin.f32 %v3116_v1, 20.0 }
 0x172   :  { %v1081_v13 = vmul.f32 %v1023_v40, %v2858_v7  ;;  %v850_v33 = vmul.f32 2.0, %v2195_v56  ;;  %vm967_vm10 = vcmp.gt.f32.partialorder %v2956_v0, 20.0  ;;  %2212 = vrcp.f32 %v765_v50  ;;  %v2197_v24 = vpop.eup %2196 }
 0x173   :  { %v480_v53 = vmin.f32 %v3125_v29, 20.0  ;;  %v678_v49 = vmul.f32 %v620_v41, %v620_v41  ;;  %v528_v51 = vmul.f32 1.442695, %v448_v34  ;;  %v3132_v6 = vadd.f32 %v335_v19, %v2548_v35  ;;  %v3155_v19 = vpop.permute.xlu0 %1276 }
 0x174   :  { %v3136_v62 = vadd.f32 %v3434_v43, %v2548_v35  ;;  %v908_v15 = vsub.f32 1.0, %v850_v33  ;;  %v3138_v57 = vadd.f32 1.0, %v708_v59  ;;  %2214 = vrcp.f32 %v3026_v60 }
 0x175   :  { %v592_v7 = vmul.f32 1.442695, %v480_v53  ;;  %vm990_vm11 = vcmp.gt.f32.partialorder %v3435_v25, 20.0  ;;  %v934_v18 = vsub.f32 1.0, %v876_v48  ;;  %v736_v30 = vadd.f32 1.0, %v678_v49  ;;  %v2199_v45 = vpop.eup %2198  ;;  %v1274_v49 = vpop.permute.xlu1 %1273 }
 0x176   :  { %2216 = vpow2.f32 %v528_v51  ;;  %v449_v4 = vmin.f32 %v3132_v6, 20.0  ;;  %vm993_vm12 = vcmp.gt.f32.partialorder %v3436_v21, 20.0  ;;  %v1024_v42 = vsel %vm966_vm7, 1.0, %v908_v15 }
 0x177   :  { %v877_v17 = vmul.f32 2.0, %v2197_v24  ;;  %2218 = vpow2.f32 %v592_v7  ;;  %v481_v58 = vmin.f32 %v3136_v62, 20.0  ;;  %v2201_v3 = vpop.eup %2200  ;;  %vm991_vm13 = vcmp.gt.f32.partialorder %v3437_v14, 20.0  ;;  %v3438_v7 = vld [vmem:[#allocation4_spill] sm:$0xff] }
 0x178   :  { %v1082_v60 = vmul.f32 %v1024_v42, %v2943_v22  ;;  %v851_v50 = vmul.f32 2.0, %v2199_v45  ;;  %2220 = vrcp.f32 %v736_v30  ;;  %v530_v9 = vmul.f32 1.442695, %v449_v4 }
 0x179   :  { %v709_v31 = vmul.f32 %v651_v54, %v651_v54  ;;  %v652_v10 = vadd.f32 1.0, %v2201_v3  ;;  %v594_v27 = vmul.f32 1.442695, %v481_v58  ;;  %2222 = vrcp.f32 %v3051_v12  ;;  %v2203_v40 = vpop.eup %2202  ;;  %v3439_v58 = vld [vmem:[#allocation10_spill] sm:$0xff] }
 0x17a   :  { %v1343_v20 = vsel %vm1305_vm8, %v1082_v60, 0.0  ;;  %v909_v59 = vsub.f32 1.0, %v851_v50  ;;  %v1050_v2 = vsel %vm992_vm9, 1.0, %v934_v18  ;;  %2224 = vpow2.f32 %v530_v9 }
 0x17b   :  { %v1853_v22 = vpack.c.bf16 %v1343_v20, %v3111_v8  ;;  %v710_v56 = vmul.f32 %v652_v10, %v652_v10  ;;  %v874_v54 = vmul.f32 2.0, %v2203_v40  ;;  %2226 = vpow2.f32 %v594_v27  ;;  %v2205_v48 = vpop.eup %2204 }
 0x17c   :  { %v1342_v12 = vsel %vm1304_vm5, %v1081_v13, 0.0  ;;  %v1025_v41 = vsel %vm967_vm10, 1.0, %v909_v59  ;;  %v935_v34 = vsub.f32 1.0, %v877_v17  ;;  %vm1318_vm14 = vcmp.eq.s32.totalorder %v3155_v19, 1  ;;  %v2207_v53 = vpop.eup %2206 }
 0x17d   :  { %v3163_v33 = vadd.f32 %v339_v11, %v2546_v32  ;;  %1973 = vst [vmem:[%s3409_s4 + $0x20] sm:$0xff] %v1853_v22   ;;  %v1083_v8 = vmul.f32 %v1025_v41, %v2956_v0  ;;  %v768_v24 = vadd.f32 1.0, %v710_v56  ;;  %v875_v61 = vmul.f32 2.0, %v2205_v48  ;;  %v2209_v51 = vpop.eup %2208 }
 0x17e   :  { %v932_v13 = vsub.f32 1.0, %v874_v54  ;;  %v1108_v43 = vmul.f32 %v1050_v2, %v2781_v5  ;;  %v621_v15 = vadd.f32 1.0, %v2207_v53  ;;  %vm1317_vm15 = vcmp.eq.s32.totalorder %v1274_v49, 1  ;;  %v2211_v30 = vpop.eup %2210 }
 0x17f   :  { %v3172_v18 = vadd.f32 %v3438_v7, %v2546_v32  ;;  %v1344_v4 = vsel %vm1305_vm8, %v1083_v8, 0.0  ;;  %v653_v45 = vadd.f32 1.0, %v2209_v51  ;;  %v933_v42 = vsub.f32 1.0, %v875_v61  ;;  %v2213_v17 = vpop.eup %2212  ;;  %v341_v61 = vpop.f32.mrf.mxu0 }
 0x180   :  { %v1048_v0 = vsel %vm990_vm11, 1.0, %v932_v13  ;;  %vm994_vm0 = vcmp.gt.f32.partialorder %v3439_v58, 20.0  ;;  %v1923_v3 = vpack.c.bf16 %v1344_v4, %v1342_v12  ;;  %v1051_v5 = vsel %vm993_vm12, 1.0, %v935_v34 }
 0x181   :  { %v679_v60 = vmul.f32 %v621_v15, %v621_v15  ;;  %v1106_v50 = vmul.f32 %v1048_v0, %v3435_v25  ;;  %v711_v9 = vmul.f32 %v653_v45, %v653_v45  ;;  %v1049_v36 = vsel %vm991_vm13, 1.0, %v933_v42  ;;  %v2215_v27 = vpop.eup %2214 }
 0x182   :  { %2228 = vrcp.f32 %v768_v24  ;;  %v450_v10 = vmin.f32 %v3163_v33, 20.0  ;;  %vm995_vm1 = vcmp.gt.f32.partialorder %v2874_v16, 20.0  ;;  %1986 = vst [vmem:[%s3410_s5 + $0x20] sm:$0xff] %v1923_v3   ;;  %v1107_v40 = vmul.f32 %v1049_v36, %v3437_v14  ;;  %v343_v36 = vpop.f32.mrf.mxu0 }
 0x183   :  { %v737_v11 = vadd.f32 1.0, %v679_v60  ;;  %v1367_v20 = vsel %vm1317_vm15, %v1106_v50, 0.0  ;;  %v482_v25 = vmin.f32 %v3172_v18, 20.0  ;;  %v2217_v59 = vpop.eup %2216  ;;  %v3192_v2 = vadd.f32 1.0, %v709_v31  ;;  %v1280_v31 = vpop.permute.xlu1 %1279 }
 0x184   :  { %v769_v22 = vadd.f32 1.0, %v711_v9  ;;  %v1883_v56 = vpack.c.bf16 %v1367_v20, %v3099_v63  ;;  %v878_v54 = vmul.f32 2.0, %v2215_v27  ;;  %v2219_v48 = vpop.eup %2218  ;;  %v1368_v12 = vsel %vm1317_vm15, %v1107_v40, 0.0 }
 0x185   :  { %2230 = vrcp.f32 %v737_v11  ;;  %v3196_v41 = vmul.f32 2.0, %v2211_v30  ;;  %v622_v34 = vadd.f32 1.0, %v2217_v59  ;;  %v2221_v53 = vpop.eup %2220  ;;  %v1109_v14 = vmul.f32 %v1051_v5, %v3436_v21 }
 0x186   :  { %v1369_v8 = vsel %vm1318_vm14, %v1108_v43, 0.0  ;;  %1979 = vst [vmem:[%s3409_s4 + $0x50] sm:$0xff] %v1883_v56   ;;  %v1953_v63 = vpack.c.bf16 %v1368_v12, %v3105_v47  ;;  %v532_v24 = vmul.f32 1.442695, %v450_v10  ;;  %v2223_v49 = vpop.eup %2222  ;;  %v936_v51 = vsub.f32 1.0, %v878_v54  ;;  %v3440_v54 = vld [vmem:[#allocation5_spill] sm:$0xff] }
 0x187   :  { %v680_v13 = vmul.f32 %v622_v34, %v622_v34  ;;  %vm1319_vm2 = vcmp.eq.s32.totalorder %v1280_v31, 1  ;;  %v596_v15 = vmul.f32 1.442695, %v482_v25  ;;  %v2225_v7 = vpop.eup %2224  ;;  %vm996_vm3 = vcmp.gt.f32.partialorder %v2892_v37, 20.0 }
 0x188   :  { %vm997_vm4 = vcmp.gt.f32.partialorder %v2925_v46, 20.0  ;;  %v852_v21 = vmul.f32 2.0, %v2221_v53  ;;  %vm968_vm5 = vcmp.gt.f32.partialorder %v3019_v44, 20.0  ;;  %1992 = vst [vmem:[%s3410_s5 + $0x50] sm:$0xff] %v1953_v63   ;;  %v881_v47 = vmul.f32 2.0, %v2213_v17  ;;  %v2227_v30 = vpop.eup %2226  ;;  %v345_v53 = vpop.f32.mrf.mxu0 }
 0x189   :  { %v879_v43 = vmul.f32 2.0, %v2223_v49  ;;  %2232 = vrcp.f32 %v769_v22  ;;  %v938_v4 = vsub.f32 1.0, %v3196_v41  ;;  %v738_v45 = vadd.f32 1.0, %v680_v13  ;;  %v3441_v49 = vld [vmem:[#allocation9_spill] sm:$0xff] }
 0x18a   :  { %v623_v42 = vadd.f32 1.0, %v2225_v7  ;;  %v3213_v0 = vadd.f32 %v341_v61, %v2548_v35  ;;  %v654_v3 = vadd.f32 1.0, %v2219_v48  ;;  %v1052_v60 = vsel %vm994_vm0, 1.0, %v936_v51  ;;  %v1283_v7 = vpop.permute.xlu0 %1282 }
 0x18b   :  { %v937_v5 = vsub.f32 1.0, %v879_v43  ;;  %2234 = vpow2.f32 %v532_v24  ;;  %v655_v9 = vadd.f32 1.0, %v2227_v30  ;;  %v1110_v17 = vmul.f32 %v1052_v60, %v3439_v58  ;;  %v349_v30 = vpop.f32.mrf.mxu0 }
 0x18c   :  { %2236 = vrcp.f32 %v738_v45  ;;  %v681_v50 = vmul.f32 %v623_v42, %v623_v42  ;;  %v910_v10 = vsub.f32 1.0, %v852_v21  ;;  %v939_v27 = vsub.f32 1.0, %v881_v47 }
 0x18d   :  { %v1053_v11 = vsel %vm995_vm1, 1.0, %v937_v5  ;;  %2238 = vpow2.f32 %v596_v15  ;;  %v1371_v25 = vsel %vm1319_vm2, %v1110_v17, 0.0  ;;  %v451_v59 = vmin.f32 %v3213_v0, 20.0 }
 0x18e   :  { %v739_v40 = vadd.f32 1.0, %v681_v50  ;;  %v1111_v20 = vmul.f32 %v1053_v11, %v2874_v16  ;;  %v1370_v22 = vsel %vm1318_vm14, %v1109_v14, 0.0  ;;  %vm1000_vm6 = vcmp.gt.f32.partialorder %v3058_v26, 20.0 }
 0x18f   :  { %vm969_vm7 = vcmp.gt.f32.partialorder %v3081_v52, 20.0  ;;  %v712_v58 = vmul.f32 %v654_v3, %v654_v3  ;;  %v1888_v56 = vpack.c.bf16 %v1371_v25, %v1369_v8  ;;  %v3229_v48 = vadd.f32 %v3440_v54, %v2548_v35  ;;  %v2229_v12 = vpop.eup %2228 }
 0x190   :  { %2240 = vrcp.f32 %v739_v40  ;;  %v713_v16 = vmul.f32 %v655_v9, %v655_v9  ;;  %v1372_v41 = vsel %vm1319_vm2, %v1111_v20, 0.0  ;;  %v534_v34 = vmul.f32 1.442695, %v451_v59 }
 0x191   :  { %1980 = vst [vmem:[%s3409_s4 + $0x58] sm:$0xff] %v1888_v56   ;;  %v1958_v19 = vpack.c.bf16 %v1372_v41, %v1370_v22  ;;  %v884_v14 = vmul.f32 2.0, %v2229_v12  ;;  %v483_v63 = vmin.f32 %v3229_v48, 20.0  ;;  %2242 = vrcp.f32 %v3138_v57 }
 0x192   :  { %v1026_v8 = vsel %vm968_vm5, 1.0, %v910_v10  ;;  %vm1001_vm8 = vcmp.gt.f32.partialorder %v3091_v28, 20.0  ;;  %v1054_v31 = vsel %vm996_vm3, 1.0, %v938_v4  ;;  %v1055_v24 = vsel %vm997_vm4, 1.0, %v939_v27  ;;  %v2231_v61 = vpop.eup %2230 }
 0x193   :  { %2244 = vpow2.f32 %v534_v34  ;;  %vm1306_vm9 = vcmp.eq.s32.totalorder %v3441_v49, 1  ;;  %1993 = vst [vmem:[%s3410_s5 + $0x58] sm:$0xff] %v1958_v19   ;;  %v942_v57 = vsub.f32 1.0, %v884_v14  ;;  %v598_v13 = vmul.f32 1.442695, %v483_v63  ;;  %v3283_v34 = vpop.permute.xlu1 %1285 }
 0x194   :  { %2246 = vrcp.f32 %v3192_v2  ;;  %v3250_v51 = vadd.f32 %v343_v36, %v2546_v32  ;;  %v853_v15 = vmul.f32 2.0, %v2231_v61  ;;  %v3253_v21 = vadd.f32 %v345_v53, %v2548_v35  ;;  %v3442_v36 = vld [vmem:[#allocation12_spill] sm:$0xff] }
 0x195   :  { %v770_v47 = vadd.f32 1.0, %v712_v58  ;;  %v771_v43 = vadd.f32 1.0, %v713_v16  ;;  %vm1320_vm10 = vcmp.eq.s32.totalorder %v1283_v7, 1  ;;  %vm970_vm11 = vcmp.gt.f32.partialorder %v3116_v1, 20.0 }
 0x196   :  { %2248 = vpow2.f32 %v598_v13  ;;  %v452_v4 = vmin.f32 %v3250_v51, 20.0  ;;  %v2233_v45 = vpop.eup %2232  ;;  %v911_v42 = vsub.f32 1.0, %v853_v15  ;;  %v1112_v2 = vmul.f32 %v1054_v31, %v2892_v37  ;;  %v351_v37 = vpop.f32.mrf.mxu0 }
 0x197   :  { %v1113_v3 = vmul.f32 %v1055_v24, %v2925_v46  ;;  %v453_v5 = vmin.f32 %v3253_v21, 20.0  ;;  %v1084_v60 = vmul.f32 %v1026_v8, %v3019_v44  ;;  %v885_v50 = vmul.f32 2.0, %v2233_v45 }
 0x198   :  { %v536_v9 = vmul.f32 1.442695, %v452_v4  ;;  %2250 = vrcp.f32 %v770_v47  ;;  %v2235_v17 = vpop.eup %2234  ;;  %vm1307_vm12 = vcmp.eq.s32.totalorder %v3442_v36, 1  ;;  %v1027_v10 = vsel %vm969_vm7, 1.0, %v911_v42  ;;  %v353_v19 = vpop.f32.mrf.mxu0 }
 0x199   :  { %v1058_v27 = vsel %vm1000_vm6, 1.0, %v942_v57  ;;  %v538_v11 = vmul.f32 1.442695, %v453_v5  ;;  %2252 = vrcp.f32 %v771_v43  ;;  %v2237_v46 = vpop.eup %2236  ;;  %v1085_v40 = vmul.f32 %v1027_v10, %v3081_v52  ;;  %v1289_v10 = vpop.permute.xlu0 %1288 }
 0x19a   :  { %v943_v20 = vsub.f32 1.0, %v885_v50  ;;  %v624_v44 = vadd.f32 1.0, %v2235_v17  ;;  %2254 = vpow2.f32 %v536_v9  ;;  %v2239_v25 = vpop.eup %2238  ;;  %vm998_vm13 = vcmp.gt.f32.partialorder %v2953_v39, 20.0 }
 0x19b   :  { %v3269_v59 = vsel %vm1320_vm10, %v1112_v2, 0.0  ;;  %v854_v22 = vmul.f32 2.0, %v2237_v46  ;;  %vm971_vm14 = vcmp.gt.f32.partialorder %v3132_v6, 20.0  ;;  %2256 = vpow2.f32 %v538_v11 }
 0x19c   :  { %v3273_v58 = vsel %vm1320_vm10, %v1113_v3, 0.0  ;;  %v1059_v56 = vsel %vm1001_vm8, 1.0, %v943_v20  ;;  %v682_v52 = vmul.f32 %v624_v44, %v624_v44  ;;  %v656_v54 = vadd.f32 1.0, %v2239_v25 }
 0x19d   :  { %vm999_vm15 = vcmp.gt.f32.partialorder %v2984_v38, 20.0  ;;  %v1345_v12 = vsel %vm1306_vm9, %v1084_v60, 0.0  ;;  %v912_v16 = vsub.f32 1.0, %v854_v22  ;;  %v3281_v41 = vmul.f32 %v1058_v27, %v3058_v26  ;;  %v2241_v14 = vpop.eup %2240  ;;  %v355_v60 = vpop.f32.mrf.mxu0 }
 0x19e   :  { %v3286_v53 = vadd.f32 %v349_v30, %v2546_v32  ;;  %v1346_v63 = vsel %vm1306_vm9, %v1085_v40, 0.0  ;;  %v3291_v8 = vmul.f32 %v1059_v56, %v3091_v28  ;;  %v740_v31 = vadd.f32 1.0, %v682_v52  ;;  %v2243_v61 = vpop.eup %2242 }
 0x19f   :  { %v714_v24 = vmul.f32 %v656_v54, %v656_v54  ;;  %vm1321_vm0 = vcmp.eq.s32.totalorder %v3283_v34, 1  ;;  %v1028_v26 = vsel %vm970_vm11, 1.0, %v912_v16  ;;  %v855_v57 = vmul.f32 2.0, %v2241_v14 }
 0x1a0   :  { %v454_v13 = vmin.f32 %v3286_v53, 20.0  ;;  %v3298_v15 = vadd.f32 %v351_v37, %v2548_v35  ;;  %v2245_v7 = vpop.eup %2244  ;;  %v1086_v49 = vmul.f32 %v1028_v26, %v3116_v1  ;;  %v882_v47 = vmul.f32 2.0, %v2243_v61  ;;  %v1292_v26 = vpop.permute.xlu1 %1291 }
 0x1a1   :  { %v772_v28 = vadd.f32 1.0, %v714_v24  ;;  %v3302_v43 = vadd.f32 %v353_v19, %v2546_v32  ;;  %v2247_v30 = vpop.eup %2246  ;;  %v913_v4 = vsub.f32 1.0, %v855_v57  ;;  %2258 = vrcp.f32 %v740_v31 }
 0x1a2   :  { %v625_v45 = vadd.f32 1.0, %v2245_v7  ;;  %v540_v42 = vmul.f32 1.442695, %v454_v13  ;;  %v1347_v2 = vsel %vm1307_vm12, %v1086_v49, 0.0  ;;  %v883_v3 = vmul.f32 2.0, %v2247_v30 }
 0x1a3   :  { %v940_v5 = vsub.f32 1.0, %v882_v47  ;;  %2260 = vrcp.f32 %v772_v28  ;;  %vm1002_vm1 = vcmp.gt.f32.partialorder %v3125_v29, 20.0  ;;  %v2249_v1 = vpop.eup %2248  ;;  %v1858_v50 = vpack.c.bf16 %v1347_v2, %v1345_v12 }
 0x1a4   :  { %v1029_v32 = vsel %vm971_vm14, 1.0, %v913_v4  ;;  %v683_v9 = vmul.f32 %v625_v45, %v625_v45  ;;  %vm1003_vm2 = vcmp.gt.f32.partialorder %v3136_v62, 20.0  ;;  %2262 = vpow2.f32 %v540_v42 }
 0x1a5   :  { %v1087_v17 = vmul.f32 %v1029_v32, %v3132_v6  ;;  %v657_v27 = vadd.f32 1.0, %v2249_v1  ;;  %v941_v11 = vsub.f32 1.0, %v883_v3  ;;  %v1056_v37 = vsel %vm998_vm13, 1.0, %v940_v5  ;;  %v2251_v46 = vpop.eup %2250  ;;  %1974 = vst [vmem:[%s3409_s4 + $0x28] sm:$0xff] %v1858_v50  }
 0x1a6   :  { %vm1322_vm3 = vcmp.eq.s32.totalorder %v1289_v10, 1  ;;  %v741_v40 = vadd.f32 1.0, %v683_v9  ;;  %v1114_v20 = vmul.f32 %v1056_v37, %v2953_v39  ;;  %v455_v44 = vmin.f32 %v3298_v15, 20.0  ;;  %v2253_v6 = vpop.eup %2252  ;;  %v1295_v10 = vpop.permute.xlu0 %1294 }
 0x1a7   :  { %v3319_v25 = vadd.f32 %v355_v60, %v2548_v35  ;;  %v1348_v22 = vsel %vm1307_vm12, %v1087_v17, 0.0  ;;  %v715_v56 = vmul.f32 %v657_v27, %v657_v27  ;;  %v1057_v52 = vsel %vm999_vm15, 1.0, %v941_v11  ;;  %v2255_v12 = vpop.eup %2254 }
 0x1a8   :  { %v886_v54 = vmul.f32 2.0, %v2251_v46  ;;  %v1928_v16 = vpack.c.bf16 %v1348_v22, %v1346_v63  ;;  %2264 = vrcp.f32 %v741_v40  ;;  %v1115_v19 = vmul.f32 %v1057_v52, %v2984_v38  ;;  %v2257_v14 = vpop.eup %2256 }
 0x1a9   :  { %v1375_v39 = vsel %vm1321_vm0, %v1114_v20, 0.0  ;;  %v773_v31 = vadd.f32 1.0, %v715_v56  ;;  %v626_v24 = vadd.f32 1.0, %v2255_v12  ;;  %v887_v36 = vmul.f32 2.0, %v2253_v6 }
 0x1aa   :  { %v1893_v35 = vpack.c.bf16 %v1375_v39, %v3269_v59  ;;  %1987 = vst [vmem:[%s3410_s5 + $0x28] sm:$0xff] %v1928_v16   ;;  %v1376_v61 = vsel %vm1321_vm0, %v1115_v19, 0.0  ;;  %v627_v63 = vadd.f32 1.0, %v2257_v14  ;;  %v944_v57 = vsub.f32 1.0, %v886_v54 }
 0x1ab   :  { %v542_v38 = vmul.f32 1.442695, %v455_v44  ;;  %v1963_v59 = vpack.c.bf16 %v1376_v61, %v3273_v58  ;;  %2266 = vrcp.f32 %v773_v31  ;;  %v684_v13 = vmul.f32 %v626_v24, %v626_v24 }
 0x1ac   :  { %1981 = vst [vmem:[%s3409_s4 + $0x60] sm:$0xff] %v1893_v35   ;;  %v945_v7 = vsub.f32 1.0, %v887_v36  ;;  %v685_v49 = vmul.f32 %v627_v63, %v627_v63  ;;  %v1060_v47 = vsel %vm1002_vm1, 1.0, %v944_v57  ;;  %v456_v34 = vmin.f32 %v3302_v43, 20.0 }
 0x1ad   :  { %2268 = vpow2.f32 %v542_v38  ;;  %1994 = vst [vmem:[%s3410_s5 + $0x60] sm:$0xff] %v1963_v59   ;;  %v742_v28 = vadd.f32 1.0, %v684_v13  ;;  %v1118_v58 = vmul.f32 %v1060_v47, %v3125_v29  ;;  %vm1323_vm4 = vcmp.eq.s32.totalorder %v1292_v26, 1 }
 0x1ae   :  { %v1061_v30 = vsel %vm1003_vm2, 1.0, %v945_v7  ;;  %v743_v4 = vadd.f32 1.0, %v685_v49  ;;  %v544_v42 = vmul.f32 1.442695, %v456_v34  ;;  %v457_v2 = vmin.f32 %v3319_v25, 20.0  ;;  %v2259_v3 = vpop.eup %2258 }
 0x1af   :  { %v1119_v45 = vmul.f32 %v1061_v30, %v3136_v62  ;;  %v1377_v5 = vsel %vm1322_vm3, %v3281_v41, 0.0  ;;  %v1378_v60 = vsel %vm1322_vm3, %v3291_v8, 0.0  ;;  %2270 = vrcp.f32 %v742_v28 }
 0x1b0   :  { %v1379_v1 = vsel %vm1323_vm4, %v1118_v58, 0.0  ;;  %v2261_v50 = vpop.eup %2260  ;;  %2272 = vrcp.f32 %v743_v4  ;;  %v546_v9 = vmul.f32 1.442695, %v457_v2  ;;  %v856_v8 = vmul.f32 2.0, %v2259_v3  ;;  %v3443_v3 = vld [vmem:[#allocation11_spill] sm:$0xff] }
 0x1b1   :  { %v1380_v32 = vsel %vm1323_vm4, %v1119_v45, 0.0  ;;  %v1898_v29 = vpack.c.bf16 %v1379_v1, %v1377_v5  ;;  %v2263_v17 = vpop.eup %2262  ;;  %v888_v27 = vmul.f32 2.0, %v2261_v50  ;;  %2274 = vpow2.f32 %v544_v42 }
 0x1b2   :  { %v1968_v62 = vpack.c.bf16 %v1380_v32, %v1378_v60  ;;  %v628_v11 = vadd.f32 1.0, %v2263_v17  ;;  %2276 = vpow2.f32 %v546_v9  ;;  %vm1004_vm5 = vcmp.gt.f32.partialorder %v3172_v18, 20.0 }
 0x1b3   :  { %1982 = vst [vmem:[%s3409_s4 + $0x68] sm:$0xff] %v1898_v29   ;;  %v946_v41 = vsub.f32 1.0, %v888_v27  ;;  %vm1324_vm6 = vcmp.eq.s32.totalorder %v1295_v10, 1  ;;  %v914_v56 = vsub.f32 1.0, %v856_v8  ;;  %vm972_vm7 = vcmp.gt.f32.partialorder %v3163_v33, 20.0 }
 0x1b4   :  { %1995 = vst [vmem:[%s3410_s5 + $0x68] sm:$0xff] %v1968_v62   ;;  %v686_v37 = vmul.f32 %v628_v11, %v628_v11  ;;  %vm1005_vm8 = vcmp.gt.f32.partialorder %v3229_v48, 20.0  ;;  %vm973_vm9 = vcmp.gt.f32.partialorder %v3213_v0, 20.0  ;;  %vm974_vm10 = vcmp.gt.f32.partialorder %v3250_v51, 20.0 }
 0x1b5   :  { %v2265_v46 = vpop.eup %2264  ;;  %v1062_v40 = vsel %vm1004_vm5, 1.0, %v946_v41  ;;  %v1030_v35 = vsel %vm972_vm7, 1.0, %v914_v56  ;;  %vm975_vm11 = vcmp.gt.f32.partialorder %v3253_v21, 20.0  ;;  %vm1308_vm12 = vcmp.eq.s32.totalorder %v3443_v3, 1 }
 0x1b6   :  { %v857_v20 = vmul.f32 2.0, %v2265_v46  ;;  %v1120_v44 = vmul.f32 %v1062_v40, %v3172_v18  ;;  %v744_v6 = vadd.f32 1.0, %v686_v37  ;;  %v1088_v7 = vmul.f32 %v1030_v35, %v3163_v33 }
 0x1b7   :  { %vm1309_vm13 = vcmp.eq.s32.totalorder %v2885_v55, 1  ;;  %vm976_vm14 = vcmp.gt.f32.partialorder %v3286_v53, 20.0  ;;  %vm977_vm15 = vcmp.gt.f32.partialorder %v3298_v15, 20.0  ;;  %vm978_vm0 = vcmp.gt.f32.partialorder %v3302_v43, 20.0 }
 0x1b8   :  { %v2267_v22 = vpop.eup %2266  ;;  %v1381_v52 = vsel %vm1324_vm6, %v1120_v44, 0.0  ;;  %v915_v19 = vsub.f32 1.0, %v857_v20  ;;  %2278 = vrcp.f32 %v744_v6  ;;  %v1349_v60 = vsel %vm1308_vm12, %v1088_v7, 0.0 }
 0x1b9   :  { %v889_v12 = vmul.f32 2.0, %v2267_v22  ;;  %v1800_v16 = vpack.c.bf16 %v1381_v52, %v1381_v52  ;;  %vm979_vm1 = vcmp.gt.f32.partialorder %v3319_v25, 20.0  ;;  %vm1311_vm3 = vcmp.eq.s32.totalorder %v2910_v23, 1 }
 0x1ba   :  { %v2269_v54 = vpop.eup %2268  ;;  %v1031_v26 = vsel %vm973_vm9, 1.0, %v915_v19 }
 0x1bb   :  { %v629_v39 = vadd.f32 1.0, %v2269_v54  ;;  %v947_v14 = vsub.f32 1.0, %v889_v12  ;;  %1528 = vst [vmem:[%s3409_s4 + $0x70] sm:$0xf] %v1800_v16  ;;  %v1089_v58 = vmul.f32 %v1031_v26, %v3213_v0  ;;  %v3444_v12 = vld [vmem:[#allocation13_spill] sm:$0xff] }
 0x1bc   :  { %v2271_v18 = vpop.eup %2270  ;;  %vm1310_vm2 = vcmp.eq.s32.totalorder %v3444_v12, 1 }
 0x1bd   :  { %v687_v31 = vmul.f32 %v629_v39, %v629_v39  ;;  %v2273_v24 = vpop.eup %2272  ;;  %v1063_v36 = vsel %vm1005_vm8, 1.0, %v947_v14  ;;  %v858_v61 = vmul.f32 2.0, %v2271_v18  ;;  %v1350_v32 = vsel %vm1308_vm12, %v1089_v58, 0.0 }
 0x1be   :  { %v2275_v63 = vpop.eup %2274  ;;  %v1121_v57 = vmul.f32 %v1063_v36, %v3229_v48  ;;  %v859_v38 = vmul.f32 2.0, %v2273_v24 }
 0x1bf   :  { %v745_v59 = vadd.f32 1.0, %v687_v31  ;;  %v2277_v13 = vpop.eup %2276  ;;  %v916_v49 = vsub.f32 1.0, %v858_v61  ;;  %v630_v47 = vadd.f32 1.0, %v2275_v63 }
 0x1c0   :  { %v1382_v34 = vsel %vm1324_vm6, %v1121_v57, 0.0  ;;  %v917_v28 = vsub.f32 1.0, %v859_v38  ;;  %v631_v30 = vadd.f32 1.0, %v2277_v13 }
 0x1c1   :  { %2280 = vrcp.f32 %v745_v59  ;;  %v1829_v4 = vpack.c.bf16 %v1382_v34, %v1382_v34  ;;  %v1032_v48 = vsel %vm974_vm10, 1.0, %v916_v49  ;;  %v688_v45 = vmul.f32 %v630_v47, %v630_v47 }
 0x1c2   :  { %v1090_v42 = vmul.f32 %v1032_v48, %v3250_v51  ;;  %v1033_v2 = vsel %vm975_vm11, 1.0, %v917_v28  ;;  %v689_v33 = vmul.f32 %v631_v30, %v631_v30 }
 0x1c3   :  { %1674 = vst [vmem:[%s3410_s5 + $0x70] sm:$0xf] %v1829_v4  ;;  %v1091_v5 = vmul.f32 %v1033_v2, %v3253_v21  ;;  %v746_v0 = vadd.f32 1.0, %v688_v45 }
 0x1c4   :  { %v1351_v1 = vsel %vm1309_vm13, %v1090_v42, 0.0  ;;  %v747_v50 = vadd.f32 1.0, %v689_v33 }
 0x1c5   :  { %v1863_v29 = vpack.c.bf16 %v1351_v1, %v1349_v60  ;;  %v1352_v9 = vsel %vm1309_vm13, %v1091_v5, 0.0  ;;  %2282 = vrcp.f32 %v746_v0  ;;  %v2279_v55 = vpop.eup %2278 }
 0x1c6   :  { %v1933_v51 = vpack.c.bf16 %v1352_v9, %v1350_v32  ;;  %2284 = vrcp.f32 %v747_v50  ;;  %v860_v21 = vmul.f32 2.0, %v2279_v55 }
 0x1c7   :  { %1975 = vst [vmem:[%s3409_s4 + $0x30] sm:$0xff] %v1863_v29  }
 0x1c8   :  { %1988 = vst [vmem:[%s3410_s5 + $0x30] sm:$0xff] %v1933_v51   ;;  %v918_v62 = vsub.f32 1.0, %v860_v21 }
 0x1ca   :  { %v1034_v10 = vsel %vm976_vm14, 1.0, %v918_v62 }
 0x1cb   :  { %v1092_v44 = vmul.f32 %v1034_v10, %v3286_v53 }
 0x1cd   :  { %v1353_v19 = vsel %vm1310_vm2, %v1092_v44, 0.0 }
 0x1ce   :  { %v2281_v17 = vpop.eup %2280 }
 0x1cf   :  { %v861_v27 = vmul.f32 2.0, %v2281_v17 }
 0x1d1   :  { %v919_v11 = vsub.f32 1.0, %v861_v27 }
 0x1d2   :  { %v2283_v41 = vpop.eup %2282 }
 0x1d3   :  { %v2285_v8 = vpop.eup %2284  ;;  %v862_v37 = vmul.f32 2.0, %v2283_v41  ;;  %v1035_v46 = vsel %vm977_vm15, 1.0, %v919_v11 }
 0x1d4   :  { %v863_v40 = vmul.f32 2.0, %v2285_v8  ;;  %v1093_v22 = vmul.f32 %v1035_v46, %v3298_v15 }
 0x1d5   :  { %v920_v20 = vsub.f32 1.0, %v862_v37 }
 0x1d6   :  { %v921_v6 = vsub.f32 1.0, %v863_v40  ;;  %v1354_v53 = vsel %vm1310_vm2, %v1093_v22, 0.0 }
 0x1d7   :  { %v1036_v56 = vsel %vm978_vm0, 1.0, %v920_v20 }
 0x1d8   :  { %v1094_v52 = vmul.f32 %v1036_v56, %v3302_v43  ;;  %v1037_v54 = vsel %vm979_vm1, 1.0, %v921_v6 }
 0x1d9   :  { %v1095_v16 = vmul.f32 %v1037_v54, %v3319_v25 }
 0x1da   :  { %v1355_v39 = vsel %vm1311_vm3, %v1094_v52, 0.0 }
 0x1db   :  { %v1868_v14 = vpack.c.bf16 %v1355_v39, %v1353_v19  ;;  %v1356_v18 = vsel %vm1311_vm3, %v1095_v16, 0.0 }
 0x1dc   :  { %v1938_v35 = vpack.c.bf16 %v1356_v18, %v1354_v53 }
 0x1dd   :  { %1976 = vst [vmem:[%s3409_s4 + $0x38] sm:$0xff] %v1868_v14  }
 0x1de   :  { %1989 = vst [vmem:[%s3410_s5 + $0x38] sm:$0xff] %v1938_v35  }

// kernel: _lambda_.10
= control target key start
LH: loop header
LB: loop body
LE: loop exit
PB: predicated region body
PF: predicated region fallthrough
CT: control target
= control target key end

     0   :  { %v1512_v0 = vmov 0.0   ;;  %vm1513_vm0 = vmmov 0   ;;  %v1514_v3 = vmov 0   ;;  %s2164_s1 = inlined_call_operand.vmem [shape: bf16[128,128], index: 1, kind: input, shape index: {}]   ;;  %s2165_s0 = inlined_call_operand.vmem [shape: bf16[232,128], index: 0, kind: input, shape index: {}]   ;;  %s2166_s3 = inlined_call_operand.vmem [shape: f32[232,1], index: 3, kind: input, shape index: {}]   ;;  %s2167_s2 = inlined_call_operand.vmem [shape: f32[1,128], index: 2, kind: input, shape index: {}]   ;;  %s2168_s4 = inlined_call_operand.vmem [shape: bf16[232,128], index: 4, kind: output, shape index: {}]  }
   0x1   :  { %1276 = vmatprep.subr.bf16.mxu0 %v1512_v0  ;;  %1352 = vmatprep.subr.bf16.mxu1 %v1512_v0  ;;  %v1373_v1 = vld [vmem:[%s2164_s1 + $0x38] sm:$0xff]   ;;  %v1374_v2 = vld [vmem:[%s2164_s1 + $0x30] sm:$0xff]   ;;  %v1375_v4 = vld [vmem:[%s2164_s1 + $0x28] sm:$0xff]  }
   0x2   :  { %1292 = vmatprep.mubr.msk.bf16.mxu0 %vm1513_vm0, %v1512_v0  ;;  %1324 = vmatprep.mubr.msk.bf16.mxu1 %vm1513_vm0, %v1512_v0  ;;  %v1376_v5 = vld [vmem:[%s2164_s1 + $0x20] sm:$0xff]   ;;  %v1377_v6 = vld [vmem:[%s2164_s1 + $0x18] sm:$0xff]   ;;  %v1378_v7 = vld [vmem:[%s2164_s1 + $0x10] sm:$0xff]  }
   0x3   :  { %1277 = vmatpush3.bf16.msra.mxu0 %v1373_v1  ;;  %1360 = vmatpush3.bf16.msra.mxu1 %v1373_v1  ;;  %v1379_v8 = vld [vmem:[%s2164_s1 + $0x8] sm:$0xff]   ;;  %v706_v9 = vld [vmem:[%s2166_s3] sm:$0xff]  ;;  %v708_v11 = vld [vmem:[%s2166_s3 + $0x10] sm:$0xff] }
   0x4   :  { %1278 = vmatprep.subr.bf16.mxu0 %v1512_v0  ;;  %1353 = vmatprep.subr.bf16.mxu1 %v1512_v0  ;;  %vm735_vm1 = vcmp.gt.f32.partialorder %v706_v9, 0.5  ;;  %v707_v10 = vld [vmem:[%s2166_s3 + $0x8] sm:$0xff]  ;;  %vm737_vm3 = vcmp.gt.f32.partialorder %v708_v11, 0.5  ;;  %v709_v13 = vld [vmem:[%s2166_s3 + $0x18] sm:$0xff]  ;;  %v1380_v15 = vld [vmem:[%s2164_s1] sm:$0xff]  }
   0x5   :  { %1371 = vset.pattern.permute.xlu0 %v1514_v3  ;;  %1372 = vset.pattern.permute.xlu1 %v1514_v3  ;;  %v764_v12 = vsel %vm735_vm1, 1, %v1514_v3  ;;  %vm736_vm2 = vcmp.gt.f32.partialorder %v707_v10, 0.5  ;;  %v766_v14 = vsel %vm737_vm3, 1, %v1514_v3  ;;  %v710_v17 = vld [vmem:[%s2166_s3 + $0x20] sm:$0xff]  ;;  %vm738_vm4 = vcmp.gt.f32.partialorder %v709_v13, 0.5  ;;  %v711_v18 = vld [vmem:[%s2166_s3 + $0x28] sm:$0xff] }
   0x6   :  { %794 = vperm.xlu0 %1371, %v764_v12   ;;  %v765_v16 = vsel %vm736_vm2, 1, %v1514_v3  ;;  %800 = vperm.xlu1 %1372, %v766_v14   ;;  %v1381_v19 = vld [vmem:[%s2165_s0] sm:$0xff]   ;;  %vm739_vm5 = vcmp.gt.f32.partialorder %v710_v17, 0.5  ;;  %v767_v21 = vsel %vm738_vm4, 1, %v1514_v3  ;;  %v712_v22 = vld [vmem:[%s2166_s3 + $0x30] sm:$0xff]  ;;  %vm740_vm6 = vcmp.gt.f32.partialorder %v711_v18, 0.5 }
   0x7   :  { %1279 = vmatpush3.bf16.msra.mxu0 %v1374_v2  ;;  %1361 = vmatpush3.bf16.msra.mxu1 %v1374_v2  ;;  %v1382_v20 = vld [vmem:[%s2165_s0 + $0x40] sm:$0xff]   ;;  %v713_v23 = vld [vmem:[%s2166_s3 + $0x38] sm:$0xff]  ;;  %v768_v24 = vsel %vm739_vm5, 1, %v1514_v3  ;;  %vm741_vm7 = vcmp.gt.f32.partialorder %v712_v22, 0.5  ;;  %v769_v25 = vsel %vm740_vm6, 1, %v1514_v3  ;;  %v715_v27 = vld [vmem:[%s2166_s3 + $0x48] sm:$0xff] }
   0x8   :  { %1280 = vmatprep.subr.bf16.mxu0 %v1512_v0  ;;  %1354 = vmatprep.subr.bf16.mxu1 %v1512_v0  ;;  %v714_v26 = vld [vmem:[%s2166_s3 + $0x40] sm:$0xff]  ;;  %vm742_vm8 = vcmp.gt.f32.partialorder %v713_v23, 0.5  ;;  %v770_v28 = vsel %vm741_vm7, 1, %v1514_v3  ;;  %v1383_v29 = vld [vmem:[%s2165_s0 + $0x8] sm:$0xff]   ;;  %v716_v32 = vld [vmem:[%s2166_s3 + $0x50] sm:$0xff]  ;;  %vm744_vm10 = vcmp.gt.f32.partialorder %v715_v27, 0.5 }
   0x9   :  { %v1384_v30 = vld [vmem:[%s2165_s0 + $0x48] sm:$0xff]   ;;  %vm743_vm9 = vcmp.gt.f32.partialorder %v714_v26, 0.5  ;;  %v771_v31 = vsel %vm742_vm8, 1, %v1514_v3  ;;  %v717_v33 = vld [vmem:[%s2166_s3 + $0x58] sm:$0xff]  ;;  %vm745_vm11 = vcmp.gt.f32.partialorder %v716_v32, 0.5  ;;  %v773_v35 = vsel %vm744_vm10, 1, %v1514_v3 }
   0xa   :  { %797 = vperm.xlu0 %1371, %v765_v16   ;;  %803 = vperm.xlu1 %1372, %v767_v21   ;;  %v772_v34 = vsel %vm743_vm9, 1, %v1514_v3  ;;  %v718_v36 = vld [vmem:[%s2166_s3 + $0x60] sm:$0xff]  ;;  %vm746_vm12 = vcmp.gt.f32.partialorder %v717_v33, 0.5  ;;  %v719_v37 = vld [vmem:[%s2166_s3 + $0x68] sm:$0xff]  ;;  %v774_v38 = vsel %vm745_vm11, 1, %v1514_v3  ;;  %v1385_v39 = vld [vmem:[%s2165_s0 + $0x10] sm:$0xff]  }
   0xb   :  { %1281 = vmatpush3.bf16.msra.mxu0 %v1375_v4  ;;  %1362 = vmatpush3.bf16.msra.mxu1 %v1375_v4  ;;  %v1386_v40 = vld [vmem:[%s2165_s0 + $0x50] sm:$0xff]   ;;  %vm747_vm13 = vcmp.gt.f32.partialorder %v718_v36, 0.5  ;;  %v775_v41 = vsel %vm746_vm12, 1, %v1514_v3  ;;  %vm748_vm14 = vcmp.gt.f32.partialorder %v719_v37, 0.5  ;;  %v721_v43 = vld [vmem:[%s2166_s3 + $0x78] sm:$0xff]  ;;  %v722_v46 = vld [vmem:[%s2166_s3 + $0x80] sm:$0xff] }
   0xc   :  { %1282 = vmatprep.subr.bf16.mxu0 %v1512_v0  ;;  %1355 = vmatprep.subr.bf16.mxu1 %v1512_v0  ;;  %v720_v42 = vld [vmem:[%s2166_s3 + $0x70] sm:$0xff]  ;;  %v776_v44 = vsel %vm747_vm13, 1, %v1514_v3  ;;  %v777_v45 = vsel %vm748_vm14, 1, %v1514_v3  ;;  %vm750_vm1 = vcmp.gt.f32.partialorder %v721_v43, 0.5  ;;  %v723_v47 = vld [vmem:[%s2166_s3 + $0x88] sm:$0xff]  ;;  %v1387_v49 = vld [vmem:[%s2165_s0 + $0x18] sm:$0xff]  }
   0xd   :  { %vm749_vm15 = vcmp.gt.f32.partialorder %v720_v42, 0.5  ;;  %v1388_v50 = vld [vmem:[%s2165_s0 + $0x58] sm:$0xff]   ;;  %vm751_vm2 = vcmp.gt.f32.partialorder %v722_v46, 0.5  ;;  %v779_v51 = vsel %vm750_vm1, 1, %v1514_v3  ;;  %v724_v52 = vld [vmem:[%s2166_s3 + $0x90] sm:$0xff]  ;;  %vm752_vm3 = vcmp.gt.f32.partialorder %v723_v47, 0.5 }
   0xe   :  { %806 = vperm.xlu0 %1371, %v768_v24   ;;  %809 = vperm.xlu1 %1372, %v769_v25   ;;  %v778_v48 = vsel %vm749_vm15, 1, %v1514_v3  ;;  %v725_v53 = vld [vmem:[%s2166_s3 + $0x98] sm:$0xff]  ;;  %v780_v54 = vsel %vm751_vm2, 1, %v1514_v3  ;;  %vm753_vm4 = vcmp.gt.f32.partialorder %v724_v52, 0.5  ;;  %v781_v55 = vsel %vm752_vm3, 1, %v1514_v3  ;;  %v726_v56 = vld [vmem:[%s2166_s3 + $0xa0] sm:$0xff] }
   0xf   :  { %1283 = vmatpush3.bf16.msra.mxu0 %v1376_v5  ;;  %1363 = vmatpush3.bf16.msra.mxu1 %v1376_v5  ;;  %vm754_vm5 = vcmp.gt.f32.partialorder %v725_v53, 0.5  ;;  %v727_v57 = vld [vmem:[%s2166_s3 + $0xa8] sm:$0xff]  ;;  %v782_v58 = vsel %vm753_vm4, 1, %v1514_v3  ;;  %v1389_v59 = vld [vmem:[%s2165_s0 + $0x20] sm:$0xff]   ;;  %vm755_vm6 = vcmp.gt.f32.partialorder %v726_v56, 0.5  ;;  %v728_v62 = vld [vmem:[%s2166_s3 + $0xb0] sm:$0xff] }
  0x10   :  { %1284 = vmatprep.subr.bf16.mxu0 %v1512_v0  ;;  %1356 = vmatprep.subr.bf16.mxu1 %v1512_v0  ;;  %v1390_v60 = vld [vmem:[%s2165_s0 + $0x60] sm:$0xff]   ;;  %v783_v61 = vsel %vm754_vm5, 1, %v1514_v3  ;;  %vm756_vm7 = vcmp.gt.f32.partialorder %v727_v57, 0.5  ;;  %v729_v63 = vld [vmem:[%s2166_s3 + $0xb8] sm:$0xff]  ;;  %v784_v1 = vsel %vm755_vm6, 1, %v1514_v3  ;;  %vm757_vm8 = vcmp.gt.f32.partialorder %v728_v62, 0.5 }
  0x11   :  { %v785_v2 = vsel %vm756_vm7, 1, %v1514_v3  ;;  %v730_v4 = vld [vmem:[%s2166_s3 + $0xc0] sm:$0xff]  ;;  %vm758_vm9 = vcmp.gt.f32.partialorder %v729_v63, 0.5  ;;  %v731_v5 = vld [vmem:[%s2166_s3 + $0xc8] sm:$0xff]  ;;  %v732_v10 = vld [vmem:[%s2166_s3 + $0xd0] sm:$0xff] }
  0x12   :  { %812 = vperm.xlu0 %1371, %v770_v28   ;;  %815 = vperm.xlu1 %1372, %v771_v31   ;;  %vm759_vm10 = vcmp.gt.f32.partialorder %v730_v4, 0.5  ;;  %v787_v9 = vsel %vm758_vm9, 1, %v1514_v3  ;;  %vm760_vm11 = vcmp.gt.f32.partialorder %v731_v5, 0.5  ;;  %v733_v11 = vld [vmem:[%s2166_s3 + $0xd8] sm:$0xff]  ;;  %vm761_vm12 = vcmp.gt.f32.partialorder %v732_v10, 0.5  ;;  %v734_v14 = vld [vmem:[%s2166_s3 + $0xe0] sm:$0xff] }
  0x13   :  { %1285 = vmatpush3.bf16.msra.mxu0 %v1377_v6  ;;  %1364 = vmatpush3.bf16.msra.mxu1 %v1377_v6  ;;  %v786_v6 = vsel %vm757_vm8, 1, %v1514_v3  ;;  %v788_v12 = vsel %vm759_vm10, 1, %v1514_v3  ;;  %v789_v13 = vsel %vm760_vm11, 1, %v1514_v3  ;;  %vm762_vm13 = vcmp.gt.f32.partialorder %v733_v11, 0.5  ;;  %v1393_v16 = vld [vmem:[%s2165_s0 + $0x30] sm:$0xff]  }
  0x14   :  { %1286 = vmatprep.subr.bf16.mxu0 %v1512_v0  ;;  %1357 = vmatprep.subr.bf16.mxu1 %v1512_v0  ;;  %v1394_v17 = vld [vmem:[%s2165_s0 + $0x70] ss:$0 sps:$4 sm:$0xff]   ;;  %vm763_vm14 = vcmp.gt.f32.partialorder %v734_v14, 0.5  ;;  %v791_v18 = vsel %vm762_vm13, 1, %v1514_v3  ;;  %v1776_v21 = vld [vmem:[%s2167_s2] ss:$0 sm:$0xff] }
  0x16   :  { %818 = vperm.xlu0 %1371, %v772_v34   ;;  %821 = vperm.xlu1 %1372, %v773_v35  }
  0x17   :  { %1287 = vmatpush3.bf16.msra.mxu0 %v1378_v7  ;;  %1365 = vmatpush3.bf16.msra.mxu1 %v1378_v7  ;;  %v1391_v7 = vld [vmem:[%s2165_s0 + $0x28] sm:$0xff]  }
  0x18   :  { %1288 = vmatprep.subr.bf16.mxu0 %v1512_v0  ;;  %1358 = vmatprep.subr.bf16.mxu1 %v1512_v0 }
  0x1a   :  { %824 = vperm.xlu0 %1371, %v774_v38   ;;  %827 = vperm.xlu1 %1372, %v775_v41  }
  0x1b   :  { %1289 = vmatpush3.bf16.msra.mxu0 %v1379_v8  ;;  %1366 = vmatpush3.bf16.msra.mxu1 %v1379_v8  ;;  %v1392_v8 = vld [vmem:[%s2165_s0 + $0x68] sm:$0xff]  }
  0x1c   :  { %1290 = vmatprep.subr.bf16.mxu0 %v1512_v0  ;;  %1359 = vmatprep.subr.bf16.mxu1 %v1512_v0 }
  0x1e   :  { %830 = vperm.xlu0 %1371, %v776_v44   ;;  %833 = vperm.xlu1 %1372, %v777_v45  }
  0x1f   :  { %1291 = vmatpush3.bf16.msra.mxu0 %v1380_v15  ;;  %1367 = vmatpush3.bf16.msra.mxu1 %v1380_v15  ;;  %v790_v15 = vsel %vm761_vm12, 1, %v1514_v3 }
  0x22   :  { %1293 = vmatmul.mubr.bf16.vlgmr.msra.gmra.mxu0 %v1381_v19  ;;  %1325 = vmatmul.mubr.bf16.vlgmr.msra.gmra.mxu1 %v1382_v20  ;;  %v792_v19 = vsel %vm763_vm14, 1, %v1514_v3  ;;  %v1395_v20 = vld [vmem:[%s2165_s0 + $0x38] sm:$0xff]  }
  0x23   :  { %1296 = vmatprep.mubr.msk.bf16.mxu0 %vm1513_vm0, %v1512_v0  ;;  %1328 = vmatprep.mubr.msk.bf16.mxu1 %vm1513_vm0, %v1512_v0 }
  0x24   :  { %836 = vperm.xlu0 %1371, %v778_v48   ;;  %839 = vperm.xlu1 %1372, %v779_v51  }
  0x28   :  { %842 = vperm.xlu0 %1371, %v780_v54   ;;  %845 = vperm.xlu1 %1372, %v781_v55  }
  0x2a   :  { %1297 = vmatmul.mubr.bf16.gmra.mxu0 %v1383_v29  ;;  %1329 = vmatmul.mubr.bf16.gmra.mxu1 %v1384_v30 }
  0x2b   :  { %1300 = vmatprep.mubr.msk.bf16.mxu0 %vm1513_vm0, %v1512_v0  ;;  %1332 = vmatprep.mubr.msk.bf16.mxu1 %vm1513_vm0, %v1512_v0 }
  0x2c   :  { %848 = vperm.xlu0 %1371, %v782_v58   ;;  %851 = vperm.xlu1 %1372, %v783_v61  }
  0x30   :  { %854 = vperm.xlu0 %1371, %v784_v1   ;;  %857 = vperm.xlu1 %1372, %v785_v2  }
  0x32   :  { %1301 = vmatmul.mubr.bf16.gmra.mxu0 %v1385_v39  ;;  %1333 = vmatmul.mubr.bf16.gmra.mxu1 %v1386_v40 }
  0x33   :  { %1304 = vmatprep.mubr.msk.bf16.mxu0 %vm1513_vm0, %v1512_v0  ;;  %1336 = vmatprep.mubr.msk.bf16.mxu1 %vm1513_vm0, %v1512_v0 }
  0x34   :  { %860 = vperm.xlu0 %1371, %v786_v6   ;;  %863 = vperm.xlu1 %1372, %v787_v9  }
  0x38   :  { %866 = vperm.xlu0 %1371, %v788_v12   ;;  %869 = vperm.xlu1 %1372, %v789_v13  }
  0x3a   :  { %1305 = vmatmul.mubr.bf16.gmra.mxu0 %v1387_v49  ;;  %1337 = vmatmul.mubr.bf16.gmra.mxu1 %v1388_v50 }
  0x3b   :  { %1308 = vmatprep.mubr.msk.bf16.mxu0 %vm1513_vm0, %v1512_v0  ;;  %1340 = vmatprep.mubr.msk.bf16.mxu1 %vm1513_vm0, %v1512_v0 }
  0x3c   :  { %872 = vperm.xlu0 %1371, %v790_v15   ;;  %875 = vperm.xlu1 %1372, %v791_v18  }
  0x40   :  { %878 = vperm.xlu0 %1371, %v792_v19  }
  0x42   :  { %1309 = vmatmul.mubr.bf16.gmra.mxu0 %v1389_v59  ;;  %1341 = vmatmul.mubr.bf16.gmra.mxu1 %v1390_v60 }
  0x43   :  { %1312 = vmatprep.mubr.msk.bf16.mxu0 %vm1513_vm0, %v1512_v0  ;;  %1344 = vmatprep.mubr.msk.bf16.mxu1 %vm1513_vm0, %v1512_v0 }
  0x4a   :  { %1313 = vmatmul.mubr.bf16.gmra.mxu0 %v1391_v7  ;;  %1345 = vmatmul.mubr.bf16.gmra.mxu1 %v1392_v8 }
  0x4b   :  { %1316 = vmatprep.mubr.msk.bf16.mxu0 %vm1513_vm0, %v1512_v0  ;;  %1348 = vmatprep.mubr.msk.bf16.mxu1 %vm1513_vm0, %v1512_v0 }
  0x52   :  { %1317 = vmatmul.mubr.bf16.gmra.mxu0 %v1393_v16  ;;  %1349 = vmatmul.mubr.bf16.gmra.mxu1 %v1394_v17 }
  0x53   :  { %1320 = vmatprep.mubr.msk.bf16.mxu0 %vm1513_vm0, %v1512_v0 }
  0x5a   :  { %1321 = vmatmul.mubr.bf16.gmra.mxu0 %v1395_v20 }
  0x81   :  { %v1778_v3 = vpop.permute.xlu0 %794  ;;  %v1786_v25 = vpop.permute.xlu1 %800 }
  0x82   :  { %vm880_vm0 = vcmp.eq.s32.totalorder %v1778_v3, 1  ;;  %vm882_vm5 = vcmp.eq.s32.totalorder %v1786_v25, 1 }
  0x85   :  { %v1796_v38 = vpop.permute.xlu0 %797  ;;  %v1800_v41 = vpop.permute.xlu1 %803 }
  0x86   :  { %vm881_vm1 = vcmp.eq.s32.totalorder %v1796_v38, 1  ;;  %vm883_vm8 = vcmp.eq.s32.totalorder %v1800_v41, 1 }
  0x89   :  { %v1810_v54 = vpop.permute.xlu0 %806  ;;  %v1812_v57 = vpop.permute.xlu1 %809 }
  0x8a   :  { %vm884_vm13 = vcmp.eq.s32.totalorder %v1810_v54, 1  ;;  %vm885_vm14 = vcmp.eq.s32.totalorder %v1812_v57, 1 }
  0x8d   :  { %v1828_v9 = vpop.permute.xlu0 %812  ;;  %v1830_v10 = vpop.permute.xlu1 %815 }
  0xe2   :  { %v240_v22 = vpop.f32.mrf.mxu0  ;;  %v304_v23 = vpop.f32.mrf.mxu1 }
  0xe3   :  { %v1781_v24 = vadd.f32 %v1776_v21, %v240_v22  ;;  %v1784_v0 = vadd.f32 %v1776_v21, %v304_v23 }
  0xe4   :  { %v1294_v26 = vpop.f32.mrf.mxu0  ;;  %v1326_v27 = vpop.f32.mrf.mxu1 }
  0xe5   :  { %v358_v28 = vmin.f32 %v1781_v24, 20.0  ;;  %v374_v29 = vmin.f32 %v1784_v0, 20.0  ;;  %vm619_vm15 = vcmp.gt.f32.partialorder %v1781_v24, 20.0  ;;  %vm635_vm2 = vcmp.gt.f32.partialorder %v1784_v0, 20.0 }
  0xe6   :  { %v243_v30 = vpop.f32.mrf.mxu0  ;;  %v307_v31 = vpop.f32.mrf.mxu1 }
  0xe7   :  { %v387_v32 = vmul.f32 1.442695, %v358_v28  ;;  %v419_v33 = vmul.f32 1.442695, %v374_v29  ;;  %v1791_v34 = vadd.f32 %v1776_v21, %v243_v30  ;;  %v1794_v35 = vadd.f32 %v1776_v21, %v307_v31 }
  0xe8   :  { %v1295_v36 = vpop.f32.mrf.mxu0  ;;  %v1327_v37 = vpop.f32.mrf.mxu1 }
  0xe9   :  { %1396 = vpow2.f32 %v387_v32  ;;  %v359_v39 = vmin.f32 %v1791_v34, 20.0  ;;  %v375_v40 = vmin.f32 %v1794_v35, 20.0  ;;  %vm620_vm3 = vcmp.gt.f32.partialorder %v1791_v34, 20.0 }
  0xea   :  { %1398 = vpow2.f32 %v419_v33  ;;  %v248_v42 = vpop.f32.mrf.mxu0  ;;  %v312_v43 = vpop.f32.mrf.mxu1  ;;  %vm636_vm6 = vcmp.gt.f32.partialorder %v1794_v35, 20.0 }
  0xeb   :  { %v389_v44 = vmul.f32 1.442695, %v359_v39  ;;  %v421_v45 = vmul.f32 1.442695, %v375_v40  ;;  %v1803_v46 = vadd.f32 %v1776_v21, %v248_v42  ;;  %v1806_v47 = vadd.f32 %v1776_v21, %v312_v43  ;;  %v1842_v43 = vpop.permute.xlu0 %818 }
  0xec   :  { %v1298_v48 = vpop.f32.mrf.mxu0  ;;  %v1330_v49 = vpop.f32.mrf.mxu1 }
  0xed   :  { %1400 = vpow2.f32 %v389_v44  ;;  %v360_v50 = vmin.f32 %v1803_v46, 20.0  ;;  %v376_v51 = vmin.f32 %v1806_v47, 20.0  ;;  %v1844_v44 = vpop.permute.xlu1 %821  ;;  %vm621_vm4 = vcmp.gt.f32.partialorder %v1803_v46, 20.0 }
  0xee   :  { %1402 = vpow2.f32 %v421_v45  ;;  %v251_v52 = vpop.f32.mrf.mxu0  ;;  %v315_v53 = vpop.f32.mrf.mxu1 }
  0xef   :  { %v391_v55 = vmul.f32 1.442695, %v360_v50  ;;  %v423_v56 = vmul.f32 1.442695, %v376_v51  ;;  %v1815_v58 = vadd.f32 %v1776_v21, %v251_v52  ;;  %v1818_v59 = vadd.f32 %v1776_v21, %v315_v53 }
  0xf0   :  { %v1299_v60 = vpop.f32.mrf.mxu0  ;;  %v1331_v61 = vpop.f32.mrf.mxu1 }
  0xf1   :  { %1404 = vpow2.f32 %v391_v55  ;;  %v361_v62 = vmin.f32 %v1815_v58, 20.0  ;;  %v377_v6 = vmin.f32 %v1818_v59, 20.0  ;;  %vm622_vm9 = vcmp.gt.f32.partialorder %v1815_v58, 20.0 }
  0xf2   :  { %1406 = vpow2.f32 %v423_v56  ;;  %v256_v63 = vpop.f32.mrf.mxu0  ;;  %v320_v1 = vpop.f32.mrf.mxu1 }
  0xf3   :  { %v393_v2 = vmul.f32 1.442695, %v361_v62  ;;  %v1822_v4 = vadd.f32 %v1776_v21, %v256_v63  ;;  %v1825_v5 = vadd.f32 %v1776_v21, %v320_v1  ;;  %v425_v23 = vmul.f32 1.442695, %v377_v6 }
  0xf4   :  { %v1302_v7 = vpop.f32.mrf.mxu0  ;;  %v1334_v8 = vpop.f32.mrf.mxu1 }
  0xf5   :  { %1408 = vpow2.f32 %v393_v2  ;;  %v362_v11 = vmin.f32 %v1822_v4, 20.0  ;;  %v378_v12 = vmin.f32 %v1825_v5, 20.0  ;;  %vm623_vm11 = vcmp.gt.f32.partialorder %v1822_v4, 20.0 }
  0xf6   :  { %v1397_v13 = vpop.eup %1396  ;;  %v259_v14 = vpop.f32.mrf.mxu0 }
  0xf7   :  { %v323_v15 = vpop.f32.mrf.mxu1  ;;  %v1399_v16 = vpop.eup %1398  ;;  %v445_v17 = vadd.f32 1.0, %v1397_v13  ;;  %v395_v18 = vmul.f32 1.442695, %v362_v11  ;;  %v427_v19 = vmul.f32 1.442695, %v378_v12  ;;  %v1835_v20 = vadd.f32 %v1776_v21, %v259_v14 }
  0xf8   :  { %v461_v22 = vadd.f32 1.0, %v1399_v16  ;;  %v1838_v26 = vadd.f32 %v1776_v21, %v323_v15  ;;  %v1303_v27 = vpop.f32.mrf.mxu0  ;;  %v1854_v16 = vpop.permute.xlu0 %824 }
  0xf9   :  { %v1335_v28 = vpop.f32.mrf.mxu1  ;;  %v474_v29 = vmul.f32 %v445_v17, %v445_v17  ;;  %1410 = vpow2.f32 %v395_v18  ;;  %v363_v30 = vmin.f32 %v1835_v20, 20.0  ;;  %v1856_v17 = vpop.permute.xlu1 %827  ;;  %vm624_vm12 = vcmp.gt.f32.partialorder %v1835_v20, 20.0 }
  0xfa   :  { %v1401_v31 = vpop.eup %1400  ;;  %v490_v32 = vmul.f32 %v461_v22, %v461_v22  ;;  %1412 = vpow2.f32 %v427_v19  ;;  %v379_v33 = vmin.f32 %v1838_v26, 20.0  ;;  %v264_v36 = vpop.f32.mrf.mxu0 }
  0xfb   :  { %v328_v37 = vpop.f32.mrf.mxu1  ;;  %v1403_v39 = vpop.eup %1402  ;;  %v503_v40 = vadd.f32 1.0, %v474_v29  ;;  %v446_v42 = vadd.f32 1.0, %v1401_v31  ;;  %v397_v45 = vmul.f32 1.442695, %v363_v30  ;;  %v1847_v48 = vadd.f32 %v1776_v21, %v264_v36 }
  0xfc   :  { %v519_v49 = vadd.f32 1.0, %v490_v32  ;;  %1414 = vpow2.f32 %v425_v23  ;;  %v429_v50 = vmul.f32 1.442695, %v379_v33  ;;  %v1850_v51 = vadd.f32 %v1776_v21, %v328_v37  ;;  %v1306_v52 = vpop.f32.mrf.mxu0 }
  0xfd   :  { %v1338_v53 = vpop.f32.mrf.mxu1  ;;  %1416 = vrcp.f32 %v503_v40  ;;  %v475_v55 = vmul.f32 %v446_v42, %v446_v42  ;;  %v364_v56 = vmin.f32 %v1847_v48, 20.0  ;;  %v462_v61 = vadd.f32 1.0, %v1403_v39 }
  0xfe   :  { %v1405_v60 = vpop.eup %1404  ;;  %1418 = vpow2.f32 %v397_v45  ;;  %v380_v62 = vmin.f32 %v1850_v51, 20.0  ;;  %v267_v63 = vpop.f32.mrf.mxu0 }
  0xff   :  { %v331_v1 = vpop.f32.mrf.mxu1  ;;  %v1407_v2 = vpop.eup %1406  ;;  %v504_v6 = vadd.f32 1.0, %v475_v55  ;;  %v447_v7 = vadd.f32 1.0, %v1405_v60  ;;  %1420 = vpow2.f32 %v429_v50  ;;  %v399_v8 = vmul.f32 1.442695, %v364_v56 }
 0x100   :  { %v463_v11 = vadd.f32 1.0, %v1407_v2  ;;  %v431_v12 = vmul.f32 1.442695, %v380_v62  ;;  %1422 = vrcp.f32 %v519_v49  ;;  %v1307_v13 = vpop.f32.mrf.mxu0  ;;  %v1859_v18 = vadd.f32 %v1776_v21, %v267_v63  ;;  %v1871_v62 = vpop.permute.xlu0 %830 }
 0x101   :  { %v1339_v14 = vpop.f32.mrf.mxu1  ;;  %1424 = vrcp.f32 %v504_v6  ;;  %v476_v15 = vmul.f32 %v447_v7, %v447_v7  ;;  %v1862_v19 = vadd.f32 %v1776_v21, %v331_v1  ;;  %v491_v23 = vmul.f32 %v462_v61, %v462_v61  ;;  %v1873_v63 = vpop.permute.xlu1 %833 }
 0x102   :  { %v1409_v22 = vpop.eup %1408  ;;  %v492_v27 = vmul.f32 %v463_v11, %v463_v11  ;;  %1426 = vpow2.f32 %v399_v8  ;;  %v272_v28 = vpop.f32.mrf.mxu0  ;;  %v365_v32 = vmin.f32 %v1859_v18, 20.0  ;;  %2169 = vst [vmem:[#allocation2_spill] sm:$0xff] %v1873_v63 }
 0x103   :  { %v336_v29 = vpop.f32.mrf.mxu1  ;;  %v505_v30 = vadd.f32 1.0, %v476_v15  ;;  %v448_v31 = vadd.f32 1.0, %v1409_v22  ;;  %1428 = vpow2.f32 %v431_v12  ;;  %v381_v36 = vmin.f32 %v1862_v19, 20.0 }
 0x104   :  { %v521_v33 = vadd.f32 1.0, %v492_v27  ;;  %v1310_v37 = vpop.f32.mrf.mxu0  ;;  %v401_v42 = vmul.f32 1.442695, %v365_v32  ;;  %v520_v49 = vadd.f32 1.0, %v491_v23  ;;  %v1867_v52 = vadd.f32 %v1776_v21, %v272_v28 }
 0x105   :  { %v1342_v39 = vpop.f32.mrf.mxu1  ;;  %1430 = vrcp.f32 %v505_v30  ;;  %v477_v40 = vmul.f32 %v448_v31, %v448_v31  ;;  %v433_v50 = vmul.f32 1.442695, %v381_v36  ;;  %v1876_v1 = vadd.f32 %v1776_v21, %v336_v29 }
 0x106   :  { %v1411_v45 = vpop.eup %1410  ;;  %1432 = vrcp.f32 %v521_v33  ;;  %v275_v53 = vpop.f32.mrf.mxu0  ;;  %v366_v6 = vmin.f32 %v1867_v52, 20.0 }
 0x107   :  { %v1869_v55 = vpop.f32.mrf.mxu1  ;;  %v1413_v56 = vpop.eup %1412  ;;  %v506_v60 = vadd.f32 1.0, %v477_v40  ;;  %v449_v61 = vadd.f32 1.0, %v1411_v45  ;;  %1434 = vpow2.f32 %v401_v42  ;;  %v382_v13 = vmin.f32 %v1876_v1, 20.0 }
 0x108   :  { %v465_v2 = vadd.f32 1.0, %v1413_v56  ;;  %1436 = vpow2.f32 %v433_v50  ;;  %v1311_v7 = vpop.f32.mrf.mxu0  ;;  %v403_v22 = vmul.f32 1.442695, %v366_v6  ;;  %v1885_v32 = vadd.f32 %v1776_v21, %v275_v53  ;;  %v1891_v50 = vpop.permute.xlu1 %839 }
 0x109   :  { %v1343_v8 = vpop.f32.mrf.mxu1  ;;  %v1415_v11 = vpop.eup %1414  ;;  %1438 = vrcp.f32 %v506_v60  ;;  %v478_v12 = vmul.f32 %v449_v61, %v449_v61  ;;  %v435_v31 = vmul.f32 1.442695, %v382_v13  ;;  %2171 = vst [vmem:[#allocation4_spill] sm:$0xff] %v1891_v50 }
 0x10a   :  { %v1417_v14 = vpop.eup %1416  ;;  %v494_v15 = vmul.f32 %v465_v2, %v465_v2  ;;  %1440 = vrcp.f32 %v520_v49  ;;  %v1880_v23 = vpop.f32.mrf.mxu0  ;;  %v367_v53 = vmin.f32 %v1885_v32, 20.0  ;;  %v464_v60 = vadd.f32 1.0, %v1415_v11 }
 0x10b   :  { %v1882_v27 = vpop.f32.mrf.mxu1  ;;  %v1419_v28 = vpop.eup %1418  ;;  %v561_v29 = vmul.f32 2.0, %v1417_v14  ;;  %v507_v30 = vadd.f32 1.0, %v478_v12  ;;  %1442 = vpow2.f32 %v403_v22 }
 0x10c   :  { %v1421_v33 = vpop.eup %1420  ;;  %v523_v36 = vadd.f32 1.0, %v494_v15  ;;  %v450_v37 = vadd.f32 1.0, %v1419_v28  ;;  %v1314_v39 = vpop.f32.mrf.mxu0 }
 0x10d   :  { %v1346_v40 = vpop.f32.mrf.mxu1  ;;  %v1423_v42 = vpop.eup %1422  ;;  %v590_v45 = vsub.f32 1.0, %v561_v29  ;;  %1444 = vrcp.f32 %v507_v30  ;;  %v466_v14 = vadd.f32 1.0, %v1421_v33 }
 0x10e   :  { %v1889_v49 = vpop.permute.xlu0 %836  ;;  %v1425_v56 = vpop.eup %1424  ;;  %v479_v61 = vmul.f32 %v450_v37, %v450_v37  ;;  %v577_v2 = vmul.f32 2.0, %v1423_v42  ;;  %1446 = vpow2.f32 %v435_v31  ;;  %v405_v31 = vmul.f32 1.442695, %v367_v53 }
 0x10f   :  { %2170 = vst [vmem:[#allocation3_spill] sm:$0xff] %v1889_v49  ;;  %v1894_v6 = vpop.f32.mrf.mxu0  ;;  %v1896_v7 = vpop.f32.mrf.mxu1  ;;  %v648_v12 = vsel %vm619_vm15, 1.0, %v590_v45  ;;  %v562_v13 = vmul.f32 2.0, %v1425_v56  ;;  %1448 = vrcp.f32 %v523_v36  ;;  %vm637_vm15 = vcmp.gt.f32.partialorder %v1806_v47, 20.0 }
 0x110   :  { %v1427_v8 = vpop.eup %1426  ;;  %v508_v15 = vadd.f32 1.0, %v479_v61  ;;  %v677_v39 = vmul.f32 %v648_v12, %v1781_v24  ;;  %v606_v36 = vsub.f32 1.0, %v577_v2 }
 0x111   :  { %v451_v22 = vadd.f32 1.0, %v1427_v8  ;;  %v1315_v28 = vpop.f32.mrf.mxu0  ;;  %v1347_v11 = vpop.f32.mrf.mxu1  ;;  %v591_v30 = vsub.f32 1.0, %v562_v13  ;;  %v493_v8 = vmul.f32 %v464_v60, %v464_v60  ;;  %v495_v13 = vmul.f32 %v466_v14, %v466_v14 }
 0x112   :  { %v1429_v29 = vpop.eup %1428  ;;  %1450 = vrcp.f32 %v508_v15  ;;  %v1909_v53 = vpop.permute.xlu0 %842  ;;  %v1920_v14 = vadd.f32 %v1776_v21, %v1869_v55 }
 0x113   :  { %v1431_v37 = vpop.eup %1430  ;;  %v480_v33 = vmul.f32 %v451_v22, %v451_v22  ;;  %v1903_v40 = vpop.f32.mrf.mxu0  ;;  %v649_v56 = vsel %vm620_vm3, 1.0, %v591_v30  ;;  %v467_v15 = vadd.f32 1.0, %v1429_v29  ;;  %1452 = vpow2.f32 %v405_v31 }
 0x114   :  { %v1905_v42 = vpop.f32.mrf.mxu1  ;;  %v1433_v45 = vpop.eup %1432  ;;  %v563_v61 = vmul.f32 2.0, %v1431_v37  ;;  %v678_v2 = vmul.f32 %v649_v56, %v1791_v34  ;;  %vm896_vm10 = vcmp.eq.s32.totalorder %v1909_v53, 1  ;;  %v909_v29 = vsel %vm880_vm0, %v677_v39, 0.0 }
 0x115   :  { %v1911_v28 = vpop.permute.xlu1 %845  ;;  %v1435_v24 = vpop.eup %1434  ;;  %v509_v12 = vadd.f32 1.0, %v480_v33  ;;  %v664_v33 = vsel %vm635_vm2, 1.0, %v606_v36  ;;  %v1933_v39 = vadd.f32 1.0, %v493_v8  ;;  %v1935_v38 = vadd.f32 1.0, %v495_v13 }
 0x116   :  { %vm897_vm7 = vcmp.eq.s32.totalorder %v1911_v28, 1  ;;  %v1318_v22 = vpop.f32.mrf.mxu0  ;;  %v1350_v11 = vpop.f32.mrf.mxu1  ;;  %v592_v37 = vsub.f32 1.0, %v563_v61  ;;  %v452_v60 = vadd.f32 1.0, %v1435_v24  ;;  %v910_v31 = vsel %vm881_vm1, %v678_v2, 0.0 }
 0x117   :  { %v1437_v30 = vpop.eup %1436  ;;  %1454 = vrcp.f32 %v509_v12  ;;  %v1173_v22 = vpack.c.bf16 %v910_v31, %v909_v29  ;;  %v496_v2 = vmul.f32 %v467_v15, %v467_v15  ;;  %v693_v29 = vmul.f32 %v664_v33, %v1784_v0 }
 0x118   :  { %v1439_v34 = vpop.eup %1438  ;;  %v1929_v56 = vpop.f32.mrf.mxu0  ;;  %v650_v55 = vsel %vm621_vm4, 1.0, %v592_v37  ;;  %v481_v3 = vmul.f32 %v452_v60, %v452_v60  ;;  %v383_v37 = vmin.f32 %v1920_v14, 20.0  ;;  %v468_v13 = vadd.f32 1.0, %v1437_v30 }
 0x119   :  { %v355_v61 = vpop.f32.mrf.mxu1  ;;  %v1441_v24 = vpop.eup %1440  ;;  %v564_v11 = vmul.f32 2.0, %v1439_v34  ;;  %1174 = vst [vmem:[%s2168_s4] sm:$0xff] %v1173_v22   ;;  %v679_v8 = vmul.f32 %v650_v55, %v1803_v46  ;;  %v1948_v0 = vmul.f32 2.0, %v1433_v45  ;;  %v525_v55 = vadd.f32 1.0, %v496_v2 }
 0x11a   :  { %v578_v50 = vmul.f32 2.0, %v1441_v24  ;;  %v1319_v12 = vpop.f32.mrf.mxu0  ;;  %v1443_v63 = vpop.eup %1442  ;;  %v510_v31 = vadd.f32 1.0, %v481_v3  ;;  %vm625_vm0 = vcmp.gt.f32.partialorder %v1847_v48, 20.0  ;;  %v925_v41 = vsel %vm896_vm10, %v693_v29, 0.0 }
 0x11b   :  { %v1351_v49 = vpop.f32.mrf.mxu1  ;;  %v593_v36 = vsub.f32 1.0, %v564_v11  ;;  %v1445_v60 = vpop.eup %1444  ;;  %v453_v34 = vadd.f32 1.0, %v1443_v63  ;;  %v911_v45 = vsel %vm882_vm5, %v679_v8, 0.0  ;;  %v608_v28 = vsub.f32 1.0, %v1948_v0 }
 0x11c   :  { %v607_v15 = vsub.f32 1.0, %v578_v50  ;;  %v1943_v61 = vpop.f32.mrf.mxu0  ;;  %v1447_v49 = vpop.eup %1446  ;;  %v565_v12 = vmul.f32 2.0, %v1445_v60  ;;  %1456 = vrcp.f32 %v510_v31  ;;  %v497_v31 = vmul.f32 %v468_v13, %v468_v13 }
 0x11d   :  { %v651_v24 = vsel %vm622_vm9, 1.0, %v593_v36  ;;  %v1449_v33 = vpop.eup %1448  ;;  %v482_v11 = vmul.f32 %v453_v34, %v453_v34  ;;  %v469_v46 = vadd.f32 1.0, %v1447_v49  ;;  %v437_v36 = vmul.f32 1.442695, %v383_v37 }
 0x11e   :  { %v680_v22 = vmul.f32 %v651_v24, %v1815_v58  ;;  %v665_v63 = vsel %vm636_vm6, 1.0, %v607_v15  ;;  %v1322_v50 = vpop.f32.mrf.mxu0  ;;  %v594_v30 = vsub.f32 1.0, %v565_v12  ;;  %v1966_v37 = vmul.f32 2.0, %v1449_v33 }
 0x11f   :  { %v694_v3 = vmul.f32 %v665_v63, %v1794_v35  ;;  %v511_v60 = vadd.f32 1.0, %v482_v11  ;;  %v1451_v15 = vpop.eup %1450  ;;  %v498_v8 = vmul.f32 %v469_v46, %v469_v46  ;;  %v1978_v33 = vadd.f32 %v1776_v21, %v1880_v23 }
 0x120   :  { %v912_v58 = vsel %vm883_vm8, %v680_v22, 0.0  ;;  %v1960_v34 = vpop.f32.mrf.mxu0  ;;  %v652_v2 = vsel %vm623_vm11, 1.0, %v594_v30  ;;  %v566_v25 = vmul.f32 2.0, %v1451_v15  ;;  %v1453_v24 = vpop.eup %1452  ;;  %vm639_vm1 = vcmp.gt.f32.partialorder %v1825_v5, 20.0 }
 0x121   :  { %v1178_v49 = vpack.c.bf16 %v912_v58, %v911_v45  ;;  %v926_v35 = vsel %vm897_vm7, %v694_v3, 0.0  ;;  %1458 = vrcp.f32 %v511_v60  ;;  %v681_v53 = vmul.f32 %v652_v2, %v1822_v4  ;;  %v1994_v30 = vpop.permute.xlu0 %848 }
 0x122   :  { %v1323_v13 = vpop.f32.mrf.mxu0  ;;  %v1213_v12 = vpack.c.bf16 %v926_v35, %v925_v41  ;;  %1460 = vpow2.f32 %v437_v36  ;;  %v595_v29 = vsub.f32 1.0, %v566_v25  ;;  %v526_v22 = vadd.f32 1.0, %v497_v31 }
 0x123   :  { %1240 = vst [vmem:[%s2168_s4 + $0x8] sm:$0xff] %v1178_v49   ;;  %v454_v11 = vadd.f32 1.0, %v1453_v24  ;;  %v610_v0 = vsub.f32 1.0, %v1966_v37  ;;  %1462 = vrcp.f32 %v1933_v39  ;;  %v368_v63 = vmin.f32 %v1978_v33, 20.0  ;;  %v2031_v13 = vpop.permute.xlu1 %851 }
 0x124   :  { %v1455_v46 = vpop.eup %1454  ;;  %1247 = vst [vmem:[%s2168_s4 + $0x40] sm:$0xff] %v1213_v12   ;;  %v1990_v23 = vadd.f32 %v1776_v21, %v1882_v27  ;;  %v653_v4 = vsel %vm624_vm12, 1.0, %v595_v29  ;;  %v527_v3 = vadd.f32 1.0, %v498_v8  ;;  %1464 = vrcp.f32 %v525_v55 }
 0x125   :  { %v567_v50 = vmul.f32 2.0, %v1455_v46  ;;  %v483_v36 = vmul.f32 %v454_v11, %v454_v11  ;;  %v682_v45 = vmul.f32 %v653_v4, %v1835_v20  ;;  %v407_v58 = vmul.f32 1.442695, %v368_v63 }
 0x126   :  { %v384_v39 = vmin.f32 %v1990_v23, 20.0  ;;  %v913_v31 = vsel %vm884_vm13, %v681_v53, 0.0  ;;  %1466 = vrcp.f32 %v1935_v38  ;;  %vm886_vm2 = vcmp.eq.s32.totalorder %v1828_v9, 1 }
 0x127   :  { %v596_v60 = vsub.f32 1.0, %v567_v50  ;;  %v512_v27 = vadd.f32 1.0, %v483_v36  ;;  %vm887_vm3 = vcmp.eq.s32.totalorder %v1830_v10, 1  ;;  %v914_v15 = vsel %vm885_vm14, %v682_v45, 0.0 }
 0x128   :  { %1468 = vpow2.f32 %v407_v58  ;;  %v439_v20 = vmul.f32 1.442695, %v384_v39  ;;  %v2007_v55 = vadd.f32 %v1776_v21, %v1894_v6  ;;  %v1183_v54 = vpack.c.bf16 %v914_v15, %v913_v31  ;;  %v858_v31 = vpop.permute.xlu1 %857 }
 0x129   :  { %v1457_v49 = vpop.eup %1456  ;;  %vm626_vm4 = vcmp.gt.f32.partialorder %v1859_v18, 20.0  ;;  %1470 = vrcp.f32 %v512_v27  ;;  %v2012_v38 = vadd.f32 %v1776_v21, %v1896_v7  ;;  %v654_v2 = vsel %vm625_vm0, 1.0, %v596_v60  ;;  %v855_v7 = vpop.permute.xlu0 %854 }
 0x12a   :  { %v568_v57 = vmul.f32 2.0, %v1457_v49  ;;  %vm898_vm5 = vcmp.eq.s32.totalorder %v1994_v30, 1  ;;  %vm627_vm6 = vcmp.gt.f32.partialorder %v1867_v52, 20.0  ;;  %1472 = vpow2.f32 %v439_v20  ;;  %1241 = vst [vmem:[%s2168_s4 + $0x10] sm:$0xff] %v1183_v54  }
 0x12b   :  { %v369_v6 = vmin.f32 %v2007_v55, 20.0  ;;  %v666_v35 = vsel %vm637_vm15, 1.0, %v608_v28  ;;  %1474 = vrcp.f32 %v527_v3  ;;  %v385_v37 = vmin.f32 %v2012_v38, 20.0 }
 0x12c   :  { %v2027_v25 = vadd.f32 %v1776_v21, %v1903_v40  ;;  %v597_v41 = vsub.f32 1.0, %v568_v57  ;;  %v668_v8 = vsel %vm639_vm1, 1.0, %v610_v0  ;;  %vm900_vm7 = vcmp.eq.s32.totalorder %v855_v7, 1 }
 0x12d   :  { %v409_v24 = vmul.f32 1.442695, %v369_v6  ;;  %1476 = vrcp.f32 %v526_v22  ;;  %vm638_vm8 = vcmp.gt.f32.partialorder %v1818_v59, 20.0  ;;  %v683_v28 = vmul.f32 %v654_v2, %v1847_v48 }
 0x12e   :  { %v441_v12 = vmul.f32 1.442695, %v385_v37  ;;  %v370_v53 = vmin.f32 %v2027_v25, 20.0  ;;  %v2038_v40 = vadd.f32 %v1776_v21, %v1905_v42  ;;  %v1459_v29 = vpop.eup %1458  ;;  %v655_v11 = vsel %vm626_vm4, 1.0, %v597_v41 }
 0x12f   :  { %v695_v46 = vmul.f32 %v666_v35, %v1806_v47  ;;  %1478 = vpow2.f32 %v409_v24  ;;  %v2045_v22 = vadd.f32 %v1776_v21, %v1929_v56  ;;  %v1461_v0 = vpop.eup %1460  ;;  %v684_v48 = vmul.f32 %v655_v11, %v1859_v18 }
 0x130   :  { %v569_v63 = vmul.f32 2.0, %v1459_v29  ;;  %1480 = vpow2.f32 %v441_v12  ;;  %v411_v4 = vmul.f32 1.442695, %v370_v53  ;;  %vm640_vm9 = vcmp.gt.f32.partialorder %v1838_v26, 20.0  ;;  %v1463_v3 = vpop.eup %1462 }
 0x131   :  { %vm641_vm10 = vcmp.gt.f32.partialorder %v1850_v51, 20.0  ;;  %v697_v42 = vmul.f32 %v668_v8, %v1825_v5  ;;  %v470_v50 = vadd.f32 1.0, %v1461_v0  ;;  %vm899_vm11 = vcmp.eq.s32.totalorder %v2031_v13, 1  ;;  %v1465_v27 = vpop.eup %1464 }
 0x132   :  { %v386_v47 = vmin.f32 %v2038_v40, 20.0  ;;  %v371_v56 = vmin.f32 %v2045_v22, 20.0  ;;  %v915_v18 = vsel %vm886_vm2, %v683_v28, 0.0  ;;  %v916_v36 = vsel %vm887_vm3, %v684_v48, 0.0 }
 0x133   :  { %v598_v45 = vsub.f32 1.0, %v569_v63  ;;  %1482 = vpow2.f32 %v411_v4  ;;  %vm888_vm12 = vcmp.eq.s32.totalorder %v1842_v43, 1  ;;  %v1188_v58 = vpack.c.bf16 %v916_v36, %v915_v18  ;;  %v1467_v20 = vpop.eup %1466 }
 0x134   :  { %v499_v5 = vmul.f32 %v470_v50, %v470_v50  ;;  %v580_v39 = vmul.f32 2.0, %v1463_v3  ;;  %v443_v60 = vmul.f32 1.442695, %v386_v47  ;;  %v927_v15 = vsel %vm898_vm5, %v695_v46, 0.0  ;;  %v861_v46 = vpop.permute.xlu0 %860 }
 0x135   :  { %v656_v9 = vsel %vm627_vm6, 1.0, %v598_v45  ;;  %vm628_vm13 = vcmp.gt.f32.partialorder %v1885_v32, 20.0  ;;  %vm901_vm14 = vcmp.eq.s32.totalorder %v858_v31, 1  ;;  %v413_v10 = vmul.f32 1.442695, %v371_v56  ;;  %1242 = vst [vmem:[%s2168_s4 + $0x18] sm:$0xff] %v1188_v58   ;;  %v1469_v30 = vpop.eup %1468 }
 0x136   :  { %v528_v49 = vadd.f32 1.0, %v499_v5  ;;  %v609_v54 = vsub.f32 1.0, %v580_v39  ;;  %v583_v2 = vmul.f32 2.0, %v1465_v27  ;;  %v2069_v57 = vadd.f32 %v1776_v21, %v1943_v61  ;;  %v1471_v41 = vpop.eup %1470 }
 0x137   :  { %vm889_vm0 = vcmp.eq.s32.totalorder %v1844_v44, 1  ;;  %v929_v6 = vsel %vm900_vm7, %v697_v42, 0.0  ;;  %v582_v35 = vmul.f32 2.0, %v1467_v20  ;;  %1484 = vpow2.f32 %v443_v60  ;;  %v1473_v12 = vpop.eup %1472 }
 0x138   :  { %v2075_v37 = vadd.f32 %v1776_v21, %v1960_v34  ;;  %v685_v8 = vmul.f32 %v656_v9, %v1867_v52  ;;  %v667_v24 = vsel %vm638_vm8, 1.0, %v609_v54  ;;  %v612_v28 = vsub.f32 1.0, %v583_v2  ;;  %v1475_v11 = vpop.eup %1474 }
 0x139   :  { %v455_v61 = vadd.f32 1.0, %v1469_v30  ;;  %v570_v53 = vmul.f32 2.0, %v1471_v41  ;;  %v696_v29 = vmul.f32 %v667_v24, %v1818_v59  ;;  %v611_v7 = vsub.f32 1.0, %v582_v35 }
 0x13a   :  { %1486 = vrcp.f32 %v528_v49  ;;  %v471_v48 = vadd.f32 1.0, %v1473_v12  ;;  %v372_v21 = vmin.f32 %v2069_v57, 20.0  ;;  %v1477_v34 = vpop.eup %1476  ;;  %v670_v4 = vsel %vm641_vm10, 1.0, %v612_v28 }
 0x13b   :  { %v484_v0 = vmul.f32 %v455_v61, %v455_v61  ;;  %1488 = vpow2.f32 %v413_v10  ;;  %v599_v52 = vsub.f32 1.0, %v570_v53  ;;  %v928_v63 = vsel %vm899_vm11, %v696_v29, 0.0 }
 0x13c   :  { %vm902_vm15 = vcmp.eq.s32.totalorder %v861_v46, 1  ;;  %v669_v59 = vsel %vm640_vm9, 1.0, %v611_v7  ;;  %v1218_v42 = vpack.c.bf16 %v928_v63, %v927_v15  ;;  %v500_v47 = vmul.f32 %v471_v48, %v471_v48  ;;  %v1479_v3 = vpop.eup %1478 }
 0x13d   :  { %v513_v50 = vadd.f32 1.0, %v484_v0  ;;  %v698_v56 = vmul.f32 %v669_v59, %v1838_v26  ;;  %v917_v18 = vsel %vm888_vm12, %v685_v8, 0.0  ;;  %v657_v13 = vsel %vm628_vm13, 1.0, %v599_v52  ;;  %v1481_v58 = vpop.eup %1480 }
 0x13e   :  { %v585_v36 = vmul.f32 2.0, %v1475_v11  ;;  %v584_v45 = vmul.f32 2.0, %v1477_v34  ;;  %v686_v5 = vmul.f32 %v657_v13, %v1885_v32  ;;  %1248 = vst [vmem:[%s2168_s4 + $0x48] sm:$0xff] %v1218_v42   ;;  %v529_v39 = vadd.f32 1.0, %v500_v47 }
 0x13f   :  { %1490 = vrcp.f32 %v513_v50  ;;  %v930_v26 = vsel %vm901_vm14, %v698_v56, 0.0  ;;  %v699_v60 = vmul.f32 %v670_v4, %v1850_v51  ;;  %v456_v27 = vadd.f32 1.0, %v1479_v3  ;;  %v867_v56 = vpop.permute.xlu0 %866 }
 0x140   :  { %v1223_v43 = vpack.c.bf16 %v930_v26, %v929_v6  ;;  %v472_v15 = vadd.f32 1.0, %v1481_v58  ;;  %v1483_v9 = vpop.eup %1482  ;;  %v918_v10 = vsel %vm889_vm0, %v686_v5, 0.0  ;;  %v613_v20 = vsub.f32 1.0, %v584_v45  ;;  %v864_v6 = vpop.permute.xlu1 %863 }
 0x141   :  { %1492 = vrcp.f32 %v529_v39  ;;  %v415_v32 = vmul.f32 1.442695, %v372_v21  ;;  %vm642_vm1 = vcmp.gt.f32.partialorder %v1862_v19, 20.0  ;;  %v1193_v49 = vpack.c.bf16 %v918_v10, %v917_v18 }
 0x142   :  { %1249 = vst [vmem:[%s2168_s4 + $0x50] sm:$0xff] %v1223_v43   ;;  %v485_v31 = vmul.f32 %v456_v27, %v456_v27  ;;  %v501_v54 = vmul.f32 %v472_v15, %v472_v15  ;;  %v614_v51 = vsub.f32 1.0, %v585_v36  ;;  %v671_v2 = vsel %vm642_vm1, 1.0, %v613_v20 }
 0x143   :  { %v457_v30 = vadd.f32 1.0, %v1483_v9  ;;  %1494 = vpow2.f32 %v415_v32  ;;  %1243 = vst [vmem:[%s2168_s4 + $0x20] sm:$0xff] %v1193_v49   ;;  %v700_v35 = vmul.f32 %v671_v2, %v1862_v19  ;;  %v373_v8 = vmin.f32 %v2075_v37, 20.0 }
 0x144   :  { %v514_v44 = vadd.f32 1.0, %v485_v31  ;;  %v530_v41 = vadd.f32 1.0, %v501_v54  ;;  %v1485_v24 = vpop.eup %1484  ;;  %v931_v28 = vsel %vm902_vm15, %v699_v60, 0.0  ;;  %vm903_vm2 = vcmp.eq.s32.totalorder %v864_v6, 1  ;;  %v870_v3 = vpop.permute.xlu1 %869 }
 0x145   :  { %v486_v61 = vmul.f32 %v457_v30, %v457_v30  ;;  %v932_v12 = vsel %vm903_vm2, %v700_v35, 0.0  ;;  %v473_v53 = vadd.f32 1.0, %v1485_v24  ;;  %v417_v29 = vmul.f32 1.442695, %v373_v8 }
 0x146   :  { %1496 = vrcp.f32 %v514_v44  ;;  %vm643_vm3 = vcmp.gt.f32.partialorder %v1876_v1, 20.0  ;;  %v1228_v11 = vpack.c.bf16 %v932_v12, %v931_v28  ;;  %vm644_vm4 = vcmp.gt.f32.partialorder %v1920_v14, 20.0  ;;  %v873_v44 = vpop.permute.xlu0 %872 }
 0x147   :  { %v1487_v7 = vpop.eup %1486  ;;  %v515_v0 = vadd.f32 1.0, %v486_v61  ;;  %1498 = vrcp.f32 %v530_v41  ;;  %v672_v19 = vsel %vm643_vm3, 1.0, %v614_v51  ;;  %v502_v21 = vmul.f32 %v473_v53, %v473_v53 }
 0x148   :  { %v1489_v48 = vpop.eup %1488  ;;  %v586_v34 = vmul.f32 2.0, %v1487_v7  ;;  %1500 = vpow2.f32 %v417_v29  ;;  %1250 = vst [vmem:[%s2168_s4 + $0x58] sm:$0xff] %v1228_v11   ;;  %v701_v4 = vmul.f32 %v672_v19, %v1876_v1  ;;  %vm904_vm5 = vcmp.eq.s32.totalorder %v867_v56, 1  ;;  %v876_v35 = vpop.permute.xlu1 %875 }
 0x149   :  { %1502 = vrcp.f32 %v515_v0  ;;  %v458_v46 = vadd.f32 1.0, %v1489_v48  ;;  %v531_v63 = vadd.f32 1.0, %v502_v21  ;;  %vm905_vm6 = vcmp.eq.s32.totalorder %v870_v3, 1  ;;  %v2172_v3 = vld [vmem:[#allocation2_spill] sm:$0xff] }
 0x14a   :  { %v615_v52 = vsub.f32 1.0, %v586_v34  ;;  %v933_v45 = vsel %vm904_vm5, %v701_v4, 0.0  ;;  %vm629_vm7 = vcmp.gt.f32.partialorder %v1978_v33, 20.0  ;;  %vm645_vm8 = vcmp.gt.f32.partialorder %v1990_v23, 20.0 }
 0x14b   :  { %v487_v59 = vmul.f32 %v458_v46, %v458_v46  ;;  %1504 = vrcp.f32 %v531_v63  ;;  %vm890_vm9 = vcmp.eq.s32.totalorder %v1854_v16, 1  ;;  %vm891_vm10 = vcmp.eq.s32.totalorder %v1856_v17, 1 }
 0x14c   :  { %v1491_v42 = vpop.eup %1490  ;;  %v673_v50 = vsel %vm644_vm4, 1.0, %v615_v52  ;;  %vm630_vm11 = vcmp.gt.f32.partialorder %v2007_v55, 20.0  ;;  %vm646_vm12 = vcmp.gt.f32.partialorder %v2012_v38, 20.0  ;;  %vm906_vm13 = vcmp.eq.s32.totalorder %v873_v44, 1  ;;  %v879_v52 = vpop.permute.xlu0 %878 }
 0x14d   :  { %v571_v47 = vmul.f32 2.0, %v1491_v42  ;;  %v702_v18 = vmul.f32 %v673_v50, %v1920_v14  ;;  %v516_v13 = vadd.f32 1.0, %v487_v59  ;;  %vm907_vm14 = vcmp.eq.s32.totalorder %v876_v35, 1 }
 0x14e   :  { %v1493_v36 = vpop.eup %1492  ;;  %vm631_vm0 = vcmp.gt.f32.partialorder %v2027_v25, 20.0  ;;  %vm647_vm15 = vcmp.gt.f32.partialorder %v2038_v40, 20.0  ;;  %vm908_vm1 = vcmp.eq.s32.totalorder %v879_v52, 1  ;;  %vm632_vm2 = vcmp.gt.f32.partialorder %v2045_v22, 20.0 }
 0x14f   :  { %v587_v58 = vmul.f32 2.0, %v1493_v36  ;;  %v934_v5 = vsel %vm905_vm6, %v702_v18, 0.0  ;;  %1506 = vrcp.f32 %v516_v13  ;;  %v600_v26 = vsub.f32 1.0, %v571_v47 }
 0x150   :  { %v1495_v39 = vpop.eup %1494  ;;  %v1233_v1 = vpack.c.bf16 %v934_v5, %v933_v45  ;;  %vm892_vm3 = vcmp.eq.s32.totalorder %v1871_v62, 1  ;;  %vm893_vm4 = vcmp.eq.s32.totalorder %v2172_v3, 1  ;;  %vm633_vm5 = vcmp.gt.f32.partialorder %v2069_v57, 20.0 }
 0x151   :  { %v616_v60 = vsub.f32 1.0, %v587_v58  ;;  %v459_v43 = vadd.f32 1.0, %v1495_v39  ;;  %v658_v9 = vsel %vm629_vm7, 1.0, %v600_v26  ;;  %vm634_vm6 = vcmp.gt.f32.partialorder %v2075_v37, 20.0 }
 0x152   :  { %1251 = vst [vmem:[%s2168_s4 + $0x60] sm:$0xff] %v1233_v1   ;;  %v687_v30 = vmul.f32 %v658_v9, %v1978_v33 }
 0x153   :  { %v1497_v27 = vpop.eup %1496  ;;  %v488_v14 = vmul.f32 %v459_v43, %v459_v43  ;;  %v674_v32 = vsel %vm645_vm8, 1.0, %v616_v60  ;;  %v2173_v60 = vld [vmem:[#allocation3_spill] sm:$0xff]  ;;  %v2174_v43 = vld [vmem:[#allocation4_spill] sm:$0xff] }
 0x154   :  { %v1499_v15 = vpop.eup %1498  ;;  %v572_v10 = vmul.f32 2.0, %v1497_v27  ;;  %v703_v24 = vmul.f32 %v674_v32, %v1990_v23  ;;  %v919_v0 = vsel %vm890_vm9, %v687_v30, 0.0  ;;  %vm894_vm7 = vcmp.eq.s32.totalorder %v2173_v60, 1 }
 0x155   :  { %v1501_v20 = vpop.eup %1500  ;;  %v588_v49 = vmul.f32 2.0, %v1499_v15  ;;  %v517_v31 = vadd.f32 1.0, %v488_v14  ;;  %vm895_vm8 = vcmp.eq.s32.totalorder %v2174_v43, 1 }
 0x156   :  { %v1503_v54 = vpop.eup %1502  ;;  %v601_v51 = vsub.f32 1.0, %v572_v10  ;;  %v460_v2 = vadd.f32 1.0, %v1501_v20  ;;  %v935_v19 = vsel %vm906_vm13, %v703_v24, 0.0 }
 0x157   :  { %v573_v6 = vmul.f32 2.0, %v1503_v54  ;;  %v617_v41 = vsub.f32 1.0, %v588_v49  ;;  %1508 = vrcp.f32 %v517_v31 }
 0x158   :  { %v659_v8 = vsel %vm630_vm11, 1.0, %v601_v51  ;;  %v489_v28 = vmul.f32 %v460_v2, %v460_v2  ;;  %v1505_v61 = vpop.eup %1504 }
 0x159   :  { %v688_v12 = vmul.f32 %v659_v8, %v2007_v55  ;;  %v602_v53 = vsub.f32 1.0, %v573_v6  ;;  %v675_v29 = vsel %vm646_vm12, 1.0, %v617_v41  ;;  %v589_v7 = vmul.f32 2.0, %v1505_v61 }
 0x15a   :  { %v704_v33 = vmul.f32 %v675_v29, %v2012_v38  ;;  %v518_v11 = vadd.f32 1.0, %v489_v28 }
 0x15b   :  { %v920_v23 = vsel %vm891_vm10, %v688_v12, 0.0  ;;  %v618_v21 = vsub.f32 1.0, %v589_v7  ;;  %v660_v46 = vsel %vm631_vm0, 1.0, %v602_v53 }
 0x15c   :  { %v1507_v48 = vpop.eup %1506  ;;  %v1198_v55 = vpack.c.bf16 %v920_v23, %v919_v0  ;;  %v936_v34 = vsel %vm907_vm14, %v704_v33, 0.0  ;;  %1510 = vrcp.f32 %v518_v11  ;;  %v689_v59 = vmul.f32 %v660_v46, %v2027_v25 }
 0x15d   :  { %v574_v38 = vmul.f32 2.0, %v1507_v48  ;;  %v1238_v63 = vpack.c.bf16 %v936_v34, %v935_v19  ;;  %v676_v16 = vsel %vm647_vm15, 1.0, %v618_v21 }
 0x15e   :  { %1244 = vst [vmem:[%s2168_s4 + $0x28] sm:$0xff] %v1198_v55   ;;  %v705_v17 = vmul.f32 %v676_v16, %v2038_v40  ;;  %v921_v18 = vsel %vm892_vm3, %v689_v59, 0.0 }
 0x15f   :  { %v603_v4 = vsub.f32 1.0, %v574_v38  ;;  %1252 = vst [vmem:[%s2168_s4 + $0x68] sm:$0xff] %v1238_v63  }
 0x160   :  { %v937_v42 = vsel %vm908_vm1, %v705_v17, 0.0 }
 0x161   :  { %v661_v50 = vsel %vm632_vm2, 1.0, %v603_v4  ;;  %v1169_v47 = vpack.c.bf16 %v937_v42, %v937_v42 }
 0x162   :  { %v690_v56 = vmul.f32 %v661_v50, %v2045_v22 }
 0x163   :  { %1083 = vst [vmem:[%s2168_s4 + $0x70] sm:$0xf] %v1169_v47 }
 0x164   :  { %v1509_v40 = vpop.eup %1508  ;;  %v922_v13 = vsel %vm893_vm4, %v690_v56, 0.0 }
 0x165   :  { %v1203_v25 = vpack.c.bf16 %v922_v13, %v921_v18  ;;  %v575_v36 = vmul.f32 2.0, %v1509_v40 }
 0x167   :  { %1245 = vst [vmem:[%s2168_s4 + $0x30] sm:$0xff] %v1203_v25   ;;  %v604_v45 = vsub.f32 1.0, %v575_v36 }
 0x169   :  { %v1511_v58 = vpop.eup %1510  ;;  %v662_v62 = vsel %vm633_vm5, 1.0, %v604_v45 }
 0x16a   :  { %v576_v22 = vmul.f32 2.0, %v1511_v58  ;;  %v691_v39 = vmul.f32 %v662_v62, %v2069_v57 }
 0x16c   :  { %v605_v5 = vsub.f32 1.0, %v576_v22  ;;  %v923_v27 = vsel %vm894_vm7, %v691_v39, 0.0 }
 0x16e   :  { %v663_v26 = vsel %vm634_vm6, 1.0, %v605_v5 }
 0x16f   :  { %v692_v1 = vmul.f32 %v663_v26, %v2075_v37 }
 0x171   :  { %v924_v14 = vsel %vm895_vm8, %v692_v1, 0.0 }
 0x172   :  { %v1208_v15 = vpack.c.bf16 %v924_v14, %v923_v27 }
 0x174   :  { %1246 = vst [vmem:[%s2168_s4 + $0x38] sm:$0xff] %v1208_v15  }

// kernel: _lambda_.11
= control target key start
LH: loop header
LB: loop body
LE: loop exit
PB: predicated region body
PF: predicated region fallthrough
CT: control target
= control target key end

     0   :  { %v2010_v0 = vmov 0.0   ;;  %vm2011_vm0 = vmmov 0   ;;  %v2012_v13 = vmov 0   ;;  %s2677_s3 = inlined_call_operand.vmem [shape: bf16[128,128], index: 3, kind: input, shape index: {}]   ;;  %s2678_s2 = inlined_call_operand.vmem [shape: bf16[128,128], index: 2, kind: input, shape index: {}]   ;;  %s2679_s1 = inlined_call_operand.vmem [shape: bf16[232,128], index: 1, kind: input, shape index: {}]   ;;  %s2680_s0 = inlined_call_operand.vmem [shape: bf16[232,128], index: 0, kind: input, shape index: {}]   ;;  %s2681_s5 = inlined_call_operand.vmem [shape: f32[232,1], index: 5, kind: input, shape index: {}]   ;;  %s2682_s4 = inlined_call_operand.vmem [shape: f32[1,128], index: 4, kind: input, shape index: {}]   ;;  %s2683_s6 = inlined_call_operand.vmem [shape: bf16[232,128], index: 6, kind: output, shape index: {}]  }
   0x1   :  { %1690 = vmatprep.subr.bf16.mxu0 %v2010_v0  ;;  %1766 = vmatprep.subr.bf16.mxu1 %v2010_v0  ;;  %v1847_v1 = vld [vmem:[%s2677_s3 + $0x38] sm:$0xff]   ;;  %v1849_v3 = vld [vmem:[%s2677_s3 + $0x30] sm:$0xff]   ;;  %v1851_v5 = vld [vmem:[%s2677_s3 + $0x28] sm:$0xff]  }
   0x2   :  { %v1848_v2 = vld [vmem:[%s2678_s2 + $0x38] sm:$0xff]   ;;  %1706 = vmatprep.mubr.msk.bf16.mxu0 %vm2011_vm0, %v2010_v0  ;;  %1782 = vmatprep.mubr.msk.bf16.mxu1 %vm2011_vm0, %v2010_v0  ;;  %v1850_v4 = vld [vmem:[%s2678_s2 + $0x30] sm:$0xff]   ;;  %v1852_v6 = vld [vmem:[%s2678_s2 + $0x28] sm:$0xff]  }
   0x3   :  { %1691 = vmatpush3.bf16.msra.mxu0 %v1847_v1  ;;  %1767 = vmatpush3.bf16.msra.mxu1 %v1848_v2  ;;  %v1853_v7 = vld [vmem:[%s2677_s3 + $0x20] sm:$0xff]   ;;  %v1855_v9 = vld [vmem:[%s2677_s3 + $0x18] sm:$0xff]   ;;  %v1857_v11 = vld [vmem:[%s2677_s3 + $0x10] sm:$0xff]  }
   0x4   :  { %1692 = vmatprep.subr.bf16.mxu0 %v2010_v0  ;;  %1768 = vmatprep.subr.bf16.mxu1 %v2010_v0  ;;  %v1854_v8 = vld [vmem:[%s2678_s2 + $0x20] sm:$0xff]   ;;  %v1856_v10 = vld [vmem:[%s2678_s2 + $0x18] sm:$0xff]   ;;  %v1858_v12 = vld [vmem:[%s2678_s2 + $0x10] sm:$0xff]  }
   0x5   :  { %1845 = vset.pattern.permute.xlu0 %v2012_v13  ;;  %1846 = vset.pattern.permute.xlu1 %v2012_v13  ;;  %v1859_v14 = vld [vmem:[%s2677_s3 + $0x8] sm:$0xff]   ;;  %v1861_v16 = vld [vmem:[%s2677_s3] sm:$0xff]   ;;  %v1867_v22 = vld [vmem:[%s2679_s1 + $0x10] sm:$0xff]  }
   0x6   :  { %v1860_v15 = vld [vmem:[%s2678_s2 + $0x8] sm:$0xff]   ;;  %v1862_v17 = vld [vmem:[%s2678_s2] sm:$0xff]   ;;  %v1868_v25 = vld [vmem:[%s2680_s0 + $0x10] sm:$0xff]  }
   0x7   :  { %1693 = vmatpush3.bf16.msra.mxu0 %v1849_v3  ;;  %1769 = vmatpush3.bf16.msra.mxu1 %v1850_v4  ;;  %v1863_v18 = vld [vmem:[%s2679_s1] sm:$0xff]   ;;  %v1865_v20 = vld [vmem:[%s2679_s1 + $0x8] sm:$0xff]   ;;  %v1076_v26 = vld [vmem:[%s2681_s5 + $0x10] sm:$0xff] }
   0x8   :  { %1694 = vmatprep.subr.bf16.mxu0 %v2010_v0  ;;  %1770 = vmatprep.subr.bf16.mxu1 %v2010_v0  ;;  %v1864_v19 = vld [vmem:[%s2680_s0] sm:$0xff]   ;;  %v1866_v21 = vld [vmem:[%s2680_s0 + $0x8] sm:$0xff]   ;;  %v1077_v27 = vld [vmem:[%s2681_s5 + $0x18] sm:$0xff]  ;;  %vm1105_vm3 = vcmp.gt.f32.partialorder %v1076_v26, 0.5 }
   0x9   :  { %v1074_v23 = vld [vmem:[%s2681_s5] sm:$0xff]  ;;  %v1075_v24 = vld [vmem:[%s2681_s5 + $0x8] sm:$0xff]  ;;  %v1134_v30 = vsel %vm1105_vm3, 1, %v2012_v13  ;;  %vm1106_vm4 = vcmp.gt.f32.partialorder %v1077_v27, 0.5  ;;  %v1080_v34 = vld [vmem:[%s2681_s5 + $0x30] sm:$0xff] }
   0xa   :  { %vm1103_vm1 = vcmp.gt.f32.partialorder %v1074_v23, 0.5  ;;  %vm1104_vm2 = vcmp.gt.f32.partialorder %v1075_v24, 0.5  ;;  %v1078_v29 = vld [vmem:[%s2681_s5 + $0x20] sm:$0xff]  ;;  %v1079_v31 = vld [vmem:[%s2681_s5 + $0x28] sm:$0xff]  ;;  %1168 = vperm.xlu1 %1846, %v1134_v30   ;;  %v1135_v33 = vsel %vm1106_vm4, 1, %v2012_v13  ;;  %v1081_v35 = vld [vmem:[%s2681_s5 + $0x38] sm:$0xff] }
   0xb   :  { %1695 = vmatpush3.bf16.msra.mxu0 %v1851_v5  ;;  %1771 = vmatpush3.bf16.msra.mxu1 %v1852_v6  ;;  %v1132_v28 = vsel %vm1103_vm1, 1, %v2012_v13  ;;  %v1133_v32 = vsel %vm1104_vm2, 1, %v2012_v13  ;;  %vm1107_vm5 = vcmp.gt.f32.partialorder %v1078_v29, 0.5  ;;  %vm1108_vm6 = vcmp.gt.f32.partialorder %v1079_v31, 0.5  ;;  %v1869_v36 = vld [vmem:[%s2679_s1 + $0x18] sm:$0xff]   ;;  %v1082_v40 = vld [vmem:[%s2681_s5 + $0x40] sm:$0xff] }
   0xc   :  { %1696 = vmatprep.subr.bf16.mxu0 %v2010_v0  ;;  %1772 = vmatprep.subr.bf16.mxu1 %v2010_v0  ;;  %v1136_v37 = vsel %vm1107_vm5, 1, %v2012_v13  ;;  %v1870_v38 = vld [vmem:[%s2680_s0 + $0x18] sm:$0xff]   ;;  %vm1109_vm7 = vcmp.gt.f32.partialorder %v1080_v34, 0.5  ;;  %v1137_v39 = vsel %vm1108_vm6, 1, %v2012_v13  ;;  %vm1110_vm8 = vcmp.gt.f32.partialorder %v1081_v35, 0.5  ;;  %v1083_v41 = vld [vmem:[%s2681_s5 + $0x48] sm:$0xff] }
   0xd   :  { %1162 = vperm.xlu0 %1845, %v1132_v28   ;;  %v1138_v42 = vsel %vm1109_vm7, 1, %v2012_v13  ;;  %vm1111_vm9 = vcmp.gt.f32.partialorder %v1082_v40, 0.5  ;;  %v1139_v43 = vsel %vm1110_vm8, 1, %v2012_v13  ;;  %v1084_v44 = vld [vmem:[%s2681_s5 + $0x50] sm:$0xff]  ;;  %vm1112_vm10 = vcmp.gt.f32.partialorder %v1083_v41, 0.5  ;;  %v1085_v45 = vld [vmem:[%s2681_s5 + $0x58] sm:$0xff] }
   0xe   :  { %1171 = vperm.xlu1 %1846, %v1135_v33   ;;  %v1871_v46 = vld [vmem:[%s2679_s1 + $0x20] sm:$0xff]   ;;  %v1140_v47 = vsel %vm1111_vm9, 1, %v2012_v13  ;;  %vm1113_vm11 = vcmp.gt.f32.partialorder %v1084_v44, 0.5  ;;  %v1141_v49 = vsel %vm1112_vm10, 1, %v2012_v13  ;;  %vm1114_vm12 = vcmp.gt.f32.partialorder %v1085_v45, 0.5  ;;  %v1087_v51 = vld [vmem:[%s2681_s5 + $0x68] sm:$0xff] }
   0xf   :  { %1697 = vmatpush3.bf16.msra.mxu0 %v1853_v7  ;;  %1773 = vmatpush3.bf16.msra.mxu1 %v1854_v8  ;;  %v1872_v48 = vld [vmem:[%s2680_s0 + $0x20] sm:$0xff]   ;;  %v1142_v52 = vsel %vm1113_vm11, 1, %v2012_v13  ;;  %v1143_v53 = vsel %vm1114_vm12, 1, %v2012_v13  ;;  %v1088_v54 = vld [vmem:[%s2681_s5 + $0x70] sm:$0xff]  ;;  %vm1116_vm14 = vcmp.gt.f32.partialorder %v1087_v51, 0.5  ;;  %v1089_v55 = vld [vmem:[%s2681_s5 + $0x78] sm:$0xff] }
  0x10   :  { %1698 = vmatprep.subr.bf16.mxu0 %v2010_v0  ;;  %1774 = vmatprep.subr.bf16.mxu1 %v2010_v0  ;;  %v1086_v50 = vld [vmem:[%s2681_s5 + $0x60] sm:$0xff]  ;;  %v1873_v56 = vld [vmem:[%s2679_s1 + $0x28] sm:$0xff]   ;;  %vm1117_vm15 = vcmp.gt.f32.partialorder %v1088_v54, 0.5  ;;  %v1145_v59 = vsel %vm1116_vm14, 1, %v2012_v13  ;;  %vm1118_vm1 = vcmp.gt.f32.partialorder %v1089_v55, 0.5  ;;  %v1092_v1 = vld [vmem:[%s2681_s5 + $0x90] sm:$0xff] }
  0x11   :  { %1165 = vperm.xlu0 %1845, %v1133_v32   ;;  %vm1115_vm13 = vcmp.gt.f32.partialorder %v1086_v50, 0.5  ;;  %v1874_v58 = vld [vmem:[%s2680_s0 + $0x28] sm:$0xff]   ;;  %v1090_v60 = vld [vmem:[%s2681_s5 + $0x80] sm:$0xff]  ;;  %v1146_v62 = vsel %vm1117_vm15, 1, %v2012_v13  ;;  %v1147_v63 = vsel %vm1118_vm1, 1, %v2012_v13  ;;  %v1093_v2 = vld [vmem:[%s2681_s5 + $0x98] sm:$0xff] }
  0x12   :  { %1177 = vperm.xlu1 %1846, %v1137_v39   ;;  %v1144_v57 = vsel %vm1115_vm13, 1, %v2012_v13  ;;  %v1091_v61 = vld [vmem:[%s2681_s5 + $0x88] sm:$0xff]  ;;  %vm1119_vm2 = vcmp.gt.f32.partialorder %v1090_v60, 0.5  ;;  %v1875_v3 = vld [vmem:[%s2679_s1 + $0x30] sm:$0xff]   ;;  %vm1121_vm4 = vcmp.gt.f32.partialorder %v1092_v1, 0.5  ;;  %v1094_v7 = vld [vmem:[%s2681_s5 + $0xa0] sm:$0xff] }
  0x13   :  { %1699 = vmatpush3.bf16.msra.mxu0 %v1855_v9  ;;  %1775 = vmatpush3.bf16.msra.mxu1 %v1856_v10  ;;  %vm1120_vm3 = vcmp.gt.f32.partialorder %v1091_v61, 0.5  ;;  %v1148_v4 = vsel %vm1119_vm2, 1, %v2012_v13  ;;  %v1876_v5 = vld [vmem:[%s2680_s0 + $0x30] sm:$0xff]   ;;  %vm1122_vm5 = vcmp.gt.f32.partialorder %v1093_v2, 0.5  ;;  %v1095_v8 = vld [vmem:[%s2681_s5 + $0xa8] sm:$0xff]  ;;  %v1150_v9 = vsel %vm1121_vm4, 1, %v2012_v13 }
  0x14   :  { %1700 = vmatprep.subr.bf16.mxu0 %v2010_v0  ;;  %1776 = vmatprep.subr.bf16.mxu1 %v2010_v0  ;;  %v1149_v6 = vsel %vm1120_vm3, 1, %v2012_v13  ;;  %vm1123_vm6 = vcmp.gt.f32.partialorder %v1094_v7, 0.5  ;;  %v1151_v10 = vsel %vm1122_vm5, 1, %v2012_v13  ;;  %vm1124_vm7 = vcmp.gt.f32.partialorder %v1095_v8, 0.5  ;;  %v1101_v23 = vld [vmem:[%s2681_s5 + $0xd8] sm:$0xff]  ;;  %v1879_v24 = vld [vmem:[%s2679_s1 + $0x40] sm:$0xff]  }
  0x15   :  { %1174 = vperm.xlu0 %1845, %v1136_v37   ;;  %v1880_v26 = vld [vmem:[%s2680_s0 + $0x40] sm:$0xff]   ;;  %vm1130_vm13 = vcmp.gt.f32.partialorder %v1101_v23, 0.5  ;;  %v1881_v31 = vld [vmem:[%s2679_s1 + $0x48] sm:$0xff]   ;;  %v1883_v34 = vld [vmem:[%s2679_s1 + $0x50] sm:$0xff]  }
  0x16   :  { %1183 = vperm.xlu1 %1846, %v1139_v43   ;;  %v1102_v28 = vld [vmem:[%s2681_s5 + $0xe0] sm:$0xff]  ;;  %v1159_v30 = vsel %vm1130_vm13, 1, %v2012_v13  ;;  %v1882_v33 = vld [vmem:[%s2680_s0 + $0x48] sm:$0xff]   ;;  %v1885_v35 = vld [vmem:[%s2679_s1 + $0x58] sm:$0xff]  }
  0x17   :  { %1701 = vmatpush3.bf16.msra.mxu0 %v1857_v11  ;;  %1777 = vmatpush3.bf16.msra.mxu1 %v1858_v12  ;;  %v1096_v11 = vld [vmem:[%s2681_s5 + $0xb0] sm:$0xff]  ;;  %v1097_v12 = vld [vmem:[%s2681_s5 + $0xb8] sm:$0xff]  ;;  %vm1131_vm14 = vcmp.gt.f32.partialorder %v1102_v28, 0.5  ;;  %v1887_v37 = vld [vmem:[%s2679_s1 + $0x60] sm:$0xff]  }
  0x18   :  { %1702 = vmatprep.subr.bf16.mxu0 %v2010_v0  ;;  %1778 = vmatprep.subr.bf16.mxu1 %v2010_v0  ;;  %vm1125_vm8 = vcmp.gt.f32.partialorder %v1096_v11, 0.5  ;;  %vm1126_vm9 = vcmp.gt.f32.partialorder %v1097_v12, 0.5  ;;  %v1160_v32 = vsel %vm1131_vm14, 1, %v2012_v13  ;;  %v1889_v39 = vld [vmem:[%s2679_s1 + $0x68] sm:$0xff]   ;;  %v1891_v41 = vld [vmem:[%s2679_s1 + $0x70] ss:$0 sps:$4 sm:$0xff]  }
  0x19   :  { %1180 = vperm.xlu0 %1845, %v1138_v42   ;;  %v1890_v40 = vld [vmem:[%s2680_s0 + $0x68] sm:$0xff]   ;;  %v1892_v42 = vld [vmem:[%s2680_s0 + $0x70] ss:$0 sps:$4 sm:$0xff]   ;;  %v2383_v45 = vld [vmem:[%s2682_s4] ss:$0 sm:$0xff] }
  0x1a   :  { %1189 = vperm.xlu1 %1846, %v1141_v49  }
  0x1b   :  { %1703 = vmatpush3.bf16.msra.mxu0 %v1859_v14  ;;  %1779 = vmatpush3.bf16.msra.mxu1 %v1860_v15  ;;  %v1877_v14 = vld [vmem:[%s2679_s1 + $0x38] sm:$0xff]   ;;  %v1152_v15 = vsel %vm1123_vm6, 1, %v2012_v13 }
  0x1c   :  { %1704 = vmatprep.subr.bf16.mxu0 %v2010_v0  ;;  %1780 = vmatprep.subr.bf16.mxu1 %v2010_v0 }
  0x1d   :  { %1186 = vperm.xlu0 %1845, %v1140_v47  }
  0x1e   :  { %1195 = vperm.xlu1 %1846, %v1143_v53  }
  0x1f   :  { %1705 = vmatpush3.bf16.msra.mxu0 %v1861_v16  ;;  %1781 = vmatpush3.bf16.msra.mxu1 %v1862_v17  ;;  %v1878_v16 = vld [vmem:[%s2680_s0 + $0x38] sm:$0xff]   ;;  %v1153_v17 = vsel %vm1124_vm7, 1, %v2012_v13 }
  0x21   :  { %1192 = vperm.xlu0 %1845, %v1142_v52  }
  0x22   :  { %1707 = vmatmul.mubr.bf16.vlgmr.msra.gmra.mxu0 %v1863_v18  ;;  %1783 = vmatmul.mubr.bf16.vlgmr.msra.gmra.mxu1 %v1864_v19  ;;  %v1098_v18 = vld [vmem:[%s2681_s5 + $0xc0] sm:$0xff]  ;;  %v1099_v19 = vld [vmem:[%s2681_s5 + $0xc8] sm:$0xff] }
  0x23   :  { %1710 = vmatprep.mubr.msk.bf16.mxu0 %vm2011_vm0, %v2010_v0  ;;  %1786 = vmatprep.mubr.msk.bf16.mxu1 %vm2011_vm0, %v2010_v0  ;;  %vm1127_vm10 = vcmp.gt.f32.partialorder %v1098_v18, 0.5  ;;  %vm1128_vm11 = vcmp.gt.f32.partialorder %v1099_v19, 0.5 }
  0x24   :  { %1201 = vperm.xlu1 %1846, %v1145_v59   ;;  %v1157_v27 = vsel %vm1128_vm11, 1, %v2012_v13 }
  0x25   :  { %1198 = vperm.xlu0 %1845, %v1144_v57  }
  0x28   :  { %1207 = vperm.xlu1 %1846, %v1147_v63  }
  0x29   :  { %1204 = vperm.xlu0 %1845, %v1146_v62  }
  0x2a   :  { %1711 = vmatmul.mubr.bf16.gmra.mxu0 %v1865_v20  ;;  %1787 = vmatmul.mubr.bf16.gmra.mxu1 %v1866_v21  ;;  %v1154_v20 = vsel %vm1125_vm8, 1, %v2012_v13  ;;  %v1155_v21 = vsel %vm1126_vm9, 1, %v2012_v13 }
  0x2b   :  { %1714 = vmatprep.mubr.msk.bf16.mxu0 %vm2011_vm0, %v2010_v0  ;;  %1790 = vmatprep.mubr.msk.bf16.mxu1 %vm2011_vm0, %v2010_v0 }
  0x2c   :  { %1213 = vperm.xlu1 %1846, %v1149_v6  }
  0x2d   :  { %1210 = vperm.xlu0 %1845, %v1148_v4  }
  0x30   :  { %1219 = vperm.xlu1 %1846, %v1151_v10  }
  0x31   :  { %1216 = vperm.xlu0 %1845, %v1150_v9  }
  0x32   :  { %1715 = vmatmul.mubr.bf16.gmra.mxu0 %v1867_v22  ;;  %1791 = vmatmul.mubr.bf16.gmra.mxu1 %v1868_v25  ;;  %v1100_v22 = vld [vmem:[%s2681_s5 + $0xd0] sm:$0xff]  ;;  %v1156_v25 = vsel %vm1127_vm10, 1, %v2012_v13 }
  0x33   :  { %1718 = vmatprep.mubr.msk.bf16.mxu0 %vm2011_vm0, %v2010_v0  ;;  %1794 = vmatprep.mubr.msk.bf16.mxu1 %vm2011_vm0, %v2010_v0  ;;  %vm1129_vm12 = vcmp.gt.f32.partialorder %v1100_v22, 0.5 }
  0x34   :  { %1225 = vperm.xlu1 %1846, %v1153_v17   ;;  %v1158_v29 = vsel %vm1129_vm12, 1, %v2012_v13  ;;  %v1884_v13 = vld [vmem:[%s2680_s0 + $0x50] sm:$0xff]  }
  0x35   :  { %1222 = vperm.xlu0 %1845, %v1152_v15  }
  0x38   :  { %1231 = vperm.xlu1 %1846, %v1155_v21  }
  0x39   :  { %1228 = vperm.xlu0 %1845, %v1154_v20  }
  0x3a   :  { %1719 = vmatmul.mubr.bf16.gmra.mxu0 %v1869_v36  ;;  %1795 = vmatmul.mubr.bf16.gmra.mxu1 %v1870_v38  ;;  %v1886_v36 = vld [vmem:[%s2680_s0 + $0x58] sm:$0xff]   ;;  %v1888_v38 = vld [vmem:[%s2680_s0 + $0x60] sm:$0xff]  }
  0x3b   :  { %1722 = vmatprep.mubr.msk.bf16.mxu0 %vm2011_vm0, %v2010_v0  ;;  %1798 = vmatprep.mubr.msk.bf16.mxu1 %vm2011_vm0, %v2010_v0 }
  0x3c   :  { %1237 = vperm.xlu1 %1846, %v1157_v27  }
  0x3d   :  { %1234 = vperm.xlu0 %1845, %v1156_v25  }
  0x40   :  { %1243 = vperm.xlu1 %1846, %v1159_v30  }
  0x41   :  { %1240 = vperm.xlu0 %1845, %v1158_v29  }
  0x42   :  { %1723 = vmatmul.mubr.bf16.gmra.mxu0 %v1871_v46  ;;  %1799 = vmatmul.mubr.bf16.gmra.mxu1 %v1872_v48 }
  0x43   :  { %1726 = vmatprep.mubr.msk.bf16.mxu0 %vm2011_vm0, %v2010_v0  ;;  %1802 = vmatprep.mubr.msk.bf16.mxu1 %vm2011_vm0, %v2010_v0 }
  0x45   :  { %1246 = vperm.xlu0 %1845, %v1160_v32  }
  0x4a   :  { %1727 = vmatmul.mubr.bf16.gmra.mxu0 %v1873_v56  ;;  %1803 = vmatmul.mubr.bf16.gmra.mxu1 %v1874_v58 }
  0x4b   :  { %1730 = vmatprep.mubr.msk.bf16.mxu0 %vm2011_vm0, %v2010_v0  ;;  %1806 = vmatprep.mubr.msk.bf16.mxu1 %vm2011_vm0, %v2010_v0 }
  0x52   :  { %1731 = vmatmul.mubr.bf16.gmra.mxu0 %v1875_v3  ;;  %1807 = vmatmul.mubr.bf16.gmra.mxu1 %v1876_v5 }
  0x53   :  { %1734 = vmatprep.mubr.msk.bf16.mxu0 %vm2011_vm0, %v2010_v0  ;;  %1810 = vmatprep.mubr.msk.bf16.mxu1 %vm2011_vm0, %v2010_v0 }
  0x5a   :  { %1735 = vmatmul.mubr.bf16.gmra.mxu0 %v1877_v14  ;;  %1811 = vmatmul.mubr.bf16.gmra.mxu1 %v1878_v16 }
  0x5b   :  { %1738 = vmatprep.mubr.msk.bf16.mxu0 %vm2011_vm0, %v2010_v0  ;;  %1814 = vmatprep.mubr.msk.bf16.mxu1 %vm2011_vm0, %v2010_v0 }
  0x62   :  { %1739 = vmatmul.mubr.bf16.gmra.mxu0 %v1879_v24  ;;  %1815 = vmatmul.mubr.bf16.gmra.mxu1 %v1880_v26 }
  0x63   :  { %1742 = vmatprep.mubr.msk.bf16.mxu0 %vm2011_vm0, %v2010_v0  ;;  %1818 = vmatprep.mubr.msk.bf16.mxu1 %vm2011_vm0, %v2010_v0 }
  0x6a   :  { %1743 = vmatmul.mubr.bf16.gmra.mxu0 %v1881_v31  ;;  %1819 = vmatmul.mubr.bf16.gmra.mxu1 %v1882_v33 }
  0x6b   :  { %1746 = vmatprep.mubr.msk.bf16.mxu0 %vm2011_vm0, %v2010_v0  ;;  %1822 = vmatprep.mubr.msk.bf16.mxu1 %vm2011_vm0, %v2010_v0 }
  0x72   :  { %1747 = vmatmul.mubr.bf16.gmra.mxu0 %v1883_v34  ;;  %1823 = vmatmul.mubr.bf16.gmra.mxu1 %v1884_v13 }
  0x73   :  { %1750 = vmatprep.mubr.msk.bf16.mxu0 %vm2011_vm0, %v2010_v0  ;;  %1826 = vmatprep.mubr.msk.bf16.mxu1 %vm2011_vm0, %v2010_v0 }
  0x7a   :  { %1751 = vmatmul.mubr.bf16.gmra.mxu0 %v1885_v35  ;;  %1827 = vmatmul.mubr.bf16.gmra.mxu1 %v1886_v36 }
  0x7b   :  { %1754 = vmatprep.mubr.msk.bf16.mxu0 %vm2011_vm0, %v2010_v0  ;;  %1830 = vmatprep.mubr.msk.bf16.mxu1 %vm2011_vm0, %v2010_v0 }
  0x82   :  { %1755 = vmatmul.mubr.bf16.gmra.mxu0 %v1887_v37  ;;  %1831 = vmatmul.mubr.bf16.gmra.mxu1 %v1888_v38 }
  0x83   :  { %1758 = vmatprep.mubr.msk.bf16.mxu0 %vm2011_vm0, %v2010_v0  ;;  %1834 = vmatprep.mubr.msk.bf16.mxu1 %vm2011_vm0, %v2010_v0 }
  0x8a   :  { %1759 = vmatmul.mubr.bf16.gmra.mxu0 %v1889_v39  ;;  %1835 = vmatmul.mubr.bf16.gmra.mxu1 %v1890_v40 }
  0x8b   :  { %1762 = vmatprep.mubr.msk.bf16.mxu0 %vm2011_vm0, %v2010_v0  ;;  %1838 = vmatprep.mubr.msk.bf16.mxu1 %vm2011_vm0, %v2010_v0 }
  0x92   :  { %1763 = vmatmul.mubr.bf16.gmra.mxu0 %v1891_v41  ;;  %1839 = vmatmul.mubr.bf16.gmra.mxu1 %v1892_v42 }
  0xe2   :  { %v284_v43 = vpop.f32.mrf.mxu0  ;;  %v572_v44 = vpop.f32.mrf.mxu1 }
  0xe3   :  { %v573_v46 = vadd.f32 %v572_v44, %v284_v43 }
  0xe4   :  { %v1708_v47 = vpop.f32.mrf.mxu0  ;;  %v1784_v0 = vpop.f32.mrf.mxu1 }
  0xe5   :  { %v2386_v48 = vadd.f32 %v2383_v45, %v573_v46 }
  0xe6   :  { %v287_v49 = vpop.f32.mrf.mxu0  ;;  %v575_v50 = vpop.f32.mrf.mxu1 }
  0xe7   :  { %v726_v51 = vmin.f32 %v2386_v48, 20.0  ;;  %v576_v52 = vadd.f32 %v575_v50, %v287_v49  ;;  %vm987_vm0 = vcmp.gt.f32.partialorder %v2386_v48, 20.0 }
  0xe8   :  { %v1709_v53 = vpop.f32.mrf.mxu0  ;;  %v1785_v54 = vpop.f32.mrf.mxu1 }
  0xe9   :  { %v755_v55 = vmul.f32 1.442695, %v726_v51  ;;  %v2390_v56 = vadd.f32 %v2383_v45, %v576_v52 }
  0xea   :  { %v292_v57 = vpop.f32.mrf.mxu0  ;;  %v580_v58 = vpop.f32.mrf.mxu1 }
  0xeb   :  { %1893 = vpow2.f32 %v755_v55  ;;  %v727_v59 = vmin.f32 %v2390_v56, 20.0  ;;  %v581_v60 = vadd.f32 %v580_v58, %v292_v57  ;;  %vm988_vm2 = vcmp.gt.f32.partialorder %v2390_v56, 20.0 }
  0xec   :  { %v1712_v61 = vpop.f32.mrf.mxu0  ;;  %v1788_v62 = vpop.f32.mrf.mxu1 }
  0xed   :  { %v757_v63 = vmul.f32 1.442695, %v727_v59  ;;  %v2394_v1 = vadd.f32 %v2383_v45, %v581_v60 }
  0xee   :  { %v295_v2 = vpop.f32.mrf.mxu0  ;;  %v583_v3 = vpop.f32.mrf.mxu1 }
  0xef   :  { %1895 = vpow2.f32 %v757_v63  ;;  %v728_v4 = vmin.f32 %v2394_v1, 20.0  ;;  %v584_v5 = vadd.f32 %v583_v3, %v295_v2  ;;  %vm989_vm4 = vcmp.gt.f32.partialorder %v2394_v1, 20.0 }
  0xf0   :  { %v1713_v6 = vpop.f32.mrf.mxu0  ;;  %v1789_v7 = vpop.f32.mrf.mxu1 }
  0xf1   :  { %v759_v8 = vmul.f32 1.442695, %v728_v4  ;;  %v2398_v9 = vadd.f32 %v2383_v45, %v584_v5 }
  0xf2   :  { %v300_v10 = vpop.f32.mrf.mxu0  ;;  %v588_v11 = vpop.f32.mrf.mxu1 }
  0xf3   :  { %1897 = vpow2.f32 %v759_v8  ;;  %v729_v12 = vmin.f32 %v2398_v9, 20.0  ;;  %v589_v14 = vadd.f32 %v588_v11, %v300_v10  ;;  %vm990_vm7 = vcmp.gt.f32.partialorder %v2398_v9, 20.0 }
  0xf4   :  { %v1716_v15 = vpop.f32.mrf.mxu0  ;;  %v1792_v16 = vpop.f32.mrf.mxu1 }
  0xf5   :  { %v761_v17 = vmul.f32 1.442695, %v729_v12  ;;  %v2402_v18 = vadd.f32 %v2383_v45, %v589_v14 }
  0xf6   :  { %v303_v19 = vpop.f32.mrf.mxu0  ;;  %v591_v20 = vpop.f32.mrf.mxu1 }
  0xf7   :  { %1899 = vpow2.f32 %v761_v17  ;;  %v730_v21 = vmin.f32 %v2402_v18, 20.0  ;;  %v592_v22 = vadd.f32 %v591_v20, %v303_v19  ;;  %vm991_vm8 = vcmp.gt.f32.partialorder %v2402_v18, 20.0 }
  0xf8   :  { %v1717_v23 = vpop.f32.mrf.mxu0  ;;  %v1894_v24 = vpop.eup %1893 }
  0xf9   :  { %v1793_v25 = vpop.f32.mrf.mxu1  ;;  %v813_v26 = vadd.f32 1.0, %v1894_v24  ;;  %v763_v27 = vmul.f32 1.442695, %v730_v21  ;;  %v2406_v28 = vadd.f32 %v2383_v45, %v592_v22  ;;  %v2424_v21 = vpop.permute.xlu0 %1162 }
  0xfa   :  { %v308_v29 = vpop.f32.mrf.mxu0  ;;  %vm1248_vm15 = vcmp.eq.s32.totalorder %v2424_v21, 1 }
  0xfb   :  { %v596_v30 = vpop.f32.mrf.mxu1  ;;  %1901 = vpow2.f32 %v763_v27  ;;  %v731_v31 = vmin.f32 %v2406_v28, 20.0  ;;  %v842_v34 = vmul.f32 %v813_v26, %v813_v26  ;;  %vm992_vm11 = vcmp.gt.f32.partialorder %v2406_v28, 20.0 }
  0xfc   :  { %v597_v32 = vadd.f32 %v596_v30, %v308_v29  ;;  %v1720_v33 = vpop.f32.mrf.mxu0  ;;  %v1896_v13 = vpop.eup %1895 }
  0xfd   :  { %v1796_v35 = vpop.f32.mrf.mxu1  ;;  %v814_v36 = vadd.f32 1.0, %v1896_v13  ;;  %v765_v37 = vmul.f32 1.442695, %v731_v31  ;;  %v871_v40 = vadd.f32 1.0, %v842_v34 }
  0xfe   :  { %v2410_v38 = vadd.f32 %v2383_v45, %v597_v32  ;;  %v311_v39 = vpop.f32.mrf.mxu0 }
  0xff   :  { %v599_v41 = vpop.f32.mrf.mxu1  ;;  %1903 = vpow2.f32 %v765_v37  ;;  %v843_v46 = vmul.f32 %v814_v36, %v814_v36 }
 0x100   :  { %v732_v42 = vmin.f32 %v2410_v38, 20.0  ;;  %v600_v43 = vadd.f32 %v599_v41, %v311_v39  ;;  %v1721_v44 = vpop.f32.mrf.mxu0  ;;  %v1898_v47 = vpop.eup %1897  ;;  %1905 = vrcp.f32 %v871_v40  ;;  %vm993_vm12 = vcmp.gt.f32.partialorder %v2410_v38, 20.0 }
 0x101   :  { %v1797_v0 = vpop.f32.mrf.mxu1  ;;  %v815_v49 = vadd.f32 1.0, %v1898_v47  ;;  %v872_v53 = vadd.f32 1.0, %v843_v46  ;;  %v1166_v44 = vpop.permute.xlu0 %1165 }
 0x102   :  { %v767_v50 = vmul.f32 1.442695, %v732_v42  ;;  %v2414_v51 = vadd.f32 %v2383_v45, %v600_v43  ;;  %v316_v52 = vpop.f32.mrf.mxu0  ;;  %vm1249_vm1 = vcmp.eq.s32.totalorder %v1166_v44, 1 }
 0x103   :  { %v604_v54 = vpop.f32.mrf.mxu1  ;;  %v844_v59 = vmul.f32 %v815_v49, %v815_v49 }
 0x104   :  { %1907 = vpow2.f32 %v767_v50  ;;  %v733_v55 = vmin.f32 %v2414_v51, 20.0  ;;  %v605_v57 = vadd.f32 %v604_v54, %v316_v52  ;;  %v1724_v58 = vpop.f32.mrf.mxu0  ;;  %v1900_v60 = vpop.eup %1899 }
 0x105   :  { %v1800_v61 = vpop.f32.mrf.mxu1  ;;  %1909 = vrcp.f32 %v872_v53  ;;  %v816_v62 = vadd.f32 1.0, %v1900_v60  ;;  %v873_v4 = vadd.f32 1.0, %v844_v59  ;;  %v2461_v44 = vpop.permute.xlu0 %1174 }
 0x106   :  { %v769_v63 = vmul.f32 1.442695, %v733_v55  ;;  %v2418_v2 = vadd.f32 %v2383_v45, %v605_v57  ;;  %v319_v3 = vpop.f32.mrf.mxu0  ;;  %v2436_v57 = vpop.permute.xlu1 %1168  ;;  %vm1252_vm6 = vcmp.eq.s32.totalorder %v2461_v44, 1 }
 0x107   :  { %v607_v5 = vpop.f32.mrf.mxu1  ;;  %v845_v10 = vmul.f32 %v816_v62, %v816_v62  ;;  %vm1250_vm3 = vcmp.eq.s32.totalorder %v2436_v57, 1 }
 0x108   :  { %1911 = vpow2.f32 %v769_v63  ;;  %v734_v6 = vmin.f32 %v2418_v2, 20.0  ;;  %v608_v7 = vadd.f32 %v607_v5, %v319_v3  ;;  %v1725_v8 = vpop.f32.mrf.mxu0  ;;  %v1902_v11 = vpop.eup %1901 }
 0x109   :  { %v1801_v12 = vpop.f32.mrf.mxu1  ;;  %1913 = vrcp.f32 %v873_v4  ;;  %v817_v14 = vadd.f32 1.0, %v1902_v11  ;;  %v874_v19 = vadd.f32 1.0, %v845_v10 }
 0x10a   :  { %v771_v15 = vmul.f32 1.442695, %v734_v6  ;;  %v2422_v16 = vadd.f32 %v2383_v45, %v608_v7  ;;  %v324_v17 = vpop.f32.mrf.mxu0 }
 0x10b   :  { %v612_v20 = vpop.f32.mrf.mxu1  ;;  %v846_v25 = vmul.f32 %v817_v14, %v817_v14 }
 0x10c   :  { %1915 = vpow2.f32 %v771_v15  ;;  %v735_v22 = vmin.f32 %v2422_v16, 20.0  ;;  %v613_v23 = vadd.f32 %v612_v20, %v324_v17  ;;  %v1728_v24 = vpop.f32.mrf.mxu0  ;;  %v1904_v26 = vpop.eup %1903 }
 0x10d   :  { %v1804_v27 = vpop.f32.mrf.mxu1  ;;  %1917 = vrcp.f32 %v874_v19  ;;  %v1906_v29 = vpop.eup %1905  ;;  %v818_v30 = vadd.f32 1.0, %v1904_v26  ;;  %v875_v34 = vadd.f32 1.0, %v846_v25 }
 0x10e   :  { %v773_v31 = vmul.f32 1.442695, %v735_v22  ;;  %v2428_v32 = vadd.f32 %v2383_v45, %v613_v23  ;;  %v327_v33 = vpop.f32.mrf.mxu0  ;;  %v929_v35 = vmul.f32 2.0, %v1906_v29  ;;  %v1172_v26 = vpop.permute.xlu1 %1171 }
 0x10f   :  { %v615_v13 = vpop.f32.mrf.mxu1  ;;  %v847_v40 = vmul.f32 %v818_v30, %v818_v30  ;;  %vm1251_vm5 = vcmp.eq.s32.totalorder %v1172_v26, 1 }
 0x110   :  { %1919 = vpow2.f32 %v773_v31  ;;  %v736_v36 = vmin.f32 %v2428_v32, 20.0  ;;  %v616_v37 = vadd.f32 %v615_v13, %v327_v33  ;;  %v1729_v39 = vpop.f32.mrf.mxu0  ;;  %v958_v43 = vsub.f32 1.0, %v929_v35 }
 0x111   :  { %v1908_v41 = vpop.eup %1907  ;;  %v1805_v42 = vpop.f32.mrf.mxu1  ;;  %1921 = vrcp.f32 %v875_v34  ;;  %v876_v52 = vadd.f32 1.0, %v847_v40 }
 0x112   :  { %v1910_v46 = vpop.eup %1909  ;;  %v819_v47 = vadd.f32 1.0, %v1908_v41  ;;  %v775_v0 = vmul.f32 1.442695, %v736_v36  ;;  %v2433_v49 = vadd.f32 %v2383_v45, %v616_v37  ;;  %v332_v50 = vpop.f32.mrf.mxu0  ;;  %v1016_v53 = vsel %vm987_vm0, 1.0, %v958_v43 }
 0x113   :  { %v620_v54 = vpop.f32.mrf.mxu1  ;;  %v930_v55 = vmul.f32 2.0, %v1910_v46  ;;  %v1045_v62 = vmul.f32 %v1016_v53, %v2386_v48  ;;  %vm994_vm0 = vcmp.gt.f32.partialorder %v2414_v51, 20.0 }
 0x114   :  { %1923 = vpow2.f32 %v775_v0  ;;  %v737_v58 = vmin.f32 %v2433_v49, 20.0  ;;  %v621_v59 = vadd.f32 %v620_v54, %v332_v50  ;;  %v1732_v60 = vpop.f32.mrf.mxu0  ;;  %v848_v4 = vmul.f32 %v819_v47, %v819_v47 }
 0x115   :  { %v1912_v61 = vpop.eup %1911  ;;  %v1808_v63 = vpop.f32.mrf.mxu1  ;;  %v959_v3 = vsub.f32 1.0, %v930_v55  ;;  %1925 = vrcp.f32 %v876_v52  ;;  %v1277_v23 = vsel %vm1248_vm15, %v1045_v62, 0.0  ;;  %vm995_vm15 = vcmp.gt.f32.partialorder %v2418_v2, 20.0 }
 0x116   :  { %v1914_v5 = vpop.eup %1913  ;;  %v820_v6 = vadd.f32 1.0, %v1912_v61  ;;  %v777_v7 = vmul.f32 1.442695, %v737_v58  ;;  %v2441_v8 = vadd.f32 %v2383_v45, %v621_v59  ;;  %v335_v10 = vpop.f32.mrf.mxu0  ;;  %v877_v48 = vadd.f32 1.0, %v848_v4 }
 0x117   :  { %v1017_v11 = vsel %vm988_vm2, 1.0, %v959_v3  ;;  %v623_v12 = vpop.f32.mrf.mxu1  ;;  %v931_v14 = vmul.f32 2.0, %v1914_v5 }
 0x118   :  { %1927 = vpow2.f32 %v777_v7  ;;  %v738_v15 = vmin.f32 %v2441_v8, 20.0  ;;  %v1046_v17 = vmul.f32 %v1017_v11, %v2390_v56  ;;  %v624_v19 = vadd.f32 %v623_v12, %v335_v10  ;;  %v1733_v20 = vpop.f32.mrf.mxu0 }
 0x119   :  { %v1916_v22 = vpop.eup %1915  ;;  %v1809_v24 = vpop.f32.mrf.mxu1  ;;  %v960_v25 = vsub.f32 1.0, %v931_v14  ;;  %1929 = vrcp.f32 %v877_v48  ;;  %v849_v27 = vmul.f32 %v820_v6, %v820_v6 }
 0x11a   :  { %v1918_v29 = vpop.eup %1917  ;;  %v821_v30 = vadd.f32 1.0, %v1916_v22  ;;  %v779_v31 = vmul.f32 1.442695, %v738_v15  ;;  %v1278_v33 = vsel %vm1249_vm1, %v1046_v17, 0.0  ;;  %v2452_v34 = vadd.f32 %v2383_v45, %v624_v19  ;;  %v340_v56 = vpop.f32.mrf.mxu0 }
 0x11b   :  { %v1564_v13 = vpack.c.bf16 %v1278_v33, %v1277_v23  ;;  %v1018_v35 = vsel %vm989_vm4, 1.0, %v960_v25  ;;  %v628_v21 = vpop.f32.mrf.mxu1  ;;  %v932_v36 = vmul.f32 2.0, %v1918_v29  ;;  %v878_v37 = vadd.f32 1.0, %v849_v27  ;;  %v1178_v20 = vpop.permute.xlu1 %1177 }
 0x11c   :  { %1931 = vpow2.f32 %v779_v31  ;;  %v739_v39 = vmin.f32 %v2452_v34, 20.0  ;;  %v629_v40 = vadd.f32 %v628_v21, %v340_v56  ;;  %v1736_v41 = vpop.f32.mrf.mxu0  ;;  %v1047_v43 = vmul.f32 %v1018_v35, %v2394_v1 }
 0x11d   :  { %v1920_v42 = vpop.eup %1919  ;;  %1565 = vst [vmem:[%s2683_s6] sm:$0xff] %v1564_v13   ;;  %v1812_v46 = vpop.f32.mrf.mxu1  ;;  %v961_v47 = vsub.f32 1.0, %v932_v36  ;;  %v850_v0 = vmul.f32 %v821_v30, %v821_v30  ;;  %1933 = vrcp.f32 %v878_v37  ;;  %vm1253_vm9 = vcmp.eq.s32.totalorder %v1178_v20, 1 }
 0x11e   :  { %v1922_v50 = vpop.eup %1921  ;;  %v822_v52 = vadd.f32 1.0, %v1920_v42  ;;  %v781_v53 = vmul.f32 1.442695, %v739_v39  ;;  %v2465_v54 = vadd.f32 %v2383_v45, %v629_v40  ;;  %v343_v55 = vpop.f32.mrf.mxu0  ;;  %v1279_v5 = vsel %vm1250_vm3, %v1047_v43, 0.0 }
 0x11f   :  { %v933_v58 = vmul.f32 2.0, %v1922_v50  ;;  %v1019_v1 = vsel %vm990_vm7, 1.0, %v961_v47  ;;  %v631_v59 = vpop.f32.mrf.mxu1  ;;  %v879_v60 = vadd.f32 1.0, %v850_v0  ;;  %v2484_v30 = vpop.permute.xlu0 %1180  ;;  %vm996_vm3 = vcmp.gt.f32.partialorder %v2422_v16, 20.0 }
 0x120   :  { %1935 = vpow2.f32 %v781_v53  ;;  %v740_v61 = vmin.f32 %v2465_v54, 20.0  ;;  %v1048_v62 = vmul.f32 %v1019_v1, %v2398_v9  ;;  %v632_v63 = vadd.f32 %v631_v59, %v343_v55  ;;  %v1737_v3 = vpop.f32.mrf.mxu0 }
 0x121   :  { %v1924_v4 = vpop.eup %1923  ;;  %v962_v6 = vsub.f32 1.0, %v933_v58  ;;  %v1813_v7 = vpop.f32.mrf.mxu1  ;;  %1937 = vrcp.f32 %v879_v60  ;;  %v851_v10 = vmul.f32 %v822_v52, %v822_v52  ;;  %vm1254_vm10 = vcmp.eq.s32.totalorder %v2484_v30, 1 }
 0x122   :  { %v1926_v11 = vpop.eup %1925  ;;  %v823_v12 = vadd.f32 1.0, %v1924_v4  ;;  %v783_v14 = vmul.f32 1.442695, %v740_v61  ;;  %v1280_v48 = vsel %vm1251_vm5, %v1048_v62, 0.0  ;;  %v2475_v15 = vadd.f32 %v2383_v45, %v632_v63  ;;  %v348_v17 = vpop.f32.mrf.mxu0 }
 0x123   :  { %v1020_v9 = vsel %vm991_vm8, 1.0, %v962_v6  ;;  %v1569_v19 = vpack.c.bf16 %v1280_v48, %v1279_v5  ;;  %v934_v57 = vmul.f32 2.0, %v1926_v11  ;;  %v636_v22 = vpop.f32.mrf.mxu1  ;;  %v880_v23 = vadd.f32 1.0, %v851_v10  ;;  %v1184_v3 = vpop.permute.xlu1 %1183 }
 0x124   :  { %1939 = vpow2.f32 %v783_v14  ;;  %v741_v24 = vmin.f32 %v2475_v15, 20.0  ;;  %v637_v25 = vadd.f32 %v636_v22, %v348_v17  ;;  %v1740_v27 = vpop.f32.mrf.mxu0  ;;  %v1049_v29 = vmul.f32 %v1020_v9, %v2402_v18  ;;  %v2507_v14 = vpop.permute.xlu0 %1186 }
 0x125   :  { %v1928_v26 = vpop.eup %1927  ;;  %1631 = vst [vmem:[%s2683_s6 + $0x8] sm:$0xff] %v1569_v19   ;;  %v963_v31 = vsub.f32 1.0, %v934_v57  ;;  %v1816_v33 = vpop.f32.mrf.mxu1  ;;  %v852_v56 = vmul.f32 %v823_v12, %v823_v12  ;;  %1941 = vrcp.f32 %v880_v23  ;;  %vm1255_vm13 = vcmp.eq.s32.totalorder %v1184_v3, 1 }
 0x126   :  { %v1930_v13 = vpop.eup %1929  ;;  %v824_v35 = vadd.f32 1.0, %v1928_v26  ;;  %v785_v21 = vmul.f32 1.442695, %v741_v24  ;;  %v2489_v36 = vadd.f32 %v2383_v45, %v637_v25  ;;  %v351_v18 = vpop.f32.mrf.mxu0  ;;  %v1281_v50 = vsel %vm1252_vm6, %v1049_v29, 0.0 }
 0x127   :  { %v935_v37 = vmul.f32 2.0, %v1930_v13  ;;  %v1021_v39 = vsel %vm992_vm11, 1.0, %v963_v31  ;;  %v881_v40 = vadd.f32 1.0, %v852_v56  ;;  %v639_v41 = vpop.f32.mrf.mxu1  ;;  %vm1256_vm14 = vcmp.eq.s32.totalorder %v2507_v14, 1 }
 0x128   :  { %1943 = vpow2.f32 %v785_v21  ;;  %v1050_v42 = vmul.f32 %v1021_v39, %v2406_v28  ;;  %v742_v43 = vmin.f32 %v2489_v36, 20.0  ;;  %v640_v46 = vadd.f32 %v639_v41, %v351_v18  ;;  %v1741_v47 = vpop.f32.mrf.mxu0  ;;  %v1190_v21 = vpop.permute.xlu1 %1189 }
 0x129   :  { %v1932_v0 = vpop.eup %1931  ;;  %v964_v52 = vsub.f32 1.0, %v935_v37  ;;  %1945 = vrcp.f32 %v881_v40  ;;  %v1817_v53 = vpop.f32.mrf.mxu1  ;;  %v853_v55 = vmul.f32 %v824_v35, %v824_v35  ;;  %vm1257_vm1 = vcmp.eq.s32.totalorder %v1190_v21, 1 }
 0x12a   :  { %v1934_v58 = vpop.eup %1933  ;;  %v825_v1 = vadd.f32 1.0, %v1932_v0  ;;  %v1282_v59 = vsel %vm1253_vm9, %v1050_v42, 0.0  ;;  %v787_v60 = vmul.f32 1.442695, %v742_v43  ;;  %v2498_v61 = vadd.f32 %v2383_v45, %v640_v46  ;;  %v356_v28 = vpop.f32.mrf.mxu0 }
 0x12b   :  { %v1022_v62 = vsel %vm993_vm12, 1.0, %v964_v52  ;;  %v1574_v63 = vpack.c.bf16 %v1282_v59, %v1281_v50  ;;  %v936_v44 = vmul.f32 2.0, %v1934_v58  ;;  %v644_v4 = vpop.f32.mrf.mxu1  ;;  %v882_v5 = vadd.f32 1.0, %v853_v55  ;;  %v2530_v59 = vpop.permute.xlu0 %1192 }
 0x12c   :  { %1947 = vpow2.f32 %v787_v60  ;;  %v743_v6 = vmin.f32 %v2498_v61, 20.0  ;;  %v854_v7 = vmul.f32 %v825_v1, %v825_v1  ;;  %v1744_v10 = vpop.f32.mrf.mxu0  ;;  %v1051_v12 = vmul.f32 %v1022_v62, %v2410_v38 }
 0x12d   :  { %v1936_v11 = vpop.eup %1935  ;;  %1632 = vst [vmem:[%s2683_s6 + $0x10] sm:$0xff] %v1574_v63   ;;  %v965_v48 = vsub.f32 1.0, %v936_v44  ;;  %v645_v17 = vadd.f32 %v644_v4, %v356_v28  ;;  %v1820_v9 = vpop.f32.mrf.mxu1  ;;  %1949 = vrcp.f32 %v882_v5  ;;  %vm1258_vm2 = vcmp.eq.s32.totalorder %v2530_v59, 1 }
 0x12e   :  { %v1938_v19 = vpop.eup %1937  ;;  %v826_v20 = vadd.f32 1.0, %v1936_v11  ;;  %v789_v57 = vmul.f32 1.442695, %v743_v6  ;;  %v883_v22 = vadd.f32 1.0, %v854_v7  ;;  %v359_v23 = vpop.f32.mrf.mxu0  ;;  %v1283_v13 = vsel %vm1254_vm10, %v1051_v12, 0.0 }
 0x12f   :  { %v937_v38 = vmul.f32 2.0, %v1938_v19  ;;  %v1023_v24 = vsel %vm994_vm0, 1.0, %v965_v48  ;;  %v2513_v25 = vadd.f32 %v2383_v45, %v645_v17  ;;  %v647_v27 = vpop.f32.mrf.mxu1  ;;  %vm997_vm4 = vcmp.gt.f32.partialorder %v2428_v32, 20.0  ;;  %v2535_v7 = vpop.permute.xlu1 %1195 }
 0x130   :  { %v1052_v26 = vmul.f32 %v1023_v24, %v2414_v51  ;;  %1951 = vpow2.f32 %v789_v57  ;;  %v648_v29 = vadd.f32 %v647_v27, %v359_v23  ;;  %v1745_v31 = vpop.f32.mrf.mxu0  ;;  %v855_v33 = vmul.f32 %v826_v20, %v826_v20 }
 0x131   :  { %v1940_v56 = vpop.eup %1939  ;;  %v966_v35 = vsub.f32 1.0, %v937_v38  ;;  %1953 = vrcp.f32 %v883_v22  ;;  %v744_v18 = vmin.f32 %v2513_v25, 20.0  ;;  %v1821_v37 = vpop.f32.mrf.mxu1  ;;  %vm1259_vm5 = vcmp.eq.s32.totalorder %v2535_v7, 1 }
 0x132   :  { %v1942_v39 = vpop.eup %1941  ;;  %v827_v40 = vadd.f32 1.0, %v1940_v56  ;;  %v1284_v41 = vsel %vm1255_vm13, %v1052_v26, 0.0  ;;  %v2521_v51 = vadd.f32 %v2383_v45, %v648_v29  ;;  %v884_v42 = vadd.f32 1.0, %v855_v33  ;;  %v364_v43 = vpop.f32.mrf.mxu0 }
 0x133   :  { %v1024_v46 = vsel %vm995_vm15, 1.0, %v966_v35  ;;  %v1579_v30 = vpack.c.bf16 %v1284_v41, %v1283_v13  ;;  %v938_v47 = vmul.f32 2.0, %v1942_v39  ;;  %v791_v0 = vmul.f32 1.442695, %v744_v18  ;;  %v652_v50 = vpop.f32.mrf.mxu1  ;;  %v2550_v35 = vpop.permute.xlu0 %1198 }
 0x134   :  { %v856_v52 = vmul.f32 %v827_v40, %v827_v40  ;;  %v745_v53 = vmin.f32 %v2521_v51, 20.0  ;;  %1955 = vrcp.f32 %v884_v42  ;;  %v1748_v55 = vpop.f32.mrf.mxu0  ;;  %v1053_v1 = vmul.f32 %v1024_v46, %v2418_v2  ;;  %v2559_v42 = vpop.permute.xlu1 %1201 }
 0x135   :  { %v1944_v58 = vpop.eup %1943  ;;  %1633 = vst [vmem:[%s2683_s6 + $0x18] sm:$0xff] %v1579_v30   ;;  %v967_v60 = vsub.f32 1.0, %v938_v47  ;;  %1957 = vpow2.f32 %v791_v0  ;;  %v653_v28 = vadd.f32 %v652_v50, %v364_v43  ;;  %v1824_v62 = vpop.f32.mrf.mxu1  ;;  %vm1260_vm6 = vcmp.eq.s32.totalorder %v2550_v35, 1 }
 0x136   :  { %v1946_v63 = vpop.eup %1945  ;;  %v828_v3 = vadd.f32 1.0, %v1944_v58  ;;  %v885_v44 = vadd.f32 1.0, %v856_v52  ;;  %v793_v4 = vmul.f32 1.442695, %v745_v53  ;;  %v367_v5 = vpop.f32.mrf.mxu0  ;;  %v1285_v20 = vsel %vm1256_vm14, %v1053_v1, 0.0 }
 0x137   :  { %v939_v2 = vmul.f32 2.0, %v1946_v63  ;;  %v1025_v6 = vsel %vm996_vm3, 1.0, %v967_v60  ;;  %v2538_v10 = vadd.f32 %v2383_v45, %v653_v28  ;;  %v655_v11 = vpop.f32.mrf.mxu1  ;;  %vm998_vm7 = vcmp.gt.f32.partialorder %v2433_v49, 20.0 }
 0x138   :  { %v1054_v12 = vmul.f32 %v1025_v6, %v2422_v16  ;;  %1959 = vrcp.f32 %v885_v44  ;;  %v857_v48 = vmul.f32 %v828_v3, %v828_v3  ;;  %v656_v17 = vadd.f32 %v655_v11, %v367_v5  ;;  %v1749_v9 = vpop.f32.mrf.mxu0 }
 0x139   :  { %v1948_v19 = vpop.eup %1947  ;;  %v968_v57 = vsub.f32 1.0, %v939_v2  ;;  %1961 = vpow2.f32 %v793_v4  ;;  %v746_v22 = vmin.f32 %v2538_v10, 20.0  ;;  %v1825_v23 = vpop.f32.mrf.mxu1  ;;  %vm1261_vm8 = vcmp.eq.s32.totalorder %v2559_v42, 1 }
 0x13a   :  { %v1950_v38 = vpop.eup %1949  ;;  %v829_v24 = vadd.f32 1.0, %v1948_v19  ;;  %v1286_v27 = vsel %vm1257_vm1, %v1054_v12, 0.0  ;;  %v886_v26 = vadd.f32 1.0, %v857_v48  ;;  %v2546_v16 = vadd.f32 %v2383_v45, %v656_v17  ;;  %v372_v29 = vpop.f32.mrf.mxu0 }
 0x13b   :  { %v1026_v31 = vsel %vm997_vm4, 1.0, %v968_v57  ;;  %v1584_v33 = vpack.c.bf16 %v1286_v27, %v1285_v20  ;;  %v940_v14 = vmul.f32 2.0, %v1950_v38  ;;  %v795_v56 = vmul.f32 1.442695, %v746_v22  ;;  %v660_v13 = vpop.f32.mrf.mxu1 }
 0x13c   :  { %v858_v18 = vmul.f32 %v829_v24, %v829_v24  ;;  %1963 = vrcp.f32 %v886_v26  ;;  %v747_v21 = vmin.f32 %v2546_v16, 20.0  ;;  %v1752_v37 = vpop.f32.mrf.mxu0  ;;  %v1055_v40 = vmul.f32 %v1026_v31, %v2428_v32 }
 0x13d   :  { %v1952_v39 = vpop.eup %1951  ;;  %1634 = vst [vmem:[%s2683_s6 + $0x20] sm:$0xff] %v1584_v33   ;;  %v969_v41 = vsub.f32 1.0, %v940_v14  ;;  %1965 = vpow2.f32 %v795_v56  ;;  %v661_v43 = vadd.f32 %v660_v13, %v372_v29  ;;  %v1828_v46 = vpop.f32.mrf.mxu1  ;;  %vm999_vm9 = vcmp.gt.f32.partialorder %v2441_v8, 20.0 }
 0x13e   :  { %v1954_v30 = vpop.eup %1953  ;;  %v830_v47 = vadd.f32 1.0, %v1952_v39  ;;  %v887_v0 = vadd.f32 1.0, %v858_v18  ;;  %v797_v32 = vmul.f32 1.442695, %v747_v21  ;;  %v375_v50 = vpop.f32.mrf.mxu0  ;;  %v1287_v3 = vsel %vm1258_vm2, %v1055_v40, 0.0 }
 0x13f   :  { %v941_v52 = vmul.f32 2.0, %v1954_v30  ;;  %v1027_v53 = vsel %vm998_vm7, 1.0, %v969_v41  ;;  %v2565_v55 = vadd.f32 %v2383_v45, %v661_v43  ;;  %v663_v58 = vpop.f32.mrf.mxu1  ;;  %vm1000_vm10 = vcmp.gt.f32.partialorder %v2452_v34, 20.0 }
 0x140   :  { %v1056_v1 = vmul.f32 %v1027_v53, %v2433_v49  ;;  %1967 = vrcp.f32 %v887_v0  ;;  %v859_v60 = vmul.f32 %v830_v47, %v830_v47  ;;  %v664_v28 = vadd.f32 %v663_v58, %v375_v50  ;;  %v1753_v62 = vpop.f32.mrf.mxu0  ;;  %v1205_v50 = vpop.permute.xlu0 %1204 }
 0x141   :  { %v1956_v63 = vpop.eup %1955  ;;  %v970_v44 = vsub.f32 1.0, %v941_v52  ;;  %1969 = vpow2.f32 %v797_v32  ;;  %v748_v4 = vmin.f32 %v2565_v55, 20.0  ;;  %v1829_v5 = vpop.f32.mrf.mxu1  ;;  %vm1001_vm11 = vcmp.gt.f32.partialorder %v2465_v54, 20.0 }
 0x142   :  { %v1958_v2 = vpop.eup %1957  ;;  %v1288_v6 = vsel %vm1259_vm5, %v1056_v1, 0.0  ;;  %v942_v11 = vmul.f32 2.0, %v1956_v63  ;;  %v888_v12 = vadd.f32 1.0, %v859_v60  ;;  %v2574_v49 = vadd.f32 %v2383_v45, %v664_v28  ;;  %v380_v48 = vpop.f32.mrf.mxu0 }
 0x143   :  { %v1028_v17 = vsel %vm999_vm9, 1.0, %v970_v44  ;;  %v831_v59 = vadd.f32 1.0, %v1958_v2  ;;  %v1589_v9 = vpack.c.bf16 %v1288_v6, %v1287_v3  ;;  %v799_v19 = vmul.f32 1.442695, %v748_v4  ;;  %v668_v20 = vpop.f32.mrf.mxu1  ;;  %v1208_v60 = vpop.permute.xlu1 %1207 }
 0x144   :  { %v1057_v57 = vmul.f32 %v1028_v17, %v2441_v8  ;;  %v971_v22 = vsub.f32 1.0, %v942_v11  ;;  %1971 = vrcp.f32 %v888_v12  ;;  %v749_v7 = vmin.f32 %v2574_v49, 20.0  ;;  %v1756_v23 = vpop.f32.mrf.mxu0 }
 0x145   :  { %v1960_v38 = vpop.eup %1959  ;;  %1635 = vst [vmem:[%s2683_s6 + $0x28] sm:$0xff] %v1589_v9   ;;  %v860_v24 = vmul.f32 %v831_v59, %v831_v59  ;;  %1973 = vpow2.f32 %v799_v19  ;;  %v669_v27 = vadd.f32 %v668_v20, %v380_v48  ;;  %v1832_v26 = vpop.f32.mrf.mxu1  ;;  %vm1262_vm12 = vcmp.eq.s32.totalorder %v1205_v50, 1 }
 0x146   :  { %v1962_v29 = vpop.eup %1961  ;;  %v943_v31 = vmul.f32 2.0, %v1960_v38  ;;  %v1029_v8 = vsel %vm1000_vm10, 1.0, %v971_v22  ;;  %v801_v33 = vmul.f32 1.442695, %v749_v7  ;;  %v383_v14 = vpop.f32.mrf.mxu0  ;;  %v1289_v39 = vsel %vm1260_vm6, %v1057_v57, 0.0 }
 0x147   :  { %v832_v56 = vadd.f32 1.0, %v1962_v29  ;;  %v1058_v13 = vmul.f32 %v1029_v8, %v2452_v34  ;;  %v889_v18 = vadd.f32 1.0, %v860_v24  ;;  %v2587_v21 = vadd.f32 %v2383_v45, %v669_v27  ;;  %v671_v37 = vpop.f32.mrf.mxu1 }
 0x148   :  { %v972_v40 = vsub.f32 1.0, %v943_v31  ;;  %1975 = vpow2.f32 %v801_v33  ;;  %v672_v41 = vadd.f32 %v671_v37, %v383_v14  ;;  %v1757_v43 = vpop.f32.mrf.mxu0  ;;  %vm1263_vm13 = vcmp.eq.s32.totalorder %v1208_v60, 1 }
 0x149   :  { %v1964_v46 = vpop.eup %1963  ;;  %v1290_v30 = vsel %vm1261_vm8, %v1058_v13, 0.0  ;;  %1977 = vrcp.f32 %v889_v18  ;;  %v861_v47 = vmul.f32 %v832_v56, %v832_v56  ;;  %v750_v34 = vmin.f32 %v2587_v21, 20.0  ;;  %v1833_v0 = vpop.f32.mrf.mxu1  ;;  %v2009_v43 = vld [vmem:[%s2682_s4] ss:$0 sm:$0xff] }
 0x14a   :  { %v1966_v32 = vpop.eup %1965  ;;  %v1030_v52 = vsel %vm1001_vm11, 1.0, %v972_v40  ;;  %v1594_v35 = vpack.c.bf16 %v1290_v30, %v1289_v39  ;;  %v944_v53 = vmul.f32 2.0, %v1964_v46  ;;  %v388_v58 = vpop.f32.mrf.mxu0  ;;  %v2600_v3 = vadd.f32 %v2383_v45, %v672_v41 }
 0x14b   :  { %v833_v1 = vadd.f32 1.0, %v1966_v32  ;;  %v890_v28 = vadd.f32 1.0, %v861_v47  ;;  %v803_v62 = vmul.f32 1.442695, %v750_v34  ;;  %v676_v42 = vpop.f32.mrf.mxu1  ;;  %v1059_v2 = vmul.f32 %v1030_v52, %v2465_v54  ;;  %v1214_v32 = vpop.permute.xlu1 %1213 }
 0x14c   :  { %1636 = vst [vmem:[%s2683_s6 + $0x30] sm:$0xff] %v1594_v35   ;;  %v973_v63 = vsub.f32 1.0, %v944_v53  ;;  %v677_v44 = vadd.f32 %v676_v42, %v388_v58  ;;  %v1760_v4 = vpop.f32.mrf.mxu0  ;;  %vm1002_vm14 = vcmp.gt.f32.partialorder %v2475_v15, 20.0  ;;  %v751_v59 = vmin.f32 %v2600_v3, 20.0 }
 0x14d   :  { %v1968_v5 = vpop.eup %1967  ;;  %v862_v6 = vmul.f32 %v833_v1, %v833_v1  ;;  %1979 = vrcp.f32 %v890_v28  ;;  %v1836_v11 = vpop.f32.mrf.mxu1  ;;  %vm1003_vm0 = vcmp.gt.f32.partialorder %v2489_v36, 20.0  ;;  %v1291_v26 = vsel %vm1262_vm12, %v1059_v2, 0.0 }
 0x14e   :  { %v1970_v12 = vpop.eup %1969  ;;  %v945_v48 = vmul.f32 2.0, %v1968_v5  ;;  %v1031_v17 = vsel %vm1002_vm14, 1.0, %v973_v63  ;;  %1981 = vpow2.f32 %v803_v62  ;;  %v391_v9 = vpop.f32.mrf.mxu0  ;;  %v805_v7 = vmul.f32 1.442695, %v751_v59 }
 0x14f   :  { %v1060_v19 = vmul.f32 %v1031_v17, %v2475_v15  ;;  %v834_v20 = vadd.f32 1.0, %v1970_v12  ;;  %v891_v57 = vadd.f32 1.0, %v862_v6  ;;  %v679_v22 = vpop.f32.mrf.mxu1  ;;  %v2608_v23 = vadd.f32 %v2383_v45, %v677_v44  ;;  %v1211_v15 = vpop.permute.xlu0 %1210 }
 0x150   :  { %v974_v54 = vsub.f32 1.0, %v945_v48  ;;  %v680_v38 = vadd.f32 %v679_v22, %v391_v9  ;;  %v1761_v24 = vpop.f32.mrf.mxu0  ;;  %vm1264_vm15 = vcmp.eq.s32.totalorder %v1211_v15, 1  ;;  %vm1004_vm1 = vcmp.gt.f32.partialorder %v2498_v61, 20.0 }
 0x151   :  { %v1972_v27 = vpop.eup %1971  ;;  %v1292_v29 = vsel %vm1263_vm13, %v1060_v19, 0.0  ;;  %1983 = vrcp.f32 %v891_v57  ;;  %v863_v31 = vmul.f32 %v834_v20, %v834_v20  ;;  %v1837_v8 = vpop.f32.mrf.mxu1  ;;  %v752_v39 = vmin.f32 %v2608_v23, 20.0 }
 0x152   :  { %v1974_v33 = vpop.eup %1973  ;;  %v1032_v14 = vsel %vm1003_vm0, 1.0, %v974_v54  ;;  %v1599_v56 = vpack.c.bf16 %v1292_v29, %v1291_v26  ;;  %v946_v13 = vmul.f32 2.0, %v1972_v27  ;;  %1985 = vpow2.f32 %v805_v7  ;;  %v396_v45 = vpop.f32.mrf.mxu0 }
 0x153   :  { %v835_v18 = vadd.f32 1.0, %v1974_v33  ;;  %v892_v37 = vadd.f32 1.0, %v863_v31  ;;  %v684_v40 = vpop.f32.mrf.mxu1  ;;  %v2622_v46 = vadd.f32 %v2009_v43, %v680_v38  ;;  %v1061_v0 = vmul.f32 %v1032_v14, %v2489_v36  ;;  %v1217_v8 = vpop.permute.xlu0 %1216 }
 0x154   :  { %1637 = vst [vmem:[%s2683_s6 + $0x38] sm:$0xff] %v1599_v56   ;;  %v975_v41 = vsub.f32 1.0, %v946_v13  ;;  %v685_v30 = vadd.f32 %v684_v40, %v396_v45  ;;  %v1764_v47 = vpop.f32.mrf.mxu0  ;;  %v807_v52 = vmul.f32 1.442695, %v752_v39  ;;  %vm1265_vm2 = vcmp.eq.s32.totalorder %v1214_v32, 1  ;;  %v1220_v33 = vpop.permute.xlu1 %1219 }
 0x155   :  { %v1976_v34 = vpop.eup %1975  ;;  %v864_v50 = vmul.f32 %v835_v18, %v835_v18  ;;  %1987 = vrcp.f32 %v892_v37  ;;  %v1840_v35 = vpop.f32.mrf.mxu1  ;;  %v753_v60 = vmin.f32 %v2622_v46, 20.0  ;;  %vm1005_vm3 = vcmp.gt.f32.partialorder %v2513_v25, 20.0 }
 0x156   :  { %v1978_v53 = vpop.eup %1977  ;;  %v1033_v58 = vsel %vm1004_vm1, 1.0, %v975_v41  ;;  %v836_v1 = vadd.f32 1.0, %v1976_v34  ;;  %v399_v28 = vpop.f32.mrf.mxu0  ;;  %1989 = vpow2.f32 %v807_v52  ;;  %v2628_v5 = vadd.f32 %v2009_v43, %v685_v30 }
 0x157   :  { %v947_v62 = vmul.f32 2.0, %v1978_v53  ;;  %v1062_v42 = vmul.f32 %v1033_v58, %v2498_v61  ;;  %v893_v63 = vadd.f32 1.0, %v864_v50  ;;  %v687_v44 = vpop.f32.mrf.mxu1  ;;  %v809_v4 = vmul.f32 1.442695, %v753_v60  ;;  %v1223_v50 = vpop.permute.xlu0 %1222 }
 0x158   :  { %v865_v36 = vmul.f32 %v836_v1, %v836_v1  ;;  %v1765_v2 = vpop.f32.mrf.mxu0  ;;  %v1293_v6 = vsel %vm1264_vm15, %v1061_v0, 0.0  ;;  %v754_v9 = vmin.f32 %v2628_v5, 20.0  ;;  %vm1006_vm4 = vcmp.gt.f32.partialorder %v2521_v51, 20.0  ;;  %v1226_v58 = vpop.permute.xlu1 %1225 }
 0x159   :  { %v976_v11 = vsub.f32 1.0, %v947_v62  ;;  %v1294_v12 = vsel %vm1265_vm2, %v1062_v42, 0.0  ;;  %1991 = vrcp.f32 %v893_v63  ;;  %v1841_v48 = vpop.f32.mrf.mxu1  ;;  %vm1266_vm5 = vcmp.eq.s32.totalorder %v1217_v8, 1 }
 0x15a   :  { %v1980_v17 = vpop.eup %1979  ;;  %v1604_v59 = vpack.c.bf16 %v1294_v12, %v1293_v6  ;;  %v894_v61 = vadd.f32 1.0, %v865_v36  ;;  %1993 = vpow2.f32 %v809_v4  ;;  %v811_v54 = vmul.f32 1.442695, %v754_v9 }
 0x15b   :  { %v1982_v19 = vpop.eup %1981  ;;  %v1034_v20 = vsel %vm1005_vm3, 1.0, %v976_v11  ;;  %v948_v57 = vmul.f32 2.0, %v1980_v17  ;;  %vm1007_vm6 = vcmp.gt.f32.partialorder %v2538_v10, 20.0  ;;  %vm1267_vm7 = vcmp.eq.s32.totalorder %v1220_v33, 1  ;;  %v1229_v9 = vpop.permute.xlu0 %1228 }
 0x15c   :  { %1638 = vst [vmem:[%s2683_s6 + $0x40] sm:$0xff] %v1604_v59   ;;  %v837_v22 = vadd.f32 1.0, %v1982_v19  ;;  %1995 = vrcp.f32 %v894_v61  ;;  %v1063_v24 = vmul.f32 %v1034_v20, %v2513_v25  ;;  %vm1008_vm8 = vcmp.gt.f32.partialorder %v2546_v16, 20.0  ;;  %v1232_v19 = vpop.permute.xlu1 %1231 }
 0x15d   :  { %v977_v7 = vsub.f32 1.0, %v948_v57  ;;  %1997 = vpow2.f32 %v811_v54  ;;  %vm1268_vm9 = vcmp.eq.s32.totalorder %v1223_v50, 1  ;;  %vm1009_vm10 = vcmp.gt.f32.partialorder %v2565_v55, 20.0 }
 0x15e   :  { %v1984_v38 = vpop.eup %1983  ;;  %v866_v27 = vmul.f32 %v837_v22, %v837_v22  ;;  %v1295_v25 = vsel %vm1266_vm5, %v1063_v24, 0.0  ;;  %vm1269_vm11 = vcmp.eq.s32.totalorder %v1226_v58, 1  ;;  %vm1010_vm12 = vcmp.gt.f32.partialorder %v2574_v49, 20.0 }
 0x15f   :  { %v1986_v26 = vpop.eup %1985  ;;  %v949_v29 = vmul.f32 2.0, %v1984_v38  ;;  %v1035_v31 = vsel %vm1006_vm4, 1.0, %v977_v7  ;;  %vm1270_vm13 = vcmp.eq.s32.totalorder %v1229_v9, 1  ;;  %vm1271_vm14 = vcmp.eq.s32.totalorder %v1232_v19, 1 }
 0x160   :  { %v1064_v15 = vmul.f32 %v1035_v31, %v2521_v51  ;;  %v895_v14 = vadd.f32 1.0, %v866_v27  ;;  %v838_v56 = vadd.f32 1.0, %v1986_v26  ;;  %vm1011_vm0 = vcmp.gt.f32.partialorder %v2587_v21, 20.0 }
 0x161   :  { %v978_v13 = vsub.f32 1.0, %v949_v29  ;;  %vm1012_vm15 = vcmp.gt.f32.partialorder %v2600_v3, 20.0  ;;  %vm1013_vm3 = vcmp.gt.f32.partialorder %v2608_v23, 20.0  ;;  %vm1014_vm4 = vcmp.gt.f32.partialorder %v2622_v46, 20.0 }
 0x162   :  { %v1988_v45 = vpop.eup %1987  ;;  %v1296_v18 = vsel %vm1267_vm7, %v1064_v15, 0.0  ;;  %v867_v37 = vmul.f32 %v838_v56, %v838_v56  ;;  %1999 = vrcp.f32 %v895_v14  ;;  %v1238_v15 = vpop.permute.xlu1 %1237  ;;  %vm1015_vm7 = vcmp.gt.f32.partialorder %v2628_v5, 20.0 }
 0x163   :  { %v1036_v39 = vsel %vm1007_vm6, 1.0, %v978_v13  ;;  %v1609_v40 = vpack.c.bf16 %v1296_v18, %v1295_v25  ;;  %v950_v41 = vmul.f32 2.0, %v1988_v45  ;;  %v1990_v43 = vpop.eup %1989  ;;  %vm1273_vm2 = vcmp.eq.s32.totalorder %v1238_v15, 1 }
 0x164   :  { %v896_v30 = vadd.f32 1.0, %v867_v37  ;;  %v839_v47 = vadd.f32 1.0, %v1990_v43  ;;  %v1065_v0 = vmul.f32 %v1036_v39, %v2538_v10 }
 0x165   :  { %1639 = vst [vmem:[%s2683_s6 + $0x48] sm:$0xff] %v1609_v40   ;;  %v979_v51 = vsub.f32 1.0, %v950_v41 }
 0x166   :  { %v1992_v34 = vpop.eup %1991  ;;  %2001 = vrcp.f32 %v896_v30  ;;  %v868_v53 = vmul.f32 %v839_v47, %v839_v47  ;;  %v1297_v10 = vsel %vm1268_vm9, %v1065_v0, 0.0  ;;  %v1244_v30 = vpop.permute.xlu1 %1243 }
 0x167   :  { %v1994_v32 = vpop.eup %1993  ;;  %v951_v52 = vmul.f32 2.0, %v1992_v34  ;;  %v1037_v35 = vsel %vm1008_vm8, 1.0, %v979_v51  ;;  %vm1275_vm6 = vcmp.eq.s32.totalorder %v1244_v30, 1 }
 0x168   :  { %v1066_v1 = vmul.f32 %v1037_v35, %v2546_v16  ;;  %v840_v60 = vadd.f32 1.0, %v1994_v32  ;;  %v897_v42 = vadd.f32 1.0, %v868_v53 }
 0x169   :  { %v1996_v28 = vpop.eup %1995  ;;  %v980_v62 = vsub.f32 1.0, %v951_v52 }
 0x16a   :  { %v1298_v63 = vsel %vm1269_vm11, %v1066_v1, 0.0  ;;  %v952_v44 = vmul.f32 2.0, %v1996_v28  ;;  %v869_v36 = vmul.f32 %v840_v60, %v840_v60  ;;  %v1998_v4 = vpop.eup %1997  ;;  %2003 = vrcp.f32 %v897_v42 }
 0x16b   :  { %v1038_v2 = vsel %vm1009_vm10, 1.0, %v980_v62  ;;  %v1614_v6 = vpack.c.bf16 %v1298_v63, %v1297_v10  ;;  %v841_v48 = vadd.f32 1.0, %v1998_v4 }
 0x16c   :  { %v981_v11 = vsub.f32 1.0, %v952_v44  ;;  %v898_v12 = vadd.f32 1.0, %v869_v36  ;;  %v1067_v16 = vmul.f32 %v1038_v2, %v2565_v55 }
 0x16d   :  { %1640 = vst [vmem:[%s2683_s6 + $0x50] sm:$0xff] %v1614_v6   ;;  %v870_v59 = vmul.f32 %v841_v48, %v841_v48 }
 0x16e   :  { %v1039_v17 = vsel %vm1010_vm12, 1.0, %v981_v11  ;;  %2005 = vrcp.f32 %v898_v12  ;;  %v1299_v54 = vsel %vm1270_vm13, %v1067_v16, 0.0 }
 0x16f   :  { %v2000_v61 = vpop.eup %1999  ;;  %v1068_v20 = vmul.f32 %v1039_v17, %v2574_v49  ;;  %v899_v22 = vadd.f32 1.0, %v870_v59  ;;  %v1235_v49 = vpop.permute.xlu0 %1234 }
 0x170   :  { %v953_v57 = vmul.f32 2.0, %v2000_v61  ;;  %vm1272_vm1 = vcmp.eq.s32.totalorder %v1235_v49, 1 }
 0x171   :  { %v1300_v55 = vsel %vm1271_vm14, %v1068_v20, 0.0  ;;  %2007 = vrcp.f32 %v899_v22 }
 0x172   :  { %v1619_v7 = vpack.c.bf16 %v1300_v55, %v1299_v54  ;;  %v982_v38 = vsub.f32 1.0, %v953_v57 }
 0x173   :  { %v2002_v24 = vpop.eup %2001  ;;  %v1241_v40 = vpop.permute.xlu0 %1240 }
 0x174   :  { %1641 = vst [vmem:[%s2683_s6 + $0x58] sm:$0xff] %v1619_v7   ;;  %v954_v27 = vmul.f32 2.0, %v2002_v24  ;;  %v1040_v26 = vsel %vm1011_vm0, 1.0, %v982_v38  ;;  %vm1274_vm5 = vcmp.eq.s32.totalorder %v1241_v40, 1 }
 0x175   :  { %v1069_v31 = vmul.f32 %v1040_v26, %v2587_v21 }
 0x176   :  { %v983_v29 = vsub.f32 1.0, %v954_v27 }
 0x177   :  { %v2004_v8 = vpop.eup %2003  ;;  %v1301_v45 = vsel %vm1272_vm1, %v1069_v31, 0.0  ;;  %v1247_v32 = vpop.permute.xlu0 %1246 }
 0x178   :  { %v1041_v33 = vsel %vm1012_vm15, 1.0, %v983_v29  ;;  %v955_v56 = vmul.f32 2.0, %v2004_v8  ;;  %vm1276_vm8 = vcmp.eq.s32.totalorder %v1247_v32, 1 }
 0x179   :  { %v1070_v14 = vmul.f32 %v1041_v33, %v2600_v3 }
 0x17a   :  { %v984_v18 = vsub.f32 1.0, %v955_v56 }
 0x17b   :  { %v2006_v13 = vpop.eup %2005  ;;  %v1302_v25 = vsel %vm1273_vm2, %v1070_v14, 0.0 }
 0x17c   :  { %v1624_v37 = vpack.c.bf16 %v1302_v25, %v1301_v45  ;;  %v956_v39 = vmul.f32 2.0, %v2006_v13  ;;  %v1042_v41 = vsel %vm1013_vm3, 1.0, %v984_v18 }
 0x17d   :  { %v1071_v3 = vmul.f32 %v1042_v41, %v2608_v23 }
 0x17e   :  { %1642 = vst [vmem:[%s2683_s6 + $0x60] sm:$0xff] %v1624_v37   ;;  %v985_v21 = vsub.f32 1.0, %v956_v39  ;;  %v2008_v43 = vpop.eup %2007 }
 0x17f   :  { %v957_v47 = vmul.f32 2.0, %v2008_v43  ;;  %v1303_v50 = vsel %vm1274_vm5, %v1071_v3, 0.0 }
 0x180   :  { %v1043_v51 = vsel %vm1014_vm4, 1.0, %v985_v21 }
 0x181   :  { %v1072_v34 = vmul.f32 %v1043_v51, %v2622_v46  ;;  %v986_v0 = vsub.f32 1.0, %v957_v47 }
 0x183   :  { %v1304_v52 = vsel %vm1275_vm6, %v1072_v34, 0.0  ;;  %v1044_v53 = vsel %vm1015_vm7, 1.0, %v986_v0 }
 0x184   :  { %v1629_v35 = vpack.c.bf16 %v1304_v52, %v1303_v50  ;;  %v1073_v58 = vmul.f32 %v1044_v53, %v2628_v5 }
 0x186   :  { %1643 = vst [vmem:[%s2683_s6 + $0x68] sm:$0xff] %v1629_v35   ;;  %v1305_v23 = vsel %vm1276_vm8, %v1073_v58, 0.0 }
 0x187   :  { %v1560_v1 = vpack.c.bf16 %v1305_v23, %v1305_v23 }
 0x189   :  { %1451 = vst [vmem:[%s2683_s6 + $0x70] sm:$0xf] %v1560_v1 }

// kernel: _lambda_.8
= control target key start
LH: loop header
LB: loop body
LE: loop exit
PB: predicated region body
PF: predicated region fallthrough
CT: control target
= control target key end

     0   :  { %s10176_s0 = inlined_call_operand.vmem [shape: bf16[232,128], index: 0, kind: input, shape index: {}, may-alias: {0,7}]   ;;  %s10177_s1 = inlined_call_operand.vmem [shape: f32[232,1], index: 1, kind: input, shape index: {}, may-alias: {1,6}]   ;;  %s10178_s2 = inlined_call_operand.vmem [shape: bf16[128,128], index: 2, kind: input, shape index: {}]   ;;  %s10179_s3 = inlined_call_operand.vmem [shape: f32[1,128], index: 3, kind: input, shape index: {}]   ;;  %s10180_s4 = inlined_call_operand.vmem [shape: bf16[9,128,128], index: 4, kind: input, shape index: {}]   ;;  %s10181_s5 = inlined_call_operand.vmem [shape: f32[1,128], index: 5, kind: input, shape index: {}]   ;;  %s10182_s6 = inlined_call_operand.vmem [shape: f32[232,1], index: 6, kind: input, shape index: {}, may-alias: {1,6}]   ;;  %s10183_s7 = inlined_call_operand.vmem [shape: bf16[232,128], index: 7, kind: input, shape index: {}, may-alias: {0,7}]   ;;  %s10184_s8 = inlined_call_operand.vmem [shape: bf16[232,128], index: 8, kind: output, shape index: {}]  }
   0x1   :  { %v65_v0 = vld [vmem:[%s10176_s0] sm:$0xff]  ;;  %v67_v1 = vld [vmem:[%s10176_s0 + $0x8] sm:$0xff]  ;;  %v69_v2 = vld [vmem:[%s10176_s0 + $0x10] sm:$0xff] }
   0x2   :  { %66 = vst [vmem:[#allocation2 + $0x8] sm:$0xff] %v65_v0  ;;  %68 = vst [vmem:[#allocation2 + $0x10] sm:$0xff] %v67_v1  ;;  %v71_v3 = vld [vmem:[%s10176_s0 + $0x18] sm:$0xff]  ;;  %v73_v4 = vld [vmem:[%s10176_s0 + $0x20] sm:$0xff] }
   0x3   :  { %70 = vst [vmem:[#allocation2 + $0x18] sm:$0xff] %v69_v2  ;;  %v75_v5 = vld [vmem:[%s10176_s0 + $0x28] sm:$0xff]  ;;  %72 = vst [vmem:[#allocation2 + $0x20] sm:$0xff] %v71_v3  ;;  %v77_v6 = vld [vmem:[%s10176_s0 + $0x30] sm:$0xff] }
   0x4   :  { %74 = vst [vmem:[#allocation2 + $0x28] sm:$0xff] %v73_v4  ;;  %76 = vst [vmem:[#allocation2 + $0x30] sm:$0xff] %v75_v5  ;;  %v79_v7 = vld [vmem:[%s10176_s0 + $0x38] sm:$0xff]  ;;  %v81_v8 = vld [vmem:[%s10176_s0 + $0x40] sm:$0xff] }
   0x5   :  { %78 = vst [vmem:[#allocation2 + $0x38] sm:$0xff] %v77_v6  ;;  %80 = vst [vmem:[#allocation2 + $0x40] sm:$0xff] %v79_v7  ;;  %v83_v9 = vld [vmem:[%s10176_s0 + $0x48] sm:$0xff]  ;;  %v85_v10 = vld [vmem:[%s10176_s0 + $0x50] sm:$0xff] }
   0x6   :  { %82 = vst [vmem:[#allocation2 + $0x48] sm:$0xff] %v81_v8  ;;  %v87_v11 = vld [vmem:[%s10176_s0 + $0x58] sm:$0xff]  ;;  %84 = vst [vmem:[#allocation2 + $0x50] sm:$0xff] %v83_v9  ;;  %v89_v12 = vld [vmem:[%s10176_s0 + $0x60] sm:$0xff] }
   0x7   :  { %86 = vst [vmem:[#allocation2 + $0x58] sm:$0xff] %v85_v10  ;;  %88 = vst [vmem:[#allocation2 + $0x60] sm:$0xff] %v87_v11  ;;  %v91_v13 = vld [vmem:[%s10176_s0 + $0x68] sm:$0xff]  ;;  %v4932_v14 = vld [vmem:[%s10176_s0 + $0x70] sm:$0xf] }
   0x8   :  { %90 = vst [vmem:[#allocation2 + $0x68] sm:$0xff] %v89_v12  ;;  %92 = vst [vmem:[#allocation2 + $0x70] sm:$0xff] %v91_v13 }
   0x9   :  { %104 = vst [vmem:[#allocation2 + $0x78] sm:$0xf] %v4932_v14 }
   0xa   :  { %108 = vsyncadd [#allocation4], 1856  ;;  %v144_v15 = vld [vmem:[%s10177_s1] sm:$0xff]  ;;  %v146_v16 = vld [vmem:[%s10177_s1 + $0x8] sm:$0xff] }
   0xb   :  { %145 = vst [vmem:[#allocation3 + $0xc0] sm:$0xff] %v144_v15  ;;  %147 = vst [vmem:[#allocation3 + $0x10] sm:$0xff] %v146_v16  ;;  %v148_v17 = vld [vmem:[%s10177_s1 + $0x10] sm:$0xff]  ;;  %v150_v18 = vld [vmem:[%s10177_s1 + $0x18] sm:$0xff] }
   0xc   :  { %v152_v19 = vld [vmem:[%s10177_s1 + $0x20] sm:$0xff]  ;;  %149 = vst [vmem:[#allocation3 + $0xe8] sm:$0xff] %v148_v17  ;;  %151 = vst [vmem:[#allocation3 + $0x28] sm:$0xff] %v150_v18  ;;  %v154_v20 = vld [vmem:[%s10177_s1 + $0x28] sm:$0xff] }
   0xd   :  { %153 = vst [vmem:[#allocation3 + $0x60] sm:$0xff] %v152_v19  ;;  %v156_v21 = vld [vmem:[%s10177_s1 + $0x30] sm:$0xff]  ;;  %v158_v22 = vld [vmem:[%s10177_s1 + $0x38] sm:$0xff]  ;;  %155 = vst [vmem:[#allocation3 + $0x78] sm:$0xff] %v154_v20 }
   0xe   :  { %157 = vst [vmem:[#allocation3 + $0x40] sm:$0xff] %v156_v21  ;;  %159 = vst [vmem:[#allocation3 + $0x58] sm:$0xff] %v158_v22  ;;  %v160_v23 = vld [vmem:[%s10177_s1 + $0x40] sm:$0xff]  ;;  %v162_v24 = vld [vmem:[%s10177_s1 + $0x48] sm:$0xff] }
   0xf   :  { %v164_v25 = vld [vmem:[%s10177_s1 + $0x50] sm:$0xff]  ;;  %161 = vst [vmem:[#allocation3 + $0x90] sm:$0xff] %v160_v23  ;;  %163 = vst [vmem:[#allocation3 + $0x98] sm:$0xff] %v162_v24  ;;  %v166_v26 = vld [vmem:[%s10177_s1 + $0x58] sm:$0xff] }
  0x10   :  { %165 = vst [vmem:[#allocation3] sm:$0xff] %v164_v25  ;;  %v168_v27 = vld [vmem:[%s10177_s1 + $0x60] sm:$0xff]  ;;  %v170_v28 = vld [vmem:[%s10177_s1 + $0x68] sm:$0xff]  ;;  %167 = vst [vmem:[#allocation3 + $0x100] sm:$0xff] %v166_v26 }
  0x11   :  { %169 = vst [vmem:[#allocation3 + $0xd0] sm:$0xff] %v168_v27  ;;  %171 = vst [vmem:[#allocation3 + $0x38] sm:$0xff] %v170_v28  ;;  %v172_v29 = vld [vmem:[%s10177_s1 + $0x70] sm:$0xff]  ;;  %v174_v30 = vld [vmem:[%s10177_s1 + $0x78] sm:$0xff] }
  0x12   :  { %v176_v31 = vld [vmem:[%s10177_s1 + $0x80] sm:$0xff]  ;;  %173 = vst [vmem:[#allocation3 + $0xf8] sm:$0xff] %v172_v29  ;;  %175 = vst [vmem:[#allocation3 + $0xc8] sm:$0xff] %v174_v30  ;;  %v178_v32 = vld [vmem:[%s10177_s1 + $0x88] sm:$0xff] }
  0x13   :  { %177 = vst [vmem:[#allocation3 + $0x50] sm:$0xff] %v176_v31  ;;  %v180_v33 = vld [vmem:[%s10177_s1 + $0x90] sm:$0xff]  ;;  %v182_v34 = vld [vmem:[%s10177_s1 + $0x98] sm:$0xff]  ;;  %179 = vst [vmem:[#allocation3 + $0xa0] sm:$0xff] %v178_v32 }
  0x14   :  { %181 = vst [vmem:[#allocation3 + $0x70] sm:$0xff] %v180_v33  ;;  %183 = vst [vmem:[#allocation3 + $0x48] sm:$0xff] %v182_v34  ;;  %v184_v35 = vld [vmem:[%s10177_s1 + $0xa0] sm:$0xff]  ;;  %v186_v36 = vld [vmem:[%s10177_s1 + $0xa8] sm:$0xff] }
  0x15   :  { %v188_v37 = vld [vmem:[%s10177_s1 + $0xb0] sm:$0xff]  ;;  %185 = vst [vmem:[#allocation3 + $0xe0] sm:$0xff] %v184_v35  ;;  %187 = vst [vmem:[#allocation3 + $0x30] sm:$0xff] %v186_v36  ;;  %v190_v38 = vld [vmem:[%s10177_s1 + $0xb8] sm:$0xff] }
  0x16   :  { %189 = vst [vmem:[#allocation3 + $0xa8] sm:$0xff] %v188_v37  ;;  %v192_v39 = vld [vmem:[%s10177_s1 + $0xc0] sm:$0xff]  ;;  %v194_v40 = vld [vmem:[%s10177_s1 + $0xc8] sm:$0xff]  ;;  %191 = vst [vmem:[#allocation3 + $0x88] sm:$0xff] %v190_v38 }
  0x17   :  { %193 = vst [vmem:[#allocation3 + $0xd8] sm:$0xff] %v192_v39  ;;  %195 = vst [vmem:[#allocation3 + $0x18] sm:$0xff] %v194_v40  ;;  %v196_v41 = vld [vmem:[%s10177_s1 + $0xd0] sm:$0xff]  ;;  %v198_v42 = vld [vmem:[%s10177_s1 + $0xd8] sm:$0xff] }
  0x18   :  { %v200_v43 = vld [vmem:[%s10177_s1 + $0xe0] sm:$0xff]  ;;  %197 = vst [vmem:[#allocation3 + $0x20] sm:$0xff] %v196_v41  ;;  %199 = vst [vmem:[#allocation3 + $0xf0] sm:$0xff] %v198_v42 }
  0x19   :  { %201 = vst [vmem:[#allocation3 + $0x80] sm:$0xff] %v200_v43 }
  0x1a   :  { %209 = vsyncadd [#allocation4 + $0x1], 3712 }
  0x1b   :  { %6793 = dma.done.wait [#allocation4], 1856 }
  0x1c   :  { %6794 = vsyncadd [#allocation4], 4294965440 }
  0x1d   :  { %6795 = dma.done.wait [#allocation4 + $0x1], 3712 }
  0x1e   :  { %6796 = vsyncadd [#allocation4 + $0x1], 4294963584  ;;  %v10187_v44 = vmov 0.0   ;;  %vm6798_vm0 = vmmov 0   ;;  %v6799_v45 = vmov 0   ;;  %v6438_v46 = vld [vmem:[%s10178_s2 + $0x38] sm:$0xff]  }
  0x1f   :  { %5649 = vmatprep.subr.bf16.mxu0 %v10187_v44  ;;  %5665 = vmatprep.mubr.msk.bf16.mxu0 %vm6798_vm0, %v10187_v44  ;;  %v6439_v47 = vld [vmem:[%s10178_s2 + $0x30] sm:$0xff]   ;;  %v6440_v48 = vld [vmem:[%s10178_s2 + $0x28] sm:$0xff]   ;;  %v6441_v49 = vld [vmem:[%s10178_s2 + $0x20] sm:$0xff]  }
  0x20   :  { %6437 = vset.pattern.permute.xlu1 %v6799_v45  ;;  %6436 = vset.pattern.permute.xlu0 %v6799_v45  ;;  %v268_v50 = vld [vmem:[#allocation3 + $0xc0] sm:$0xff]  ;;  %v266_v51 = vld [vmem:[#allocation3 + $0xb8] sm:$0xff]  ;;  %v269_v52 = vld [vmem:[#allocation3 + $0x10] sm:$0xff] }
  0x21   :  { %5733 = vmatprep.subr.bf16.mxu1 %v10187_v44  ;;  %5749 = vmatprep.mubr.msk.bf16.mxu1 %vm6798_vm0, %v10187_v44  ;;  %vm301_vm1 = vcmp.gt.f32.partialorder %v268_v50, 0.5  ;;  %vm299_vm2 = vcmp.gt.f32.partialorder %v266_v51, 0.5  ;;  %vm302_vm3 = vcmp.gt.f32.partialorder %v269_v52, 0.5  ;;  %v267_v53 = vld [vmem:[#allocation3 + $0x68] sm:$0xff]  ;;  %v6442_v60 = vld [vmem:[%s10178_s2 + $0x18] sm:$0xff]   ;;  %v272_v62 = vld [vmem:[#allocation3 + $0x60] sm:$0xff] }
  0x22   :  { %5650 = vmatpush3.bf16.msra.mxu0 %v6438_v46  ;;  %v1053_v54 = vsel %vm301_vm1, 1, %v6799_v45  ;;  %v1051_v55 = vsel %vm299_vm2, 1, %v6799_v45  ;;  %vm300_vm4 = vcmp.gt.f32.partialorder %v267_v53, 0.5  ;;  %v271_v56 = vld [vmem:[#allocation3 + $0x28] sm:$0xff]  ;;  %v1054_v58 = vsel %vm302_vm3, 1, %v6799_v45  ;;  %v273_v61 = vld [vmem:[#allocation3 + $0x78] sm:$0xff] }
  0x23   :  { %5651 = vmatprep.subr.bf16.mxu0 %v10187_v44  ;;  %1091 = vperm.xlu1 %6437, %v1053_v54   ;;  %v270_v57 = vld [vmem:[#allocation3 + $0xe8] sm:$0xff]  ;;  %v1052_v59 = vsel %vm300_vm4, 1, %v6799_v45  ;;  %vm304_vm5 = vcmp.gt.f32.partialorder %v271_v56, 0.5  ;;  %vm306_vm7 = vcmp.gt.f32.partialorder %v273_v61, 0.5  ;;  %vm305_vm8 = vcmp.gt.f32.partialorder %v272_v62, 0.5  ;;  %v275_v2 = vld [vmem:[#allocation3 + $0x58] sm:$0xff] }
  0x24   :  { %1085 = vperm.xlu0 %6436, %v1051_v55   ;;  %vm303_vm6 = vcmp.gt.f32.partialorder %v270_v57, 0.5  ;;  %v1056_v63 = vsel %vm304_vm5, 1, %v6799_v45  ;;  %v6443_v1 = vld [vmem:[%s10178_s2 + $0x10] sm:$0xff]   ;;  %v274_v3 = vld [vmem:[#allocation3 + $0x40] sm:$0xff]  ;;  %v1058_v4 = vsel %vm306_vm7, 1, %v6799_v45  ;;  %v1057_v5 = vsel %vm305_vm8, 1, %v6799_v45 }
  0x25   :  { %v1055_v0 = vsel %vm303_vm6, 1, %v6799_v45  ;;  %v6444_v6 = vld [vmem:[%s10178_s2 + $0x8] sm:$0xff]   ;;  %vm308_vm9 = vcmp.gt.f32.partialorder %v275_v2, 0.5  ;;  %vm307_vm10 = vcmp.gt.f32.partialorder %v274_v3, 0.5  ;;  %v277_v7 = vld [vmem:[#allocation3 + $0x98] sm:$0xff]  ;;  %v276_v8 = vld [vmem:[#allocation3 + $0x90] sm:$0xff] }
  0x26   :  { %5652 = vmatpush3.bf16.msra.mxu0 %v6439_v47  ;;  %v1060_v9 = vsel %vm308_vm9, 1, %v6799_v45  ;;  %v1059_v10 = vsel %vm307_vm10, 1, %v6799_v45  ;;  %v6445_v11 = vld [vmem:[%s10178_s2] sm:$0xff]   ;;  %vm310_vm11 = vcmp.gt.f32.partialorder %v277_v7, 0.5  ;;  %vm309_vm12 = vcmp.gt.f32.partialorder %v276_v8, 0.5  ;;  %v280_v18 = vld [vmem:[#allocation3 + $0xd0] sm:$0xff] }
  0x27   :  { %5653 = vmatprep.subr.bf16.mxu0 %v10187_v44  ;;  %1094 = vperm.xlu1 %6437, %v1054_v58   ;;  %v279_v12 = vld [vmem:[#allocation3 + $0x100] sm:$0xff]  ;;  %v1062_v15 = vsel %vm310_vm11, 1, %v6799_v45  ;;  %v1061_v16 = vsel %vm309_vm12, 1, %v6799_v45  ;;  %v281_v17 = vld [vmem:[#allocation3 + $0x38] sm:$0xff]  ;;  %vm313_vm1 = vcmp.gt.f32.partialorder %v280_v18, 0.5  ;;  %v283_v21 = vld [vmem:[#allocation3 + $0xc8] sm:$0xff] }
  0x28   :  { %1088 = vperm.xlu0 %6436, %v1052_v59   ;;  %v278_v13 = vld [vmem:[#allocation3] sm:$0xff]  ;;  %vm312_vm13 = vcmp.gt.f32.partialorder %v279_v12, 0.5  ;;  %vm314_vm15 = vcmp.gt.f32.partialorder %v281_v17, 0.5  ;;  %v282_v22 = vld [vmem:[#allocation3 + $0xf8] sm:$0xff]  ;;  %v284_v24 = vld [vmem:[#allocation3 + $0x50] sm:$0xff]  ;;  %v1065_v27 = vsel %vm313_vm1, 1, %v6799_v45 }
  0x29   :  { %v6446_v14 = vld [vmem:[#allocation2] sm:$0xff]   ;;  %vm311_vm14 = vcmp.gt.f32.partialorder %v278_v13, 0.5  ;;  %v1064_v19 = vsel %vm312_vm13, 1, %v6799_v45  ;;  %v6447_v25 = vld [vmem:[#allocation2 + $0x8] sm:$0xff]   ;;  %v1066_v26 = vsel %vm314_vm15, 1, %v6799_v45  ;;  %vm316_vm2 = vcmp.gt.f32.partialorder %v283_v21, 0.5 }
  0x2a   :  { %5654 = vmatpush3.bf16.msra.mxu0 %v6440_v48  ;;  %v1063_v20 = vsel %vm311_vm14, 1, %v6799_v45  ;;  %v285_v23 = vld [vmem:[#allocation3 + $0xa0] sm:$0xff]  ;;  %vm315_vm3 = vcmp.gt.f32.partialorder %v282_v22, 0.5  ;;  %v287_v28 = vld [vmem:[#allocation3 + $0x48] sm:$0xff]  ;;  %v286_v29 = vld [vmem:[#allocation3 + $0x70] sm:$0xff]  ;;  %vm317_vm5 = vcmp.gt.f32.partialorder %v284_v24, 0.5 }
  0x2b   :  { %5655 = vmatprep.subr.bf16.mxu0 %v10187_v44  ;;  %1100 = vperm.xlu1 %6437, %v1056_v63   ;;  %vm318_vm4 = vcmp.gt.f32.partialorder %v285_v23, 0.5  ;;  %v289_v30 = vld [vmem:[#allocation3 + $0x30] sm:$0xff]  ;;  %v288_v31 = vld [vmem:[#allocation3 + $0xe0] sm:$0xff]  ;;  %v291_v32 = vld [vmem:[#allocation3 + $0x88] sm:$0xff]  ;;  %v1068_v34 = vsel %vm316_vm2, 1, %v6799_v45  ;;  %v1067_v35 = vsel %vm315_vm3, 1, %v6799_v45 }
  0x2c   :  { %1097 = vperm.xlu0 %6436, %v1055_v0   ;;  %v290_v33 = vld [vmem:[#allocation3 + $0xa8] sm:$0xff]  ;;  %vm320_vm6 = vcmp.gt.f32.partialorder %v287_v28, 0.5  ;;  %vm319_vm7 = vcmp.gt.f32.partialorder %v286_v29, 0.5  ;;  %v293_v36 = vld [vmem:[#allocation3 + $0x18] sm:$0xff]  ;;  %v1070_v37 = vsel %vm318_vm4, 1, %v6799_v45  ;;  %v1069_v38 = vsel %vm317_vm5, 1, %v6799_v45 }
  0x2d   :  { %vm322_vm8 = vcmp.gt.f32.partialorder %v289_v30, 0.5  ;;  %vm321_vm9 = vcmp.gt.f32.partialorder %v288_v31, 0.5  ;;  %vm324_vm10 = vcmp.gt.f32.partialorder %v291_v32, 0.5  ;;  %vm323_vm11 = vcmp.gt.f32.partialorder %v290_v33, 0.5  ;;  %v292_v39 = vld [vmem:[#allocation3 + $0xd8] sm:$0xff]  ;;  %v295_v40 = vld [vmem:[#allocation3 + $0xf0] sm:$0xff] }
  0x2e   :  { %5656 = vmatpush3.bf16.msra.mxu0 %v6441_v49  ;;  %v1072_v41 = vsel %vm320_vm6, 1, %v6799_v45  ;;  %v1071_v42 = vsel %vm319_vm7, 1, %v6799_v45  ;;  %vm326_vm12 = vcmp.gt.f32.partialorder %v293_v36, 0.5  ;;  %v294_v43 = vld [vmem:[#allocation3 + $0x20] sm:$0xff]  ;;  %v297_v46 = vld [vmem:[#allocation3 + $0x8] sm:$0xff]  ;;  %v7044_v48 = vsel %vm322_vm8, 1, %v6799_v45 }
  0x2f   :  { %5657 = vmatprep.subr.bf16.mxu0 %v10187_v44  ;;  %1106 = vperm.xlu1 %6437, %v1058_v4   ;;  %v296_v47 = vld [vmem:[#allocation3 + $0x80] sm:$0xff]  ;;  %v7047_v49 = vsel %vm321_vm9, 1, %v6799_v45  ;;  %v298_v51 = vld [vmem:[#allocation3 + $0xb0] sm:$0xff]  ;;  %v7054_v52 = vsel %vm324_vm10, 1, %v6799_v45  ;;  %v7058_v53 = vsel %vm323_vm11, 1, %v6799_v45  ;;  %vm325_vm13 = vcmp.gt.f32.partialorder %v292_v39, 0.5 }
  0x30   :  { %1103 = vperm.xlu0 %6436, %v1057_v5   ;;  %v4427_v50 = vld [vmem:[%s10182_s6] sm:$0xff]  ;;  %vm328_vm14 = vcmp.gt.f32.partialorder %v295_v40, 0.5  ;;  %v6448_v54 = vld [vmem:[#allocation2 + $0x10] sm:$0xff]   ;;  %v7061_v55 = vsel %vm326_vm12, 1, %v6799_v45  ;;  %vm327_vm15 = vcmp.gt.f32.partialorder %v294_v43, 0.5  ;;  %vm330_vm1 = vcmp.gt.f32.partialorder %v297_v46, 0.5 }
  0x31   :  { %vm329_vm2 = vcmp.gt.f32.partialorder %v296_v47, 0.5  ;;  %v4429_v56 = vld [vmem:[%s10182_s6 + $0x10] sm:$0xff]  ;;  %vm4456_vm3 = vcmp.gt.f32.partialorder %v4427_v50, 0.5  ;;  %vm331_vm4 = vcmp.gt.f32.partialorder %v298_v51, 0.5  ;;  %v4428_v57 = vld [vmem:[%s10182_s6 + $0x8] sm:$0xff]  ;;  %v4431_v58 = vld [vmem:[%s10182_s6 + $0x20] sm:$0xff] }
  0x32   :  { %5658 = vmatpush3.bf16.msra.mxu0 %v6442_v60  ;;  %v1077_v59 = vsel %vm325_vm13, 1, %v6799_v45  ;;  %v1080_v60 = vsel %vm328_vm14, 1, %v6799_v45  ;;  %v4430_v61 = vld [vmem:[%s10182_s6 + $0x18] sm:$0xff]  ;;  %v4433_v62 = vld [vmem:[%s10182_s6 + $0x30] sm:$0xff]  ;;  %v1079_v63 = vsel %vm327_vm15, 1, %v6799_v45  ;;  %v1082_v0 = vsel %vm330_vm1, 1, %v6799_v45 }
  0x33   :  { %5659 = vmatprep.subr.bf16.mxu0 %v10187_v44  ;;  %1112 = vperm.xlu1 %6437, %v1060_v9   ;;  %v4432_v2 = vld [vmem:[%s10182_s6 + $0x28] sm:$0xff]  ;;  %v4435_v3 = vld [vmem:[%s10182_s6 + $0x40] sm:$0xff]  ;;  %v4434_v4 = vld [vmem:[%s10182_s6 + $0x38] sm:$0xff]  ;;  %v4485_v5 = vsel %vm4456_vm3, 1, %v6799_v45  ;;  %vm4458_vm5 = vcmp.gt.f32.partialorder %v4429_v56, 0.5  ;;  %vm4457_vm6 = vcmp.gt.f32.partialorder %v4428_v57, 0.5 }
  0x34   :  { %1109 = vperm.xlu0 %6436, %v1059_v10   ;;  %v4437_v7 = vld [vmem:[%s10182_s6 + $0x50] sm:$0xff]  ;;  %v4436_v8 = vld [vmem:[%s10182_s6 + $0x48] sm:$0xff]  ;;  %v4439_v9 = vld [vmem:[%s10182_s6 + $0x60] sm:$0xff]  ;;  %vm4460_vm7 = vcmp.gt.f32.partialorder %v4431_v58, 0.5  ;;  %vm4459_vm8 = vcmp.gt.f32.partialorder %v4430_v61, 0.5  ;;  %vm4462_vm9 = vcmp.gt.f32.partialorder %v4433_v62, 0.5 }
  0x35   :  { %v4438_v10 = vld [vmem:[%s10182_s6 + $0x58] sm:$0xff]  ;;  %vm4461_vm10 = vcmp.gt.f32.partialorder %v4432_v2, 0.5  ;;  %vm4464_vm11 = vcmp.gt.f32.partialorder %v4435_v3, 0.5  ;;  %vm4463_vm12 = vcmp.gt.f32.partialorder %v4434_v4, 0.5  ;;  %vm4466_vm13 = vcmp.gt.f32.partialorder %v4437_v7, 0.5  ;;  %v4441_v24 = vld [vmem:[%s10182_s6 + $0x70] sm:$0xff] }
  0x36   :  { %5660 = vmatpush3.bf16.msra.mxu0 %v6443_v1  ;;  %v1081_v1 = vsel %vm329_vm2, 1, %v6799_v45  ;;  %vm4465_vm14 = vcmp.gt.f32.partialorder %v4436_v8, 0.5  ;;  %v4487_v12 = vsel %vm4458_vm5, 1, %v6799_v45  ;;  %v4486_v13 = vsel %vm4457_vm6, 1, %v6799_v45  ;;  %v6452_v30 = vld [vmem:[#allocation2 + $0x30] sm:$0xff]   ;;  %v6453_v31 = vld [vmem:[#allocation2 + $0x38] sm:$0xff]  }
  0x37   :  { %5661 = vmatprep.subr.bf16.mxu0 %v10187_v44  ;;  %1118 = vperm.xlu1 %6437, %v1062_v15   ;;  %vm4468_vm15 = vcmp.gt.f32.partialorder %v4439_v9, 0.5  ;;  %vm4467_vm1 = vcmp.gt.f32.partialorder %v4438_v10, 0.5  ;;  %v4488_v15 = vsel %vm4459_vm8, 1, %v6799_v45  ;;  %v4490_v17 = vsel %vm4461_vm10, 1, %v6799_v45  ;;  %v4443_v32 = vld [vmem:[%s10182_s6 + $0x80] sm:$0xff]  ;;  %v4442_v33 = vld [vmem:[%s10182_s6 + $0x78] sm:$0xff] }
  0x38   :  { %1115 = vperm.xlu0 %6436, %v1061_v16   ;;  %v4491_v16 = vsel %vm4462_vm9, 1, %v6799_v45  ;;  %v4493_v18 = vsel %vm4464_vm11, 1, %v6799_v45  ;;  %v4494_v21 = vsel %vm4465_vm14, 1, %v6799_v45  ;;  %v4497_v22 = vsel %vm4468_vm15, 1, %v6799_v45  ;;  %v4445_v36 = vld [vmem:[%s10182_s6 + $0x90] sm:$0xff]  ;;  %v4447_v40 = vld [vmem:[%s10182_s6 + $0xa0] sm:$0xff] }
  0x39   :  { %v4496_v23 = vsel %vm4467_vm1, 1, %v6799_v45  ;;  %vm4470_vm2 = vcmp.gt.f32.partialorder %v4441_v24, 0.5  ;;  %vm4471_vm5 = vcmp.gt.f32.partialorder %v4442_v33, 0.5  ;;  %vm4474_vm6 = vcmp.gt.f32.partialorder %v4445_v36, 0.5  ;;  %v4449_v47 = vld [vmem:[%s10182_s6 + $0xb0] sm:$0xff]  ;;  %v4451_v51 = vld [vmem:[%s10182_s6 + $0xc0] sm:$0xff] }
  0x3a   :  { %5662 = vmatpush3.bf16.msra.mxu0 %v6444_v6  ;;  %v1083_v6 = vsel %vm331_vm4, 1, %v6799_v45  ;;  %v4499_v28 = vsel %vm4470_vm2, 1, %v6799_v45  ;;  %vm4472_vm4 = vcmp.gt.f32.partialorder %v4443_v32, 0.5  ;;  %v4500_v39 = vsel %vm4471_vm5, 1, %v6799_v45  ;;  %v4453_v56 = vld [vmem:[%s10182_s6 + $0xd0] sm:$0xff]  ;;  %v4452_v57 = vld [vmem:[%s10182_s6 + $0xc8] sm:$0xff] }
  0x3b   :  { %5663 = vmatprep.subr.bf16.mxu0 %v10187_v44  ;;  %1124 = vperm.xlu1 %6437, %v1064_v19   ;;  %v4492_v19 = vsel %vm4463_vm12, 1, %v6799_v45  ;;  %v4503_v43 = vsel %vm4474_vm6, 1, %v6799_v45  ;;  %vm4476_vm8 = vcmp.gt.f32.partialorder %v4447_v40, 0.5  ;;  %vm4478_vm10 = vcmp.gt.f32.partialorder %v4449_v47, 0.5  ;;  %v4454_v61 = vld [vmem:[%s10182_s6 + $0xd8] sm:$0xff]  ;;  %v6458_v62 = vld [vmem:[#allocation2 + $0x60] sm:$0xff]  }
  0x3c   :  { %1121 = vperm.xlu0 %6436, %v1063_v20   ;;  %v4495_v20 = vsel %vm4466_vm13, 1, %v6799_v45  ;;  %vm4480_vm12 = vcmp.gt.f32.partialorder %v4451_v51, 0.5  ;;  %vm4482_vm14 = vcmp.gt.f32.partialorder %v4453_v56, 0.5  ;;  %vm4481_vm15 = vcmp.gt.f32.partialorder %v4452_v57, 0.5  ;;  %v6463_v3 = vld [vmem:[%s10180_s4 + $0x78] sm:$0xff]   ;;  %v6459_v4 = vld [vmem:[#allocation2 + $0x68] sm:$0xff]  }
  0x3d   :  { %v4509_v58 = vsel %vm4480_vm12, 1, %v6799_v45  ;;  %vm4483_vm2 = vcmp.gt.f32.partialorder %v4454_v61, 0.5  ;;  %5734 = vmatpush3.bf16.msra.mxu1 %v6463_v3  ;;  %v6467_v7 = vld [vmem:[%s10180_s4 + $0xb0] sm:$0xff]   ;;  %v6468_v9 = vld [vmem:[%s10180_s4 + $0x60] sm:$0xff]   ;;  %v6469_v10 = vld [vmem:[%s10180_s4 + $0xa8] sm:$0xff]  }
  0x3e   :  { %5664 = vmatpush3.bf16.msra.mxu0 %v6445_v11  ;;  %v6449_v11 = vld [vmem:[#allocation2 + $0x18] sm:$0xff]   ;;  %v4512_v2 = vsel %vm4483_vm2, 1, %v6799_v45  ;;  %5735 = vmatprep.subr.bf16.mxu1 %v10187_v44  ;;  %v6460_v8 = vld [vmem:[#allocation2 + $0x70] sm:$0xff]  }
  0x3f   :  { %5885 = vmatprep.subr.bf16.mxu0 %v10187_v44  ;;  %1130 = vperm.xlu1 %6437, %v1066_v26   ;;  %v6450_v26 = vld [vmem:[#allocation2 + $0x20] sm:$0xff]  }
  0x40   :  { %1127 = vperm.xlu0 %6436, %v1065_v27   ;;  %v6451_v27 = vld [vmem:[#allocation2 + $0x28] sm:$0xff]  }
  0x41   :  { %5666 = vmatmul.mubr.bf16.vlgmr.msra.gmra.mxu0 %v6446_v14  ;;  %v4489_v14 = vsel %vm4460_vm7, 1, %v6799_v45 }
  0x42   :  { %5669 = vmatprep.mubr.msk.bf16.mxu0 %vm6798_vm0, %v10187_v44 }
  0x43   :  { %1136 = vperm.xlu1 %6437, %v1068_v34   ;;  %v6454_v34 = vld [vmem:[#allocation2 + $0x40] sm:$0xff]  }
  0x44   :  { %1133 = vperm.xlu0 %6436, %v1067_v35   ;;  %v6455_v35 = vld [vmem:[#allocation2 + $0x48] sm:$0xff]  }
  0x47   :  { %1142 = vperm.xlu1 %6437, %v1070_v37   ;;  %v4444_v37 = vld [vmem:[%s10182_s6 + $0x88] sm:$0xff] }
  0x48   :  { %1139 = vperm.xlu0 %6436, %v1069_v38   ;;  %v4501_v38 = vsel %vm4472_vm4, 1, %v6799_v45  ;;  %vm4473_vm7 = vcmp.gt.f32.partialorder %v4444_v37, 0.5 }
  0x49   :  { %5670 = vmatmul.mubr.bf16.gmra.mxu0 %v6447_v25  ;;  %v4440_v25 = vld [vmem:[%s10182_s6 + $0x68] sm:$0xff]  ;;  %v4502_v46 = vsel %vm4473_vm7, 1, %v6799_v45 }
  0x4a   :  { %5673 = vmatprep.mubr.msk.bf16.mxu0 %vm6798_vm0, %v10187_v44  ;;  %vm4469_vm3 = vcmp.gt.f32.partialorder %v4440_v25, 0.5 }
  0x4b   :  { %1148 = vperm.xlu1 %6437, %v1072_v41   ;;  %v4498_v29 = vsel %vm4469_vm3, 1, %v6799_v45  ;;  %v4446_v41 = vld [vmem:[%s10182_s6 + $0x98] sm:$0xff] }
  0x4c   :  { %1145 = vperm.xlu0 %6436, %v1071_v42   ;;  %v6456_v42 = vld [vmem:[#allocation2 + $0x50] sm:$0xff]   ;;  %vm4475_vm9 = vcmp.gt.f32.partialorder %v4446_v41, 0.5 }
  0x4d   :  { %v4504_v50 = vsel %vm4475_vm9, 1, %v6799_v45 }
  0x4f   :  { %1154 = vperm.xlu1 %6437, %v7044_v48   ;;  %v4448_v48 = vld [vmem:[%s10182_s6 + $0xa8] sm:$0xff] }
  0x50   :  { %1151 = vperm.xlu0 %6436, %v7047_v49   ;;  %v4505_v49 = vsel %vm4476_vm8, 1, %v6799_v45  ;;  %vm4477_vm11 = vcmp.gt.f32.partialorder %v4448_v48, 0.5 }
  0x51   :  { %5674 = vmatmul.mubr.bf16.gmra.mxu0 %v6448_v54  ;;  %v4507_v54 = vsel %vm4478_vm10, 1, %v6799_v45 }
  0x52   :  { %5677 = vmatprep.mubr.msk.bf16.mxu0 %vm6798_vm0, %v10187_v44 }
  0x53   :  { %1160 = vperm.xlu1 %6437, %v7054_v52   ;;  %v4450_v52 = vld [vmem:[%s10182_s6 + $0xb8] sm:$0xff] }
  0x54   :  { %1157 = vperm.xlu0 %6436, %v7058_v53   ;;  %v6457_v53 = vld [vmem:[#allocation2 + $0x58] sm:$0xff]   ;;  %vm4479_vm13 = vcmp.gt.f32.partialorder %v4450_v52, 0.5 }
  0x57   :  { %1166 = vperm.xlu1 %6437, %v7061_v55   ;;  %v4506_v55 = vsel %vm4477_vm11, 1, %v6799_v45  ;;  %vm1314_vm11 = vcmask 1044480  }
  0x58   :  { %1163 = vperm.xlu0 %6436, %v1077_v59   ;;  %v4508_v59 = vsel %vm4479_vm13, 1, %v6799_v45 }
  0x59   :  { %5678 = vmatmul.mubr.bf16.gmra.mxu0 %v6449_v11  ;;  %v6470_v11 = vld [vmem:[%s10180_s4 + $0x58] sm:$0xff]  }
  0x5a   :  { %5681 = vmatprep.mubr.msk.bf16.mxu0 %vm6798_vm0, %v10187_v44 }
  0x5b   :  { %1172 = vperm.xlu1 %6437, %v1080_v60   ;;  %v4455_v60 = vld [vmem:[%s10182_s6 + $0xe0] sm:$0xff] }
  0x5c   :  { %1169 = vperm.xlu0 %6436, %v1079_v63   ;;  %v4511_v63 = vsel %vm4482_vm14, 1, %v6799_v45  ;;  %vm4484_vm1 = vcmp.gt.f32.partialorder %v4455_v60, 0.5 }
  0x5f   :  { %1178 = vperm.xlu1 %6437, %v1082_v0   ;;  %v4510_v0 = vsel %vm4481_vm15, 1, %v6799_v45 }
  0x60   :  { %1175 = vperm.xlu0 %6436, %v1081_v1   ;;  %v4513_v1 = vsel %vm4484_vm1, 1, %v6799_v45  ;;  %v6465_v45 = vld [vmem:[%s10180_s4 + $0xb8] sm:$0xff]  }
  0x61   :  { %5682 = vmatmul.mubr.bf16.gmra.mxu0 %v6450_v26 }
  0x62   :  { %5685 = vmatprep.mubr.msk.bf16.mxu0 %vm6798_vm0, %v10187_v44  ;;  %5886 = vmatpush3.bf16.msra.mxu0 %v6465_v45 }
  0x63   :  { %4515 = vperm.xlu1 %6437, %v4485_v5   ;;  %v6464_v5 = vld [vmem:[%s10180_s4 + $0x70] sm:$0xff]   ;;  %5887 = vmatprep.subr.bf16.mxu0 %v10187_v44 }
  0x64   :  { %1181 = vperm.xlu0 %6436, %v1083_v6   ;;  %5736 = vmatpush3.bf16.msra.mxu1 %v6464_v5  ;;  %v6466_v6 = vld [vmem:[%s10180_s4 + $0x68] sm:$0xff]  }
  0x65   :  { %5737 = vmatprep.subr.bf16.mxu1 %v10187_v44 }
  0x66   :  { %5888 = vmatpush3.bf16.msra.mxu0 %v6467_v7 }
  0x67   :  { %4521 = vperm.xlu1 %6437, %v4487_v12   ;;  %5889 = vmatprep.subr.bf16.mxu0 %v10187_v44  ;;  %v6471_v12 = vld [vmem:[%s10180_s4 + $0xa0] sm:$0xff]  }
  0x68   :  { %4518 = vperm.xlu0 %6436, %v4486_v13   ;;  %5738 = vmatpush3.bf16.msra.mxu1 %v6466_v6  ;;  %v6461_v13 = vld [vmem:[#allocation2 + $0x78] sm:$0xff]  }
  0x69   :  { %5686 = vmatmul.mubr.bf16.gmra.mxu0 %v6451_v27  ;;  %5739 = vmatprep.subr.bf16.mxu1 %v10187_v44 }
  0x6a   :  { %5689 = vmatprep.mubr.msk.bf16.mxu0 %vm6798_vm0, %v10187_v44  ;;  %5890 = vmatpush3.bf16.msra.mxu0 %v6469_v10 }
  0x6b   :  { %4527 = vperm.xlu1 %6437, %v4489_v14   ;;  %5891 = vmatprep.subr.bf16.mxu0 %v10187_v44  ;;  %v6472_v14 = vld [vmem:[%s10180_s4 + $0x50] sm:$0xff]  }
  0x6c   :  { %4524 = vperm.xlu0 %6436, %v4488_v15   ;;  %5740 = vmatpush3.bf16.msra.mxu1 %v6468_v9  ;;  %v6473_v15 = vld [vmem:[%s10180_s4 + $0x98] sm:$0xff]  }
  0x6d   :  { %5741 = vmatprep.subr.bf16.mxu1 %v10187_v44 }
  0x6e   :  { %5892 = vmatpush3.bf16.msra.mxu0 %v6471_v12 }
  0x6f   :  { %4533 = vperm.xlu1 %6437, %v4491_v16   ;;  %5893 = vmatprep.subr.bf16.mxu0 %v10187_v44  ;;  %v6462_v16 = vld [vmem:[#allocation2 + $0x80] ss:$0 sps:$4 sm:$0xff]  }
  0x70   :  { %4530 = vperm.xlu0 %6436, %v4490_v17   ;;  %5742 = vmatpush3.bf16.msra.mxu1 %v6470_v11  ;;  %v6474_v17 = vld [vmem:[%s10180_s4 + $0x48] sm:$0xff]  }
  0x71   :  { %5690 = vmatmul.mubr.bf16.gmra.mxu0 %v6452_v30  ;;  %5743 = vmatprep.subr.bf16.mxu1 %v10187_v44 }
  0x72   :  { %5693 = vmatprep.mubr.msk.bf16.mxu0 %vm6798_vm0, %v10187_v44  ;;  %5894 = vmatpush3.bf16.msra.mxu0 %v6473_v15 }
  0x73   :  { %4539 = vperm.xlu1 %6437, %v4493_v18   ;;  %5895 = vmatprep.subr.bf16.mxu0 %v10187_v44  ;;  %v6475_v18 = vld [vmem:[%s10180_s4 + $0x90] sm:$0xff]  }
  0x74   :  { %4536 = vperm.xlu0 %6436, %v4492_v19   ;;  %5744 = vmatpush3.bf16.msra.mxu1 %v6472_v14  ;;  %v6476_v19 = vld [vmem:[%s10180_s4 + $0x40] sm:$0xff]  }
  0x75   :  { %5745 = vmatprep.subr.bf16.mxu1 %v10187_v44 }
  0x76   :  { %5896 = vmatpush3.bf16.msra.mxu0 %v6475_v18 }
  0x77   :  { %4545 = vperm.xlu1 %6437, %v4495_v20   ;;  %5897 = vmatprep.subr.bf16.mxu0 %v10187_v44  ;;  %v6477_v20 = vld [vmem:[%s10180_s4 + $0x88] sm:$0xff]  }
  0x78   :  { %4542 = vperm.xlu0 %6436, %v4494_v21   ;;  %5746 = vmatpush3.bf16.msra.mxu1 %v6474_v17  ;;  %v6479_v21 = vld [vmem:[%s10180_s4 + $0x80] sm:$0xff]  }
  0x79   :  { %5694 = vmatmul.mubr.bf16.gmra.mxu0 %v6453_v31  ;;  %5747 = vmatprep.subr.bf16.mxu1 %v10187_v44 }
  0x7a   :  { %5697 = vmatprep.mubr.msk.bf16.mxu0 %vm6798_vm0, %v10187_v44  ;;  %5898 = vmatpush3.bf16.msra.mxu0 %v6477_v20 }
  0x7b   :  { %4551 = vperm.xlu1 %6437, %v4497_v22   ;;  %5899 = vmatprep.subr.bf16.mxu0 %v10187_v44  ;;  %v7286_v22 = vld [vmem:[%s10179_s3] ss:$0 sm:$0xff] }
  0x7c   :  { %4548 = vperm.xlu0 %6436, %v4496_v23   ;;  %5748 = vmatpush3.bf16.msra.mxu1 %v6476_v19 }
  0x7d   :  { %5809 = vmatprep.subr.bf16.mxu1 %v10187_v44 }
  0x7e   :  { %5900 = vmatpush3.bf16.msra.mxu0 %v6479_v21 }
  0x7f   :  { %4557 = vperm.xlu1 %6437, %v4499_v28   ;;  %6037 = vmatprep.subr.bf16.mxu0 %v10187_v44 }
  0x80   :  { %4554 = vperm.xlu0 %6436, %v4498_v29  }
  0x81   :  { %5698 = vmatmul.mubr.bf16.gmra.mxu0 %v6454_v34 }
  0x82   :  { %5701 = vmatprep.mubr.msk.bf16.mxu0 %vm6798_vm0, %v10187_v44 }
  0x83   :  { %4563 = vperm.xlu1 %6437, %v4501_v38  }
  0x84   :  { %4560 = vperm.xlu0 %6436, %v4500_v39  }
  0x87   :  { %4569 = vperm.xlu1 %6437, %v4503_v43  }
  0x88   :  { %4566 = vperm.xlu0 %6436, %v4502_v46  }
  0x89   :  { %5702 = vmatmul.mubr.bf16.gmra.mxu0 %v6455_v35 }
  0x8a   :  { %5705 = vmatprep.mubr.msk.bf16.mxu0 %vm6798_vm0, %v10187_v44 }
  0x8b   :  { %4575 = vperm.xlu1 %6437, %v4505_v49  }
  0x8c   :  { %4572 = vperm.xlu0 %6436, %v4504_v50  }
  0x8f   :  { %4581 = vperm.xlu1 %6437, %v4507_v54  }
  0x90   :  { %4578 = vperm.xlu0 %6436, %v4506_v55  }
  0x91   :  { %5706 = vmatmul.mubr.bf16.gmra.mxu0 %v6456_v42 }
  0x92   :  { %5709 = vmatprep.mubr.msk.bf16.mxu0 %vm6798_vm0, %v10187_v44 }
  0x93   :  { %4587 = vperm.xlu1 %6437, %v4509_v58  }
  0x94   :  { %4584 = vperm.xlu0 %6436, %v4508_v59  }
  0x97   :  { %4593 = vperm.xlu1 %6437, %v4511_v63  }
  0x98   :  { %4590 = vperm.xlu0 %6436, %v4510_v0  }
  0x99   :  { %5710 = vmatmul.mubr.bf16.gmra.mxu0 %v6457_v53 }
  0x9a   :  { %5713 = vmatprep.mubr.msk.bf16.mxu0 %vm6798_vm0, %v10187_v44 }
  0x9b   :  { %4599 = vperm.xlu1 %6437, %v4513_v1  }
  0x9c   :  { %4596 = vperm.xlu0 %6436, %v4512_v2  }
  0xa1   :  { %5714 = vmatmul.mubr.bf16.gmra.mxu0 %v6458_v62 }
  0xa2   :  { %5717 = vmatprep.mubr.msk.bf16.mxu0 %vm6798_vm0, %v10187_v44 }
  0xa9   :  { %5718 = vmatmul.mubr.bf16.gmra.mxu0 %v6459_v4 }
  0xaa   :  { %5721 = vmatprep.mubr.msk.bf16.mxu0 %vm6798_vm0, %v10187_v44 }
  0xb1   :  { %5722 = vmatmul.mubr.bf16.gmra.mxu0 %v6460_v8 }
  0xb2   :  { %5725 = vmatprep.mubr.msk.bf16.mxu0 %vm6798_vm0, %v10187_v44 }
  0xb9   :  { %5726 = vmatmul.mubr.bf16.gmra.mxu0 %v6461_v13 }
  0xba   :  { %5729 = vmatprep.mubr.msk.bf16.mxu0 %vm6798_vm0, %v10187_v44 }
  0xc1   :  { %5730 = vmatmul.mubr.bf16.gmra.mxu0 %v6462_v16 }
  0xc2   :  { %5901 = vmatprep.mubr.msk.bf16.mxu0 %vm6798_vm0, %v10187_v44 }
 0x101   :  { %v521_v23 = vpop.f32.mrf.mxu0 }
 0x102   :  { %v7289_v24 = vadd.f32 %v7286_v22, %v521_v23 }
 0x103   :  { %v5667_v25 = vpop.f32.mrf.mxu0 }
 0x104   :  { %v655_v26 = vmin.f32 %v7289_v24, 20.0  ;;  %vm952_vm4 = vcmp.gt.f32.partialorder %v7289_v24, 20.0 }
 0x105   :  { %v524_v27 = vpop.f32.mrf.mxu0 }
 0x106   :  { %v688_v28 = vmul.f32 1.442695, %v655_v26  ;;  %v7293_v29 = vadd.f32 %v7286_v22, %v524_v27 }
 0x107   :  { %v5668_v30 = vpop.f32.mrf.mxu0 }
 0x108   :  { %6535 = vpow2.f32 %v688_v28  ;;  %v656_v31 = vmin.f32 %v7293_v29, 20.0  ;;  %vm953_vm5 = vcmp.gt.f32.partialorder %v7293_v29, 20.0 }
 0x109   :  { %v529_v32 = vpop.f32.mrf.mxu0 }
 0x10a   :  { %v690_v33 = vmul.f32 1.442695, %v656_v31  ;;  %v7297_v34 = vadd.f32 %v7286_v22, %v529_v32 }
 0x10b   :  { %v5671_v35 = vpop.f32.mrf.mxu0 }
 0x10c   :  { %6537 = vpow2.f32 %v690_v33  ;;  %v657_v36 = vmin.f32 %v7297_v34, 20.0  ;;  %vm954_vm8 = vcmp.gt.f32.partialorder %v7297_v34, 20.0 }
 0x10d   :  { %v532_v37 = vpop.f32.mrf.mxu0 }
 0x10e   :  { %v692_v38 = vmul.f32 1.442695, %v657_v36  ;;  %v7301_v39 = vadd.f32 %v7286_v22, %v532_v37 }
 0x10f   :  { %v5672_v40 = vpop.f32.mrf.mxu0 }
 0x110   :  { %6539 = vpow2.f32 %v692_v38  ;;  %v658_v41 = vmin.f32 %v7301_v39, 20.0  ;;  %vm955_vm10 = vcmp.gt.f32.partialorder %v7301_v39, 20.0 }
 0x111   :  { %v537_v42 = vpop.f32.mrf.mxu0 }
 0x112   :  { %v694_v43 = vmul.f32 1.442695, %v658_v41  ;;  %v7305_v46 = vadd.f32 %v7286_v22, %v537_v42 }
 0x113   :  { %v5675_v47 = vpop.f32.mrf.mxu0 }
 0x114   :  { %6541 = vpow2.f32 %v694_v43  ;;  %v659_v48 = vmin.f32 %v7305_v46, 20.0  ;;  %v7332_v47 = vpop.permute.xlu0 %1085  ;;  %vm956_vm12 = vcmp.gt.f32.partialorder %v7305_v46, 20.0 }
 0x115   :  { %v6536_v49 = vpop.eup %6535  ;;  %v540_v50 = vpop.f32.mrf.mxu0  ;;  %vm1183_vm6 = vcmp.eq.s32.totalorder %v7332_v47, 1 }
 0x116   :  { %v754_v51 = vadd.f32 1.0, %v6536_v49  ;;  %v696_v52 = vmul.f32 1.442695, %v659_v48  ;;  %v7309_v53 = vadd.f32 %v7286_v22, %v540_v50 }
 0x117   :  { %v5676_v54 = vpop.f32.mrf.mxu0 }
 0x118   :  { %v787_v55 = vmul.f32 %v754_v51, %v754_v51  ;;  %6543 = vpow2.f32 %v696_v52  ;;  %v660_v56 = vmin.f32 %v7309_v53, 20.0  ;;  %vm957_vm13 = vcmp.gt.f32.partialorder %v7309_v53, 20.0 }
 0x119   :  { %v6538_v57 = vpop.eup %6537  ;;  %v545_v58 = vpop.f32.mrf.mxu0 }
 0x11a   :  { %v820_v59 = vadd.f32 1.0, %v787_v55  ;;  %v755_v60 = vadd.f32 1.0, %v6538_v57  ;;  %v698_v61 = vmul.f32 1.442695, %v660_v56  ;;  %v7313_v62 = vadd.f32 %v7286_v22, %v545_v58 }
 0x11b   :  { %v5679_v63 = vpop.f32.mrf.mxu0 }
 0x11c   :  { %6545 = vrcp.f32 %v820_v59  ;;  %v788_v0 = vmul.f32 %v755_v60, %v755_v60  ;;  %v661_v1 = vmin.f32 %v7313_v62, 20.0  ;;  %v7337_v59 = vpop.permute.xlu1 %1091  ;;  %vm958_vm1 = vcmp.gt.f32.partialorder %v7313_v62, 20.0 }
 0x11d   :  { %v6540_v2 = vpop.eup %6539  ;;  %6547 = vpow2.f32 %v698_v61  ;;  %v548_v3 = vpop.f32.mrf.mxu0  ;;  %vm1185_vm3 = vcmp.eq.s32.totalorder %v7337_v59, 1 }
 0x11e   :  { %v821_v4 = vadd.f32 1.0, %v788_v0  ;;  %v756_v5 = vadd.f32 1.0, %v6540_v2  ;;  %v700_v45 = vmul.f32 1.442695, %v661_v1  ;;  %v7317_v6 = vadd.f32 %v7286_v22, %v548_v3 }
 0x11f   :  { %v5680_v7 = vpop.f32.mrf.mxu0 }
 0x120   :  { %6549 = vrcp.f32 %v821_v4  ;;  %v789_v8 = vmul.f32 %v756_v5, %v756_v5  ;;  %v662_v9 = vmin.f32 %v7317_v6, 20.0  ;;  %v1089_v7 = vpop.permute.xlu0 %1088  ;;  %vm959_vm2 = vcmp.gt.f32.partialorder %v7317_v6, 20.0 }
 0x121   :  { %v6542_v10 = vpop.eup %6541  ;;  %6551 = vpow2.f32 %v700_v45  ;;  %v553_v11 = vpop.f32.mrf.mxu0  ;;  %vm1184_vm7 = vcmp.eq.s32.totalorder %v1089_v7, 1 }
 0x122   :  { %v822_v12 = vadd.f32 1.0, %v789_v8  ;;  %v757_v13 = vadd.f32 1.0, %v6542_v10  ;;  %v702_v14 = vmul.f32 1.442695, %v662_v9  ;;  %v7321_v15 = vadd.f32 %v7286_v22, %v553_v11 }
 0x123   :  { %v5683_v16 = vpop.f32.mrf.mxu0 }
 0x124   :  { %6553 = vrcp.f32 %v822_v12  ;;  %v790_v17 = vmul.f32 %v757_v13, %v757_v13  ;;  %v663_v18 = vmin.f32 %v7321_v15, 20.0 }
 0x125   :  { %v6544_v19 = vpop.eup %6543  ;;  %6555 = vpow2.f32 %v702_v14  ;;  %v556_v20 = vpop.f32.mrf.mxu0 }
 0x126   :  { %v823_v21 = vadd.f32 1.0, %v790_v17  ;;  %v758_v23 = vadd.f32 1.0, %v6544_v19  ;;  %v704_v25 = vmul.f32 1.442695, %v663_v18  ;;  %v7325_v26 = vadd.f32 %v7286_v22, %v556_v20  ;;  %v7350_v20 = vpop.permute.xlu1 %1094 }
 0x127   :  { %v5684_v27 = vpop.f32.mrf.mxu0  ;;  %vm1186_vm9 = vcmp.eq.s32.totalorder %v7350_v20, 1 }
 0x128   :  { %6557 = vrcp.f32 %v823_v21  ;;  %v791_v28 = vmul.f32 %v758_v23, %v758_v23  ;;  %v664_v30 = vmin.f32 %v7325_v26, 20.0 }
 0x129   :  { %v6546_v31 = vpop.eup %6545  ;;  %6559 = vpow2.f32 %v704_v25  ;;  %v561_v32 = vpop.f32.mrf.mxu0 }
 0x12a   :  { %v6548_v33 = vpop.eup %6547  ;;  %v824_v35 = vadd.f32 1.0, %v791_v28  ;;  %v706_v36 = vmul.f32 1.442695, %v664_v30  ;;  %v7329_v37 = vadd.f32 %v7286_v22, %v561_v32  ;;  %v886_v38 = vmul.f32 2.0, %v6546_v31 }
 0x12b   :  { %v759_v40 = vadd.f32 1.0, %v6548_v33  ;;  %v5687_v41 = vpop.f32.mrf.mxu0 }
 0x12c   :  { %6561 = vrcp.f32 %v824_v35  ;;  %v665_v42 = vmin.f32 %v7329_v37, 20.0  ;;  %v919_v55 = vsub.f32 1.0, %v886_v38 }
 0x12d   :  { %v6550_v43 = vpop.eup %6549  ;;  %v792_v48 = vmul.f32 %v759_v40, %v759_v40  ;;  %6563 = vpow2.f32 %v706_v36  ;;  %v564_v49 = vpop.f32.mrf.mxu0 }
 0x12e   :  { %v6552_v50 = vpop.eup %6551  ;;  %v887_v51 = vmul.f32 2.0, %v6550_v43  ;;  %v708_v52 = vmul.f32 1.442695, %v665_v42  ;;  %v7335_v54 = vadd.f32 %v7286_v22, %v564_v49  ;;  %v985_v8 = vsel %vm952_vm4, 1.0, %v919_v55 }
 0x12f   :  { %v825_v56 = vadd.f32 1.0, %v792_v48  ;;  %v760_v57 = vadd.f32 1.0, %v6552_v50  ;;  %v5688_v58 = vpop.f32.mrf.mxu0  ;;  %v1018_v21 = vmul.f32 %v985_v8, %v7289_v24  ;;  %vm1926_vm4 = vsmask.f32 4352 }
 0x130   :  { %v920_v60 = vsub.f32 1.0, %v887_v51  ;;  %6565 = vpow2.f32 %v708_v52  ;;  %v666_v61 = vmin.f32 %v7335_v54, 20.0 }
 0x131   :  { %v6554_v63 = vpop.eup %6553  ;;  %6567 = vrcp.f32 %v825_v56  ;;  %v793_v0 = vmul.f32 %v760_v57, %v760_v57  ;;  %v569_v1 = vpop.f32.mrf.mxu0  ;;  %v1216_v42 = vsel %vm1183_vm6, %v1018_v21, 0.0 }
 0x132   :  { %v6556_v2 = vpop.eup %6555  ;;  %v986_v3 = vsel %vm953_vm5, 1.0, %v920_v60  ;;  %v888_v4 = vmul.f32 2.0, %v6554_v63  ;;  %v710_v5 = vmul.f32 1.442695, %v666_v61  ;;  %v7344_v45 = vadd.f32 %v7286_v22, %v569_v1 }
 0x133   :  { %v826_v9 = vadd.f32 1.0, %v793_v0  ;;  %v761_v10 = vadd.f32 1.0, %v6556_v2  ;;  %v5691_v11 = vpop.f32.mrf.mxu0  ;;  %v1019_v16 = vmul.f32 %v986_v3, %v7293_v29 }
 0x134   :  { %v921_v12 = vsub.f32 1.0, %v888_v4  ;;  %6569 = vpow2.f32 %v710_v5  ;;  %v667_v13 = vmin.f32 %v7344_v45, 20.0 }
 0x135   :  { %v6558_v14 = vpop.eup %6557  ;;  %6571 = vrcp.f32 %v826_v9  ;;  %v794_v17 = vmul.f32 %v761_v10, %v761_v10  ;;  %v572_v18 = vpop.f32.mrf.mxu0  ;;  %v1217_v24 = vsel %vm1184_vm7, %v1019_v16, 0.0  ;;  %vm960_vm7 = vcmp.gt.f32.partialorder %v7321_v15, 20.0 }
 0x136   :  { %v6560_v19 = vpop.eup %6559  ;;  %v987_v23 = vsel %vm954_vm8, 1.0, %v921_v12  ;;  %v889_v25 = vmul.f32 2.0, %v6558_v14  ;;  %v712_v27 = vmul.f32 1.442695, %v667_v13  ;;  %v7355_v31 = vadd.f32 %v7286_v22, %v572_v18  ;;  %v7385_v9 = vpop.permute.xlu1 %1100 }
 0x137   :  { %v827_v28 = vadd.f32 1.0, %v794_v17  ;;  %v762_v30 = vadd.f32 1.0, %v6560_v19  ;;  %v5692_v29 = vpop.f32.mrf.mxu0  ;;  %v7358_v32 = vmul.f32 %v987_v23, %v7297_v34  ;;  %v7371_v56 = vpack.c.bf16 %v1217_v24, %v1216_v42  ;;  %v7406_v24 = vpop.permute.xlu0 %1097 }
 0x138   :  { %v922_v33 = vsub.f32 1.0, %v889_v25  ;;  %6573 = vpow2.f32 %v712_v27  ;;  %v668_v38 = vmin.f32 %v7355_v31, 20.0  ;;  %vm1188_vm14 = vcmp.eq.s32.totalorder %v7385_v9, 1 }
 0x139   :  { %v6562_v35 = vpop.eup %6561  ;;  %6575 = vrcp.f32 %v827_v28  ;;  %v795_v36 = vmul.f32 %v762_v30, %v762_v30  ;;  %v577_v40 = vpop.f32.mrf.mxu0  ;;  %v1218_v57 = vsel %vm1185_vm3, %v7358_v32, 0.0  ;;  %v1315_v17 = vrot.slane %v7371_v56, 3 }
 0x13a   :  { %v6564_v41 = vpop.eup %6563  ;;  %v988_v43 = vsel %vm955_vm10, 1.0, %v922_v33  ;;  %v890_v48 = vmul.f32 2.0, %v6562_v35  ;;  %v7366_v34 = vadd.f32 %v7286_v22, %v577_v40  ;;  %v714_v52 = vmul.f32 1.442695, %v668_v38  ;;  %v6478_v35 = vld [vmem:[%s10180_s4 + $0x38] sm:$0xff]  }
 0x13b   :  { %v7369_v49 = vmul.f32 %v988_v43, %v7301_v39  ;;  %v828_v50 = vadd.f32 1.0, %v795_v36  ;;  %v763_v51 = vadd.f32 1.0, %v6564_v41  ;;  %v5695_v55 = vpop.f32.mrf.mxu0  ;;  %vm1187_vm15 = vcmp.eq.s32.totalorder %v7406_v24, 1 }
 0x13c   :  { %v923_v47 = vsub.f32 1.0, %v890_v48  ;;  %v669_v58 = vmin.f32 %v7366_v34, 20.0  ;;  %v7421_v55 = vshrl.u32 %v7371_v56, 16  ;;  %vm961_vm8 = vcmp.gt.f32.partialorder %v7325_v26, 20.0 }
 0x13d   :  { %v6566_v60 = vpop.eup %6565  ;;  %v1219_v61 = vsel %vm1186_vm9, %v7369_v49, 0.0  ;;  %6577 = vrcp.f32 %v828_v50  ;;  %v796_v63 = vmul.f32 %v763_v51, %v763_v51  ;;  %v580_v0 = vpop.f32.mrf.mxu0  ;;  %vm962_vm10 = vcmp.gt.f32.partialorder %v7329_v37, 20.0 }
 0x13e   :  { %v6568_v1 = vpop.eup %6567  ;;  %v7382_v2 = vpack.c.bf16 %v1219_v61, %v1218_v57  ;;  %v764_v3 = vadd.f32 1.0, %v6566_v60  ;;  %6579 = vpow2.f32 %v714_v52  ;;  %v716_v7 = vmul.f32 1.442695, %v669_v58  ;;  %10280 = vst [vmem:[#allocation10_spill] sm:$0xff] %v7421_v55  ;;  %v6480_v60 = vld [vmem:[%s10180_s4 + $0x30] sm:$0xff]  }
 0x13f   :  { %v891_v4 = vmul.f32 2.0, %v6568_v1  ;;  %v829_v5 = vadd.f32 1.0, %v796_v63  ;;  %v5696_v8 = vpop.f32.mrf.mxu0  ;;  %v989_v10 = vsel %vm956_vm12, 1.0, %v923_v47  ;;  %v7389_v12 = vadd.f32 %v7286_v22, %v580_v0 }
 0x140   :  { %10279 = vst [vmem:[#allocation9_spill] sm:$0xff] %v7382_v2  ;;  %v797_v11 = vmul.f32 %v764_v3, %v764_v3  ;;  %v1316_v18 = vrot.slane %v7382_v2, 3  ;;  %v7396_v27 = vmul.f32 %v989_v10, %v7305_v46  ;;  %v10185_v61 = vshll.u32 %v7371_v56, 16 }
 0x141   :  { %v6570_v13 = vpop.eup %6569  ;;  %v924_v14 = vsub.f32 1.0, %v891_v4  ;;  %6581 = vrcp.f32 %v829_v5  ;;  %v585_v16 = vpop.f32.mrf.mxu0  ;;  %v670_v25 = vmin.f32 %v7389_v12, 20.0  ;;  %v7431_v1 = vshrl.u32 %v7382_v2, 16 }
 0x142   :  { %v6572_v19 = vpop.eup %6571  ;;  %v830_v21 = vadd.f32 1.0, %v797_v11  ;;  %v765_v23 = vadd.f32 1.0, %v6570_v13  ;;  %6583 = vpow2.f32 %v716_v7  ;;  %v7401_v29 = vadd.f32 %v7286_v22, %v585_v16 }
 0x143   :  { %v990_v28 = vsel %vm957_vm13, 1.0, %v924_v14  ;;  %v892_v30 = vmul.f32 2.0, %v6572_v19  ;;  %v5699_v33 = vpop.f32.mrf.mxu0  ;;  %v718_v38 = vmul.f32 1.442695, %v670_v25  ;;  %v1317_v43 = vsel %vm1314_vm11, %v1315_v17, %v1316_v18  ;;  %v6481_v25 = vld [vmem:[%s10180_s4 + $0x28] sm:$0xff]  }
 0x144   :  { %v7409_v36 = vmul.f32 %v990_v28, %v7309_v53  ;;  %6585 = vrcp.f32 %v830_v21  ;;  %v798_v46 = vmul.f32 %v765_v23, %v765_v23  ;;  %v671_v42 = vmin.f32 %v7401_v29, 20.0  ;;  %5750 = vmatmul.mubr.bf16.vlgmr.msra.gmra.mxu1 %v1317_v43  ;;  %v7452_v28 = vpop.permute.xlu1 %1106 }
 0x145   :  { %v6574_v40 = vpop.eup %6573  ;;  %v925_v41 = vsub.f32 1.0, %v892_v30  ;;  %v588_v48 = vpop.f32.mrf.mxu0  ;;  %6587 = vpow2.f32 %v718_v38  ;;  %5810 = vmatpush3.bf16.msra.mxu1 %v6478_v35  ;;  %5753 = vmatprep.mubr.msk.bf16.mxu1 %vm6798_vm0, %v10187_v44  ;;  %v7434_v3 = vshll.u32 %v7382_v2, 16  ;;  %v1927_v21 = vrot.slane %v7421_v55, 3 }
 0x146   :  { %v6576_v50 = vpop.eup %6575  ;;  %v831_v51 = vadd.f32 1.0, %v798_v46  ;;  %v766_v52 = vadd.f32 1.0, %v6574_v40  ;;  %v720_v0 = vmul.f32 1.442695, %v671_v42  ;;  %5811 = vmatprep.subr.bf16.mxu1 %v10187_v44  ;;  %v7437_v5 = vadd.f32 %v7286_v22, %v588_v48  ;;  %v7461_v35 = vpop.permute.xlu0 %1103 }
 0x147   :  { %v991_v57 = vsel %vm958_vm1, 1.0, %v925_v41  ;;  %v893_v47 = vmul.f32 2.0, %v6576_v50  ;;  %v5700_v58 = vpop.f32.mrf.mxu0  ;;  %v1221_v10 = vsel %vm1188_vm14, %v7409_v36, 0.0  ;;  %v1928_v33 = vrot.slane %v10185_v61, 4 }
 0x148   :  { %6589 = vrcp.f32 %v831_v51  ;;  %v799_v63 = vmul.f32 %v766_v52, %v766_v52  ;;  %v7443_v11 = vmul.f32 %v991_v57, %v7313_v62  ;;  %v672_v19 = vmin.f32 %v7437_v5, 20.0  ;;  %v6482_v58 = vld [vmem:[%s10180_s4 + $0x20] sm:$0xff]  }
 0x149   :  { %v926_v4 = vsub.f32 1.0, %v893_v47  ;;  %v593_v7 = vpop.f32.mrf.mxu0  ;;  %6591 = vpow2.f32 %v720_v0  ;;  %5812 = vmatpush3.bf16.msra.mxu1 %v6480_v60  ;;  %vm1190_vm5 = vcmp.eq.s32.totalorder %v7452_v28, 1  ;;  %v1930_v40 = vrot.slane %v7431_v1, 3  ;;  %v6508_v28 = vld [vmem:[%s10180_s4 + $0x190] sm:$0xff]  }
 0x14a   :  { %v6578_v8 = vpop.eup %6577  ;;  %v832_v13 = vadd.f32 1.0, %v799_v63  ;;  %5813 = vmatprep.subr.bf16.mxu1 %v10187_v44  ;;  %v722_v38 = vmul.f32 1.442695, %v672_v19  ;;  %v1931_v41 = vrot.slane %v7434_v3, 4  ;;  %vm1189_vm6 = vcmp.eq.s32.totalorder %v7461_v35, 1  ;;  %v7490_v19 = vpop.permute.xlu1 %1112 }
 0x14b   :  { %v6580_v14 = vpop.eup %6579  ;;  %v992_v16 = vsel %vm959_vm2, 1.0, %v926_v4  ;;  %v894_v17 = vmul.f32 2.0, %v6578_v8  ;;  %v5703_v23 = vpop.f32.mrf.mxu0  ;;  %v1220_v43 = vsel %vm1187_vm15, %v7396_v27, 0.0  ;;  %10282 = vst [vmem:[#allocation12_spill] sm:$0xff] %v7490_v19  ;;  %vm963_vm12 = vcmp.gt.f32.partialorder %v7335_v54, 20.0 }
 0x14c   :  { %v7455_v62 = vmul.f32 %v992_v16, %v7317_v6  ;;  %6593 = vrcp.f32 %v832_v13  ;;  %v767_v30 = vadd.f32 1.0, %v6580_v14  ;;  %v7472_v52 = vpack.c.bf16 %v1221_v10, %v1220_v43 }
 0x14d   :  { %v927_v46 = vsub.f32 1.0, %v894_v17  ;;  %v596_v42 = vpop.f32.mrf.mxu0  ;;  %6595 = vpow2.f32 %v722_v38  ;;  %5814 = vmatpush3.bf16.msra.mxu1 %v6481_v25  ;;  %v7478_v4 = vor.u32 %v1931_v41, %v1930_v40  ;;  %v1929_v13 = vor.u32 %v1928_v33, %v1927_v21  ;;  %v6486_v17 = vld [vmem:[%s10180_s4 + $0x138] sm:$0xff]  }
 0x14e   :  { %v6582_v6 = vpop.eup %6581  ;;  %v800_v50 = vmul.f32 %v767_v30, %v767_v30  ;;  %10281 = vst [vmem:[#allocation11_spill] sm:$0xff] %v7472_v52  ;;  %5815 = vmatprep.subr.bf16.mxu1 %v10187_v44  ;;  %v7483_v14 = vadd.f32 %v7286_v22, %v593_v7  ;;  %vm10186_vm13 = vcmp.eq.s32.totalorder %v7490_v19, 1  ;;  %v6483_v38 = vld [vmem:[%s10180_s4 + $0x18] sm:$0xff]   ;;  %v1318_v43 = vrot.slane %v7472_v52, 3 }
 0x14f   :  { %v6584_v51 = vpop.eup %6583  ;;  %v895_v57 = vmul.f32 2.0, %v6582_v6  ;;  %v5704_v47 = vpop.f32.mrf.mxu0  ;;  %v993_v60 = vsel %vm960_vm7, 1.0, %v927_v46  ;;  %v1933_v30 = vsel %vm1926_vm4, %v1929_v13, %v7478_v4  ;;  %v7532_v13 = vadd.f32 %v7286_v22, %v596_v42 }
 0x150   :  { %v833_v63 = vadd.f32 1.0, %v800_v50  ;;  %v768_v0 = vadd.f32 1.0, %v6584_v51  ;;  %v7495_v21 = vmul.f32 %v993_v60, %v7321_v15  ;;  %v673_v33 = vmin.f32 %v7483_v14, 20.0  ;;  %5902 = vmatmul.mubr.bf16.vlgmr.msra.gmra.mxu0 %v1933_v30  ;;  %v7510_v51 = vpop.permute.xlu0 %1109 }
 0x151   :  { %v6586_v8 = vpop.eup %6585  ;;  %v928_v10 = vsub.f32 1.0, %v895_v57  ;;  %v7485_v16 = vpop.f32.mrf.mxu0  ;;  %5816 = vmatpush3.bf16.msra.mxu1 %v6482_v58  ;;  %10285 = vst [vmem:[#allocation15_spill] sm:$0xff] %v7510_v51  ;;  %v7513_v57 = vshrl.u32 %v7472_v52, 16  ;;  %v7516_v47 = vshll.u32 %v7472_v52, 16  ;;  %5905 = vmatprep.mubr.msk.bf16.mxu0 %vm6798_vm0, %v10187_v44  ;;  %vm10200_vm1 = vcmp.eq.s32.totalorder %v7510_v51, 1 }
 0x152   :  { %v896_v23 = vmul.f32 2.0, %v6586_v8  ;;  %6597 = vrcp.f32 %v833_v63  ;;  %v801_v25 = vmul.f32 %v768_v0, %v768_v0  ;;  %10283 = vst [vmem:[#allocation13_spill] sm:$0xff] %v7495_v21  ;;  %v6588_v40 = vpop.eup %6587  ;;  %5817 = vmatprep.subr.bf16.mxu1 %v10187_v44  ;;  %v724_v60 = vmul.f32 1.442695, %v673_v33  ;;  %6038 = vmatpush3.bf16.msra.mxu0 %v6486_v17  ;;  %v6487_v63 = vld [vmem:[%s10180_s4 + $0x130] sm:$0xff]  }
 0x153   :  { %v994_v7 = vsel %vm961_vm8, 1.0, %v928_v10  ;;  %v5707_v46 = vpop.f32.mrf.mxu0  ;;  %v769_v58 = vadd.f32 1.0, %v6588_v40  ;;  %v1223_v0 = vsel %vm1190_vm5, %v7455_v62, 0.0  ;;  %6039 = vmatprep.subr.bf16.mxu0 %v10187_v44  ;;  %v6484_v33 = vld [vmem:[%s10180_s4 + $0x10] sm:$0xff]   ;;  %v1319_v40 = vsel %vm1314_vm11, %v1316_v18, %v1318_v43 }
 0x154   :  { %v7506_v41 = vmul.f32 %v994_v7, %v7325_v26  ;;  %v929_v15 = vsub.f32 1.0, %v896_v23  ;;  %v834_v6 = vadd.f32 1.0, %v801_v25  ;;  %v1222_v23 = vsel %vm1189_vm6, %v7443_v11, 0.0  ;;  %5754 = vmatmul.mubr.bf16.gmra.mxu1 %v1319_v40 }
 0x155   :  { %v6590_v50 = vpop.eup %6589  ;;  %v7520_v26 = vpop.f32.mrf.mxu0  ;;  %v802_v7 = vmul.f32 %v769_v58, %v769_v58  ;;  %5818 = vmatpush3.bf16.msra.mxu1 %v6483_v38  ;;  %vm964_vm2 = vcmp.gt.f32.partialorder %v7344_v45, 20.0  ;;  %5757 = vmatprep.mubr.msk.bf16.mxu1 %vm6798_vm0, %v10187_v44  ;;  %v10353_v9 = vpack.c.bf16 %v7409_v36, %v7396_v27 }
 0x156   :  { %10284 = vst [vmem:[#allocation14_spill] sm:$0xff] %v7506_v41  ;;  %v897_v10 = vmul.f32 2.0, %v6590_v50  ;;  %v6592_v17 = vpop.eup %6591  ;;  %v995_v25 = vsel %vm962_vm10, 1.0, %v929_v15  ;;  %6599 = vrcp.f32 %v834_v6  ;;  %5819 = vmatprep.subr.bf16.mxu1 %v10187_v44  ;;  %v7549_v6 = vpack.c.bf16 %v1223_v0, %v1222_v23  ;;  %6040 = vmatpush3.bf16.msra.mxu0 %v6487_v63  ;;  %v7564_v23 = vpop.permute.xlu1 %1118 }
 0x157   :  { %v5708_v30 = vpop.f32.mrf.mxu0  ;;  %v770_v46 = vadd.f32 1.0, %v6592_v17  ;;  %6601 = vpow2.f32 %v724_v60  ;;  %v835_v38 = vadd.f32 1.0, %v802_v7  ;;  %v1934_v50 = vrot.slane %v7513_v57, 3  ;;  %v6488_v60 = vld [vmem:[%s10180_s4 + $0x128] sm:$0xff]   ;;  %6041 = vmatprep.subr.bf16.mxu0 %v10187_v44  ;;  %10287 = vst [vmem:[#allocation17_spill] sm:$0xff] %v7564_v23 }
 0x158   :  { %v930_v42 = vsub.f32 1.0, %v897_v10  ;;  %10286 = vst [vmem:[#allocation16_spill] sm:$0xff] %v7549_v6  ;;  %v674_v0 = vmin.f32 %v7532_v13, 20.0  ;;  %v7567_v63 = vmul.f32 %v995_v25, %v7329_v37  ;;  %v1935_v30 = vrot.slane %v7516_v47, 4  ;;  %v7584_v25 = vpop.permute.xlu0 %1115 }
 0x159   :  { %v6594_v15 = vpop.eup %6593  ;;  %v7553_v58 = vpop.f32.mrf.mxu0  ;;  %v803_v17 = vmul.f32 %v770_v46, %v770_v46  ;;  %6603 = vrcp.f32 %v835_v38  ;;  %5820 = vmatpush3.bf16.msra.mxu1 %v6484_v33  ;;  %v6485_v46 = vld [vmem:[%s10180_s4 + $0x8] sm:$0xff]   ;;  %10290 = vst [vmem:[#allocation20_spill] sm:$0xff] %v7584_v25  ;;  %vm10197_vm7 = vcmp.eq.s32.totalorder %v7564_v23, 1  ;;  %vm10198_vm8 = vcmp.eq.s32.totalorder %v7584_v25, 1 }
 0x15a   :  { %v996_v18 = vsel %vm963_vm12, 1.0, %v930_v42  ;;  %v898_v10 = vmul.f32 2.0, %v6594_v15  ;;  %10288 = vst [vmem:[#allocation18_spill] sm:$0xff] %v7567_v63  ;;  %v6596_v40 = vpop.eup %6595  ;;  %v1225_v15 = vsel %vm10186_vm13, %v7506_v41, 0.0  ;;  %v726_v37 = vmul.f32 1.442695, %v674_v0  ;;  %5821 = vmatprep.subr.bf16.mxu1 %v10187_v44  ;;  %6042 = vmatpush3.bf16.msra.mxu0 %v6488_v60 }
 0x15b   :  { %v7570_v7 = vmul.f32 %v996_v18, %v7335_v54  ;;  %v5711_v42 = vpop.f32.mrf.mxu0  ;;  %v836_v8 = vadd.f32 1.0, %v803_v17  ;;  %v7581_v54 = vadd.f32 %v7286_v22, %v7485_v16  ;;  %v771_v18 = vadd.f32 1.0, %v6596_v40  ;;  %v6490_v17 = vld [vmem:[%s10180_s4 + $0x120] sm:$0xff]   ;;  %6043 = vmatprep.subr.bf16.mxu0 %v10187_v44 }
 0x15c   :  { %v931_v38 = vsub.f32 1.0, %v898_v10  ;;  %v7588_v42 = vor.u32 %v1935_v30, %v1934_v50  ;;  %v7597_v16 = vshrl.u32 %v7549_v6, 16  ;;  %v7600_v0 = vshll.u32 %v7549_v6, 16 }
 0x15d   :  { %10289 = vst [vmem:[#allocation19_spill] sm:$0xff] %v7570_v7  ;;  %v7590_v48 = vpop.f32.mrf.mxu0  ;;  %6605 = vrcp.f32 %v836_v8  ;;  %v675_v10 = vmin.f32 %v7581_v54, 20.0  ;;  %v1224_v60 = vsel %vm10200_vm1, %v7495_v21, 0.0  ;;  %v804_v30 = vmul.f32 %v771_v18, %v771_v18  ;;  %5822 = vmatpush3.bf16.msra.mxu1 %v6485_v46  ;;  %v6489_v8 = vld [vmem:[%s10180_s4] sm:$0xff]   ;;  %v6491_v18 = vld [vmem:[%s10180_s4 + $0x118] sm:$0xff]  }
 0x15e   :  { %6607 = vpow2.f32 %v726_v37  ;;  %v1937_v40 = vsel %vm1926_vm4, %v7478_v4, %v7588_v42  ;;  %v7614_v53 = vpack.c.bf16 %v1225_v15, %v1224_v60  ;;  %vm965_vm10 = vcmp.gt.f32.partialorder %v7355_v31, 20.0  ;;  %5823 = vmatprep.subr.bf16.mxu1 %v10187_v44  ;;  %v7618_v37 = vpop.permute.xlu1 %1124  ;;  %6044 = vmatpush3.bf16.msra.mxu0 %v6490_v17  ;;  %v7638_v60 = vpop.permute.xlu0 %1121 }
 0x15f   :  { %v6598_v50 = vpop.eup %6597  ;;  %v5712_v33 = vpop.f32.mrf.mxu0  ;;  %5906 = vmatmul.mubr.bf16.gmra.mxu0 %v1937_v40  ;;  %v728_v61 = vmul.f32 1.442695, %v675_v10  ;;  %10292 = vst [vmem:[#allocation22_spill] sm:$0xff] %v7618_v37  ;;  %v997_v4 = vsel %vm964_vm2, 1.0, %v931_v38  ;;  %vm966_vm12 = vcmp.gt.f32.partialorder %v7366_v34, 20.0  ;;  %v837_v46 = vadd.f32 1.0, %v804_v30  ;;  %6045 = vmatprep.subr.bf16.mxu0 %v10187_v44 }
 0x160   :  { %10291 = vst [vmem:[#allocation21_spill] sm:$0xff] %v7614_v53  ;;  %v899_v39 = vmul.f32 2.0, %v6598_v50  ;;  %v1320_v33 = vrot.slane %v7549_v6, 3  ;;  %5909 = vmatprep.mubr.msk.bf16.mxu0 %vm6798_vm0, %v10187_v44  ;;  %vm10230_vm13 = vcmp.eq.s32.totalorder %v7618_v37, 1  ;;  %v7634_v38 = vadd.f32 %v7286_v22, %v7520_v26  ;;  %10293 = vst [vmem:[#allocation23_spill] sm:$0xff] %v7638_v60 }
 0x161   :  { %v7626_v15 = vpop.f32.mrf.mxu0  ;;  %6609 = vpow2.f32 %v728_v61  ;;  %v1938_v50 = vrot.slane %v7597_v16, 3  ;;  %v1939_v30 = vrot.slane %v7600_v0, 4  ;;  %5824 = vmatpush3.bf16.msra.mxu1 %v6489_v8  ;;  %v7649_v40 = vmul.f32 %v997_v4, %v7344_v45 }
 0x162   :  { %v932_v10 = vsub.f32 1.0, %v899_v39  ;;  %6611 = vrcp.f32 %v837_v46  ;;  %v1321_v17 = vsel %vm1314_vm11, %v1318_v43, %v1320_v33  ;;  %v7646_v39 = vadd.f32 %v7286_v22, %v7553_v58  ;;  %6046 = vmatpush3.bf16.msra.mxu0 %v6491_v18  ;;  %v7691_v23 = vpop.permute.xlu0 %1127 }
 0x163   :  { %v5715_v61 = vpop.f32.mrf.mxu0  ;;  %v6600_v26 = vpop.eup %6599  ;;  %10294 = vst [vmem:[#allocation24_spill] sm:$0xff] %v7649_v40  ;;  %vm967_vm2 = vcmp.gt.f32.partialorder %v7389_v12, 20.0  ;;  %5758 = vmatmul.mubr.bf16.gmra.mxu1 %v1321_v17  ;;  %v676_v43 = vmin.f32 %v7634_v38, 20.0  ;;  %v10295_v6 = vmov 0.0   ;;  %v7660_v2 = vor.u32 %v1939_v30, %v1938_v50  ;;  %10298 = vst [vmem:[#allocation27_spill] sm:$0xff] %v7691_v23 }
 0x164   :  { %v998_v44 = vsel %vm965_vm10, 1.0, %v932_v10  ;;  %5961 = vmatprep.subr.bf16.mxu1 %v10295_v6  ;;  %v6602_v58 = vpop.eup %6601  ;;  %v900_v8 = vmul.f32 2.0, %v6600_v26  ;;  %v677_v45 = vmin.f32 %v7646_v39, 20.0  ;;  %5761 = vmatprep.mubr.msk.bf16.mxu1 %vm6798_vm0, %v10295_v6  ;;  %v6492_v10 = vld [vmem:[%s10180_s4 + $0x110] sm:$0xff]   ;;  %v7671_v17 = vshrl.u32 %v7614_v53, 16 }
 0x165   :  { %v7658_v61 = vmul.f32 %v998_v44, %v7355_v31  ;;  %v7665_v4 = vpop.f32.mrf.mxu0  ;;  %v7674_v44 = vshll.u32 %v7614_v53, 16  ;;  %v772_v31 = vadd.f32 1.0, %v6602_v58  ;;  %v730_v50 = vmul.f32 1.442695, %v676_v43  ;;  %6047 = vmatprep.subr.bf16.mxu0 %v10295_v6  ;;  %v7686_v58 = vpop.permute.xlu1 %1130 }
 0x166   :  { %vm1195_vm10 = vcmp.eq.s32.totalorder %v7638_v60, 1  ;;  %v1227_v18 = vsel %vm10197_vm7, %v7570_v7, 0.0  ;;  %v933_v26 = vsub.f32 1.0, %v900_v8  ;;  %v1941_v46 = vsel %vm1926_vm4, %v7588_v42, %v7660_v2  ;;  %v6604_v21 = vpop.eup %6603  ;;  %10297 = vst [vmem:[#allocation26_spill] sm:$0xff] %v7686_v58  ;;  %6048 = vmatpush3.bf16.msra.mxu0 %v6492_v10 }
 0x167   :  { %10296 = vst [vmem:[#allocation25_spill] sm:$0xff] %v7658_v61  ;;  %v5716_v52 = vpop.f32.mrf.mxu0  ;;  %v1226_v43 = vsel %vm10198_vm8, %v7567_v63, 0.0  ;;  %v805_v41 = vmul.f32 %v772_v31, %v772_v31  ;;  %6613 = vpow2.f32 %v730_v50  ;;  %5910 = vmatmul.mubr.bf16.gmra.mxu0 %v1941_v46  ;;  %v732_v7 = vmul.f32 1.442695, %v677_v45  ;;  %v6493_v46 = vld [vmem:[%s10180_s4 + $0x108] sm:$0xff]   ;;  %6049 = vmatprep.subr.bf16.mxu0 %v10295_v6 }
 0x168   :  { %v999_v8 = vsel %vm966_vm12, 1.0, %v933_v26  ;;  %v901_v30 = vmul.f32 2.0, %v6604_v21  ;;  %v10299_v42 = vrot.slane %v7614_v53, 3  ;;  %v7700_v19 = vadd.f32 %v7286_v22, %v7590_v48  ;;  %5913 = vmatprep.mubr.msk.bf16.mxu0 %vm6798_vm0, %v10295_v6 }
 0x169   :  { %v7704_v31 = vpop.f32.mrf.mxu0  ;;  %vm10215_vm12 = vcmp.eq.s32.totalorder %v7686_v58, 1  ;;  %vm10216_vm7 = vcmp.eq.s32.totalorder %v7691_v23, 1  ;;  %v7711_v21 = vpack.c.bf16 %v1227_v18, %v1226_v43  ;;  %vm968_vm8 = vcmp.gt.f32.partialorder %v7401_v29, 20.0 }
 0x16a   :  { %v1323_v52 = vsel %vm1314_vm11, %v1320_v33, %v10299_v42  ;;  %v838_v48 = vadd.f32 1.0, %v805_v41  ;;  %v1942_v33 = vrot.slane %v7671_v17, 3  ;;  %v6606_v45 = vpop.eup %6605  ;;  %v1229_v10 = vsel %vm10230_vm13, %v7658_v61, 0.0  ;;  %6050 = vmatpush3.bf16.msra.mxu0 %v6493_v46 }
 0x16b   :  { %10300 = vst [vmem:[#allocation28_spill] sm:$0xff] %v7711_v21  ;;  %v934_v50 = vsub.f32 1.0, %v901_v30  ;;  %6615 = vpow2.f32 %v732_v7  ;;  %v678_v26 = vmin.f32 %v7700_v19, 20.0  ;;  %v5719_v42 = vpop.f32.mrf.mxu0  ;;  %v6608_v63 = vpop.eup %6607  ;;  %v7721_v18 = vmul.f32 %v999_v8, %v7366_v34  ;;  %5762 = vmatmul.mubr.bf16.gmra.mxu1 %v1323_v52  ;;  %v6495_v8 = vld [vmem:[%s10180_s4 + $0x100] sm:$0xff]   ;;  %6051 = vmatprep.subr.bf16.mxu0 %v10295_v6 }
 0x16c   :  { %v902_v43 = vmul.f32 2.0, %v6606_v45  ;;  %vm969_vm1 = vcmp.gt.f32.partialorder %v7437_v5, 20.0  ;;  %6617 = vrcp.f32 %v838_v48  ;;  %v1943_v41 = vrot.slane %v7674_v44, 4  ;;  %5765 = vmatprep.mubr.msk.bf16.mxu1 %vm6798_vm0, %v10295_v6 }
 0x16d   :  { %10301 = vst [vmem:[#allocation29_spill] sm:$0xff] %v7721_v18  ;;  %v1000_v37 = vsel %vm967_vm2, 1.0, %v934_v50  ;;  %v773_v61 = vadd.f32 1.0, %v6608_v63  ;;  %v734_v30 = vmul.f32 1.442695, %v678_v26  ;;  %v7729_v7 = vadd.f32 %v7286_v22, %v7626_v15  ;;  %v7733_v34 = vpop.f32.mrf.mxu0 }
 0x16e   :  { %v7739_v52 = vmul.f32 %v1000_v37, %v7389_v12  ;;  %v935_v48 = vsub.f32 1.0, %v902_v43  ;;  %v7741_v63 = vor.u32 %v1943_v41, %v1942_v33  ;;  %v6610_v22 = vpop.eup %6609  ;;  %v7746_v15 = vshrl.u32 %v7711_v21, 16  ;;  %v7756_v41 = vpop.permute.xlu1 %1136  ;;  %6052 = vmatpush3.bf16.msra.mxu0 %v6495_v8 }
 0x16f   :  { %v806_v50 = vmul.f32 %v773_v61, %v773_v61  ;;  %6619 = vpow2.f32 %v734_v30  ;;  %v679_v46 = vmin.f32 %v7729_v7, 20.0  ;;  %v5720_v26 = vpop.f32.mrf.mxu0  ;;  %v6612_v42 = vpop.eup %6611  ;;  %v1228_v12 = vsel %vm1195_vm10, %v7649_v40, 0.0  ;;  %10304 = vst [vmem:[#allocation32_spill] sm:$0xff] %v7756_v41  ;;  %6189 = vmatprep.subr.bf16.mxu0 %v10295_v6 }
 0x170   :  { %10302 = vst [vmem:[#allocation30_spill] sm:$0xff] %v7739_v52  ;;  %10303 = vst [vmem:[#allocation31_spill] sm:$0xff] %v7746_v15  ;;  %v1001_v33 = vsel %vm968_vm8, 1.0, %v935_v48  ;;  %v774_v43 = vadd.f32 1.0, %v6610_v22  ;;  %v7759_v61 = vshll.u32 %v7711_v21, 16  ;;  %v7761_v30 = vpack.c.bf16 %v1229_v10, %v1228_v12  ;;  %v7784_v12 = vpop.permute.xlu0 %1133 }
 0x171   :  { %v903_v26 = vmul.f32 2.0, %v6612_v42  ;;  %v839_v45 = vadd.f32 1.0, %v806_v50  ;;  %v7763_v25 = vpop.f32.mrf.mxu0  ;;  %vm10214_vm2 = vcmp.eq.s32.totalorder %v7756_v41, 1  ;;  %v1945_v48 = vsel %vm1926_vm4, %v7660_v2, %v7741_v63  ;;  %10310 = vst [vmem:[#allocation36_spill] sm:$0xff] %v7784_v12 }
 0x172   :  { %10305 = vst [vmem:[#allocation33_spill] sm:$0xff] %v7759_v61  ;;  %10306 = vst [vmem:[#allocation34_spill] sm:$0xff] %v7761_v30  ;;  %v807_v40 = vmul.f32 %v774_v43, %v774_v43  ;;  %v736_v22 = vmul.f32 1.442695, %v679_v46  ;;  %v10307_v37 = vrot.slane %v7711_v21, 3  ;;  %v10308_v60 = vrot.slane %v7614_v53, 3  ;;  %5914 = vmatmul.mubr.bf16.gmra.mxu0 %v1945_v48 }
 0x173   :  { %v1230_v8 = vsel %vm10216_vm7, %v7721_v18, 0.0  ;;  %v1231_v50 = vsel %vm10215_vm12, %v7739_v52, 0.0  ;;  %v7782_v42 = vmul.f32 %v1001_v33, %v7401_v29  ;;  %v936_v2 = vsub.f32 1.0, %v903_v26  ;;  %v5723_v46 = vpop.f32.mrf.mxu0  ;;  %5917 = vmatprep.mubr.msk.bf16.mxu0 %vm6798_vm0, %v10295_v6 }
 0x174   :  { %v1325_v10 = vsel %vm1314_vm11, %v10308_v60, %v10307_v37  ;;  %6621 = vrcp.f32 %v839_v45  ;;  %v840_v60 = vadd.f32 1.0, %v807_v40  ;;  %v7789_v37 = vld [vmem:[%s10179_s3] ss:$0 sm:$0xff]  ;;  %v1946_v29 = vrot.slane %v7746_v15, 3  ;;  %v6614_v33 = vpop.eup %6613 }
 0x175   :  { %10309 = vst [vmem:[#allocation35_spill] sm:$0xff] %v7782_v42  ;;  %5766 = vmatmul.mubr.bf16.gmra.mxu1 %v1325_v10  ;;  %v7793_v43 = vadd.f32 %v7789_v37, %v7665_v4  ;;  %vm10225_vm8 = vcmp.eq.s32.totalorder %v7784_v12, 1  ;;  %v1002_v40 = vsel %vm969_vm1, 1.0, %v936_v2  ;;  %6623 = vpow2.f32 %v736_v22  ;;  %v7808_v4 = vpop.f32.mrf.mxu0 }
 0x176   :  { %v1947_v45 = vrot.slane %v7759_v61, 4  ;;  %v7804_v26 = vadd.f32 %v7789_v37, %v7704_v31  ;;  %5769 = vmatprep.mubr.msk.bf16.mxu1 %vm6798_vm0, %v10295_v6  ;;  %v7811_v48 = vmul.f32 %v1002_v40, %v7437_v5  ;;  %6625 = vrcp.f32 %v840_v60 }
 0x177   :  { %v775_v10 = vadd.f32 1.0, %v6614_v33  ;;  %v680_v46 = vmin.f32 %v7793_v43, 20.0  ;;  %v7814_v2 = vpack.c.bf16 %v1231_v50, %v1230_v8  ;;  %vm970_vm1 = vcmp.gt.f32.partialorder %v7483_v14, 20.0  ;;  %v5724_v53 = vpop.f32.mrf.mxu0 }
 0x178   :  { %10311 = vst [vmem:[#allocation37_spill] sm:$0xff] %v7811_v48  ;;  %v1948_v22 = vor.u32 %v1947_v45, %v1946_v29  ;;  %v681_v31 = vmin.f32 %v7804_v26, 20.0  ;;  %v6616_v18 = vpop.eup %6615  ;;  %v7819_v52 = vshrl.u32 %v7761_v30, 16  ;;  %v7824_v58 = vshll.u32 %v7761_v30, 16 }
 0x179   :  { %10312 = vst [vmem:[#allocation38_spill] sm:$0xff] %v7814_v2  ;;  %v808_v40 = vmul.f32 %v775_v10, %v775_v10  ;;  %v738_v60 = vmul.f32 1.442695, %v680_v46  ;;  %v6618_v33 = vpop.eup %6617  ;;  %v776_v8 = vadd.f32 1.0, %v6616_v18  ;;  %v7828_v45 = vpop.f32.mrf.mxu0  ;;  %v1326_v51 = vrot.slane %v7761_v30, 3 }
 0x17a   :  { %10313 = vst [vmem:[#allocation39_spill] sm:$0xff] %v7819_v52  ;;  %10314 = vst [vmem:[#allocation40_spill] sm:$0xff] %v7824_v58  ;;  %v1949_v50 = vsel %vm1926_vm4, %v7741_v63, %v1948_v22  ;;  %v740_v29 = vmul.f32 1.442695, %v681_v31  ;;  %v904_v53 = vmul.f32 2.0, %v6618_v33  ;;  %v7832_v5 = vshrl.u32 %v7814_v2, 16  ;;  %v7837_v31 = vpop.permute.xlu0 %1139 }
 0x17b   :  { %v841_v23 = vadd.f32 1.0, %v808_v40  ;;  %6627 = vpow2.f32 %v738_v60  ;;  %v1233_v10 = vsel %vm10214_vm2, %v7811_v48, 0.0  ;;  %v809_v46 = vmul.f32 %v776_v8, %v776_v8  ;;  %5918 = vmatmul.mubr.bf16.gmra.mxu0 %v1949_v50  ;;  %v5727_v18 = vpop.f32.mrf.mxu0  ;;  %10316 = vst [vmem:[#allocation42_spill] sm:$0xff] %v7837_v31 }
 0x17c   :  { %10315 = vst [vmem:[#allocation41_spill] sm:$0xff] %v7832_v5  ;;  %6629 = vpow2.f32 %v740_v29  ;;  %v6620_v63 = vpop.eup %6619  ;;  %v937_v61 = vsub.f32 1.0, %v904_v53  ;;  %v10317_v40 = vrot.slane %v7711_v21, 3  ;;  %v7844_v33 = vadd.f32 %v7789_v37, %v7733_v34  ;;  %5921 = vmatprep.mubr.msk.bf16.mxu0 %vm6798_vm0, %v10295_v6 }
 0x17d   :  { %6631 = vrcp.f32 %v841_v23  ;;  %vm10236_vm2 = vcmp.eq.s32.totalorder %v7837_v31, 1  ;;  %vm971_vm12 = vcmp.gt.f32.partialorder %v7532_v13, 20.0  ;;  %v842_v8 = vadd.f32 1.0, %v809_v46  ;;  %v7852_v53 = vpop.f32.mrf.mxu0 }
 0x17e   :  { %v1327_v60 = vsel %vm1314_vm11, %v10317_v40, %v1326_v51  ;;  %v777_v50 = vadd.f32 1.0, %v6620_v63  ;;  %v1950_v23 = vrot.slane %v7819_v52, 3  ;;  %v1951_v29 = vrot.slane %v7824_v58, 4  ;;  %v7866_v63 = vpop.permute.xlu1 %1142 }
 0x17f   :  { %5770 = vmatmul.mubr.bf16.gmra.mxu1 %v1327_v60  ;;  %v1232_v34 = vsel %vm10225_vm8, %v7782_v42, 0.0  ;;  %v1003_v18 = vsel %vm970_vm1, 1.0, %v937_v61  ;;  %v682_v40 = vmin.f32 %v7844_v33, 20.0  ;;  %v7862_v46 = vadd.f32 %v7789_v37, %v7763_v25  ;;  %10318 = vst [vmem:[#allocation43_spill] sm:$0xff] %v7866_v63  ;;  %v5728_v61 = vpop.f32.mrf.mxu0 }
 0x180   :  { %5773 = vmatprep.mubr.msk.bf16.mxu1 %vm6798_vm0, %v10295_v6  ;;  %v7868_v60 = vpack.c.bf16 %v1233_v10, %v1232_v34  ;;  %vm972_vm7 = vcmp.gt.f32.partialorder %v7581_v54, 20.0  ;;  %6633 = vrcp.f32 %v842_v8  ;;  %v810_v30 = vmul.f32 %v777_v50, %v777_v50 }
 0x181   :  { %v7871_v21 = vor.u32 %v1951_v29, %v1950_v23  ;;  %vm10235_vm1 = vcmp.eq.s32.totalorder %v7866_v63, 1  ;;  %v7875_v42 = vshll.u32 %v7814_v2, 16  ;;  %v742_v25 = vmul.f32 1.442695, %v682_v40  ;;  %v6622_v12 = vpop.eup %6621  ;;  %v7888_v23 = vpop.f32.mrf.mxu0 }
 0x182   :  { %10319 = vst [vmem:[#allocation44_spill] sm:$0xff] %v7868_v60  ;;  %v683_v48 = vmin.f32 %v7862_v46, 20.0  ;;  %v7880_v10 = vmul.f32 %v1003_v18, %v7483_v14  ;;  %v843_v34 = vadd.f32 1.0, %v810_v30  ;;  %v7886_v50 = vadd.f32 %v7789_v37, %v7808_v4  ;;  %v6624_v29 = vpop.eup %6623  ;;  %v7890_v40 = vpop.permute.xlu0 %1145 }
 0x183   :  { %10320 = vst [vmem:[#allocation45_spill] sm:$0xff] %v7875_v42  ;;  %v1953_v8 = vsel %vm1926_vm4, %v1948_v22, %v7871_v21  ;;  %10322 = vst [vmem:[#allocation47_spill] sm:$0xff] %v7890_v40  ;;  %v905_v61 = vmul.f32 2.0, %v6622_v12  ;;  %6635 = vpow2.f32 %v742_v25  ;;  %v10323_v58 = vrot.slane %v7814_v2, 3  ;;  %v6626_v30 = vpop.eup %6625  ;;  %v5731_v52 = vpop.f32.mrf.mxu0 }
 0x184   :  { %10321 = vst [vmem:[#allocation46_spill] sm:$0xff] %v7880_v10  ;;  %v744_v41 = vmul.f32 1.442695, %v683_v48  ;;  %vm10237_vm8 = vcmp.eq.s32.totalorder %v7890_v40, 1  ;;  %v7897_v22 = vshrl.u32 %v7868_v60, 16  ;;  %6637 = vrcp.f32 %v843_v34  ;;  %5922 = vmatmul.mubr.bf16.gmra.mxu0 %v1953_v8 }
 0x185   :  { %v1329_v14 = vsel %vm1314_vm11, %v1326_v51, %v10323_v58  ;;  %v778_v4 = vadd.f32 1.0, %v6624_v29  ;;  %v684_v18 = vmin.f32 %v7886_v50, 20.0  ;;  %v938_v15 = vsub.f32 1.0, %v905_v61  ;;  %5925 = vmatprep.mubr.msk.bf16.mxu0 %vm6798_vm0, %v10295_v6  ;;  %v652_v52 = vpop.f32.mrf.mxu0 }
 0x186   :  { %10324 = vst [vmem:[#allocation48_spill] sm:$0xff] %v7897_v22  ;;  %v906_v12 = vmul.f32 2.0, %v6626_v30  ;;  %6639 = vpow2.f32 %v744_v41  ;;  %v1954_v51 = vrot.slane %v7832_v5, 3  ;;  %vm973_vm13 = vcmp.gt.f32.partialorder %v7634_v38, 20.0  ;;  %v7917_v30 = vpop.permute.xlu1 %1148 }
 0x187   :  { %v811_v58 = vmul.f32 %v778_v4, %v778_v4  ;;  %5774 = vmatmul.mubr.bf16.gmra.mxu1 %v1329_v14  ;;  %v746_v48 = vmul.f32 1.442695, %v684_v18  ;;  %v1955_v25 = vrot.slane %v7875_v42, 4  ;;  %v7907_v34 = vadd.f32 %v7789_v37, %v7828_v45  ;;  %10325 = vst [vmem:[#allocation49_spill] sm:$0xff] %v7917_v30  ;;  %v5732_v52 = vpop.f32.mrf.mxu0 }
 0x188   :  { %v1234_v41 = vsel %vm10236_vm2, %v7880_v10, 0.0  ;;  %v1004_v8 = vsel %vm971_vm12, 1.0, %v938_v15  ;;  %v939_v29 = vsub.f32 1.0, %v906_v12  ;;  %5777 = vmatprep.mubr.msk.bf16.mxu1 %vm6798_vm0, %v10295_v6  ;;  %v6628_v14 = vpop.eup %6627  ;;  %vm1204_vm12 = vcmp.eq.s32.totalorder %v7917_v30, 1 }
 0x189   :  { %v7920_v45 = vmul.f32 %v1004_v8, %v7532_v13  ;;  %v844_v4 = vadd.f32 1.0, %v811_v58  ;;  %6641 = vpow2.f32 %v746_v48  ;;  %v7922_v18 = vor.u32 %v1955_v25, %v1954_v51  ;;  %v6630_v31 = vpop.eup %6629 }
 0x18a   :  { %v1005_v15 = vsel %vm972_vm7, 1.0, %v939_v29  ;;  %v779_v12 = vadd.f32 1.0, %v6628_v14  ;;  %v685_v61 = vmin.f32 %v7907_v34, 20.0  ;;  %v7930_v42 = vadd.f32 %v7789_v37, %v7852_v53  ;;  %v6632_v13 = vpop.eup %6631 }
 0x18b   :  { %10326 = vst [vmem:[#allocation50_spill] sm:$0xff] %v7920_v45  ;;  %v1235_v51 = vsel %vm10235_vm1, %v7920_v45, 0.0  ;;  %v7938_v48 = vmul.f32 %v1005_v15, %v7581_v54  ;;  %6643 = vrcp.f32 %v844_v4  ;;  %v907_v8 = vmul.f32 2.0, %v6632_v13  ;;  %v7951_v4 = vpop.permute.xlu0 %1151 }
 0x18c   :  { %v7940_v25 = vpack.c.bf16 %v1235_v51, %v1234_v41  ;;  %v812_v29 = vmul.f32 %v779_v12, %v779_v12  ;;  %v780_v14 = vadd.f32 1.0, %v6630_v31  ;;  %vm974_vm7 = vcmp.gt.f32.partialorder %v7646_v39, 20.0  ;;  %v7964_v51 = vpop.permute.xlu1 %1154 }
 0x18d   :  { %v1957_v53 = vsel %vm1926_vm4, %v7871_v21, %v7922_v18  ;;  %v748_v52 = vmul.f32 1.442695, %v685_v61  ;;  %v10328_v63 = vrot.slane %v7868_v60, 3  ;;  %v10329_v58 = vrot.slane %v7814_v2, 3  ;;  %v6634_v15 = vpop.eup %6633 }
 0x18e   :  { %10327 = vst [vmem:[#allocation51_spill] sm:$0xff] %v7940_v25  ;;  %v7954_v41 = vshll.u32 %v7868_v60, 16  ;;  %v1236_v31 = vsel %vm10237_vm8, %v7938_v48, 0.0  ;;  %v940_v12 = vsub.f32 1.0, %v907_v8  ;;  %vm975_vm1 = vcmp.gt.f32.partialorder %v7700_v19, 20.0  ;;  %5926 = vmatmul.mubr.bf16.gmra.mxu0 %v1957_v53 }
 0x18f   :  { %v1331_v54 = vsel %vm1314_vm11, %v10329_v58, %v10328_v63  ;;  %v845_v21 = vadd.f32 1.0, %v812_v29  ;;  %vm1205_vm2 = vcmp.eq.s32.totalorder %v7951_v4, 1  ;;  %v908_v61 = vmul.f32 2.0, %v6634_v15  ;;  %5929 = vmatprep.mubr.msk.bf16.mxu0 %vm6798_vm0, %v10295_v6 }
 0x190   :  { %10330 = vst [vmem:[#allocation52_spill] sm:$0xff] %v7954_v41  ;;  %v813_v13 = vmul.f32 %v780_v14, %v780_v14  ;;  %6645 = vpow2.f32 %v748_v52  ;;  %5778 = vmatmul.mubr.bf16.gmra.mxu1 %v1331_v54  ;;  %v686_v63 = vmin.f32 %v7930_v42, 20.0  ;;  %v7967_v58 = vshrl.u32 %v7940_v25, 16  ;;  %v6636_v14 = vpop.eup %6635 }
 0x191   :  { %v1006_v8 = vsel %vm973_vm13, 1.0, %v940_v12  ;;  %6647 = vrcp.f32 %v845_v21  ;;  %v1958_v29 = vrot.slane %v7897_v22, 3  ;;  %5781 = vmatprep.mubr.msk.bf16.mxu1 %vm6798_vm0, %v10295_v6  ;;  %vm10252_vm8 = vcmp.eq.s32.totalorder %v7964_v51, 1  ;;  %v6638_v2 = vpop.eup %6637 }
 0x192   :  { %v7976_v53 = vmul.f32 %v1006_v8, %v7634_v38  ;;  %v941_v52 = vsub.f32 1.0, %v908_v61  ;;  %v846_v54 = vadd.f32 1.0, %v813_v13  ;;  %v750_v15 = vmul.f32 1.442695, %v686_v63 }
 0x193   :  { %v781_v40 = vadd.f32 1.0, %v6636_v14  ;;  %v1959_v10 = vrot.slane %v7954_v41, 4  ;;  %v7981_v12 = vadd.f32 %v7789_v37, %v7888_v23  ;;  %v1332_v21 = vrot.slane %v7940_v25, 3  ;;  %v6640_v45 = vpop.eup %6639 }
 0x194   :  { %v1237_v22 = vsel %vm1204_vm12, %v7976_v53, 0.0  ;;  %v1007_v61 = vsel %vm974_vm7, 1.0, %v941_v52  ;;  %v909_v13 = vmul.f32 2.0, %v6638_v2  ;;  %6649 = vrcp.f32 %v846_v54 }
 0x195   :  { %v7991_v63 = vpack.c.bf16 %v1237_v22, %v1236_v31  ;;  %v7994_v8 = vmul.f32 %v1007_v61, %v7646_v39  ;;  %v814_v37 = vmul.f32 %v781_v40, %v781_v40  ;;  %v782_v14 = vadd.f32 1.0, %v6640_v45 }
 0x196   :  { %v942_v23 = vsub.f32 1.0, %v909_v13  ;;  %6651 = vpow2.f32 %v750_v15  ;;  %v1960_v41 = vor.u32 %v1959_v10, %v1958_v29  ;;  %v6642_v30 = vpop.eup %6641  ;;  %v7997_v5 = vshll.u32 %v7940_v25, 16  ;;  %v8042_v25 = vpop.permute.xlu0 %1157 }
 0x197   :  { %10331 = vst [vmem:[#allocation53_spill] sm:$0xff] %v7991_v63  ;;  %10332 = vst [vmem:[#allocation54_spill] sm:$0xff] %v7994_v8  ;;  %v8000_v38 = vshrl.u32 %v7991_v63, 16  ;;  %v8003_v2 = vshll.u32 %v7991_v63, 16  ;;  %v847_v22 = vadd.f32 1.0, %v814_v37  ;;  %v815_v31 = vmul.f32 %v782_v14, %v782_v14 }
 0x198   :  { %v1008_v39 = vsel %vm975_vm1, 1.0, %v942_v23  ;;  %v783_v40 = vadd.f32 1.0, %v6642_v30  ;;  %v1961_v45 = vsel %vm1926_vm4, %v7922_v18, %v1960_v41  ;;  %v6644_v10 = vpop.eup %6643  ;;  %v1238_v29 = vsel %vm1205_vm2, %v7994_v8, 0.0  ;;  %10337 = vst [vmem:[#allocation58_spill] sm:$0xff] %v8042_v25 }
 0x199   :  { %v8013_v52 = vmul.f32 %v1008_v39, %v7700_v19  ;;  %6653 = vrcp.f32 %v847_v22  ;;  %5930 = vmatmul.mubr.bf16.gmra.mxu0 %v1961_v45  ;;  %v687_v54 = vmin.f32 %v7981_v12, 20.0  ;;  %v910_v15 = vmul.f32 2.0, %v6644_v10 }
 0x19a   :  { %v848_v61 = vadd.f32 1.0, %v815_v31  ;;  %v816_v13 = vmul.f32 %v783_v40, %v783_v40  ;;  %v10334_v30 = vrot.slane %v7868_v60, 3  ;;  %5933 = vmatprep.mubr.msk.bf16.mxu0 %vm6798_vm0, %v10295_v6  ;;  %v1962_v14 = vrot.slane %v7967_v58, 3 }
 0x19b   :  { %10333 = vst [vmem:[#allocation55_spill] sm:$0xff] %v8013_v52  ;;  %v1239_v18 = vsel %vm10252_vm8, %v8013_v52, 0.0  ;;  %v752_v23 = vmul.f32 1.442695, %v687_v54  ;;  %v943_v39 = vsub.f32 1.0, %v910_v15  ;;  %vm976_vm13 = vcmp.gt.f32.partialorder %v7729_v7, 20.0 }
 0x19c   :  { %v1333_v37 = vsel %vm1314_vm11, %v10334_v30, %v1332_v21  ;;  %v8027_v22 = vpack.c.bf16 %v1239_v18, %v1238_v29  ;;  %6655 = vrcp.f32 %v848_v61  ;;  %v849_v31 = vadd.f32 1.0, %v816_v13 }
 0x19d   :  { %5782 = vmatmul.mubr.bf16.gmra.mxu1 %v1333_v37  ;;  %v6646_v40 = vpop.eup %6645  ;;  %6657 = vpow2.f32 %v752_v23  ;;  %v1963_v45 = vrot.slane %v7997_v5, 4  ;;  %v1334_v10 = vrot.slane %v7991_v63, 3  ;;  %v1009_v30 = vsel %vm976_vm13, 1.0, %v943_v39  ;;  %v8040_v23 = vpop.permute.xlu1 %1160 }
 0x19e   :  { %10335 = vst [vmem:[#allocation56_spill] sm:$0xff] %v8027_v22  ;;  %5785 = vmatprep.mubr.msk.bf16.mxu1 %vm6798_vm0, %v10295_v6  ;;  %v6648_v54 = vpop.eup %6647  ;;  %6659 = vrcp.f32 %v849_v31  ;;  %v784_v29 = vadd.f32 1.0, %v6646_v40  ;;  %v1966_v15 = vrot.slane %v8000_v38, 3  ;;  %v8036_v61 = vshrl.u32 %v8027_v22, 16  ;;  %10336 = vst [vmem:[#allocation57_spill] sm:$0xff] %v8040_v23 }
 0x19f   :  { %v911_v37 = vmul.f32 2.0, %v6648_v54  ;;  %v1964_v18 = vor.u32 %v1963_v45, %v1962_v14  ;;  %v1335_v13 = vsel %vm1314_vm11, %v1332_v21, %v1334_v10  ;;  %v1967_v19 = vrot.slane %v8003_v2, 4 }
 0x1a0   :  { %v8045_v63 = vmul.f32 %v1009_v30, %v7729_v7  ;;  %v817_v31 = vmul.f32 %v784_v29, %v784_v29  ;;  %vm10258_vm1 = vcmp.eq.s32.totalorder %v8040_v23, 1  ;;  %vm10259_vm7 = vcmp.eq.s32.totalorder %v8042_v25, 1  ;;  %v8080_v23 = vpop.permute.xlu0 %1163 }
 0x1a1   :  { %v944_v39 = vsub.f32 1.0, %v911_v37  ;;  %v1965_v14 = vsel %vm1926_vm4, %v1960_v41, %v1964_v18  ;;  %v6650_v40 = vpop.eup %6649  ;;  %v8051_v21 = vshll.u32 %v8027_v22, 16  ;;  %vm977_vm13 = vcmp.gt.f32.partialorder %v7793_v43, 20.0  ;;  %10340 = vst [vmem:[#allocation61_spill] sm:$0xff] %v8080_v23 }
 0x1a2   :  { %5934 = vmatmul.mubr.bf16.gmra.mxu0 %v1965_v14  ;;  %v912_v60 = vmul.f32 2.0, %v6650_v40  ;;  %v850_v7 = vadd.f32 1.0, %v817_v31  ;;  %v1968_v41 = vor.u32 %v1967_v19, %v1966_v15  ;;  %vm978_vm8 = vcmp.gt.f32.partialorder %v7804_v26, 20.0 }
 0x1a3   :  { %v6652_v45 = vpop.eup %6651  ;;  %v1010_v54 = vsel %vm977_vm13, 1.0, %v944_v39  ;;  %5937 = vmatprep.mubr.msk.bf16.mxu0 %vm6798_vm0, %v10295_v6  ;;  %v1336_v29 = vrot.slane %v8027_v22, 3  ;;  %v1240_v39 = vsel %vm10259_vm7, %v8045_v63, 0.0  ;;  %v1970_v31 = vrot.slane %v8036_v61, 3 }
 0x1a4   :  { %v8057_v30 = vmul.f32 %v1010_v54, %v7793_v43  ;;  %v785_v37 = vadd.f32 1.0, %v6652_v45  ;;  %6661 = vrcp.f32 %v850_v7  ;;  %v1971_v40 = vrot.slane %v8051_v21, 4  ;;  %v8076_v7 = vpop.permute.xlu1 %1166 }
 0x1a5   :  { %5786 = vmatmul.mubr.bf16.gmra.mxu1 %v1335_v13  ;;  %v945_v13 = vsub.f32 1.0, %v912_v60  ;;  %v1969_v60 = vsel %vm1926_vm4, %v1964_v18, %v1968_v41  ;;  %10339 = vst [vmem:[#allocation60_spill] sm:$0xff] %v8076_v7  ;;  %v1337_v8 = vsel %vm1314_vm11, %v1334_v10, %v1336_v29  ;;  %vm10267_vm13 = vcmp.eq.s32.totalorder %v8076_v7, 1 }
 0x1a6   :  { %5789 = vmatprep.mubr.msk.bf16.mxu1 %vm6798_vm0, %v10295_v6  ;;  %v6654_v19 = vpop.eup %6653  ;;  %v1241_v43 = vsel %vm10258_vm1, %v8057_v30, 0.0  ;;  %v818_v14 = vmul.f32 %v785_v37, %v785_v37  ;;  %vm979_vm1 = vcmp.gt.f32.partialorder %v7844_v33, 20.0  ;;  %vm981_vm7 = vcmp.gt.f32.partialorder %v7886_v50, 20.0 }
 0x1a7   :  { %v8073_v45 = vpack.c.bf16 %v1241_v43, %v1240_v39  ;;  %v1011_v54 = vsel %vm978_vm8, 1.0, %v945_v13  ;;  %v913_v22 = vmul.f32 2.0, %v6654_v19  ;;  %vm1209_vm8 = vcmp.eq.s32.totalorder %v8080_v23, 1 }
 0x1a8   :  { %v851_v25 = vadd.f32 1.0, %v818_v14  ;;  %v8083_v37 = vmul.f32 %v1011_v54, %v7804_v26  ;;  %v1972_v26 = vor.u32 %v1971_v40, %v1970_v31  ;;  %v8117_v23 = vpop.permute.xlu1 %1172  ;;  %v1589_v59 = vrot.slane %v7597_v16, 2 }
 0x1a9   :  { %10338 = vst [vmem:[#allocation59_spill] sm:$0xff] %v8073_v45  ;;  %v6656_v52 = vpop.eup %6655  ;;  %v946_v15 = vsub.f32 1.0, %v913_v22  ;;  %v8088_v10 = vshrl.u32 %v8073_v45, 16  ;;  %v8091_v19 = vshll.u32 %v8073_v45, 16  ;;  %10342 = vst [vmem:[#allocation63_spill] sm:$0xff] %v8117_v23  ;;  %v1592_v20 = vrot.slane %v7600_v0, 3 }
 0x1aa   :  { %v6658_v39 = vpop.eup %6657  ;;  %v914_v18 = vmul.f32 2.0, %v6656_v52  ;;  %6663 = vrcp.f32 %v851_v25  ;;  %5938 = vmatmul.mubr.bf16.gmra.mxu0 %v1969_v60  ;;  %v1338_v25 = vrot.slane %v8073_v45, 3  ;;  %v1242_v54 = vsel %vm1209_vm8, %v8083_v37, 0.0 }
 0x1ab   :  { %v6660_v13 = vpop.eup %6659  ;;  %v1012_v43 = vsel %vm979_vm1, 1.0, %v946_v15  ;;  %5941 = vmatprep.mubr.msk.bf16.mxu0 %vm6798_vm0, %v10295_v6  ;;  %vm980_vm1 = vcmp.gt.f32.partialorder %v7862_v46, 20.0 }
 0x1ac   :  { %v8096_v22 = vmul.f32 %v1012_v43, %v7844_v33  ;;  %v947_v14 = vsub.f32 1.0, %v914_v18  ;;  %v915_v52 = vmul.f32 2.0, %v6660_v13  ;;  %v1973_v18 = vsel %vm1926_vm4, %v1968_v41, %v1972_v26 }
 0x1ad   :  { %5790 = vmatmul.mubr.bf16.gmra.mxu1 %v1337_v8  ;;  %v786_v8 = vadd.f32 1.0, %v6658_v39  ;;  %v1974_v13 = vrot.slane %v8088_v10, 3  ;;  %v1975_v43 = vrot.slane %v8091_v19, 4  ;;  %v1339_v39 = vsel %vm1314_vm11, %v1336_v29, %v1338_v25  ;;  %v8132_v29 = vpop.permute.xlu0 %1169 }
 0x1ae   :  { %5793 = vmatprep.mubr.msk.bf16.mxu1 %vm6798_vm0, %v10295_v6  ;;  %v1243_v33 = vsel %vm10267_vm13, %v8096_v22, 0.0  ;;  %v1013_v15 = vsel %vm980_vm1, 1.0, %v947_v14  ;;  %v948_v40 = vsub.f32 1.0, %v915_v52  ;;  %vm10263_vm1 = vcmp.eq.s32.totalorder %v8117_v23, 1 }
 0x1af   :  { %v8111_v60 = vpack.c.bf16 %v1243_v33, %v1242_v54  ;;  %v8120_v7 = vmul.f32 %v1013_v15, %v7862_v46  ;;  %v819_v54 = vmul.f32 %v786_v8, %v786_v8  ;;  %v1976_v33 = vor.u32 %v1975_v43, %v1974_v13 }
 0x1b0   :  { %v1014_v45 = vsel %vm981_vm7, 1.0, %v948_v40  ;;  %vm10269_vm7 = vcmp.eq.s32.totalorder %v8132_v29, 1  ;;  %vm983_vm13 = vcmp.gt.f32.partialorder %v7930_v42, 20.0 }
 0x1b1   :  { %10341 = vst [vmem:[#allocation62_spill] sm:$0xff] %v8111_v60  ;;  %10343 = vst [vmem:[#allocation64_spill] sm:$0xff] %v8120_v7  ;;  %v8123_v31 = vmul.f32 %v1014_v45, %v7886_v50  ;;  %v6662_v14 = vpop.eup %6661  ;;  %v8127_v41 = vshrl.u32 %v8111_v60, 16  ;;  %v8130_v52 = vshll.u32 %v8111_v60, 16  ;;  %v1340_v8 = vrot.slane %v8111_v60, 3 }
 0x1b2   :  { %5942 = vmatmul.mubr.bf16.gmra.mxu0 %v1973_v18  ;;  %v916_v45 = vmul.f32 2.0, %v6662_v14  ;;  %v1244_v15 = vsel %vm10269_vm7, %v8120_v7, 0.0  ;;  %v1977_v50 = vsel %vm1926_vm4, %v1972_v26, %v1976_v33 }
 0x1b3   :  { %10344 = vst [vmem:[#allocation65_spill] sm:$0xff] %v8123_v31  ;;  %v1245_v46 = vsel %vm10263_vm1, %v8123_v31, 0.0  ;;  %5945 = vmatprep.mubr.msk.bf16.mxu0 %vm6798_vm0, %v10295_v6  ;;  %vm982_vm1 = vcmp.gt.f32.partialorder %v7907_v34, 20.0  ;;  %v1978_v14 = vrot.slane %v8127_v41, 3  ;;  %v1979_v13 = vrot.slane %v8130_v52, 4 }
 0x1b4   :  { %v949_v40 = vsub.f32 1.0, %v916_v45  ;;  %v8149_v18 = vpack.c.bf16 %v1245_v46, %v1244_v15  ;;  %v1341_v60 = vsel %vm1314_vm11, %v1338_v25, %v1340_v8 }
 0x1b5   :  { %5794 = vmatmul.mubr.bf16.gmra.mxu1 %v1339_v39  ;;  %v852_v39 = vadd.f32 1.0, %v819_v54  ;;  %v1980_v54 = vor.u32 %v1979_v13, %v1978_v14 }
 0x1b6   :  { %5797 = vmatprep.mubr.msk.bf16.mxu1 %vm6798_vm0, %v10295_v6  ;;  %10345 = vst [vmem:[#allocation66_spill] sm:$0xff] %v8149_v18  ;;  %v1015_v31 = vsel %vm982_vm1, 1.0, %v949_v40  ;;  %v8157_v45 = vshrl.u32 %v8149_v18, 16  ;;  %v8160_v46 = vshll.u32 %v8149_v18, 16  ;;  %v1342_v25 = vrot.slane %v8149_v18, 3 }
 0x1b7   :  { %v6664_v43 = vpop.eup %6663  ;;  %6665 = vrcp.f32 %v852_v39  ;;  %v8163_v15 = vmul.f32 %v1015_v31, %v7907_v34  ;;  %v1981_v34 = vsel %vm1926_vm4, %v1976_v33, %v1980_v54 }
 0x1b8   :  { %v917_v23 = vmul.f32 2.0, %v6664_v43  ;;  %v1983_v39 = vrot.slane %v8160_v46, 4  ;;  %v1343_v13 = vsel %vm1314_vm11, %v1340_v8, %v1342_v25  ;;  %v1679_v43 = vrot.slane %v8127_v41, 2 }
 0x1b9   :  { %10346 = vst [vmem:[#allocation67_spill] sm:$0xff] %v8163_v15  ;;  %vm1559_vm11 = vsmask.f32 5376 }
 0x1ba   :  { %v950_v7 = vsub.f32 1.0, %v917_v23  ;;  %5946 = vmatmul.mubr.bf16.gmra.mxu0 %v1977_v50  ;;  %v8170_v23 = vpop.permute.xlu1 %1178  ;;  %v8172_v50 = vpop.permute.xlu0 %1175 }
 0x1bb   :  { %5949 = vmatprep.mubr.msk.bf16.mxu0 %vm6798_vm0, %v10295_v6  ;;  %10347 = vst [vmem:[#allocation68_spill] sm:$0xff] %v8170_v23  ;;  %10348 = vst [vmem:[#allocation69_spill] sm:$0xff] %v8172_v50  ;;  %vm1214_vm1 = vcmp.eq.s32.totalorder %v8170_v23, 1  ;;  %vm1213_vm7 = vcmp.eq.s32.totalorder %v8172_v50, 1  ;;  %v1580_v50 = vrot.slane %v7513_v57, 2 }
 0x1bc   :  { %v1016_v26 = vsel %vm983_vm13, 1.0, %v950_v7  ;;  %v1982_v7 = vrot.slane %v8157_v45, 3  ;;  %v1246_v31 = vsel %vm1213_vm7, %v8163_v15, 0.0  ;;  %v1571_v15 = vrot.slane %v7431_v1, 2 }
 0x1bd   :  { %5798 = vmatmul.mubr.bf16.gmra.mxu1 %v1341_v60  ;;  %v8175_v40 = vmul.f32 %v1016_v26, %v7930_v42  ;;  %v1682_v26 = vrot.slane %v8130_v52, 3  ;;  %v1688_v42 = vrot.slane %v8157_v45, 2 }
 0x1be   :  { %5801 = vmatprep.mubr.msk.bf16.mxu1 %vm6798_vm0, %v10295_v6  ;;  %v1984_v33 = vor.u32 %v1983_v39, %v1982_v7 }
 0x1bf   :  { %10349 = vst [vmem:[#allocation70_spill] sm:$0xff] %v8175_v40  ;;  %v1247_v60 = vsel %vm1214_vm1, %v8175_v40, 0.0  ;;  %v1574_v40 = vrot.slane %v7434_v3, 3 }
 0x1c0   :  { %v8190_v14 = vpack.c.bf16 %v1247_v60, %v1246_v31  ;;  %v1691_v31 = vrot.slane %v8160_v46, 3  ;;  %v8201_v60 = vor.u32 %v1682_v26, %v1679_v43 }
 0x1c2   :  { %5950 = vmatmul.mubr.bf16.gmra.mxu0 %v1981_v34  ;;  %v8203_v8 = vor.u32 %v1691_v31, %v1688_v42  ;;  %v10350_v42 = vshll.u32 %v7371_v56, 16  ;;  %v1575_v31 = vor.u32 %v1574_v40, %v1571_v15  ;;  %v6496_v56 = vld [vmem:[%s10180_s4 + $0xf0] sm:$0xff]  }
 0x1c3   :  { %5953 = vmatprep.mubr.msk.bf16.mxu0 %vm6798_vm0, %v10295_v6 }
 0x1c4   :  { %v6666_v34 = vpop.eup %6665  ;;  %v8209_v7 = vsel %vm1559_vm11, %v8201_v60, %v8203_v8  ;;  %v1566_v43 = vrot.slane %v10350_v42, 3  ;;  %v8257_v42 = vshll.u32 %v8190_v14, 16 }
 0x1c5   :  { %5802 = vmatmul.mubr.bf16.gmra.mxu1 %v1343_v13  ;;  %v1985_v13 = vsel %vm1926_vm4, %v1980_v54, %v1984_v33  ;;  %v918_v39 = vmul.f32 2.0, %v6666_v34  ;;  %v1563_v54 = vrot.slane %v7421_v55, 2  ;;  %vm984_vm4 = vcmp.gt.f32.partialorder %v7981_v12, 20.0 }
 0x1c6   :  { %5805 = vmatprep.mubr.msk.bf16.mxu1 %vm6798_vm0, %v10295_v6  ;;  %v1583_v55 = vrot.slane %v7516_v47, 3 }
 0x1c7   :  { %v951_v26 = vsub.f32 1.0, %v918_v39  ;;  %v1567_v34 = vor.u32 %v1566_v43, %v1563_v54  ;;  %v3160_v43 = vrot.slane %v8127_v41, 4 }
 0x1c8   :  { %v1584_v40 = vor.u32 %v1583_v55, %v1580_v50  ;;  %v8248_v55 = vshrl.u32 %v8190_v14, 16  ;;  %v10351_v50 = vpack.c.bf16 %v7369_v49, %v7358_v32  ;;  %v6498_v32 = vld [vmem:[%s10180_s4 + $0xe0] sm:$0xff]   ;;  %v6503_v49 = vld [vmem:[%s10180_s4 + $0x1b0] sm:$0xff]  }
 0x1c9   :  { %v1576_v23 = vsel %vm1559_vm11, %v1567_v34, %v1575_v31 }
 0x1ca   :  { %5954 = vmatmul.mubr.bf16.gmra.mxu0 %v1985_v13  ;;  %v1017_v13 = vsel %vm984_vm4, 1.0, %v951_v26  ;;  %vm5063_vm4 = vmpackc.low %vm1186_vm9, %vm1185_vm3  ;;  %v1585_v54 = vsel %vm1559_vm11, %v1575_v31, %v1584_v40  ;;  %v3161_v26 = vrot.slane %v8130_v52, 5  ;;  %v3164_v31 = vrot.slane %v8157_v45, 4 }
 0x1cb   :  { %5957 = vmatprep.mubr.msk.bf16.mxu0 %vm6798_vm0, %v10295_v6  ;;  %v1050_v15 = vmul.f32 %v1017_v13, %v7981_v12  ;;  %v6502_v12 = vld [vmem:[%s10180_s4 + $0x1b8] sm:$0xff]   ;;  %v1593_v13 = vor.u32 %v1592_v20, %v1589_v59  ;;  %vm2247_vm3 = vsmask.f32 256  ;;  %vm3112_vm9 = vsmask.f32 3328 }
 0x1cc   :  { %v1601_v20 = vrot.slane %v7674_v44, 3 }
 0x1cd   :  { %5806 = vmatmul.mubr.bf16.gmra.mxu1 %v1342_v25  ;;  %v6494_v25 = vld [vmem:[%s10180_s4 + $0xf8] sm:$0xff]   ;;  %v1594_v24 = vsel %vm1559_vm11, %v1584_v40, %v1593_v13  ;;  %v6500_v40 = vld [vmem:[%s10180_s4 + $0xd0] sm:$0xff]  }
 0x1ce   :  { %5825 = vmatprep.mubr.msk.bf16.mxu1 %vm6798_vm0, %v10295_v6 }
 0x1d2   :  { %5958 = vmatmul.mubr.bf16.gmra.mxu0 %v1984_v33  ;;  %v1182_v33 = vpop.permute.xlu0 %1181 }
 0x1d3   :  { %6053 = vmatprep.mubr.msk.bf16.mxu0 %vm6798_vm0, %v10295_v6  ;;  %vm1215_vm13 = vcmp.eq.s32.totalorder %v1182_v33, 1  ;;  %v8279_v33 = vor.u32 %v3161_v26, %v3160_v43  ;;  %v1598_v43 = vrot.slane %v7671_v17, 2  ;;  %v6504_v26 = vld [vmem:[%s10180_s4 + $0x1a8] sm:$0xff]  }
 0x1d4   :  { %v1248_v39 = vsel %vm1215_vm13, %v1050_v15, 0.0  ;;  %v3168_v15 = vrot.slane %v8248_v55, 4  ;;  %vm5066_vm13 = vmpackc.low %vm1188_vm14, %vm1187_vm15 }
 0x1d5   :  { %5826 = vmatmul.mubr.bf16.vlgmr.msra.gmra.mxu1 %v1576_v23  ;;  %v6497_v23 = vld [vmem:[%s10180_s4 + $0xe8] sm:$0xff]   ;;  %v8263_v34 = vpack.c.bf16 %v1248_v39, %v1248_v39  ;;  %v3169_v39 = vrot.slane %v8257_v42, 5  ;;  %vm5069_vm14 = vmpackc.low %vm1190_vm5, %vm1189_vm6 }
 0x1d6   :  { %5962 = vmatpush3.bf16.msra.mxu1 %v6494_v25  ;;  %5829 = vmatprep.mubr.msk.bf16.mxu1 %vm6798_vm0, %v10295_v6  ;;  %v3165_v25 = vrot.slane %v8160_v46, 5 }
 0x1d7   :  { %5963 = vmatprep.subr.bf16.mxu1 %v10295_v6 }
 0x1da   :  { %5964 = vmatpush3.bf16.msra.mxu1 %v6496_v56  ;;  %6054 = vmatmul.mubr.msk.bf16.vlgmr.msra.gmra.mxu0 %vm5063_vm4, %v10351_v50  ;;  %v2288_v56 = vrot.slane %v8157_v45, 7  ;;  %v6499_v50 = vld [vmem:[%s10180_s4 + $0xd8] sm:$0xff]  }
 0x1db   :  { %5965 = vmatprep.subr.bf16.mxu1 %v10295_v6  ;;  %6057 = vmatprep.mubr.msk.bf16.mxu0 %vm6798_vm0, %v10295_v6 }
 0x1dc   :  { %6190 = vmatpush3.bf16.msra.mxu0 %v6502_v12  ;;  %v2294_v12 = vrot.slane %v8248_v55, 7  ;;  %v2289_v59 = vor.u32 %v2288_v56, %v8160_v46 }
 0x1dd   :  { %5830 = vmatmul.mubr.bf16.gmra.mxu1 %v1585_v54  ;;  %6191 = vmatprep.subr.bf16.mxu0 %v10295_v6  ;;  %v10275_v54 = vrot.slane %v8127_v41, 7 }
 0x1de   :  { %5833 = vmatprep.mubr.msk.bf16.mxu1 %vm6798_vm0, %v10295_v6  ;;  %5966 = vmatpush3.bf16.msra.mxu1 %v6497_v23  ;;  %v3166_v23 = vor.u32 %v3165_v25, %v3164_v31  ;;  %v3170_v31 = vor.u32 %v3169_v39, %v3168_v15  ;;  %v2297_v25 = vor.u32 %v8257_v42, %v2294_v12  ;;  %v6501_v12 = vld [vmem:[%s10180_s4 + $0xc8] sm:$0xff]  }
 0x1df   :  { %5967 = vmatprep.subr.bf16.mxu1 %v10295_v6 }
 0x1e0   :  { %6192 = vmatpush3.bf16.msra.mxu0 %v6503_v49  ;;  %v8312_v49 = vsel %vm2247_vm3, %v10275_v54, %v2289_v59  ;;  %v8319_v27 = vsel %vm3112_vm9, %v3166_v23, %v3170_v31  ;;  %v8322_v36 = vsel %vm2247_vm3, %v2288_v56, %v2297_v25  ;;  %v1602_v56 = vor.u32 %v1601_v20, %v1598_v43  ;;  %v10359_v43 = vld [vmem:[#allocation31_spill] sm:$0xff]  ;;  %v6509_v25 = vld [vmem:[%s10180_s4 + $0x188] sm:$0xff]  }
 0x1e1   :  { %6193 = vmatprep.subr.bf16.mxu0 %v10295_v6  ;;  %10355 = vst [vmem:[#allocation72_spill] sm:$0xff] %v8319_v27  ;;  %10356 = vst [vmem:[#allocation73_spill] sm:$0xff] %v8322_v36  ;;  %v10358_v59 = vpack.c.bf16 %v7455_v62, %v7443_v11  ;;  %v6505_v11 = vld [vmem:[%s10180_s4 + $0xc0] sm:$0xff]  }
 0x1e2   :  { %5968 = vmatpush3.bf16.msra.mxu1 %v6498_v32  ;;  %v8300_v32 = vsel %vm3112_vm9, %v8279_v33, %v3166_v23  ;;  %6058 = vmatmul.mubr.msk.bf16.gmra.mxu0 %vm5066_vm13, %v10353_v9  ;;  %v6506_v23 = vld [vmem:[%s10180_s4 + $0x1a0] sm:$0xff]   ;;  %v1603_v20 = vsel %vm1559_vm11, %v1593_v13, %v1602_v56  ;;  %v10365_v9 = vld [vmem:[#allocation14_spill] sm:$0xff] }
 0x1e3   :  { %5969 = vmatprep.subr.bf16.mxu1 %v10295_v6  ;;  %10352 = vst [vmem:[#allocation71_spill] sm:$0xff] %v8300_v32  ;;  %v10354_v32 = vshll.u32 %v8263_v34, 16  ;;  %6061 = vmatprep.mubr.msk.bf16.mxu0 %vm6798_vm0, %v10295_v6  ;;  %v10361_v13 = vld [vmem:[#allocation15_spill] sm:$0xff] }
 0x1e4   :  { %6194 = vmatpush3.bf16.msra.mxu0 %v6504_v26  ;;  %v1607_v26 = vrot.slane %v10359_v43, 2  ;;  %vm10362_vm15 = vcmp.eq.s32.totalorder %v10361_v13, 1  ;;  %v10376_v54 = vld [vmem:[#allocation19_spill] sm:$0xff] }
 0x1e5   :  { %v3175_v15 = vrot.slane %v10354_v32, 5  ;;  %5834 = vmatmul.mubr.bf16.gmra.mxu1 %v1594_v24  ;;  %6195 = vmatprep.subr.bf16.mxu0 %v10295_v6  ;;  %v10360_v32 = vld [vmem:[#allocation33_spill] sm:$0xff] }
 0x1e6   :  { %5837 = vmatprep.mubr.msk.bf16.mxu1 %vm6798_vm0, %v10295_v6  ;;  %5970 = vmatpush3.bf16.msra.mxu1 %v6499_v50  ;;  %v6507_v50 = vld [vmem:[%s10180_s4 + $0x198] sm:$0xff]   ;;  %v1610_v35 = vrot.slane %v10360_v32, 3  ;;  %v10366_v24 = vld [vmem:[#allocation13_spill] sm:$0xff] }
 0x1e7   :  { %v8330_v39 = vsel %vm3112_vm9, %v3170_v31, %v3175_v15  ;;  %5971 = vmatprep.subr.bf16.mxu1 %v10295_v6  ;;  %v10363_v31 = vld [vmem:[#allocation12_spill] sm:$0xff]  ;;  %v10367_v15 = vpack.c.bf16 %v10365_v9, %v10366_v24  ;;  %v10373_v24 = vld [vmem:[#allocation17_spill] sm:$0xff] }
 0x1e8   :  { %10357 = vst [vmem:[#allocation74_spill] sm:$0xff] %v8330_v39  ;;  %6196 = vmatpush3.bf16.msra.mxu0 %v6506_v23  ;;  %v1611_v62 = vor.u32 %v1610_v35, %v1607_v26  ;;  %vm10364_vm5 = vcmp.eq.s32.totalorder %v10363_v31, 1  ;;  %v10368_v23 = vld [vmem:[#allocation39_spill] sm:$0xff]  ;;  %v3781_v35 = vrot.slane %v8127_v41, 5  ;;  %v10371_v9 = vld [vmem:[#allocation20_spill] sm:$0xff]  ;;  %vm10374_vm13 = vcmp.eq.s32.totalorder %v10373_v24, 1 }
 0x1e9   :  { %6197 = vmatprep.subr.bf16.mxu0 %v10295_v6  ;;  %vm5072_vm6 = vmpackc.low %vm10364_vm5, %vm10362_vm15  ;;  %vm10372_vm4 = vcmp.eq.s32.totalorder %v10371_v9, 1  ;;  %vm2806_vm15 = vsmask.f32 7424  ;;  %v10377_v39 = vld [vmem:[#allocation18_spill] sm:$0xff]  ;;  %vm3733_vm5 = vsmask.f32 2304 }
 0x1ea   :  { %5972 = vmatpush3.bf16.msra.mxu1 %v6500_v40  ;;  %6062 = vmatmul.mubr.msk.bf16.gmra.mxu0 %vm5069_vm14, %v10358_v59  ;;  %v1612_v40 = vsel %vm1559_vm11, %v1602_v56, %v1611_v62  ;;  %v10276_v56 = vrot.slane %v8130_v52, 1  ;;  %vm5075_vm14 = vmpackc.low %vm10374_vm13, %vm10372_vm4  ;;  %v10378_v36 = vpack.c.bf16 %v10376_v54, %v10377_v39  ;;  %v3789_v54 = vrot.slane %v8248_v55, 5 }
 0x1eb   :  { %5973 = vmatprep.subr.bf16.mxu1 %v10295_v6  ;;  %6065 = vmatprep.mubr.msk.bf16.mxu0 %vm6798_vm0, %v10295_v6 }
 0x1ec   :  { %6198 = vmatpush3.bf16.msra.mxu0 %v6507_v50  ;;  %v10369_v50 = vld [vmem:[#allocation40_spill] sm:$0xff]  ;;  %v2844_v31 = vor.u32 %v10276_v56, %v8127_v41 }
 0x1ed   :  { %5838 = vmatmul.mubr.bf16.gmra.mxu1 %v1603_v20  ;;  %6199 = vmatprep.subr.bf16.mxu0 %v10295_v6  ;;  %v1619_v59 = vrot.slane %v10369_v50, 3  ;;  %v6511_v20 = vld [vmem:[%s10180_s4 + $0x180] sm:$0xff]  }
 0x1ee   :  { %5841 = vmatprep.mubr.msk.bf16.mxu1 %vm6798_vm0, %v10295_v6  ;;  %5974 = vmatpush3.bf16.msra.mxu1 %v6501_v12  ;;  %v1616_v12 = vrot.slane %v10368_v23, 2 }
 0x1ef   :  { %5975 = vmatprep.subr.bf16.mxu1 %v10295_v6 }
 0x1f0   :  { %6200 = vmatpush3.bf16.msra.mxu0 %v6508_v28  ;;  %v1620_v26 = vor.u32 %v1619_v59, %v1616_v12  ;;  %v10370_v28 = vld [vmem:[#allocation41_spill] sm:$0xff]  ;;  %v3785_v12 = vrot.slane %v8157_v45, 5  ;;  %v3786_v59 = vrot.slane %v8160_v46, 6 }
 0x1f1   :  { %6201 = vmatprep.subr.bf16.mxu0 %v10295_v6  ;;  %v1625_v13 = vrot.slane %v10370_v28, 2 }
 0x1f2   :  { %5976 = vmatpush3.bf16.msra.mxu1 %v6505_v11  ;;  %6066 = vmatmul.mubr.msk.bf16.gmra.mxu0 %vm5072_vm6, %v10367_v15  ;;  %v3782_v11 = vrot.slane %v8130_v52, 6  ;;  %v10375_v15 = vld [vmem:[#allocation45_spill] sm:$0xff]  ;;  %v1621_v56 = vsel %vm1559_vm11, %v1611_v62, %v1620_v26  ;;  %v3787_v27 = vor.u32 %v3786_v59, %v3785_v12  ;;  %v3793_v62 = vshrl.u32 %v8263_v34, 16  ;;  %v10387_v59 = vld [vmem:[#allocation48_spill] sm:$0xff] }
 0x1f3   :  { %6113 = vmatprep.subr.bf16.mxu1 %v10295_v6  ;;  %6069 = vmatprep.mubr.msk.bf16.mxu0 %vm6798_vm0, %v10295_v6 }
 0x1f4   :  { %6202 = vmatpush3.bf16.msra.mxu0 %v6509_v25  ;;  %v2845_v25 = vrot.slane %v8160_v46, 1  ;;  %v8417_v46 = vor.u32 %v3782_v11, %v3781_v35  ;;  %v3795_v12 = vrot.slane %v3793_v62, 5  ;;  %v3470_v62 = vrot.slane %v8263_v34, 5 }
 0x1f5   :  { %5842 = vmatmul.mubr.bf16.gmra.mxu1 %v1612_v40  ;;  %6203 = vmatprep.subr.bf16.mxu0 %v10295_v6  ;;  %v1628_v40 = vrot.slane %v10375_v15, 3 }
 0x1f6   :  { %5845 = vmatprep.mubr.msk.bf16.mxu1 %vm6798_vm0, %v10295_v6  ;;  %v8411_v9 = vsel %vm2806_vm15, %v2844_v31, %v2845_v25  ;;  %v2847_v24 = vor.u32 %v2845_v25, %v8157_v45  ;;  %v10385_v25 = vld [vmem:[#allocation22_spill] sm:$0xff]  ;;  %v10396_v31 = vld [vmem:[#allocation27_spill] sm:$0xff] }
 0x1f7   :  { %10379 = vst [vmem:[#allocation31_spill] sm:$0xff] %v8411_v9  ;;  %v1629_v11 = vor.u32 %v1628_v40, %v1625_v13  ;;  %vm10386_vm6 = vcmp.eq.s32.totalorder %v10385_v25, 1  ;;  %v10392_v40 = vld [vmem:[#allocation52_spill] sm:$0xff]  ;;  %vm10397_vm13 = vcmp.eq.s32.totalorder %v10396_v31, 1  ;;  %v10398_v25 = vld [vmem:[#allocation26_spill] sm:$0xff] }
 0x1f8   :  { %6204 = vmatpush3.bf16.msra.mxu0 %v6511_v20  ;;  %v2848_v20 = vrot.slane %v8257_v42, 1  ;;  %vm5078_vm4 = vmpackc.low %vm10386_vm6, %vm1195_vm10  ;;  %vm3440_vm10 = vcmask 1042432  }
 0x1f9   :  { %6341 = vmatprep.subr.bf16.mxu0 %v10295_v6  ;;  %v1630_v13 = vsel %vm1559_vm11, %v1620_v26, %v1629_v11 }
 0x1fa   :  { %6070 = vmatmul.mubr.msk.bf16.gmra.mxu0 %vm5075_vm14, %v10378_v36  ;;  %v3790_v36 = vrot.slane %v8257_v42, 6  ;;  %v8424_v39 = vsel %vm2806_vm15, %v2847_v24, %v2848_v20  ;;  %v8427_v45 = vor.u32 %v2848_v20, %v8248_v55  ;;  %v1634_v55 = vrot.slane %v10387_v59, 2 }
 0x1fb   :  { %6073 = vmatprep.mubr.msk.bf16.mxu0 %vm6798_vm0, %v10295_v6  ;;  %10380 = vst [vmem:[#allocation33_spill] sm:$0xff] %v8424_v39  ;;  %v10388_v24 = vshll.u32 %v8263_v34, 16  ;;  %v10390_v39 = vld [vmem:[#allocation24_spill] sm:$0xff]  ;;  %vm10399_vm14 = vcmp.eq.s32.totalorder %v10398_v25, 1  ;;  %v1652_v25 = vrot.slane %v8000_v38, 2 }
 0x1fc   :  { %10381 = vst [vmem:[#allocation15_spill] sm:$0xff] %v8427_v45  ;;  %v3791_v35 = vor.u32 %v3790_v36, %v3789_v54  ;;  %v10389_v45 = vld [vmem:[#allocation25_spill] sm:$0xff]  ;;  %v10278_v54 = vrot.slane %v8149_v18, 5  ;;  %v3468_v36 = vrot.slane %v8190_v14, 5  ;;  %vm5081_vm6 = vmpackc.low %vm10399_vm14, %vm10397_vm13 }
 0x1fd   :  { %5846 = vmatmul.mubr.bf16.gmra.mxu1 %v1621_v56  ;;  %v8432_v56 = vsel %vm3733_vm5, %v8417_v46, %v3787_v27  ;;  %v3796_v20 = vrot.slane %v10388_v24, 6  ;;  %v10391_v9 = vpack.c.bf16 %v10389_v45, %v10390_v39  ;;  %v10400_v24 = vld [vmem:[#allocation30_spill] sm:$0xff] }
 0x1fe   :  { %5849 = vmatprep.mubr.msk.bf16.mxu1 %vm6798_vm0, %v10295_v6  ;;  %10382 = vst [vmem:[#allocation12_spill] sm:$0xff] %v8432_v56  ;;  %v8435_v42 = vsel %vm3733_vm5, %v3787_v27, %v3791_v35  ;;  %v1637_v27 = vrot.slane %v10392_v40, 3  ;;  %v8459_v26 = vsel %vm3440_vm10, %v10278_v54, %v3468_v36 }
 0x1ff   :  { %10383 = vst [vmem:[#allocation14_spill] sm:$0xff] %v8435_v42  ;;  %10393 = vst [vmem:[#allocation13_spill] sm:$0xff] %v8459_v26  ;;  %v3797_v39 = vor.u32 %v3796_v20, %v3795_v12  ;;  %v1646_v12 = vrot.slane %v7997_v5, 3  ;;  %v3113_v42 = vrot.slane %v7431_v1, 4 }
 0x200   :  { %v1638_v14 = vor.u32 %v1637_v27, %v1634_v55 }
 0x201   :  { %v8465_v45 = vsel %vm3733_vm5, %v3791_v35, %v3797_v39  ;;  %v10408_v39 = vld [vmem:[#allocation35_spill] sm:$0xff] }
 0x202   :  { %6074 = vmatmul.mubr.msk.bf16.gmra.mxu0 %vm5078_vm4, %v10391_v9  ;;  %v8462_v9 = vsel %vm3440_vm10, %v3468_v36, %v3470_v62  ;;  %10395 = vst [vmem:[#allocation40_spill] sm:$0xff] %v8465_v45  ;;  %v1639_v54 = vsel %vm1559_vm11, %v1629_v11, %v1638_v14  ;;  %v1643_v36 = vrot.slane %v7967_v58, 2  ;;  %v10403_v62 = vld [vmem:[#allocation36_spill] sm:$0xff]  ;;  %v10407_v11 = vld [vmem:[#allocation37_spill] sm:$0xff]  ;;  %v1670_v45 = vrot.slane %v8088_v10, 2 }
 0x203   :  { %6077 = vmatprep.mubr.msk.bf16.mxu0 %vm6798_vm0, %v10295_v6  ;;  %10394 = vst [vmem:[#allocation39_spill] sm:$0xff] %v8462_v9  ;;  %vm10404_vm4 = vcmp.eq.s32.totalorder %v10403_v62, 1  ;;  %v10409_v31 = vpack.c.bf16 %v10407_v11, %v10408_v39  ;;  %v10415_v62 = vld [vmem:[#allocation46_spill] sm:$0xff]  ;;  %v1661_v39 = vrot.slane %v8036_v61, 2  ;;  %v2249_v9 = vrot.slane %v7431_v1, 7 }
 0x204   :  { %v8471_v34 = vpop.f32.mrf.mxu1  ;;  %v1647_v20 = vor.u32 %v1646_v12, %v1643_v36  ;;  %v10410_v12 = vld [vmem:[#allocation42_spill] sm:$0xff] }
 0x205   :  { %5850 = vmatmul.mubr.bf16.gmra.mxu1 %v1630_v13  ;;  %v10401_v13 = vld [vmem:[#allocation29_spill] sm:$0xff] }
 0x206   :  { %5853 = vmatprep.mubr.msk.bf16.mxu1 %vm6798_vm0, %v10295_v6  ;;  %v10402_v18 = vpack.c.bf16 %v10400_v24, %v10401_v13  ;;  %v5751_v35 = vpop.f32.mrf.mxu1  ;;  %v1655_v24 = vrot.slane %v8003_v2, 3 }
 0x207   :  { %v10412_v35 = vld [vmem:[#allocation43_spill] sm:$0xff] }
 0x208   :  { %v8483_v55 = vpop.f32.mrf.mxu1  ;;  %v1656_v13 = vor.u32 %v1655_v24, %v1652_v25 }
 0x20a   :  { %6078 = vmatmul.mubr.msk.bf16.gmra.mxu0 %vm5081_vm6, %v10402_v18  ;;  %v5752_v27 = vpop.f32.mrf.mxu1  ;;  %v10405_v18 = vld [vmem:[#allocation32_spill] sm:$0xff]  ;;  %vm10411_vm6 = vcmp.eq.s32.totalorder %v10410_v12, 1  ;;  %v1657_v11 = vsel %vm1559_vm11, %v1647_v20, %v1656_v13 }
 0x20b   :  { %6081 = vmatprep.mubr.msk.bf16.mxu0 %vm6798_vm0, %v10295_v6  ;;  %vm10406_vm13 = vcmp.eq.s32.totalorder %v10405_v18, 1  ;;  %v10414_v27 = vld [vmem:[#allocation50_spill] sm:$0xff] }
 0x20c   :  { %vm5084_vm14 = vmpackc.low %vm10406_vm13, %vm10404_vm4  ;;  %vm10413_vm4 = vcmp.eq.s32.totalorder %v10412_v35, 1  ;;  %v10416_v18 = vpack.c.bf16 %v10414_v27, %v10415_v62  ;;  %v10420_v62 = vpack.c.bf16 %v7976_v53, %v7938_v48  ;;  %v10422_v27 = vld [vmem:[#allocation55_spill] sm:$0xff] }
 0x20d   :  { %5854 = vmatmul.mubr.bf16.gmra.mxu1 %v1639_v54  ;;  %v1648_v54 = vsel %vm1559_vm11, %v1638_v14, %v1647_v20  ;;  %vm5087_vm13 = vmpackc.low %vm10413_vm4, %vm10411_vm6  ;;  %v10417_v20 = vld [vmem:[#allocation47_spill] sm:$0xff] }
 0x20e   :  { %5857 = vmatprep.mubr.msk.bf16.mxu1 %vm6798_vm0, %v10295_v6 }
 0x210   :  { %v8499_v36 = vpop.f32.mrf.mxu0 }
 0x212   :  { %6082 = vmatmul.mubr.msk.bf16.gmra.mxu0 %vm5084_vm14, %v10409_v31  ;;  %v5903_v14 = vpop.f32.mrf.mxu0  ;;  %v1664_v31 = vrot.slane %v8051_v21, 3  ;;  %vm10418_vm14 = vcmp.eq.s32.totalorder %v10417_v20, 1 }
 0x213   :  { %6085 = vmatprep.mubr.msk.bf16.mxu0 %vm6798_vm0, %v10295_v6  ;;  %vm5090_vm6 = vmpackc.low %vm1204_vm12, %vm10418_vm14  ;;  %vm10421_vm12 = vcmp.eq.s32.totalorder %v7964_v51, 1 }
 0x214   :  { %v8517_v25 = vpop.f32.mrf.mxu1  ;;  %v1665_v12 = vor.u32 %v1664_v31, %v1661_v39  ;;  %vm5093_vm4 = vmpackc.low %vm10421_vm12, %vm1205_vm2 }
 0x215   :  { %5858 = vmatmul.mubr.bf16.gmra.mxu1 %v1648_v54  ;;  %v8513_v54 = vpop.f32.mrf.mxu0 }
 0x216   :  { %5861 = vmatprep.mubr.msk.bf16.mxu1 %vm6798_vm0, %v10295_v6  ;;  %v5755_v35 = vpop.f32.mrf.mxu1 }
 0x217   :  { %v5904_v24 = vpop.f32.mrf.mxu0 }
 0x218   :  { %v8519_v14 = vpop.f32.mrf.mxu1  ;;  %v1673_v24 = vrot.slane %v8091_v19, 3 }
 0x21a   :  { %6086 = vmatmul.mubr.msk.bf16.gmra.mxu0 %vm5087_vm13, %v10416_v18  ;;  %v1666_v18 = vsel %vm1559_vm11, %v1656_v13, %v1665_v12  ;;  %v1674_v35 = vor.u32 %v1673_v24, %v1670_v45 }
 0x21b   :  { %6089 = vmatprep.mubr.msk.bf16.mxu0 %vm6798_vm0, %v10295_v6 }
 0x21d   :  { %5862 = vmatmul.mubr.bf16.gmra.mxu1 %v1657_v11  ;;  %v5756_v11 = vpop.f32.mrf.mxu1 }
 0x21e   :  { %5865 = vmatprep.mubr.msk.bf16.mxu1 %vm6798_vm0, %v10295_v6  ;;  %v1675_v11 = vsel %vm1559_vm11, %v1665_v12, %v1674_v35  ;;  %v10427_v12 = vld [vmem:[#allocation57_spill] sm:$0xff] }
 0x21f   :  { %v8533_v39 = vpop.f32.mrf.mxu0  ;;  %vm10428_vm13 = vcmp.eq.s32.totalorder %v10427_v12, 1 }
 0x221   :  { %v5907_v31 = vpop.f32.mrf.mxu0 }
 0x222   :  { %6090 = vmatmul.mubr.msk.bf16.gmra.mxu0 %vm5090_vm6, %v10420_v62  ;;  %v10423_v62 = vld [vmem:[#allocation54_spill] sm:$0xff] }
 0x223   :  { %6093 = vmatprep.mubr.msk.bf16.mxu0 %vm6798_vm0, %v10295_v6  ;;  %v8537_v48 = vpop.f32.mrf.mxu1  ;;  %v8539_v53 = vpop.f32.mrf.mxu0 }
 0x225   :  { %5866 = vmatmul.mubr.bf16.gmra.mxu1 %v1666_v18  ;;  %v5759_v13 = vpop.f32.mrf.mxu1  ;;  %v5908_v20 = vpop.f32.mrf.mxu0  ;;  %v10424_v18 = vpack.c.bf16 %v10422_v27, %v10423_v62 }
 0x226   :  { %5869 = vmatprep.mubr.msk.bf16.mxu1 %vm6798_vm0, %v10295_v6  ;;  %v10425_v20 = vld [vmem:[#allocation58_spill] sm:$0xff] }
 0x227   :  { %v8551_v45 = vpop.f32.mrf.mxu1  ;;  %v8553_v24 = vpop.f32.mrf.mxu0  ;;  %vm10426_vm2 = vcmp.eq.s32.totalorder %v10425_v20, 1 }
 0x228   :  { %vm5096_vm14 = vmpackc.low %vm10428_vm13, %vm10426_vm2 }
 0x229   :  { %v5760_v4 = vpop.f32.mrf.mxu1  ;;  %v5911_v51 = vpop.f32.mrf.mxu0  ;;  %vm5105_vm2 = vmpackc.low %vm1214_vm1, %vm1213_vm7 }
 0x22a   :  { %6094 = vmatmul.mubr.msk.bf16.gmra.mxu0 %vm5093_vm4, %v10424_v18  ;;  %v10429_v18 = vpack.c.bf16 %v8057_v30, %v8045_v63  ;;  %v10432_v30 = vld [vmem:[#allocation60_spill] sm:$0xff] }
 0x22b   :  { %6097 = vmatprep.mubr.msk.bf16.mxu0 %vm6798_vm0, %v10295_v6  ;;  %v8557_v31 = vpop.f32.mrf.mxu1  ;;  %v8559_v13 = vpop.f32.mrf.mxu0  ;;  %vm10433_vm6 = vcmp.eq.s32.totalorder %v10432_v30, 1 }
 0x22d   :  { %5870 = vmatmul.mubr.bf16.gmra.mxu1 %v1675_v11  ;;  %v5763_v27 = vpop.f32.mrf.mxu1  ;;  %v5912_v62 = vpop.f32.mrf.mxu0  ;;  %v1684_v11 = vsel %vm1559_vm11, %v1674_v35, %v8201_v60  ;;  %vm5099_vm11 = vmpackc.low %vm10433_vm6, %vm1209_vm8  ;;  %v10434_v35 = vpack.c.bf16 %v8096_v22, %v8083_v37  ;;  %vm10439_vm8 = vcmp.eq.s32.totalorder %v8132_v29, 1  ;;  %v10440_v37 = vld [vmem:[#allocation63_spill] sm:$0xff]  ;;  %v10442_v22 = vld [vmem:[#allocation65_spill] sm:$0xff] }
 0x22e   :  { %5873 = vmatprep.mubr.msk.bf16.mxu1 %vm6798_vm0, %v10295_v6  ;;  %vm10441_vm12 = vcmp.eq.s32.totalorder %v10440_v37, 1 }
 0x22f   :  { %v8572_v4 = vpop.f32.mrf.mxu1  ;;  %vm5102_vm4 = vmpackc.low %vm10441_vm12, %vm10439_vm8 }
 0x231   :  { %v5764_v51 = vpop.f32.mrf.mxu1 }
 0x232   :  { %6098 = vmatmul.mubr.msk.bf16.gmra.mxu0 %vm5096_vm14, %v10429_v18  ;;  %v8576_v20 = vpop.f32.mrf.mxu0 }
 0x233   :  { %6101 = vmatprep.mubr.msk.bf16.mxu0 %vm6798_vm0, %v10295_v6 }
 0x234   :  { %v5915_v27 = vpop.f32.mrf.mxu0 }
 0x235   :  { %5874 = vmatmul.mubr.bf16.gmra.mxu1 %v1684_v11  ;;  %v8578_v12 = vpop.f32.mrf.mxu1 }
 0x236   :  { %5877 = vmatprep.mubr.msk.bf16.mxu1 %vm6798_vm0, %v10295_v6  ;;  %10430 = vst [vmem:[#allocation41_spill] sm:$0xff] %v8578_v12  ;;  %v8587_v62 = vpop.f32.mrf.mxu0 }
 0x237   :  { %v5767_v60 = vpop.f32.mrf.mxu1  ;;  %10435 = vst [vmem:[#allocation20_spill] sm:$0xff] %v8587_v62 }
 0x238   :  { %v5916_v11 = vpop.f32.mrf.mxu0 }
 0x239   :  { %v8592_v18 = vpop.f32.mrf.mxu1 }
 0x23a   :  { %6102 = vmatmul.mubr.msk.bf16.gmra.mxu0 %vm5099_vm11, %v10434_v35  ;;  %10436 = vst [vmem:[#allocation17_spill] sm:$0xff] %v8592_v18 }
 0x23b   :  { %6105 = vmatprep.mubr.msk.bf16.mxu0 %vm6798_vm0, %v10295_v6  ;;  %v5768_v51 = vpop.f32.mrf.mxu1  ;;  %v8596_v27 = vpop.f32.mrf.mxu0 }
 0x23c   :  { %10437 = vst [vmem:[#allocation45_spill] sm:$0xff] %v8596_v27  ;;  %v2252_v27 = vrot.slane %v7513_v57, 7 }
 0x23d   :  { %5878 = vmatmul.mubr.bf16.gmra.mxu1 %v8209_v7  ;;  %v5919_v63 = vpop.f32.mrf.mxu0  ;;  %v10443_v7 = vld [vmem:[#allocation64_spill] sm:$0xff] }
 0x23e   :  { %5881 = vmatprep.mubr.msk.bf16.mxu1 %vm6798_vm0, %v10295_v6  ;;  %v10444_v60 = vpack.c.bf16 %v10442_v22, %v10443_v7  ;;  %v2250_v22 = vor.u32 %v2249_v9, %v7434_v3 }
 0x23f   :  { %v8598_v30 = vpop.f32.mrf.mxu1  ;;  %v8607_v35 = vpop.f32.mrf.mxu0 }
 0x240   :  { %10438 = vst [vmem:[#allocation19_spill] sm:$0xff] %v8598_v30  ;;  %10445 = vst [vmem:[#allocation18_spill] sm:$0xff] %v8607_v35  ;;  %v10453_v35 = vld [vmem:[#allocation67_spill] sm:$0xff] }
 0x241   :  { %v5771_v11 = vpop.f32.mrf.mxu1  ;;  %v5920_v51 = vpop.f32.mrf.mxu0 }
 0x242   :  { %6106 = vmatmul.mubr.msk.bf16.gmra.mxu0 %vm5102_vm4, %v10444_v60  ;;  %v10449_v11 = vld [vmem:[#allocation10_spill] sm:$0xff]  ;;  %v3114_v51 = vrot.slane %v7434_v3, 5 }
 0x243   :  { %6109 = vmatprep.mubr.msk.bf16.mxu0 %vm6798_vm0, %v10295_v6  ;;  %v8613_v63 = vpop.f32.mrf.mxu1  ;;  %v2248_v26 = vrot.slane %v10449_v11, 7 }
 0x244   :  { %10446 = vst [vmem:[#allocation23_spill] sm:$0xff] %v8613_v63  ;;  %v8617_v29 = vpop.f32.mrf.mxu0  ;;  %v3116_v63 = vrot.slane %v7513_v57, 4 }
 0x245   :  { %5882 = vmatmul.mubr.bf16.gmra.mxu1 %v8203_v8  ;;  %10447 = vst [vmem:[#allocation22_spill] sm:$0xff] %v8617_v29  ;;  %v5772_v37 = vpop.f32.mrf.mxu1  ;;  %v6510_v8 = vld [vmem:[%s10180_s4 + $0x178] sm:$0xff]   ;;  %v2251_v11 = vsel %vm2247_vm3, %v2248_v26, %v2250_v22  ;;  %v6512_v26 = vld [vmem:[%s10180_s4 + $0x170] sm:$0xff]  }
 0x246   :  { %5977 = vmatprep.mubr.msk.bf16.mxu1 %vm6798_vm0, %v10295_v6  ;;  %v5923_v7 = vpop.f32.mrf.mxu0  ;;  %v3117_v37 = vrot.slane %v7516_v47, 5  ;;  %v10452_v29 = vld [vmem:[#allocation70_spill] sm:$0xff] }
 0x247   :  { %v8620_v60 = vpop.f32.mrf.mxu1  ;;  %v10454_v7 = vpack.c.bf16 %v10452_v29, %v10453_v35  ;;  %v2253_v29 = vor.u32 %v2252_v27, %v7516_v47 }
 0x248   :  { %10448 = vst [vmem:[#allocation48_spill] sm:$0xff] %v8620_v60  ;;  %v8635_v60 = vpop.f32.mrf.mxu0 }
 0x249   :  { %10455 = vst [vmem:[#allocation25_spill] sm:$0xff] %v8635_v60  ;;  %v5775_v30 = vpop.f32.mrf.mxu1 }
 0x24a   :  { %6110 = vmatmul.mubr.msk.bf16.gmra.mxu0 %vm5105_vm2, %v10454_v7  ;;  %v5924_v56 = vpop.f32.mrf.mxu0  ;;  %v3118_v30 = vor.u32 %v3117_v37, %v3116_v63  ;;  %v3115_v7 = vor.u32 %v3114_v51, %v3113_v42  ;;  %v3120_v63 = vrot.slane %v7597_v16, 4  ;;  %v3121_v37 = vrot.slane %v7600_v0, 5  ;;  %v6518_v42 = vld [vmem:[%s10180_s4 + $0x238] sm:$0xff]  }
 0x24b   :  { %6205 = vmatprep.mubr.msk.bf16.mxu0 %vm6798_vm0, %v10295_v6  ;;  %v8643_v18 = vpop.f32.mrf.mxu1  ;;  %v6513_v56 = vld [vmem:[%s10180_s4 + $0x168] sm:$0xff]   ;;  %v2254_v51 = vsel %vm2247_vm3, %v2249_v9, %v2253_v29 }
 0x24c   :  { %10456 = vst [vmem:[#allocation24_spill] sm:$0xff] %v8643_v18  ;;  %v3122_v29 = vor.u32 %v3121_v37, %v3120_v63  ;;  %v3124_v37 = vrot.slane %v7671_v17, 4 }
 0x24d   :  { %5978 = vmatmul.mubr.bf16.vlgmr.msra.gmra.mxu1 %v2251_v11  ;;  %v5776_v35 = vpop.f32.mrf.mxu1  ;;  %v3119_v11 = vsel %vm3112_vm9, %v3115_v7, %v3118_v30  ;;  %v6514_v7 = vld [vmem:[%s10180_s4 + $0x160] sm:$0xff]  }
 0x24e   :  { %6114 = vmatpush3.bf16.msra.mxu1 %v6510_v8  ;;  %5981 = vmatprep.mubr.msk.bf16.mxu1 %vm6798_vm0, %v10295_v6  ;;  %v8652_v22 = vpop.f32.mrf.mxu0  ;;  %v2255_v35 = vrot.slane %v7597_v16, 7  ;;  %v3123_v63 = vsel %vm3112_vm9, %v3118_v30, %v3122_v29 }
 0x24f   :  { %6115 = vmatprep.subr.bf16.mxu1 %v10295_v6  ;;  %10457 = vst [vmem:[#allocation52_spill] sm:$0xff] %v8652_v22 }
 0x250   :  { %v8654_v8 = vpop.f32.mrf.mxu1  ;;  %v5927_v18 = vpop.f32.mrf.mxu0 }
 0x251   :  { %10458 = vst [vmem:[#allocation27_spill] sm:$0xff] %v8654_v8 }
 0x252   :  { %6116 = vmatpush3.bf16.msra.mxu1 %v6512_v26  ;;  %6206 = vmatmul.mubr.bf16.vlgmr.msra.gmra.mxu0 %v3119_v11  ;;  %v5779_v26 = vpop.f32.mrf.mxu1  ;;  %v8668_v8 = vpop.f32.mrf.mxu0  ;;  %v6519_v11 = vld [vmem:[%s10180_s4 + $0x230] sm:$0xff]  }
 0x253   :  { %6117 = vmatprep.subr.bf16.mxu1 %v10295_v6  ;;  %10459 = vst [vmem:[#allocation26_spill] sm:$0xff] %v8668_v8  ;;  %6209 = vmatprep.mubr.msk.bf16.mxu0 %vm6798_vm0, %v10295_v6  ;;  %v2256_v26 = vor.u32 %v2255_v35, %v7600_v0  ;;  %v2261_v8 = vrot.slane %v10359_v43, 7 }
 0x254   :  { %v8672_v18 = vpop.f32.mrf.mxu1  ;;  %v5928_v9 = vpop.f32.mrf.mxu0  ;;  %6342 = vmatpush3.bf16.msra.mxu0 %v6518_v42  ;;  %v3125_v42 = vrot.slane %v7674_v44, 5 }
 0x255   :  { %5982 = vmatmul.mubr.bf16.gmra.mxu1 %v2254_v51  ;;  %10460 = vst [vmem:[#allocation30_spill] sm:$0xff] %v8672_v18  ;;  %6343 = vmatprep.subr.bf16.mxu0 %v10295_v6  ;;  %v6520_v9 = vld [vmem:[%s10180_s4 + $0x228] sm:$0xff]  }
 0x256   :  { %5985 = vmatprep.mubr.msk.bf16.mxu1 %vm6798_vm0, %v10295_v6  ;;  %6118 = vmatpush3.bf16.msra.mxu1 %v6513_v56  ;;  %v5780_v51 = vpop.f32.mrf.mxu1  ;;  %v6515_v56 = vld [vmem:[%s10180_s4 + $0x158] sm:$0xff]  }
 0x257   :  { %6119 = vmatprep.subr.bf16.mxu1 %v10295_v6  ;;  %v2258_v51 = vrot.slane %v7671_v17, 7 }
 0x258   :  { %6344 = vmatpush3.bf16.msra.mxu0 %v6519_v11  ;;  %v6516_v11 = vld [vmem:[%s10180_s4 + $0x150] sm:$0xff]  }
 0x259   :  { %v8688_v18 = vpop.f32.mrf.mxu0  ;;  %6345 = vmatprep.subr.bf16.mxu0 %v10295_v6 }
 0x25a   :  { %6120 = vmatpush3.bf16.msra.mxu1 %v6514_v7  ;;  %10461 = vst [vmem:[#allocation29_spill] sm:$0xff] %v8688_v18  ;;  %6210 = vmatmul.mubr.bf16.gmra.mxu0 %v3123_v63  ;;  %v2257_v7 = vsel %vm2247_vm3, %v2252_v27, %v2256_v26  ;;  %v3126_v63 = vor.u32 %v3125_v42, %v3124_v37 }
 0x25b   :  { %6121 = vmatprep.subr.bf16.mxu1 %v10295_v6  ;;  %v5931_v18 = vpop.f32.mrf.mxu0  ;;  %6213 = vmatprep.mubr.msk.bf16.mxu0 %vm6798_vm0, %v10295_v6 }
 0x25c   :  { %6346 = vmatpush3.bf16.msra.mxu0 %v6520_v9  ;;  %v6522_v18 = vld [vmem:[%s10180_s4 + $0x220] sm:$0xff]   ;;  %v3127_v37 = vsel %vm3112_vm9, %v3122_v29, %v3126_v63  ;;  %v3128_v9 = vrot.slane %v10359_v43, 4 }
 0x25d   :  { %v8700_v30 = vpop.f32.mrf.mxu1  ;;  %5986 = vmatmul.mubr.bf16.gmra.mxu1 %v2257_v7  ;;  %v8709_v27 = vpop.f32.mrf.mxu0  ;;  %v2259_v7 = vor.u32 %v2258_v51, %v7674_v44  ;;  %6347 = vmatprep.subr.bf16.mxu0 %v10295_v6 }
 0x25e   :  { %10462 = vst [vmem:[#allocation36_spill] sm:$0xff] %v8700_v30  ;;  %5989 = vmatprep.mubr.msk.bf16.mxu1 %vm6798_vm0, %v10295_v6  ;;  %6122 = vmatpush3.bf16.msra.mxu1 %v6515_v56  ;;  %10463 = vst [vmem:[#allocation32_spill] sm:$0xff] %v8709_v27  ;;  %v3129_v27 = vrot.slane %v10360_v32, 5 }
 0x25f   :  { %v5783_v26 = vpop.f32.mrf.mxu1  ;;  %6123 = vmatprep.subr.bf16.mxu1 %v10295_v6  ;;  %v5932_v56 = vpop.f32.mrf.mxu0 }
 0x260   :  { %v6517_v26 = vld [vmem:[%s10180_s4 + $0x148] sm:$0xff]   ;;  %6348 = vmatpush3.bf16.msra.mxu0 %v6522_v18  ;;  %v6523_v56 = vld [vmem:[%s10180_s4 + $0x218] sm:$0xff]  }
 0x261   :  { %v8717_v30 = vpop.f32.mrf.mxu1  ;;  %6349 = vmatprep.subr.bf16.mxu0 %v10295_v6 }
 0x262   :  { %10464 = vst [vmem:[#allocation37_spill] sm:$0xff] %v8717_v30  ;;  %6124 = vmatpush3.bf16.msra.mxu1 %v6516_v11  ;;  %v8729_v30 = vpop.f32.mrf.mxu0  ;;  %6214 = vmatmul.mubr.bf16.gmra.mxu0 %v3127_v37  ;;  %v2260_v11 = vsel %vm2247_vm3, %v2255_v35, %v2259_v7  ;;  %v6521_v37 = vld [vmem:[%s10180_s4 + $0x140] sm:$0xff]   ;;  %v3130_v7 = vor.u32 %v3129_v27, %v3128_v9  ;;  %v3132_v9 = vrot.slane %v10368_v23, 4 }
 0x263   :  { %v5784_v42 = vpop.f32.mrf.mxu1  ;;  %6125 = vmatprep.subr.bf16.mxu1 %v10295_v6  ;;  %10465 = vst [vmem:[#allocation35_spill] sm:$0xff] %v8729_v30  ;;  %6217 = vmatprep.mubr.msk.bf16.mxu0 %vm6798_vm0, %v10295_v6 }
 0x264   :  { %v5935_v18 = vpop.f32.mrf.mxu0  ;;  %6350 = vmatpush3.bf16.msra.mxu0 %v6523_v56  ;;  %v6524_v42 = vld [vmem:[%s10180_s4 + $0x210] sm:$0xff]   ;;  %v3133_v56 = vrot.slane %v10369_v50, 5 }
 0x265   :  { %v8734_v29 = vpop.f32.mrf.mxu1  ;;  %5990 = vmatmul.mubr.bf16.gmra.mxu1 %v2260_v11  ;;  %v2262_v18 = vor.u32 %v2261_v8, %v10360_v32  ;;  %6351 = vmatprep.subr.bf16.mxu0 %v10295_v6 }
 0x266   :  { %10466 = vst [vmem:[#allocation42_spill] sm:$0xff] %v8734_v29  ;;  %5993 = vmatprep.mubr.msk.bf16.mxu1 %vm6798_vm0, %v10295_v6  ;;  %6126 = vmatpush3.bf16.msra.mxu1 %v6517_v26  ;;  %v8747_v11 = vpop.f32.mrf.mxu0 }
 0x267   :  { %v5787_v35 = vpop.f32.mrf.mxu1  ;;  %6127 = vmatprep.subr.bf16.mxu1 %v10295_v6  ;;  %10467 = vst [vmem:[#allocation43_spill] sm:$0xff] %v8747_v11  ;;  %v6525_v11 = vld [vmem:[%s10180_s4 + $0x208] sm:$0xff]  }
 0x268   :  { %v5936_v29 = vpop.f32.mrf.mxu0  ;;  %v3131_v35 = vsel %vm3112_vm9, %v3126_v63, %v3130_v7  ;;  %6352 = vmatpush3.bf16.msra.mxu0 %v6524_v42 }
 0x269   :  { %v8751_v26 = vpop.f32.mrf.mxu1  ;;  %v2263_v29 = vsel %vm2247_vm3, %v2258_v51, %v2262_v18  ;;  %6353 = vmatprep.subr.bf16.mxu0 %v10295_v6  ;;  %v6527_v51 = vld [vmem:[%s10180_s4 + $0x200] sm:$0xff]  }
 0x26a   :  { %10468 = vst [vmem:[#allocation50_spill] sm:$0xff] %v8751_v26  ;;  %6128 = vmatpush3.bf16.msra.mxu1 %v6521_v37  ;;  %v8760_v30 = vpop.f32.mrf.mxu0  ;;  %6218 = vmatmul.mubr.bf16.gmra.mxu0 %v3131_v35  ;;  %v2264_v37 = vrot.slane %v10368_v23, 7  ;;  %v3134_v26 = vor.u32 %v3133_v56, %v3132_v9 }
 0x26b   :  { %v5788_v27 = vpop.f32.mrf.mxu1  ;;  %6265 = vmatprep.subr.bf16.mxu1 %v10295_v6  ;;  %10469 = vst [vmem:[#allocation46_spill] sm:$0xff] %v8760_v30  ;;  %6221 = vmatprep.mubr.msk.bf16.mxu0 %vm6798_vm0, %v10295_v6 }
 0x26c   :  { %v5939_v42 = vpop.f32.mrf.mxu0  ;;  %6354 = vmatpush3.bf16.msra.mxu0 %v6525_v11  ;;  %v2265_v35 = vor.u32 %v2264_v37, %v10369_v50  ;;  %v3137_v11 = vrot.slane %v10375_v15, 5 }
 0x26d   :  { %v8765_v63 = vpop.f32.mrf.mxu1  ;;  %5994 = vmatmul.mubr.bf16.gmra.mxu1 %v2263_v29  ;;  %6355 = vmatprep.subr.bf16.mxu0 %v10295_v6  ;;  %v3135_v42 = vsel %vm3112_vm9, %v3130_v7, %v3134_v26 }
 0x26e   :  { %10470 = vst [vmem:[#allocation47_spill] sm:$0xff] %v8765_v63  ;;  %5997 = vmatprep.mubr.msk.bf16.mxu1 %vm6798_vm0, %v10295_v6  ;;  %v8774_v18 = vpop.f32.mrf.mxu0  ;;  %v2266_v56 = vsel %vm2247_vm3, %v2261_v8, %v2265_v35 }
 0x26f   :  { %v5791_v27 = vpop.f32.mrf.mxu1  ;;  %10471 = vst [vmem:[#allocation49_spill] sm:$0xff] %v8774_v18  ;;  %v2267_v18 = vrot.slane %v10370_v28, 7 }
 0x270   :  { %v5940_v63 = vpop.f32.mrf.mxu0  ;;  %v3136_v27 = vrot.slane %v10370_v28, 4  ;;  %6356 = vmatpush3.bf16.msra.mxu0 %v6527_v51 }
 0x271   :  { %v8778_v29 = vpop.f32.mrf.mxu1 }
 0x272   :  { %10472 = vst [vmem:[#allocation55_spill] sm:$0xff] %v8778_v29  ;;  %v8783_v9 = vpop.f32.mrf.mxu0  ;;  %6222 = vmatmul.mubr.bf16.gmra.mxu0 %v3135_v42  ;;  %v3138_v63 = vor.u32 %v3137_v11, %v3136_v27  ;;  %v2268_v42 = vor.u32 %v2267_v18, %v10375_v15  ;;  %v3141_v29 = vrot.slane %v10392_v40, 5  ;;  %v2270_v27 = vrot.slane %v10387_v59, 7 }
 0x273   :  { %v5792_v30 = vpop.f32.mrf.mxu1  ;;  %10473 = vst [vmem:[#allocation54_spill] sm:$0xff] %v8783_v9  ;;  %6225 = vmatprep.mubr.msk.bf16.mxu0 %vm6798_vm0, %v10295_v6 }
 0x274   :  { %v5943_v7 = vpop.f32.mrf.mxu0  ;;  %v3139_v35 = vsel %vm3112_vm9, %v3134_v26, %v3138_v63 }
 0x275   :  { %v8787_v22 = vpop.f32.mrf.mxu1  ;;  %5998 = vmatmul.mubr.bf16.gmra.mxu1 %v2266_v56  ;;  %v3140_v56 = vrot.slane %v10387_v59, 4 }
 0x276   :  { %10474 = vst [vmem:[#allocation58_spill] sm:$0xff] %v8787_v22  ;;  %6001 = vmatprep.mubr.msk.bf16.mxu1 %vm6798_vm0, %v10295_v6  ;;  %v8793_v51 = vpop.f32.mrf.mxu0 }
 0x277   :  { %v5795_v30 = vpop.f32.mrf.mxu1  ;;  %10475 = vst [vmem:[#allocation57_spill] sm:$0xff] %v8793_v51  ;;  %v3142_v26 = vor.u32 %v3141_v29, %v3140_v56  ;;  %v3145_v51 = vrot.slane %v7997_v5, 5  ;;  %v2273_v29 = vrot.slane %v7967_v58, 7 }
 0x278   :  { %v5944_v8 = vpop.f32.mrf.mxu0  ;;  %v2269_v30 = vsel %vm2247_vm3, %v2264_v37, %v2268_v42 }
 0x279   :  { %v8796_v9 = vpop.f32.mrf.mxu1  ;;  %v3143_v42 = vsel %vm3112_vm9, %v3138_v63, %v3142_v26 }
 0x27a   :  { %10476 = vst [vmem:[#allocation61_spill] sm:$0xff] %v8796_v9  ;;  %v8801_v7 = vpop.f32.mrf.mxu0  ;;  %6226 = vmatmul.mubr.bf16.gmra.mxu0 %v3139_v35  ;;  %v2271_v35 = vor.u32 %v2270_v27, %v10392_v40 }
 0x27b   :  { %v5796_v22 = vpop.f32.mrf.mxu1  ;;  %10477 = vst [vmem:[#allocation60_spill] sm:$0xff] %v8801_v7  ;;  %6229 = vmatprep.mubr.msk.bf16.mxu0 %vm6798_vm0, %v10295_v6 }
 0x27c   :  { %v5947_v8 = vpop.f32.mrf.mxu0 }
 0x27d   :  { %v8805_v11 = vpop.f32.mrf.mxu1  ;;  %6002 = vmatmul.mubr.bf16.gmra.mxu1 %v2269_v30  ;;  %v3144_v30 = vrot.slane %v7967_v58, 4 }
 0x27e   :  { %10478 = vst [vmem:[#allocation63_spill] sm:$0xff] %v8805_v11  ;;  %6005 = vmatprep.mubr.msk.bf16.mxu1 %vm6798_vm0, %v10295_v6  ;;  %v8811_v9 = vpop.f32.mrf.mxu0 }
 0x27f   :  { %v5799_v22 = vpop.f32.mrf.mxu1  ;;  %10479 = vst [vmem:[#allocation65_spill] sm:$0xff] %v8811_v9  ;;  %v3149_v9 = vrot.slane %v8003_v2, 5 }
 0x280   :  { %v5948_v37 = vpop.f32.mrf.mxu0  ;;  %v2272_v22 = vsel %vm2247_vm3, %v2267_v18, %v2271_v35 }
 0x281   :  { %v8814_v7 = vpop.f32.mrf.mxu1 }
 0x282   :  { %10480 = vst [vmem:[#allocation64_spill] sm:$0xff] %v8814_v7  ;;  %v8819_v8 = vpop.f32.mrf.mxu0  ;;  %6230 = vmatmul.mubr.bf16.gmra.mxu0 %v3143_v42  ;;  %v2274_v42 = vor.u32 %v2273_v29, %v7997_v5 }
 0x283   :  { %v5800_v11 = vpop.f32.mrf.mxu1  ;;  %10481 = vst [vmem:[#allocation10_spill] sm:$0xff] %v8819_v8  ;;  %6233 = vmatprep.mubr.msk.bf16.mxu0 %vm6798_vm0, %v10295_v6 }
 0x284   :  { %v5951_v37 = vpop.f32.mrf.mxu0  ;;  %v3146_v11 = vor.u32 %v3145_v51, %v3144_v30  ;;  %v2276_v51 = vrot.slane %v8000_v38, 7 }
 0x285   :  { %v8823_v56 = vpop.f32.mrf.mxu1  ;;  %6006 = vmatmul.mubr.bf16.gmra.mxu1 %v2272_v22  ;;  %v3148_v22 = vrot.slane %v8000_v38, 4 }
 0x286   :  { %10482 = vst [vmem:[#allocation69_spill] sm:$0xff] %v8823_v56  ;;  %6009 = vmatprep.mubr.msk.bf16.mxu1 %vm6798_vm0, %v10295_v6  ;;  %v8829_v7 = vpop.f32.mrf.mxu0  ;;  %v3147_v35 = vsel %vm3112_vm9, %v3142_v26, %v3146_v11 }
 0x287   :  { %v5803_v63 = vpop.f32.mrf.mxu1  ;;  %10483 = vst [vmem:[#allocation68_spill] sm:$0xff] %v8829_v7 }
 0x288   :  { %v5952_v18 = vpop.f32.mrf.mxu0  ;;  %v2275_v63 = vsel %vm2247_vm3, %v2270_v27, %v2274_v42 }
 0x289   :  { %v8832_v8 = vpop.f32.mrf.mxu1 }
 0x28a   :  { %10484 = vst [vmem:[#allocation70_spill] sm:$0xff] %v8832_v8  ;;  %v8837_v37 = vpop.f32.mrf.mxu0  ;;  %6234 = vmatmul.mubr.bf16.gmra.mxu0 %v3147_v35  ;;  %v2277_v35 = vor.u32 %v2276_v51, %v8003_v2 }
 0x28b   :  { %v5804_v56 = vpop.f32.mrf.mxu1  ;;  %10485 = vst [vmem:[#allocation67_spill] sm:$0xff] %v8837_v37  ;;  %6237 = vmatprep.mubr.msk.bf16.mxu0 %vm6798_vm0, %v10295_v6 }
 0x28c   :  { %v5955_v18 = vpop.f32.mrf.mxu0  ;;  %v3150_v56 = vor.u32 %v3149_v9, %v3148_v22  ;;  %v2279_v9 = vrot.slane %v8036_v61, 7 }
 0x28d   :  { %v8841_v30 = vpop.f32.mrf.mxu1  ;;  %6010 = vmatmul.mubr.bf16.gmra.mxu1 %v2275_v63  ;;  %v3152_v63 = vrot.slane %v8036_v61, 4  ;;  %v2278_v18 = vsel %vm2247_vm3, %v2273_v29, %v2277_v35 }
 0x28e   :  { %10486 = vst [vmem:[#allocation75_spill] sm:$0xff] %v8841_v30  ;;  %6013 = vmatprep.mubr.msk.bf16.mxu1 %vm6798_vm0, %v10295_v6  ;;  %v8847_v8 = vpop.f32.mrf.mxu0  ;;  %v3151_v42 = vsel %vm3112_vm9, %v3146_v11, %v3150_v56  ;;  %v3153_v30 = vrot.slane %v8051_v21, 5 }
 0x28f   :  { %v5807_v26 = vpop.f32.mrf.mxu1  ;;  %10487 = vst [vmem:[#allocation76_spill] sm:$0xff] %v8847_v8  ;;  %v3157_v8 = vrot.slane %v8091_v19, 5 }
 0x290   :  { %v5956_v27 = vpop.f32.mrf.mxu0  ;;  %v3154_v11 = vor.u32 %v3153_v30, %v3152_v63  ;;  %v2282_v30 = vrot.slane %v8088_v10, 7 }
 0x291   :  { %v1556_v37 = vpop.f32.mrf.mxu1  ;;  %v2280_v27 = vor.u32 %v2279_v9, %v8051_v21 }
 0x292   :  { %v8853_v60 = vpop.f32.mrf.mxu0  ;;  %6238 = vmatmul.mubr.bf16.gmra.mxu0 %v3151_v42  ;;  %v3155_v35 = vsel %vm3112_vm9, %v3150_v56, %v3154_v11 }
 0x293   :  { %v5808_v7 = vpop.f32.mrf.mxu1  ;;  %10488 = vst [vmem:[#allocation77_spill] sm:$0xff] %v8853_v60  ;;  %6241 = vmatprep.mubr.msk.bf16.mxu0 %vm6798_vm0, %v10295_v6 }
 0x294   :  { %v5959_v37 = vpop.f32.mrf.mxu0 }
 0x295   :  { %v8857_v22 = vpop.f32.mrf.mxu1  ;;  %6014 = vmatmul.mubr.bf16.gmra.mxu1 %v2278_v18  ;;  %v3156_v18 = vrot.slane %v8088_v10, 4  ;;  %v2281_v37 = vsel %vm2247_vm3, %v2276_v51, %v2280_v27 }
 0x296   :  { %6017 = vmatprep.mubr.msk.bf16.mxu1 %vm6798_vm0, %v10295_v6  ;;  %v2198_v26 = vpop.f32.mrf.mxu0 }
 0x297   :  { %v5827_v7 = vpop.f32.mrf.mxu1  ;;  %v3158_v56 = vor.u32 %v3157_v8, %v3156_v18 }
 0x298   :  { %v5960_v29 = vpop.f32.mrf.mxu0 }
 0x299   :  { %v8864_v42 = vpop.f32.mrf.mxu1  ;;  %v2283_v29 = vor.u32 %v2282_v30, %v8091_v19  ;;  %v3159_v27 = vsel %vm3112_vm9, %v3154_v11, %v3158_v56 }
 0x29a   :  { %v8869_v62 = vpop.f32.mrf.mxu0  ;;  %6242 = vmatmul.mubr.bf16.gmra.mxu0 %v3155_v35 }
 0x29b   :  { %v5828_v60 = vpop.f32.mrf.mxu1  ;;  %10489 = vst [vmem:[#allocation78_spill] sm:$0xff] %v8869_v62  ;;  %6245 = vmatprep.mubr.msk.bf16.mxu0 %vm6798_vm0, %v10295_v6 }
 0x29c   :  { %v6055_v7 = vpop.f32.mrf.mxu0 }
 0x29d   :  { %v8873_v63 = vpop.f32.mrf.mxu1  ;;  %6018 = vmatmul.mubr.bf16.gmra.mxu1 %v2281_v37  ;;  %v2284_v7 = vsel %vm2247_vm3, %v2279_v9, %v2283_v29  ;;  %v3163_v29 = vsel %vm3112_vm9, %v3158_v56, %v8279_v33 }
 0x29e   :  { %6021 = vmatprep.mubr.msk.bf16.mxu1 %vm6798_vm0, %v10295_v6  ;;  %v8879_v26 = vpop.f32.mrf.mxu0 }
 0x29f   :  { %v5831_v60 = vpop.f32.mrf.mxu1  ;;  %10490 = vst [vmem:[#allocation79_spill] sm:$0xff] %v8879_v26  ;;  %v3738_v26 = vrot.slane %v7516_v47, 6 }
 0x2a0   :  { %v6056_v51 = vpop.f32.mrf.mxu0 }
 0x2a1   :  { %v8882_v35 = vpop.f32.mrf.mxu1 }
 0x2a2   :  { %v8885_v37 = vpop.f32.mrf.mxu0  ;;  %6246 = vmatmul.mubr.bf16.gmra.mxu0 %v3159_v27 }
 0x2a3   :  { %v5832_v62 = vpop.f32.mrf.mxu1  ;;  %10491 = vst [vmem:[#allocation80_spill] sm:$0xff] %v8885_v37  ;;  %6249 = vmatprep.mubr.msk.bf16.mxu0 %vm6798_vm0, %v10295_v6 }
 0x2a4   :  { %v6059_v8 = vpop.f32.mrf.mxu0  ;;  %v10493_v62 = vrot.slane %v8127_v41, 7 }
 0x2a5   :  { %v8888_v12 = vpop.f32.mrf.mxu1  ;;  %6022 = vmatmul.mubr.bf16.gmra.mxu1 %v2284_v7 }
 0x2a6   :  { %6025 = vmatprep.mubr.msk.bf16.mxu1 %vm6798_vm0, %v10295_v6  ;;  %v8894_v60 = vpop.f32.mrf.mxu0  ;;  %v2286_v11 = vor.u32 %v10493_v62, %v8130_v52 }
 0x2a7   :  { %v5835_v18 = vpop.f32.mrf.mxu1  ;;  %10492 = vst [vmem:[#allocation81_spill] sm:$0xff] %v8894_v60  ;;  %v3737_v60 = vrot.slane %v7513_v57, 5 }
 0x2a8   :  { %v6060_v9 = vpop.f32.mrf.mxu0  ;;  %v2287_v8 = vsel %vm2247_vm3, %v2282_v30, %v2286_v11  ;;  %v10497_v30 = vld [vmem:[#allocation71_spill] sm:$0xff] }
 0x2a9   :  { %v8899_v51 = vpop.f32.mrf.mxu1 }
 0x2aa   :  { %v8903_v7 = vpop.f32.mrf.mxu0  ;;  %6250 = vmatmul.mubr.bf16.gmra.mxu0 %v3163_v29 }
 0x2ab   :  { %v5836_v27 = vpop.f32.mrf.mxu1  ;;  %10494 = vst [vmem:[#allocation82_spill] sm:$0xff] %v8903_v7  ;;  %6253 = vmatprep.mubr.msk.bf16.mxu0 %vm6798_vm0, %v10295_v6 }
 0x2ac   :  { %v6063_v41 = vpop.f32.mrf.mxu0 }
 0x2ad   :  { %v8906_v37 = vpop.f32.mrf.mxu1  ;;  %6026 = vmatmul.mubr.bf16.gmra.mxu1 %v2287_v8 }
 0x2ae   :  { %6029 = vmatprep.mubr.msk.bf16.mxu1 %vm6798_vm0, %v10295_v6  ;;  %v8912_v62 = vpop.f32.mrf.mxu0 }
 0x2af   :  { %v5839_v18 = vpop.f32.mrf.mxu1  ;;  %10495 = vst [vmem:[#allocation83_spill] sm:$0xff] %v8912_v62 }
 0x2b0   :  { %v6064_v56 = vpop.f32.mrf.mxu0 }
 0x2b1   :  { %v8914_v33 = vpop.f32.mrf.mxu1 }
 0x2b2   :  { %v8916_v29 = vpop.f32.mrf.mxu0  ;;  %6254 = vmatmul.mubr.bf16.gmra.mxu0 %v10497_v30  ;;  %v10501_v30 = vld [vmem:[#allocation72_spill] sm:$0xff] }
 0x2b3   :  { %v5840_v9 = vpop.f32.mrf.mxu1  ;;  %10496 = vst [vmem:[#allocation84_spill] sm:$0xff] %v8916_v29  ;;  %6257 = vmatprep.mubr.msk.bf16.mxu0 %vm6798_vm0, %v10295_v6 }
 0x2b4   :  { %v6067_v27 = vpop.f32.mrf.mxu0 }
 0x2b5   :  { %v8919_v11 = vpop.f32.mrf.mxu1  ;;  %6030 = vmatmul.mubr.bf16.gmra.mxu1 %v8312_v49  ;;  %v10503_v49 = vld [vmem:[#allocation73_spill] sm:$0xff] }
 0x2b6   :  { %6033 = vmatprep.mubr.msk.bf16.mxu1 %vm6798_vm0, %v10295_v6  ;;  %v8926_v41 = vpop.f32.mrf.mxu0 }
 0x2b7   :  { %v5843_v8 = vpop.f32.mrf.mxu1  ;;  %10498 = vst [vmem:[#allocation71_spill] sm:$0xff] %v8926_v41 }
 0x2b8   :  { %v6068_v56 = vpop.f32.mrf.mxu0  ;;  %v2807_v8 = vrot.slane %v7434_v3, 1 }
 0x2b9   :  { %v8928_v18 = vpop.f32.mrf.mxu1 }
 0x2ba   :  { %10499 = vst [vmem:[#allocation85_spill] sm:$0xff] %v8928_v18  ;;  %v8930_v29 = vpop.f32.mrf.mxu0  ;;  %6258 = vmatmul.mubr.bf16.gmra.mxu0 %v10501_v30  ;;  %v2808_v7 = vor.u32 %v2807_v8, %v7431_v1  ;;  %v3734_v8 = vrot.slane %v7431_v1, 5 }
 0x2bb   :  { %v5844_v9 = vpop.f32.mrf.mxu1  ;;  %10500 = vst [vmem:[#allocation86_spill] sm:$0xff] %v8930_v29  ;;  %6261 = vmatprep.mubr.msk.bf16.mxu0 %vm6798_vm0, %v10295_v6 }
 0x2bc   :  { %v6071_v27 = vpop.f32.mrf.mxu0  ;;  %v2809_v9 = vrot.slane %v7516_v47, 1  ;;  %v6528_v47 = vld [vmem:[%s10180_s4 + $0x1f0] sm:$0xff]  }
 0x2bd   :  { %v8933_v62 = vpop.f32.mrf.mxu1  ;;  %6034 = vmatmul.mubr.bf16.gmra.mxu1 %v10503_v49  ;;  %v6526_v49 = vld [vmem:[%s10180_s4 + $0x1f8] sm:$0xff]  }
 0x2be   :  { %10502 = vst [vmem:[#allocation72_spill] sm:$0xff] %v8933_v62  ;;  %6129 = vmatprep.mubr.msk.bf16.mxu1 %vm6798_vm0, %v10295_v6  ;;  %v8941_v56 = vpop.f32.mrf.mxu0 }
 0x2bf   :  { %v5847_v41 = vpop.f32.mrf.mxu1  ;;  %10504 = vst [vmem:[#allocation73_spill] sm:$0xff] %v8941_v56  ;;  %v2810_v56 = vsel %vm2806_vm15, %v2808_v7, %v2809_v9 }
 0x2c0   :  { %v6072_v30 = vpop.f32.mrf.mxu0  ;;  %v10507_v41 = vld [vmem:[#allocation74_spill] sm:$0xff] }
 0x2c1   :  { %v8944_v29 = vpop.f32.mrf.mxu1  ;;  %v3735_v30 = vrot.slane %v7434_v3, 6 }
 0x2c2   :  { %10505 = vst [vmem:[#allocation87_spill] sm:$0xff] %v8944_v29  ;;  %v8952_v62 = vpop.f32.mrf.mxu0  ;;  %6262 = vmatmul.mubr.bf16.gmra.mxu0 %v10507_v41  ;;  %v3739_v41 = vor.u32 %v3738_v26, %v3737_v60  ;;  %v3741_v60 = vrot.slane %v7597_v16, 5 }
 0x2c3   :  { %v5848_v27 = vpop.f32.mrf.mxu1  ;;  %10506 = vst [vmem:[#allocation88_spill] sm:$0xff] %v8952_v62  ;;  %6357 = vmatprep.mubr.msk.bf16.mxu0 %vm6798_vm0, %v10295_v6  ;;  %v2812_v62 = vrot.slane %v7600_v0, 1  ;;  %v3736_v3 = vor.u32 %v3735_v30, %v3734_v8 }
 0x2c4   :  { %v6075_v27 = vpop.f32.mrf.mxu0 }
 0x2c5   :  { %v8956_v18 = vpop.f32.mrf.mxu1  ;;  %6130 = vmatmul.mubr.bf16.vlgmr.msra.gmra.mxu1 %v2810_v56 }
 0x2c6   :  { %10508 = vst [vmem:[#allocation74_spill] sm:$0xff] %v8956_v18  ;;  %6266 = vmatpush3.bf16.msra.mxu1 %v6526_v49  ;;  %6133 = vmatprep.mubr.msk.bf16.mxu1 %vm6798_vm0, %v10295_v6  ;;  %v8968_v56 = vpop.f32.mrf.mxu0  ;;  %v2811_v49 = vor.u32 %v2809_v9, %v7513_v57  ;;  %v6529_v18 = vld [vmem:[%s10180_s4 + $0x1e8] sm:$0xff]  }
 0x2c7   :  { %v5851_v7 = vpop.f32.mrf.mxu1  ;;  %6267 = vmatprep.subr.bf16.mxu1 %v10295_v6  ;;  %10509 = vst [vmem:[#allocation89_spill] sm:$0xff] %v8968_v56  ;;  %v3742_v56 = vrot.slane %v7600_v0, 6  ;;  %v6530_v0 = vld [vmem:[%s10180_s4 + $0x1e0] sm:$0xff]  }
 0x2c8   :  { %v6076_v27 = vpop.f32.mrf.mxu0  ;;  %v3740_v7 = vsel %vm3733_vm5, %v3736_v3, %v3739_v41  ;;  %v2813_v8 = vsel %vm2806_vm15, %v2811_v49, %v2812_v62 }
 0x2c9   :  { %v8971_v1 = vpop.f32.mrf.mxu1  ;;  %v2815_v27 = vrot.slane %v7674_v44, 1 }
 0x2ca   :  { %6268 = vmatpush3.bf16.msra.mxu1 %v6528_v47  ;;  %v8981_v29 = vpop.f32.mrf.mxu0  ;;  %6358 = vmatmul.mubr.bf16.vlgmr.msra.gmra.mxu0 %v3740_v7  ;;  %v3743_v47 = vor.u32 %v3742_v56, %v3741_v60  ;;  %v3745_v56 = vrot.slane %v7671_v17, 5  ;;  %v3746_v60 = vrot.slane %v7674_v44, 6  ;;  %v6532_v44 = vld [vmem:[%s10180_s4 + $0x1d0] sm:$0xff]  }
 0x2cb   :  { %v5852_v26 = vpop.f32.mrf.mxu1  ;;  %6269 = vmatprep.subr.bf16.mxu1 %v10295_v6  ;;  %10510 = vst [vmem:[#allocation90_spill] sm:$0xff] %v8981_v29  ;;  %6361 = vmatprep.mubr.msk.bf16.mxu0 %vm6798_vm0, %v10295_v6 }
 0x2cc   :  { %v6079_v9 = vpop.f32.mrf.mxu0  ;;  %v2814_v26 = vor.u32 %v2812_v62, %v7597_v16 }
 0x2cd   :  { %v8984_v57 = vpop.f32.mrf.mxu1  ;;  %6134 = vmatmul.mubr.bf16.gmra.mxu1 %v2813_v8  ;;  %v3744_v8 = vsel %vm3733_vm5, %v3739_v41, %v3743_v47 }
 0x2ce   :  { %6137 = vmatprep.mubr.msk.bf16.mxu1 %vm6798_vm0, %v10295_v6  ;;  %6270 = vmatpush3.bf16.msra.mxu1 %v6529_v18  ;;  %v8994_v3 = vpop.f32.mrf.mxu0  ;;  %v6531_v18 = vld [vmem:[%s10180_s4 + $0x1d8] sm:$0xff]  }
 0x2cf   :  { %v5855_v30 = vpop.f32.mrf.mxu1  ;;  %6271 = vmatprep.subr.bf16.mxu1 %v10295_v6  ;;  %10511 = vst [vmem:[#allocation91_spill] sm:$0xff] %v8994_v3  ;;  %v3753_v3 = vrot.slane %v10368_v23, 5 }
 0x2d0   :  { %v6080_v7 = vpop.f32.mrf.mxu0 }
 0x2d1   :  { %v8997_v49 = vpop.f32.mrf.mxu1  ;;  %v2816_v7 = vsel %vm2806_vm15, %v2814_v26, %v2815_v27 }
 0x2d2   :  { %6272 = vmatpush3.bf16.msra.mxu1 %v6530_v0  ;;  %v9007_v30 = vpop.f32.mrf.mxu0  ;;  %6362 = vmatmul.mubr.bf16.gmra.mxu0 %v3744_v8  ;;  %v3747_v0 = vor.u32 %v3746_v60, %v3745_v56  ;;  %v2818_v8 = vrot.slane %v10360_v32, 1  ;;  %v3749_v56 = vrot.slane %v10359_v43, 5  ;;  %v3750_v60 = vrot.slane %v10360_v32, 6  ;;  %v6534_v32 = vld [vmem:[%s10180_s4 + $0x1c0] sm:$0xff]  }
 0x2d3   :  { %v5856_v9 = vpop.f32.mrf.mxu1  ;;  %6273 = vmatprep.subr.bf16.mxu1 %v10295_v6  ;;  %10512 = vst [vmem:[#allocation92_spill] sm:$0xff] %v9007_v30  ;;  %6365 = vmatprep.mubr.msk.bf16.mxu0 %vm6798_vm0, %v10295_v6 }
 0x2d4   :  { %v6083_v62 = vpop.f32.mrf.mxu0  ;;  %v3748_v30 = vsel %vm3733_vm5, %v3743_v47, %v3747_v0 }
 0x2d5   :  { %v9010_v16 = vpop.f32.mrf.mxu1  ;;  %6138 = vmatmul.mubr.bf16.gmra.mxu1 %v2816_v7  ;;  %v2817_v62 = vor.u32 %v2815_v27, %v7671_v17 }
 0x2d6   :  { %6141 = vmatprep.mubr.msk.bf16.mxu1 %vm6798_vm0, %v10295_v6  ;;  %6274 = vmatpush3.bf16.msra.mxu1 %v6531_v18  ;;  %v9020_v26 = vpop.f32.mrf.mxu0  ;;  %v6533_v18 = vld [vmem:[%s10180_s4 + $0x1c8] sm:$0xff]  }
 0x2d7   :  { %v5859_v41 = vpop.f32.mrf.mxu1  ;;  %6275 = vmatprep.subr.bf16.mxu1 %v10295_v6  ;;  %10513 = vst [vmem:[#allocation93_spill] sm:$0xff] %v9020_v26 }
 0x2d8   :  { %v6084_v7 = vpop.f32.mrf.mxu0 }
 0x2d9   :  { %v9023_v9 = vpop.f32.mrf.mxu1  ;;  %v2819_v7 = vsel %vm2806_vm15, %v2817_v62, %v2818_v8  ;;  %v2821_v62 = vrot.slane %v10369_v50, 1 }
 0x2da   :  { %6276 = vmatpush3.bf16.msra.mxu1 %v6532_v44  ;;  %v9033_v26 = vpop.f32.mrf.mxu0  ;;  %6366 = vmatmul.mubr.bf16.gmra.mxu0 %v3748_v30  ;;  %v3751_v44 = vor.u32 %v3750_v60, %v3749_v56 }
 0x2db   :  { %v5860_v41 = vpop.f32.mrf.mxu1  ;;  %6277 = vmatprep.subr.bf16.mxu1 %v10295_v6  ;;  %10514 = vst [vmem:[#allocation94_spill] sm:$0xff] %v9033_v26  ;;  %6369 = vmatprep.mubr.msk.bf16.mxu0 %vm6798_vm0, %v10295_v6 }
 0x2dc   :  { %v6087_v27 = vpop.f32.mrf.mxu0 }
 0x2dd   :  { %v9036_v17 = vpop.f32.mrf.mxu1  ;;  %6142 = vmatmul.mubr.bf16.gmra.mxu1 %v2819_v7  ;;  %v2820_v27 = vor.u32 %v2818_v8, %v10359_v43  ;;  %v2824_v8 = vrot.slane %v10375_v15, 1 }
 0x2de   :  { %6145 = vmatprep.mubr.msk.bf16.mxu1 %vm6798_vm0, %v10295_v6  ;;  %6278 = vmatpush3.bf16.msra.mxu1 %v6533_v18  ;;  %v9046_v30 = vpop.f32.mrf.mxu0  ;;  %v3752_v18 = vsel %vm3733_vm5, %v3747_v0, %v3751_v44 }
 0x2df   :  { %v5863_v47 = vpop.f32.mrf.mxu1  ;;  %6279 = vmatprep.subr.bf16.mxu1 %v10295_v6  ;;  %10515 = vst [vmem:[#allocation95_spill] sm:$0xff] %v9046_v30  ;;  %v2822_v60 = vsel %vm2806_vm15, %v2820_v27, %v2821_v62  ;;  %v2823_v27 = vor.u32 %v2821_v62, %v10368_v23 }
 0x2e0   :  { %v6088_v7 = vpop.f32.mrf.mxu0  ;;  %v3754_v47 = vrot.slane %v10369_v50, 6 }
 0x2e1   :  { %v9049_v41 = vpop.f32.mrf.mxu1 }
 0x2e2   :  { %6280 = vmatpush3.bf16.msra.mxu1 %v6534_v32  ;;  %v9056_v56 = vpop.f32.mrf.mxu0  ;;  %6370 = vmatmul.mubr.bf16.gmra.mxu0 %v3752_v18 }
 0x2e3   :  { %v5864_v26 = vpop.f32.mrf.mxu1  ;;  %6417 = vmatprep.subr.bf16.mxu1 %v10295_v6  ;;  %10516 = vst [vmem:[#allocation96_spill] sm:$0xff] %v9056_v56  ;;  %6373 = vmatprep.mubr.msk.bf16.mxu0 %vm6798_vm0, %v10295_v6  ;;  %v3757_v56 = vrot.slane %v10370_v28, 5 }
 0x2e4   :  { %v6091_v43 = vpop.f32.mrf.mxu0  ;;  %v3755_v26 = vor.u32 %v3754_v47, %v3753_v3  ;;  %v2825_v3 = vsel %vm2806_vm15, %v2823_v27, %v2824_v8  ;;  %v2826_v27 = vor.u32 %v2824_v8, %v10370_v28 }
 0x2e5   :  { %v9059_v30 = vpop.f32.mrf.mxu1  ;;  %6146 = vmatmul.mubr.bf16.gmra.mxu1 %v2822_v60  ;;  %v3758_v43 = vrot.slane %v10375_v15, 6  ;;  %v2827_v15 = vrot.slane %v10392_v40, 1 }
 0x2e6   :  { %6149 = vmatprep.mubr.msk.bf16.mxu1 %vm6798_vm0, %v10295_v6  ;;  %v9065_v50 = vpop.f32.mrf.mxu0  ;;  %v3756_v18 = vsel %vm3733_vm5, %v3751_v44, %v3755_v26 }
 0x2e7   :  { %v5867_v0 = vpop.f32.mrf.mxu1  ;;  %10517 = vst [vmem:[#allocation97_spill] sm:$0xff] %v9065_v50  ;;  %v3759_v44 = vor.u32 %v3758_v43, %v3757_v56  ;;  %v2828_v56 = vsel %vm2806_vm15, %v2826_v27, %v2827_v15  ;;  %v2829_v27 = vor.u32 %v2827_v15, %v10387_v59 }
 0x2e8   :  { %v6092_v7 = vpop.f32.mrf.mxu0 }
 0x2e9   :  { %v9068_v32 = vpop.f32.mrf.mxu1 }
 0x2ea   :  { %v9074_v29 = vpop.f32.mrf.mxu0  ;;  %6374 = vmatmul.mubr.bf16.gmra.mxu0 %v3756_v18 }
 0x2eb   :  { %v5868_v60 = vpop.f32.mrf.mxu1  ;;  %10518 = vst [vmem:[#allocation98_spill] sm:$0xff] %v9074_v29  ;;  %6377 = vmatprep.mubr.msk.bf16.mxu0 %vm6798_vm0, %v10295_v6  ;;  %v3761_v29 = vrot.slane %v10387_v59, 5 }
 0x2ec   :  { %v6095_v0 = vpop.f32.mrf.mxu0  ;;  %v3760_v60 = vsel %vm3733_vm5, %v3755_v26, %v3759_v44 }
 0x2ed   :  { %v9077_v47 = vpop.f32.mrf.mxu1  ;;  %6150 = vmatmul.mubr.bf16.gmra.mxu1 %v2825_v3  ;;  %v3762_v0 = vrot.slane %v10392_v40, 6  ;;  %v2830_v40 = vrot.slane %v7997_v5, 1 }
 0x2ee   :  { %6153 = vmatprep.mubr.msk.bf16.mxu1 %vm6798_vm0, %v10295_v6  ;;  %v9083_v62 = vpop.f32.mrf.mxu0 }
 0x2ef   :  { %v5871_v23 = vpop.f32.mrf.mxu1  ;;  %10519 = vst [vmem:[#allocation99_spill] sm:$0xff] %v9083_v62  ;;  %v3763_v26 = vor.u32 %v3762_v0, %v3761_v29  ;;  %v2831_v29 = vsel %vm2806_vm15, %v2829_v27, %v2830_v40  ;;  %v2832_v27 = vor.u32 %v2830_v40, %v7967_v58 }
 0x2f0   :  { %v6096_v18 = vpop.f32.mrf.mxu0 }
 0x2f1   :  { %v9086_v7 = vpop.f32.mrf.mxu1 }
 0x2f2   :  { %v9092_v50 = vpop.f32.mrf.mxu0  ;;  %6378 = vmatmul.mubr.bf16.gmra.mxu0 %v3760_v60 }
 0x2f3   :  { %v5872_v3 = vpop.f32.mrf.mxu1  ;;  %10520 = vst [vmem:[#allocation100_spill] sm:$0xff] %v9092_v50  ;;  %6381 = vmatprep.mubr.msk.bf16.mxu0 %vm6798_vm0, %v10295_v6  ;;  %v3765_v50 = vrot.slane %v7967_v58, 5 }
 0x2f4   :  { %v6099_v23 = vpop.f32.mrf.mxu0  ;;  %v3764_v3 = vsel %vm3733_vm5, %v3759_v44, %v3763_v26 }
 0x2f5   :  { %v9095_v43 = vpop.f32.mrf.mxu1  ;;  %6154 = vmatmul.mubr.bf16.gmra.mxu1 %v2828_v56  ;;  %v3766_v23 = vrot.slane %v7997_v5, 6  ;;  %v2833_v5 = vrot.slane %v8003_v2, 1 }
 0x2f6   :  { %6157 = vmatprep.mubr.msk.bf16.mxu1 %vm6798_vm0, %v10295_v6  ;;  %v9101_v8 = vpop.f32.mrf.mxu0 }
 0x2f7   :  { %v5875_v28 = vpop.f32.mrf.mxu1  ;;  %10521 = vst [vmem:[#allocation101_spill] sm:$0xff] %v9101_v8  ;;  %v3767_v44 = vor.u32 %v3766_v23, %v3765_v50  ;;  %v2834_v50 = vsel %vm2806_vm15, %v2832_v27, %v2833_v5 }
 0x2f8   :  { %v6100_v60 = vpop.f32.mrf.mxu0 }
 0x2f9   :  { %v9104_v18 = vpop.f32.mrf.mxu1 }
 0x2fa   :  { %v9110_v62 = vpop.f32.mrf.mxu0  ;;  %6382 = vmatmul.mubr.bf16.gmra.mxu0 %v3764_v3 }
 0x2fb   :  { %v5876_v56 = vpop.f32.mrf.mxu1  ;;  %10522 = vst [vmem:[#allocation102_spill] sm:$0xff] %v9110_v62  ;;  %6385 = vmatprep.mubr.msk.bf16.mxu0 %vm6798_vm0, %v10295_v6  ;;  %v3769_v62 = vrot.slane %v8000_v38, 5 }
 0x2fc   :  { %v6103_v28 = vpop.f32.mrf.mxu0  ;;  %v3768_v56 = vsel %vm3733_vm5, %v3763_v26, %v3767_v44 }
 0x2fd   :  { %v9113_v0 = vpop.f32.mrf.mxu1  ;;  %6158 = vmatmul.mubr.bf16.gmra.mxu1 %v2831_v29  ;;  %v3770_v28 = vrot.slane %v8003_v2, 6  ;;  %v1792_v2 = vadd.f32 %v8857_v22, %v8471_v34 }
 0x2fe   :  { %6161 = vmatprep.mubr.msk.bf16.mxu1 %vm6798_vm0, %v10295_v6  ;;  %v9119_v15 = vpop.f32.mrf.mxu0 }
 0x2ff   :  { %v5879_v59 = vpop.f32.mrf.mxu1  ;;  %10523 = vst [vmem:[#allocation103_spill] sm:$0xff] %v9119_v15  ;;  %v3771_v26 = vor.u32 %v3770_v28, %v3769_v62  ;;  %v3774_v15 = vrot.slane %v8051_v21, 6  ;;  %v1795_v62 = vadd.f32 %v8864_v42, %v8483_v55  ;;  %v2201_v34 = vadd.f32 %v8499_v36, %v1792_v2 }
 0x300   :  { %v6104_v3 = vpop.f32.mrf.mxu0  ;;  %v1800_v42 = vadd.f32 %v8873_v63, %v8517_v25  ;;  %v1803_v25 = vadd.f32 %v8882_v35, %v8519_v14  ;;  %v1808_v35 = vadd.f32 %v8888_v12, %v8537_v48  ;;  %v10525_v12 = vrot.slane %v8130_v52, 1 }
 0x301   :  { %v9122_v60 = vpop.f32.mrf.mxu1  ;;  %v2836_v3 = vrot.slane %v8051_v21, 1  ;;  %v2202_v36 = vadd.f32 %v8513_v54, %v1795_v62 }
 0x302   :  { %v9128_v8 = vpop.f32.mrf.mxu0  ;;  %6386 = vmatmul.mubr.bf16.gmra.mxu0 %v3768_v56  ;;  %v2203_v54 = vadd.f32 %v8533_v39, %v1800_v42  ;;  %v2204_v39 = vadd.f32 %v8539_v53, %v1803_v25  ;;  %v2205_v48 = vadd.f32 %v8553_v24, %v1808_v35  ;;  %v1819_v25 = vadd.f32 %v8914_v33, %v8572_v4 }
 0x303   :  { %v5880_v29 = vpop.f32.mrf.mxu1  ;;  %10524 = vst [vmem:[#allocation104_spill] sm:$0xff] %v9128_v8  ;;  %6389 = vmatprep.mubr.msk.bf16.mxu0 %vm6798_vm0, %v10295_v6 }
 0x304   :  { %v6107_v59 = vpop.f32.mrf.mxu0  ;;  %v2835_v29 = vor.u32 %v2833_v5, %v8000_v38  ;;  %v2839_v5 = vrot.slane %v8091_v19, 1 }
 0x305   :  { %v9131_v23 = vpop.f32.mrf.mxu1  ;;  %6162 = vmatmul.mubr.bf16.gmra.mxu1 %v2834_v50  ;;  %v3772_v50 = vsel %vm3733_vm5, %v3767_v44, %v3771_v26  ;;  %v3773_v59 = vrot.slane %v8036_v61, 5 }
 0x306   :  { %6165 = vmatprep.mubr.msk.bf16.mxu1 %vm6798_vm0, %v10295_v6  ;;  %v9139_v40 = vpop.f32.mrf.mxu0  ;;  %v2837_v22 = vsel %vm2806_vm15, %v2835_v29, %v2836_v3  ;;  %v2838_v29 = vor.u32 %v2836_v3, %v8036_v61  ;;  %v2841_v42 = vor.u32 %v2839_v5, %v8088_v10 }
 0x307   :  { %v5883_v58 = vpop.f32.mrf.mxu1  ;;  %v3775_v55 = vor.u32 %v3774_v15, %v3773_v59  ;;  %v3778_v15 = vrot.slane %v8091_v19, 6 }
 0x308   :  { %v6108_v56 = vpop.f32.mrf.mxu0  ;;  %v2840_v59 = vsel %vm2806_vm15, %v2838_v29, %v2839_v5  ;;  %v2843_v53 = vsel %vm2806_vm15, %v2841_v42, %v10525_v12  ;;  %v10530_v42 = vld [vmem:[#allocation85_spill] sm:$0xff] }
 0x309   :  { %v1906_v27 = vpop.f32.mrf.mxu1 }
 0x30a   :  { %v9148_v28 = vpop.f32.mrf.mxu0  ;;  %6390 = vmatmul.mubr.bf16.gmra.mxu0 %v3772_v50  ;;  %v3776_v50 = vsel %vm3733_vm5, %v3771_v26, %v3775_v55 }
 0x30b   :  { %v5884_v8 = vpop.f32.mrf.mxu1  ;;  %6393 = vmatprep.mubr.msk.bf16.mxu0 %vm6798_vm0, %v10295_v6 }
 0x30c   :  { %v6111_v38 = vpop.f32.mrf.mxu0 }
 0x30d   :  { %v2396_v58 = vpop.f32.mrf.mxu1  ;;  %6166 = vmatmul.mubr.bf16.gmra.mxu1 %v2837_v22  ;;  %v3777_v22 = vrot.slane %v8088_v10, 5 }
 0x30e   :  { %v9154_v8 = vadd.f32 %v2396_v58, %v2201_v34  ;;  %6169 = vmatprep.mubr.msk.bf16.mxu1 %vm6798_vm0, %v10295_v6  ;;  %v2757_v44 = vpop.f32.mrf.mxu0 }
 0x30f   :  { %v5979_v21 = vpop.f32.mrf.mxu1  ;;  %v3779_v14 = vor.u32 %v3778_v15, %v3777_v22 }
 0x310   :  { %v6112_v27 = vpop.f32.mrf.mxu0 }
 0x311   :  { %v2399_v2 = vpop.f32.mrf.mxu1  ;;  %v3780_v44 = vsel %vm3733_vm5, %v3775_v55, %v3779_v14  ;;  %v3784_v22 = vsel %vm3733_vm5, %v3779_v14, %v8417_v46 }
 0x312   :  { %v9162_v56 = vadd.f32 %v2399_v2, %v2202_v36  ;;  %v9170_v63 = vpop.f32.mrf.mxu0  ;;  %6394 = vmatmul.mubr.bf16.gmra.mxu0 %v3776_v50  ;;  %v1811_v2 = vadd.f32 %v8899_v51, %v8551_v45  ;;  %v1816_v51 = vadd.f32 %v8906_v37, %v8557_v31 }
 0x313   :  { %v5980_v34 = vpop.f32.mrf.mxu1  ;;  %6397 = vmatprep.mubr.msk.bf16.mxu0 %vm6798_vm0, %v10295_v6 }
 0x314   :  { %v6207_v61 = vpop.f32.mrf.mxu0  ;;  %v2206_v52 = vadd.f32 %v8559_v13, %v1811_v2  ;;  %v2207_v31 = vadd.f32 %v8576_v20, %v1816_v51  ;;  %v10531_v2 = vld [vmem:[#allocation12_spill] sm:$0xff]  ;;  %v10534_v51 = vld [vmem:[#allocation19_spill] sm:$0xff] }
 0x315   :  { %v2404_v62 = vpop.f32.mrf.mxu1  ;;  %6170 = vmatmul.mubr.bf16.gmra.mxu1 %v2840_v59  ;;  %v10526_v59 = vld [vmem:[#allocation31_spill] sm:$0xff]  ;;  %v10527_v61 = vld [vmem:[#allocation41_spill] sm:$0xff] }
 0x316   :  { %v9176_v26 = vadd.f32 %v2404_v62, %v2203_v54  ;;  %6173 = vmatprep.mubr.msk.bf16.mxu1 %vm6798_vm0, %v10295_v6  ;;  %v9182_v3 = vpop.f32.mrf.mxu0  ;;  %v1824_v4 = vadd.f32 %v8919_v11, %v10527_v61  ;;  %v10533_v11 = vld [vmem:[#allocation33_spill] sm:$0xff] }
 0x317   :  { %v5983_v19 = vpop.f32.mrf.mxu1 }
 0x318   :  { %v6208_v38 = vpop.f32.mrf.mxu0  ;;  %v10528_v19 = vld [vmem:[#allocation20_spill] sm:$0xff] }
 0x319   :  { %v2407_v58 = vpop.f32.mrf.mxu1  ;;  %v2208_v20 = vadd.f32 %v10528_v19, %v1819_v25  ;;  %v10529_v38 = vld [vmem:[#allocation17_spill] sm:$0xff]  ;;  %v10539_v19 = vld [vmem:[#allocation14_spill] sm:$0xff] }
 0x31a   :  { %v9185_v21 = vadd.f32 %v2407_v58, %v2204_v39  ;;  %v9191_v27 = vpop.f32.mrf.mxu0  ;;  %6398 = vmatmul.mubr.bf16.gmra.mxu0 %v3780_v44  ;;  %v1827_v44 = vadd.f32 %v10530_v42, %v10529_v38 }
 0x31b   :  { %v5984_v36 = vpop.f32.mrf.mxu1  ;;  %6401 = vmatprep.mubr.msk.bf16.mxu0 %vm6798_vm0, %v10295_v6 }
 0x31c   :  { %v6211_v10 = vpop.f32.mrf.mxu0 }
 0x31d   :  { %v2412_v29 = vpop.f32.mrf.mxu1  ;;  %6174 = vmatmul.mubr.bf16.gmra.mxu1 %v2843_v53 }
 0x31e   :  { %v9199_v55 = vadd.f32 %v2412_v29, %v2205_v48  ;;  %6177 = vmatprep.mubr.msk.bf16.mxu1 %vm6798_vm0, %v10295_v6  ;;  %v9205_v24 = vpop.f32.mrf.mxu0  ;;  %v10532_v48 = vld [vmem:[#allocation45_spill] sm:$0xff] }
 0x31f   :  { %v5987_v45 = vpop.f32.mrf.mxu1  ;;  %v2209_v12 = vadd.f32 %v10532_v48, %v1824_v4  ;;  %v10543_v48 = vld [vmem:[#allocation74_spill] sm:$0xff] }
 0x320   :  { %v6212_v50 = vpop.f32.mrf.mxu0 }
 0x321   :  { %v2415_v5 = vpop.f32.mrf.mxu1 }
 0x322   :  { %v9208_v34 = vadd.f32 %v2415_v5, %v2206_v52  ;;  %v9214_v54 = vpop.f32.mrf.mxu0  ;;  %6402 = vmatmul.mubr.bf16.gmra.mxu0 %v3784_v22  ;;  %v10535_v52 = vld [vmem:[#allocation72_spill] sm:$0xff]  ;;  %v10536_v22 = vld [vmem:[#allocation18_spill] sm:$0xff] }
 0x323   :  { %v5988_v15 = vpop.f32.mrf.mxu1  ;;  %6405 = vmatprep.mubr.msk.bf16.mxu0 %vm6798_vm0, %v10295_v6  ;;  %v1832_v5 = vadd.f32 %v10535_v52, %v10534_v51 }
 0x324   :  { %v6215_v13 = vpop.f32.mrf.mxu0  ;;  %v2210_v15 = vadd.f32 %v10536_v22, %v1827_v44 }
 0x325   :  { %v2420_v37 = vpop.f32.mrf.mxu1  ;;  %6178 = vmatmul.mubr.bf16.gmra.mxu1 %v10526_v59  ;;  %v10537_v13 = vld [vmem:[#allocation23_spill] sm:$0xff] }
 0x326   :  { %v9220_v62 = vadd.f32 %v2420_v37, %v2207_v31  ;;  %6181 = vmatprep.mubr.msk.bf16.mxu1 %vm6798_vm0, %v10295_v6  ;;  %v9226_v33 = vpop.f32.mrf.mxu0 }
 0x327   :  { %v5991_v46 = vpop.f32.mrf.mxu1 }
 0x328   :  { %v6216_v35 = vpop.f32.mrf.mxu0  ;;  %v10538_v46 = vld [vmem:[#allocation87_spill] sm:$0xff] }
 0x329   :  { %v2423_v14 = vpop.f32.mrf.mxu1  ;;  %v1835_v61 = vadd.f32 %v10538_v46, %v10537_v13 }
 0x32a   :  { %v9229_v39 = vadd.f32 %v2423_v14, %v2208_v20  ;;  %v9233_v36 = vpop.f32.mrf.mxu0  ;;  %6406 = vmatmul.mubr.bf16.gmra.mxu0 %v10531_v2  ;;  %v10540_v20 = vld [vmem:[#allocation22_spill] sm:$0xff]  ;;  %v10542_v2 = vld [vmem:[#allocation48_spill] sm:$0xff] }
 0x32b   :  { %v5992_v58 = vpop.f32.mrf.mxu1  ;;  %6409 = vmatprep.mubr.msk.bf16.mxu0 %vm6798_vm0, %v10295_v6  ;;  %v2211_v14 = vadd.f32 %v10540_v20, %v1832_v5 }
 0x32c   :  { %v6219_v29 = vpop.f32.mrf.mxu0  ;;  %v10541_v58 = vld [vmem:[#allocation15_spill] sm:$0xff] }
 0x32d   :  { %v2428_v53 = vpop.f32.mrf.mxu1  ;;  %6182 = vmatmul.mubr.bf16.gmra.mxu1 %v10533_v11  ;;  %v10544_v11 = vld [vmem:[#allocation25_spill] sm:$0xff] }
 0x32e   :  { %v9240_v10 = vadd.f32 %v2428_v53, %v2209_v12  ;;  %6185 = vmatprep.mubr.msk.bf16.mxu1 %vm6798_vm0, %v10295_v6  ;;  %v9246_v50 = vpop.f32.mrf.mxu0  ;;  %v1840_v12 = vadd.f32 %v10543_v48, %v10542_v2  ;;  %v2212_v29 = vadd.f32 %v10544_v11, %v1835_v61 }
 0x32f   :  { %v5995_v45 = vpop.f32.mrf.mxu1 }
 0x330   :  { %v6220_v31 = vpop.f32.mrf.mxu0  ;;  %v10545_v45 = vld [vmem:[#allocation11_spill] sm:$0xff] }
 0x331   :  { %v2431_v25 = vpop.f32.mrf.mxu1  ;;  %v3442_v51 = vrot.slane %v10545_v45, 5 }
 0x332   :  { %v9249_v37 = vadd.f32 %v2431_v25, %v2210_v15  ;;  %v9253_v4 = vpop.f32.mrf.mxu0  ;;  %6410 = vmatmul.mubr.bf16.gmra.mxu0 %v10539_v19  ;;  %v10546_v15 = vld [vmem:[#allocation9_spill] sm:$0xff]  ;;  %v10549_v19 = vld [vmem:[#allocation52_spill] sm:$0xff] }
 0x333   :  { %v5996_v59 = vpop.f32.mrf.mxu1  ;;  %v3441_v25 = vrot.slane %v10546_v15, 5  ;;  %v2213_v20 = vadd.f32 %v10549_v19, %v1840_v12  ;;  %v10552_v12 = vld [vmem:[#allocation26_spill] sm:$0xff] }
 0x334   :  { %v6223_v38 = vpop.f32.mrf.mxu0  ;;  %v10547_v59 = vld [vmem:[#allocation24_spill] sm:$0xff] }
 0x335   :  { %v2436_v35 = vpop.f32.mrf.mxu1  ;;  %6186 = vmatmul.mubr.bf16.gmra.mxu1 %v10541_v58  ;;  %v1843_v13 = vadd.f32 %v8971_v1, %v10547_v59  ;;  %v6784_v38 = vld [vmem:[%s10180_s4 + $0x238] sm:$0xff]  }
 0x336   :  { %v9258_v42 = vadd.f32 %v2436_v35, %v2211_v14  ;;  %6281 = vmatprep.mubr.msk.bf16.mxu1 %vm6798_vm0, %v10295_v6  ;;  %v9264_v53 = vpop.f32.mrf.mxu0  ;;  %v3443_v14 = vsel %vm3440_vm10, %v3441_v25, %v3442_v51  ;;  %v6785_v25 = vld [vmem:[%s10180_s4 + $0x230] sm:$0xff]  }
 0x337   :  { %v5999_v44 = vpop.f32.mrf.mxu1  ;;  %v2214_v11 = vadd.f32 %v10552_v12, %v1843_v13  ;;  %v10554_v59 = vld [vmem:[#allocation30_spill] sm:$0xff]  ;;  %v10556_v13 = vld [vmem:[#allocation29_spill] sm:$0xff]  ;;  %v10559_v12 = vld [vmem:[#allocation32_spill] sm:$0xff] }
 0x338   :  { %v6224_v5 = vpop.f32.mrf.mxu0  ;;  %v10550_v44 = vld [vmem:[#allocation27_spill] sm:$0xff] }
 0x339   :  { %v2439_v52 = vpop.f32.mrf.mxu1  ;;  %v1848_v2 = vadd.f32 %v8984_v57, %v10550_v44  ;;  %v1851_v57 = vadd.f32 %v8997_v49, %v10554_v59  ;;  %v10557_v44 = vld [vmem:[#allocation36_spill] sm:$0xff] }
 0x33a   :  { %v9268_v22 = vadd.f32 %v2439_v52, %v2212_v29  ;;  %v9273_v46 = vpop.f32.mrf.mxu0  ;;  %v10553_v29 = vld [vmem:[#allocation16_spill] sm:$0xff] }
 0x33b   :  { %v6000_v31 = vpop.f32.mrf.mxu1  ;;  %10548 = vst [vmem:[#allocation31_spill] sm:$0xff] %v9273_v46  ;;  %v3444_v45 = vrot.slane %v10553_v29, 5  ;;  %v10560_v29 = vld [vmem:[#allocation21_spill] sm:$0xff]  ;;  %v6787_v59 = vld [vmem:[%s10180_s4 + $0x220] sm:$0xff]  }
 0x33c   :  { %v6227_v61 = vpop.f32.mrf.mxu0 }
 0x33d   :  { %v2444_v35 = vpop.f32.mrf.mxu1  ;;  %6282 = vmatmul.mubr.bf16.vlgmr.msra.gmra.mxu1 %v3443_v14  ;;  %v3445_v14 = vsel %vm3440_vm10, %v3442_v51, %v3444_v45 }
 0x33e   :  { %v9277_v58 = vadd.f32 %v2444_v35, %v2213_v20  ;;  %6425 = vmatpush3.bf16.msra.mxu1 %v6784_v38  ;;  %6285 = vmatprep.mubr.msk.bf16.mxu1 %vm6798_vm0, %v10295_v6  ;;  %v9287_v48 = vpop.f32.mrf.mxu0  ;;  %v2215_v20 = vadd.f32 %v10556_v13, %v1848_v2  ;;  %v1856_v2 = vadd.f32 %v9010_v16, %v10557_v44 }
 0x33f   :  { %v6003_v1 = vpop.f32.mrf.mxu1  ;;  %6418 = vmatprep.subr.bf16.mxu1 %v10295_v6  ;;  %10551 = vst [vmem:[#allocation41_spill] sm:$0xff] %v9287_v48 }
 0x340   :  { %v6228_v5 = vpop.f32.mrf.mxu0  ;;  %v6786_v1 = vld [vmem:[%s10180_s4 + $0x228] sm:$0xff]  }
 0x341   :  { %v2447_v52 = vpop.f32.mrf.mxu1 }
 0x342   :  { %v9291_v15 = vadd.f32 %v2447_v52, %v2214_v11  ;;  %6426 = vmatpush3.bf16.msra.mxu1 %v6785_v25  ;;  %v9299_v19 = vpop.f32.mrf.mxu0  ;;  %v2216_v11 = vadd.f32 %v10559_v12, %v1851_v57  ;;  %v3446_v52 = vrot.slane %v10560_v29, 5  ;;  %v10563_v57 = vld [vmem:[#allocation35_spill] sm:$0xff] }
 0x343   :  { %v6004_v31 = vpop.f32.mrf.mxu1  ;;  %6419 = vmatprep.subr.bf16.mxu1 %v10295_v6  ;;  %10555 = vst [vmem:[#allocation20_spill] sm:$0xff] %v9299_v19  ;;  %v6788_v12 = vld [vmem:[%s10180_s4 + $0x218] sm:$0xff]  }
 0x344   :  { %v6231_v61 = vpop.f32.mrf.mxu0  ;;  %v10566_v29 = vld [vmem:[#allocation43_spill] sm:$0xff] }
 0x345   :  { %v2452_v35 = vpop.f32.mrf.mxu1  ;;  %6286 = vmatmul.mubr.bf16.gmra.mxu1 %v3445_v14  ;;  %v3447_v61 = vsel %vm3440_vm10, %v3444_v45, %v3446_v52 }
 0x346   :  { %v9303_v38 = vadd.f32 %v2452_v35, %v2215_v20  ;;  %6289 = vmatprep.mubr.msk.bf16.mxu1 %vm6798_vm0, %v10295_v6  ;;  %6427 = vmatpush3.bf16.msra.mxu1 %v6786_v1  ;;  %v9313_v51 = vpop.f32.mrf.mxu0  ;;  %v10561_v20 = vld [vmem:[#allocation37_spill] sm:$0xff]  ;;  %v2217_v35 = vadd.f32 %v10563_v57, %v1856_v2 }
 0x347   :  { %v6007_v49 = vpop.f32.mrf.mxu1  ;;  %6420 = vmatprep.subr.bf16.mxu1 %v10295_v6  ;;  %10558 = vst [vmem:[#allocation17_spill] sm:$0xff] %v9313_v51  ;;  %v1859_v16 = vadd.f32 %v9023_v9, %v10561_v20 }
 0x348   :  { %v6232_v25 = vpop.f32.mrf.mxu0 }
 0x349   :  { %v2455_v5 = vpop.f32.mrf.mxu1  ;;  %v10567_v25 = vld [vmem:[#allocation28_spill] sm:$0xff] }
 0x34a   :  { %v9317_v31 = vadd.f32 %v2455_v5, %v2216_v11  ;;  %6428 = vmatpush3.bf16.msra.mxu1 %v6787_v59  ;;  %v9325_v14 = vpop.f32.mrf.mxu0  ;;  %v10564_v11 = vld [vmem:[#allocation42_spill] sm:$0xff]  ;;  %v2218_v5 = vadd.f32 %v10566_v29, %v1859_v16  ;;  %v3448_v59 = vrot.slane %v10567_v25, 5  ;;  %v6790_v25 = vld [vmem:[%s10180_s4 + $0x208] sm:$0xff]  }
 0x34b   :  { %v6008_v13 = vpop.f32.mrf.mxu1  ;;  %6421 = vmatprep.subr.bf16.mxu1 %v10295_v6  ;;  %10562 = vst [vmem:[#allocation85_spill] sm:$0xff] %v9325_v14  ;;  %v1864_v2 = vadd.f32 %v9036_v17, %v10564_v11  ;;  %v10570_v16 = vld [vmem:[#allocation46_spill] sm:$0xff] }
 0x34c   :  { %v6235_v49 = vpop.f32.mrf.mxu0 }
 0x34d   :  { %v2460_v1 = vpop.f32.mrf.mxu1  ;;  %6290 = vmatmul.mubr.bf16.gmra.mxu1 %v3447_v61 }
 0x34e   :  { %v9329_v44 = vadd.f32 %v2460_v1, %v2217_v35  ;;  %6293 = vmatprep.mubr.msk.bf16.mxu1 %vm6798_vm0, %v10295_v6  ;;  %6429 = vmatpush3.bf16.msra.mxu1 %v6788_v12  ;;  %v9339_v45 = vpop.f32.mrf.mxu0  ;;  %v6789_v35 = vld [vmem:[%s10180_s4 + $0x210] sm:$0xff]   ;;  %v2219_v12 = vadd.f32 %v10570_v16, %v1864_v2 }
 0x34f   :  { %v6011_v9 = vpop.f32.mrf.mxu1  ;;  %6422 = vmatprep.subr.bf16.mxu1 %v10295_v6  ;;  %10565 = vst [vmem:[#allocation12_spill] sm:$0xff] %v9339_v45  ;;  %v10568_v1 = vld [vmem:[#allocation50_spill] sm:$0xff] }
 0x350   :  { %v6236_v20 = vpop.f32.mrf.mxu0  ;;  %v1867_v17 = vadd.f32 %v9049_v41, %v10568_v1  ;;  %v3449_v9 = vsel %vm3440_vm10, %v3446_v52, %v3448_v59 }
 0x351   :  { %v2463_v13 = vpop.f32.mrf.mxu1  ;;  %v10573_v20 = vld [vmem:[#allocation49_spill] sm:$0xff] }
 0x352   :  { %v9343_v57 = vadd.f32 %v2463_v13, %v2218_v5  ;;  %6430 = vmatpush3.bf16.msra.mxu1 %v6789_v35  ;;  %v9351_v49 = vpop.f32.mrf.mxu0  ;;  %v10571_v13 = vld [vmem:[#allocation47_spill] sm:$0xff]  ;;  %v2220_v35 = vadd.f32 %v10573_v20, %v1867_v17 }
 0x353   :  { %v6012_v61 = vpop.f32.mrf.mxu1  ;;  %6423 = vmatprep.subr.bf16.mxu1 %v10295_v6  ;;  %10569 = vst [vmem:[#allocation45_spill] sm:$0xff] %v9351_v49  ;;  %v1872_v2 = vadd.f32 %v9059_v30, %v10571_v13  ;;  %v10577_v13 = vld [vmem:[#allocation54_spill] sm:$0xff] }
 0x354   :  { %v6239_v29 = vpop.f32.mrf.mxu0  ;;  %v10574_v61 = vld [vmem:[#allocation34_spill] sm:$0xff] }
 0x355   :  { %v2468_v11 = vpop.f32.mrf.mxu1  ;;  %6294 = vmatmul.mubr.bf16.gmra.mxu1 %v3449_v9  ;;  %v3450_v1 = vrot.slane %v10574_v61, 5 }
 0x356   :  { %v9355_v5 = vadd.f32 %v2468_v11, %v2219_v12  ;;  %6297 = vmatprep.mubr.msk.bf16.mxu1 %vm6798_vm0, %v10295_v6  ;;  %6431 = vmatpush3.bf16.msra.mxu1 %v6790_v25  ;;  %v9365_v52 = vpop.f32.mrf.mxu0  ;;  %v6791_v11 = vld [vmem:[%s10180_s4 + $0x200] sm:$0xff]  }
 0x357   :  { %v6015_v41 = vpop.f32.mrf.mxu1  ;;  %6424 = vmatprep.subr.bf16.mxu1 %v10295_v6  ;;  %10572 = vst [vmem:[#allocation33_spill] sm:$0xff] %v9365_v52  ;;  %v10575_v25 = vld [vmem:[#allocation55_spill] sm:$0xff]  ;;  %v2221_v52 = vadd.f32 %v10577_v13, %v1872_v2  ;;  %v3451_v17 = vsel %vm3440_vm10, %v3448_v59, %v3450_v1 }
 0x358   :  { %v6240_v12 = vpop.f32.mrf.mxu0  ;;  %v1875_v41 = vadd.f32 %v9068_v32, %v10575_v25  ;;  %v10580_v32 = vld [vmem:[#allocation57_spill] sm:$0xff] }
 0x359   :  { %v2471_v16 = vpop.f32.mrf.mxu1  ;;  %v10578_v12 = vld [vmem:[#allocation58_spill] sm:$0xff] }
 0x35a   :  { %v9369_v9 = vadd.f32 %v2471_v16, %v2220_v35  ;;  %6432 = vmatpush3.bf16.msra.mxu1 %v6791_v11  ;;  %v9376_v30 = vpop.f32.mrf.mxu0  ;;  %v1880_v11 = vadd.f32 %v9077_v47, %v10578_v12  ;;  %v2222_v25 = vadd.f32 %v10580_v32, %v1875_v41  ;;  %v10585_v32 = vld [vmem:[#allocation63_spill] sm:$0xff] }
 0x35b   :  { %v6016_v29 = vpop.f32.mrf.mxu1  ;;  %10576 = vst [vmem:[#allocation19_spill] sm:$0xff] %v9376_v30  ;;  %v10581_v30 = vld [vmem:[#allocation38_spill] sm:$0xff] }
 0x35c   :  { %v6243_v61 = vpop.f32.mrf.mxu0  ;;  %v3452_v2 = vrot.slane %v10581_v30, 5 }
 0x35d   :  { %v2476_v20 = vpop.f32.mrf.mxu1  ;;  %6298 = vmatmul.mubr.bf16.gmra.mxu1 %v3451_v17 }
 0x35e   :  { %v9380_v35 = vadd.f32 %v2476_v20, %v2221_v52  ;;  %6301 = vmatprep.mubr.msk.bf16.mxu1 %vm6798_vm0, %v10295_v6  ;;  %v9386_v29 = vpop.f32.mrf.mxu0  ;;  %v10582_v52 = vld [vmem:[#allocation61_spill] sm:$0xff]  ;;  %v3453_v47 = vsel %vm3440_vm10, %v3450_v1, %v3452_v2 }
 0x35f   :  { %v6019_v16 = vpop.f32.mrf.mxu1  ;;  %10579 = vst [vmem:[#allocation72_spill] sm:$0xff] %v9386_v29  ;;  %v1883_v20 = vadd.f32 %v9086_v7, %v10582_v52  ;;  %v10587_v7 = vld [vmem:[#allocation65_spill] sm:$0xff] }
 0x360   :  { %v6244_v59 = vpop.f32.mrf.mxu0  ;;  %v10584_v16 = vld [vmem:[#allocation60_spill] sm:$0xff] }
 0x361   :  { %v2479_v13 = vpop.f32.mrf.mxu1  ;;  %v2223_v45 = vadd.f32 %v10584_v16, %v1880_v11  ;;  %v2224_v59 = vadd.f32 %v10587_v7, %v1883_v20 }
 0x362   :  { %v9390_v49 = vadd.f32 %v2479_v13, %v2222_v25  ;;  %v9394_v61 = vpop.f32.mrf.mxu0  ;;  %v1888_v25 = vadd.f32 %v9095_v43, %v10585_v32 }
 0x363   :  { %v6020_v17 = vpop.f32.mrf.mxu1  ;;  %10583 = vst [vmem:[#allocation18_spill] sm:$0xff] %v9394_v61 }
 0x364   :  { %v6247_v29 = vpop.f32.mrf.mxu0  ;;  %v10588_v17 = vld [vmem:[#allocation44_spill] sm:$0xff] }
 0x365   :  { %v2484_v12 = vpop.f32.mrf.mxu1  ;;  %6302 = vmatmul.mubr.bf16.gmra.mxu1 %v3453_v47  ;;  %v3454_v11 = vrot.slane %v10588_v17, 5 }
 0x366   :  { %v9398_v41 = vadd.f32 %v2484_v12, %v2223_v45  ;;  %6305 = vmatprep.mubr.msk.bf16.mxu1 %vm6798_vm0, %v10295_v6  ;;  %v9404_v13 = vpop.f32.mrf.mxu0  ;;  %v10589_v45 = vld [vmem:[#allocation64_spill] sm:$0xff] }
 0x367   :  { %v6023_v30 = vpop.f32.mrf.mxu1  ;;  %10586 = vst [vmem:[#allocation23_spill] sm:$0xff] %v9404_v13  ;;  %v1891_v47 = vadd.f32 %v9104_v18, %v10589_v45  ;;  %v3455_v43 = vsel %vm3440_vm10, %v3452_v2, %v3454_v11  ;;  %v10594_v18 = vld [vmem:[#allocation68_spill] sm:$0xff] }
 0x368   :  { %v6248_v1 = vpop.f32.mrf.mxu0  ;;  %v10591_v30 = vld [vmem:[#allocation10_spill] sm:$0xff] }
 0x369   :  { %v2487_v52 = vpop.f32.mrf.mxu1  ;;  %v2225_v61 = vadd.f32 %v10591_v30, %v1888_v25  ;;  %v2226_v1 = vadd.f32 %v10594_v18, %v1891_v47 }
 0x36a   :  { %v9408_v16 = vadd.f32 %v2487_v52, %v2224_v59  ;;  %v9412_v12 = vpop.f32.mrf.mxu0  ;;  %v10592_v59 = vld [vmem:[#allocation69_spill] sm:$0xff] }
 0x36b   :  { %v6024_v29 = vpop.f32.mrf.mxu1  ;;  %10590 = vst [vmem:[#allocation87_spill] sm:$0xff] %v9412_v12  ;;  %v1896_v17 = vadd.f32 %v9113_v0, %v10592_v59 }
 0x36c   :  { %v6251_v13 = vpop.f32.mrf.mxu0  ;;  %v10595_v29 = vld [vmem:[#allocation51_spill] sm:$0xff] }
 0x36d   :  { %v2492_v32 = vpop.f32.mrf.mxu1  ;;  %6306 = vmatmul.mubr.bf16.gmra.mxu1 %v3455_v43  ;;  %v3456_v25 = vrot.slane %v10595_v29, 5 }
 0x36e   :  { %v9416_v20 = vadd.f32 %v2492_v32, %v2225_v61  ;;  %6309 = vmatprep.mubr.msk.bf16.mxu1 %vm6798_vm0, %v10295_v6  ;;  %v9422_v52 = vpop.f32.mrf.mxu0  ;;  %v10596_v61 = vld [vmem:[#allocation70_spill] sm:$0xff] }
 0x36f   :  { %v6027_v7 = vpop.f32.mrf.mxu1  ;;  %10593 = vst [vmem:[#allocation14_spill] sm:$0xff] %v9422_v52  ;;  %v1899_v43 = vadd.f32 %v9122_v60, %v10596_v61  ;;  %v3457_v0 = vsel %vm3440_vm10, %v3454_v11, %v3456_v25  ;;  %v10601_v60 = vld [vmem:[#allocation76_spill] sm:$0xff] }
 0x370   :  { %v6252_v2 = vpop.f32.mrf.mxu0  ;;  %v10598_v7 = vld [vmem:[#allocation67_spill] sm:$0xff] }
 0x371   :  { %v2495_v45 = vpop.f32.mrf.mxu1  ;;  %v2227_v12 = vadd.f32 %v10598_v7, %v1896_v17  ;;  %v2228_v2 = vadd.f32 %v10601_v60, %v1899_v43 }
 0x372   :  { %v9426_v30 = vadd.f32 %v2495_v45, %v2226_v1  ;;  %v9430_v32 = vpop.f32.mrf.mxu0  ;;  %v10599_v1 = vld [vmem:[#allocation75_spill] sm:$0xff] }
 0x373   :  { %v6028_v13 = vpop.f32.mrf.mxu1  ;;  %10597 = vst [vmem:[#allocation22_spill] sm:$0xff] %v9430_v32  ;;  %v1904_v29 = vadd.f32 %v9131_v23, %v10599_v1 }
 0x374   :  { %v6255_v52 = vpop.f32.mrf.mxu0  ;;  %v10602_v13 = vld [vmem:[#allocation53_spill] sm:$0xff] }
 0x375   :  { %v2500_v59 = vpop.f32.mrf.mxu1  ;;  %6310 = vmatmul.mubr.bf16.gmra.mxu1 %v3457_v0  ;;  %v3458_v17 = vrot.slane %v10602_v13, 5  ;;  %v10604_v0 = vld [vmem:[#allocation77_spill] sm:$0xff] }
 0x376   :  { %v9434_v47 = vadd.f32 %v2500_v59, %v2227_v12  ;;  %6313 = vmatprep.mubr.msk.bf16.mxu1 %vm6798_vm0, %v10295_v6  ;;  %v9440_v45 = vpop.f32.mrf.mxu0  ;;  %v2229_v59 = vadd.f32 %v10604_v0, %v1904_v29 }
 0x377   :  { %v6031_v18 = vpop.f32.mrf.mxu1  ;;  %10600 = vst [vmem:[#allocation15_spill] sm:$0xff] %v9440_v45 }
 0x378   :  { %v6256_v11 = vpop.f32.mrf.mxu0  ;;  %v3459_v18 = vsel %vm3440_vm10, %v3456_v25, %v3458_v17  ;;  %v10608_v25 = vld [vmem:[#allocation78_spill] sm:$0xff] }
 0x379   :  { %v2503_v61 = vpop.f32.mrf.mxu1  ;;  %v2760_v29 = vadd.f32 %v10608_v25, %v9154_v8 }
 0x37a   :  { %v9444_v7 = vadd.f32 %v2503_v61, %v2228_v2  ;;  %v9446_v12 = vpop.f32.mrf.mxu0  ;;  %v10606_v2 = vld [vmem:[#allocation56_spill] sm:$0xff] }
 0x37b   :  { %v6032_v52 = vpop.f32.mrf.mxu1  ;;  %10603 = vst [vmem:[#allocation48_spill] sm:$0xff] %v9446_v12  ;;  %v3460_v13 = vrot.slane %v10606_v2, 5  ;;  %v10609_v2 = vld [vmem:[#allocation79_spill] sm:$0xff] }
 0x37c   :  { %v6259_v23 = vpop.f32.mrf.mxu0 }
 0x37d   :  { %v2508_v32 = vpop.f32.mrf.mxu1  ;;  %6314 = vmatmul.mubr.bf16.gmra.mxu1 %v3459_v18  ;;  %v3461_v0 = vsel %vm3440_vm10, %v3458_v17, %v3460_v13 }
 0x37e   :  { %v9450_v1 = vadd.f32 %v2508_v32, %v2229_v59  ;;  %6317 = vmatprep.mubr.msk.bf16.mxu1 %vm6798_vm0, %v10295_v6  ;;  %v9454_v60 = vpop.f32.mrf.mxu0 }
 0x37f   :  { %v6035_v43 = vpop.f32.mrf.mxu1  ;;  %10605 = vst [vmem:[#allocation74_spill] sm:$0xff] %v9454_v60 }
 0x380   :  { %v6260_v11 = vpop.f32.mrf.mxu0 }
 0x381   :  { %v2511_v61 = vpop.f32.mrf.mxu1  ;;  %v10610_v11 = vld [vmem:[#allocation59_spill] sm:$0xff] }
 0x382   :  { %v9457_v12 = vpop.f32.mrf.mxu0  ;;  %v2761_v61 = vadd.f32 %v10609_v2, %v9162_v56 }
 0x383   :  { %v6036_v52 = vpop.f32.mrf.mxu1  ;;  %10607 = vst [vmem:[#allocation25_spill] sm:$0xff] %v9457_v12 }
 0x384   :  { %v6263_v59 = vpop.f32.mrf.mxu0  ;;  %v3462_v52 = vrot.slane %v10610_v11, 5 }
 0x385   :  { %v2948_v32 = vpop.f32.mrf.mxu1  ;;  %6318 = vmatmul.mubr.bf16.gmra.mxu1 %v3461_v0 }
 0x386   :  { %v9462_v18 = vadd.f32 %v2948_v32, %v2760_v29  ;;  %6321 = vmatprep.mubr.msk.bf16.mxu1 %vm6798_vm0, %v10295_v6  ;;  %v3389_v43 = vpop.f32.mrf.mxu0  ;;  %v10611_v29 = vld [vmem:[#allocation80_spill] sm:$0xff]  ;;  %v3463_v32 = vsel %vm3440_vm10, %v3460_v13, %v3462_v52 }
 0x387   :  { %v6131_v23 = vpop.f32.mrf.mxu1  ;;  %v2762_v0 = vadd.f32 %v10611_v29, %v9176_v26 }
 0x388   :  { %v6264_v60 = vpop.f32.mrf.mxu0 }
 0x389   :  { %v2951_v12 = vpop.f32.mrf.mxu1 }
 0x38a   :  { %v9469_v8 = vadd.f32 %v2951_v12, %v2761_v61  ;;  %v9471_v25 = vpop.f32.mrf.mxu0  ;;  %v10612_v12 = vld [vmem:[#allocation81_spill] sm:$0xff]  ;;  %v10613_v61 = vld [vmem:[#allocation62_spill] sm:$0xff] }
 0x38b   :  { %v6132_v17 = vpop.f32.mrf.mxu1  ;;  %v2763_v2 = vadd.f32 %v10612_v12, %v9185_v21  ;;  %v3464_v11 = vrot.slane %v10613_v61, 5 }
 0x38c   :  { %v6359_v23 = vpop.f32.mrf.mxu0 }
 0x38d   :  { %v2956_v59 = vpop.f32.mrf.mxu1  ;;  %6322 = vmatmul.mubr.bf16.gmra.mxu1 %v3463_v32  ;;  %v3465_v23 = vsel %vm3440_vm10, %v3462_v52, %v3464_v11 }
 0x38e   :  { %v9476_v43 = vadd.f32 %v2956_v59, %v2762_v0  ;;  %6325 = vmatprep.mubr.msk.bf16.mxu1 %vm6798_vm0, %v10295_v6  ;;  %v9480_v60 = vpop.f32.mrf.mxu0  ;;  %v10614_v0 = vld [vmem:[#allocation82_spill] sm:$0xff] }
 0x38f   :  { %v6135_v56 = vpop.f32.mrf.mxu1  ;;  %v2764_v59 = vadd.f32 %v10614_v0, %v9199_v55 }
 0x390   :  { %v6360_v26 = vpop.f32.mrf.mxu0 }
 0x391   :  { %v2959_v17 = vpop.f32.mrf.mxu1 }
 0x392   :  { %v9485_v29 = vadd.f32 %v2959_v17, %v2763_v2  ;;  %v9487_v32 = vpop.f32.mrf.mxu0  ;;  %v10615_v2 = vld [vmem:[#allocation83_spill] sm:$0xff] }
 0x393   :  { %v6136_v13 = vpop.f32.mrf.mxu1  ;;  %v2765_v61 = vadd.f32 %v10615_v2, %v9208_v34 }
 0x394   :  { %v6363_v45 = vpop.f32.mrf.mxu0 }
 0x395   :  { %v2964_v56 = vpop.f32.mrf.mxu1  ;;  %6326 = vmatmul.mubr.bf16.gmra.mxu1 %v3465_v23  ;;  %v10616_v45 = vld [vmem:[#allocation84_spill] sm:$0xff] }
 0x396   :  { %v9492_v14 = vadd.f32 %v2964_v56, %v2764_v59  ;;  %6329 = vmatprep.mubr.msk.bf16.mxu1 %vm6798_vm0, %v10295_v6  ;;  %v9496_v12 = vpop.f32.mrf.mxu0  ;;  %v2766_v0 = vadd.f32 %v10616_v45, %v9220_v62  ;;  %v10617_v59 = vld [vmem:[#allocation66_spill] sm:$0xff] }
 0x397   :  { %v6139_v21 = vpop.f32.mrf.mxu1  ;;  %v10618_v23 = vrot.slane %v10617_v59, 5 }
 0x398   :  { %v6364_v26 = vpop.f32.mrf.mxu0 }
 0x399   :  { %v2967_v17 = vpop.f32.mrf.mxu1  ;;  %v3467_v56 = vsel %vm3440_vm10, %v3464_v11, %v10618_v23  ;;  %v10621_v23 = vld [vmem:[#allocation13_spill] sm:$0xff] }
 0x39a   :  { %v9500_v13 = vadd.f32 %v2967_v17, %v2765_v61  ;;  %v9502_v52 = vpop.f32.mrf.mxu0  ;;  %v10619_v61 = vld [vmem:[#allocation71_spill] sm:$0xff] }
 0x39b   :  { %v6140_v55 = vpop.f32.mrf.mxu1  ;;  %v2767_v17 = vadd.f32 %v10619_v61, %v9229_v39  ;;  %v10622_v61 = vld [vmem:[#allocation73_spill] sm:$0xff] }
 0x39c   :  { %v6367_v51 = vpop.f32.mrf.mxu0 }
 0x39d   :  { %v2972_v21 = vpop.f32.mrf.mxu1  ;;  %6330 = vmatmul.mubr.bf16.gmra.mxu1 %v3467_v56  ;;  %v10620_v51 = vld [vmem:[#allocation86_spill] sm:$0xff] }
 0x39e   :  { %v9509_v19 = vadd.f32 %v2972_v21, %v2766_v0  ;;  %6333 = vmatprep.mubr.msk.bf16.mxu1 %vm6798_vm0, %v10295_v6  ;;  %v9513_v2 = vpop.f32.mrf.mxu0  ;;  %v2768_v0 = vadd.f32 %v10620_v51, %v9240_v10 }
 0x39f   :  { %v6143_v34 = vpop.f32.mrf.mxu1 }
 0x3a0   :  { %v6368_v62 = vpop.f32.mrf.mxu0 }
 0x3a1   :  { %v2975_v26 = vpop.f32.mrf.mxu1 }
 0x3a2   :  { %v9517_v55 = vadd.f32 %v2975_v26, %v2767_v17  ;;  %v9519_v11 = vpop.f32.mrf.mxu0  ;;  %v2769_v17 = vadd.f32 %v10622_v61, %v9249_v37 }
 0x3a3   :  { %v6144_v45 = vpop.f32.mrf.mxu1 }
 0x3a4   :  { %v6371_v56 = vpop.f32.mrf.mxu0 }
 0x3a5   :  { %v2980_v59 = vpop.f32.mrf.mxu1  ;;  %6334 = vmatmul.mubr.bf16.gmra.mxu1 %v10621_v23  ;;  %v10624_v23 = vld [vmem:[#allocation88_spill] sm:$0xff]  ;;  %v10625_v56 = vld [vmem:[#allocation39_spill] sm:$0xff] }
 0x3a6   :  { %v9524_v21 = vadd.f32 %v2980_v59, %v2768_v0  ;;  %6337 = vmatprep.mubr.msk.bf16.mxu1 %vm6798_vm0, %v10295_v6  ;;  %v9528_v34 = vpop.f32.mrf.mxu0  ;;  %v2770_v0 = vadd.f32 %v10624_v23, %v9258_v42 }
 0x3a7   :  { %v6147_v39 = vpop.f32.mrf.mxu1 }
 0x3a8   :  { %v6372_v62 = vpop.f32.mrf.mxu0 }
 0x3a9   :  { %v2983_v26 = vpop.f32.mrf.mxu1 }
 0x3aa   :  { %v9532_v45 = vadd.f32 %v2983_v26, %v2769_v17  ;;  %v9534_v51 = vpop.f32.mrf.mxu0  ;;  %v10627_v17 = vld [vmem:[#allocation89_spill] sm:$0xff] }
 0x3ab   :  { %v6148_v10 = vpop.f32.mrf.mxu1  ;;  %10623 = vst [vmem:[#allocation11_spill] sm:$0xff] %v9534_v51  ;;  %v2771_v26 = vadd.f32 %v10627_v17, %v9268_v22  ;;  %v10632_v22 = vld [vmem:[#allocation91_spill] sm:$0xff] }
 0x3ac   :  { %v6375_v48 = vpop.f32.mrf.mxu0  ;;  %v2773_v17 = vadd.f32 %v10632_v22, %v9291_v15 }
 0x3ad   :  { %v2988_v59 = vpop.f32.mrf.mxu1  ;;  %6338 = vmatmul.mubr.bf16.gmra.mxu1 %v10625_v56  ;;  %v10629_v48 = vld [vmem:[#allocation90_spill] sm:$0xff]  ;;  %v10630_v56 = vld [vmem:[#allocation40_spill] sm:$0xff] }
 0x3ae   :  { %v9539_v39 = vadd.f32 %v2988_v59, %v2770_v0  ;;  %6413 = vmatprep.mubr.msk.bf16.mxu1 %vm6798_vm0, %v10295_v6  ;;  %v9543_v61 = vpop.f32.mrf.mxu0  ;;  %v2772_v0 = vadd.f32 %v10629_v48, %v9277_v58  ;;  %v10634_v58 = vld [vmem:[#allocation92_spill] sm:$0xff] }
 0x3af   :  { %v6151_v37 = vpop.f32.mrf.mxu1  ;;  %10626 = vst [vmem:[#allocation9_spill] sm:$0xff] %v9543_v61  ;;  %v2774_v48 = vadd.f32 %v10634_v58, %v9303_v38 }
 0x3b0   :  { %v6376_v10 = vpop.f32.mrf.mxu0 }
 0x3b1   :  { %v2991_v62 = vpop.f32.mrf.mxu1 }
 0x3b2   :  { %v9547_v51 = vadd.f32 %v2991_v62, %v2771_v26  ;;  %v9549_v23 = vpop.f32.mrf.mxu0 }
 0x3b3   :  { %v6152_v42 = vpop.f32.mrf.mxu1  ;;  %10628 = vst [vmem:[#allocation24_spill] sm:$0xff] %v9549_v23 }
 0x3b4   :  { %v6379_v6 = vpop.f32.mrf.mxu0 }
 0x3b5   :  { %v2996_v59 = vpop.f32.mrf.mxu1  ;;  %6414 = vmatmul.mubr.bf16.vlgmr.msra.gmra.mxu1 %v10630_v56 }
 0x3b6   :  { %v9554_v37 = vadd.f32 %v2996_v59, %v2772_v0  ;;  %v9556_v46 = vpop.f32.mrf.mxu0 }
 0x3b7   :  { %v6155_v61 = vpop.f32.mrf.mxu1  ;;  %10631 = vst [vmem:[#allocation52_spill] sm:$0xff] %v9556_v46  ;;  %v10636_v46 = vld [vmem:[#allocation93_spill] sm:$0xff] }
 0x3b8   :  { %v6380_v62 = vpop.f32.mrf.mxu0  ;;  %v2775_v15 = vadd.f32 %v10636_v46, %v9317_v31 }
 0x3b9   :  { %v2999_v26 = vpop.f32.mrf.mxu1 }
 0x3ba   :  { %v9560_v10 = vadd.f32 %v2999_v26, %v2773_v17  ;;  %v9562_v23 = vpop.f32.mrf.mxu0 }
 0x3bb   :  { %v6156_v42 = vpop.f32.mrf.mxu1  ;;  %10633 = vst [vmem:[#allocation27_spill] sm:$0xff] %v9562_v23  ;;  %v10638_v23 = vld [vmem:[#allocation94_spill] sm:$0xff] }
 0x3bc   :  { %v6383_v6 = vpop.f32.mrf.mxu0  ;;  %v2776_v38 = vadd.f32 %v10638_v23, %v9329_v44 }
 0x3bd   :  { %v3004_v56 = vpop.f32.mrf.mxu1 }
 0x3be   :  { %v9566_v0 = vadd.f32 %v3004_v56, %v2774_v48  ;;  %v9568_v59 = vpop.f32.mrf.mxu0 }
 0x3bf   :  { %v6159_v61 = vpop.f32.mrf.mxu1  ;;  %10635 = vst [vmem:[#allocation26_spill] sm:$0xff] %v9568_v59  ;;  %v10640_v59 = vld [vmem:[#allocation95_spill] sm:$0xff] }
 0x3c0   :  { %v6384_v62 = vpop.f32.mrf.mxu0  ;;  %v2777_v46 = vadd.f32 %v10640_v59, %v9343_v57 }
 0x3c1   :  { %v3007_v22 = vpop.f32.mrf.mxu1 }
 0x3c2   :  { %v9572_v17 = vadd.f32 %v3007_v22, %v2775_v15  ;;  %v9574_v42 = vpop.f32.mrf.mxu0 }
 0x3c3   :  { %v6160_v26 = vpop.f32.mrf.mxu1  ;;  %10637 = vst [vmem:[#allocation16_spill] sm:$0xff] %v9574_v42  ;;  %v10642_v42 = vld [vmem:[#allocation96_spill] sm:$0xff] }
 0x3c4   :  { %v6387_v6 = vpop.f32.mrf.mxu0  ;;  %v2778_v44 = vadd.f32 %v10642_v42, %v9355_v5 }
 0x3c5   :  { %v3012_v58 = vpop.f32.mrf.mxu1 }
 0x3c6   :  { %v9578_v48 = vadd.f32 %v3012_v58, %v2776_v38  ;;  %v9580_v61 = vpop.f32.mrf.mxu0 }
 0x3c7   :  { %v6163_v56 = vpop.f32.mrf.mxu1  ;;  %10639 = vst [vmem:[#allocation30_spill] sm:$0xff] %v9580_v61  ;;  %v10644_v61 = vld [vmem:[#allocation97_spill] sm:$0xff] }
 0x3c8   :  { %v6388_v62 = vpop.f32.mrf.mxu0  ;;  %v2779_v57 = vadd.f32 %v10644_v61, %v9369_v9 }
 0x3c9   :  { %v3015_v31 = vpop.f32.mrf.mxu1 }
 0x3ca   :  { %v9584_v15 = vadd.f32 %v3015_v31, %v2777_v46  ;;  %v9586_v26 = vpop.f32.mrf.mxu0 }
 0x3cb   :  { %v6164_v22 = vpop.f32.mrf.mxu1  ;;  %10641 = vst [vmem:[#allocation29_spill] sm:$0xff] %v9586_v26  ;;  %v10646_v26 = vld [vmem:[#allocation98_spill] sm:$0xff] }
 0x3cc   :  { %v6391_v6 = vpop.f32.mrf.mxu0  ;;  %v2780_v5 = vadd.f32 %v10646_v26, %v9380_v35 }
 0x3cd   :  { %v3020_v23 = vpop.f32.mrf.mxu1 }
 0x3ce   :  { %v9590_v38 = vadd.f32 %v3020_v23, %v2778_v44  ;;  %v9592_v56 = vpop.f32.mrf.mxu0 }
 0x3cf   :  { %v6167_v58 = vpop.f32.mrf.mxu1  ;;  %10643 = vst [vmem:[#allocation36_spill] sm:$0xff] %v9592_v56  ;;  %v10648_v56 = vld [vmem:[#allocation99_spill] sm:$0xff] }
 0x3d0   :  { %v6392_v62 = vpop.f32.mrf.mxu0  ;;  %v2781_v9 = vadd.f32 %v10648_v56, %v9390_v49 }
 0x3d1   :  { %v3023_v59 = vpop.f32.mrf.mxu1 }
 0x3d2   :  { %v9596_v46 = vadd.f32 %v3023_v59, %v2779_v57  ;;  %v9598_v22 = vpop.f32.mrf.mxu0 }
 0x3d3   :  { %v6168_v31 = vpop.f32.mrf.mxu1  ;;  %10645 = vst [vmem:[#allocation32_spill] sm:$0xff] %v9598_v22  ;;  %v10650_v22 = vld [vmem:[#allocation100_spill] sm:$0xff] }
 0x3d4   :  { %v6395_v6 = vpop.f32.mrf.mxu0  ;;  %v2782_v35 = vadd.f32 %v10650_v22, %v9398_v41 }
 0x3d5   :  { %v3028_v42 = vpop.f32.mrf.mxu1 }
 0x3d6   :  { %v9602_v44 = vadd.f32 %v3028_v42, %v2780_v5  ;;  %v9604_v58 = vpop.f32.mrf.mxu0 }
 0x3d7   :  { %v6171_v23 = vpop.f32.mrf.mxu1  ;;  %10647 = vst [vmem:[#allocation21_spill] sm:$0xff] %v9604_v58  ;;  %v10652_v58 = vld [vmem:[#allocation101_spill] sm:$0xff] }
 0x3d8   :  { %v6396_v62 = vpop.f32.mrf.mxu0  ;;  %v2783_v49 = vadd.f32 %v10652_v58, %v9408_v16 }
 0x3d9   :  { %v3031_v61 = vpop.f32.mrf.mxu1 }
 0x3da   :  { %v9608_v57 = vadd.f32 %v3031_v61, %v2781_v9  ;;  %v9610_v31 = vpop.f32.mrf.mxu0 }
 0x3db   :  { %v6172_v59 = vpop.f32.mrf.mxu1  ;;  %10649 = vst [vmem:[#allocation37_spill] sm:$0xff] %v9610_v31  ;;  %v10654_v31 = vld [vmem:[#allocation102_spill] sm:$0xff] }
 0x3dc   :  { %v6399_v6 = vpop.f32.mrf.mxu0  ;;  %v2784_v41 = vadd.f32 %v10654_v31, %v9416_v20 }
 0x3dd   :  { %v3036_v26 = vpop.f32.mrf.mxu1 }
 0x3de   :  { %v9614_v5 = vadd.f32 %v3036_v26, %v2782_v35  ;;  %v9616_v23 = vpop.f32.mrf.mxu0 }
 0x3df   :  { %v6175_v42 = vpop.f32.mrf.mxu1  ;;  %10651 = vst [vmem:[#allocation35_spill] sm:$0xff] %v9616_v23  ;;  %v10655_v23 = vld [vmem:[#allocation103_spill] sm:$0xff] }
 0x3e0   :  { %v6400_v62 = vpop.f32.mrf.mxu0  ;;  %v2785_v16 = vadd.f32 %v10655_v23, %v9426_v30  ;;  %v2787_v30 = vadd.f32 %v9139_v40, %v9444_v7  ;;  %v3392_v7 = vadd.f32 %v9170_v63, %v9462_v18 }
 0x3e1   :  { %v3039_v56 = vpop.f32.mrf.mxu1 }
 0x3e2   :  { %v9620_v9 = vadd.f32 %v3039_v56, %v2783_v49  ;;  %v9622_v59 = vpop.f32.mrf.mxu0 }
 0x3e3   :  { %v6176_v61 = vpop.f32.mrf.mxu1  ;;  %10653 = vst [vmem:[#allocation42_spill] sm:$0xff] %v9622_v59  ;;  %v10657_v59 = vld [vmem:[#allocation104_spill] sm:$0xff] }
 0x3e4   :  { %v6403_v6 = vpop.f32.mrf.mxu0  ;;  %v2786_v20 = vadd.f32 %v10657_v59, %v9434_v47  ;;  %v2788_v47 = vadd.f32 %v9148_v28, %v9450_v1 }
 0x3e5   :  { %v3044_v22 = vpop.f32.mrf.mxu1 }
 0x3e6   :  { %v9626_v35 = vadd.f32 %v3044_v22, %v2784_v41  ;;  %v9628_v42 = vpop.f32.mrf.mxu0 }
 0x3e7   :  { %v6179_v26 = vpop.f32.mrf.mxu1 }
 0x3e8   :  { %v6404_v62 = vpop.f32.mrf.mxu0 }
 0x3e9   :  { %v3047_v58 = vpop.f32.mrf.mxu1 }
 0x3ea   :  { %v9632_v49 = vadd.f32 %v3047_v58, %v2785_v16  ;;  %v9634_v61 = vpop.f32.mrf.mxu0 }
 0x3eb   :  { %v6180_v56 = vpop.f32.mrf.mxu1  ;;  %10656 = vst [vmem:[#allocation43_spill] sm:$0xff] %v9634_v61 }
 0x3ec   :  { %v6407_v6 = vpop.f32.mrf.mxu0 }
 0x3ed   :  { %v3052_v31 = vpop.f32.mrf.mxu1 }
 0x3ee   :  { %v9638_v41 = vadd.f32 %v3052_v31, %v2786_v20  ;;  %v9640_v26 = vpop.f32.mrf.mxu0 }
 0x3ef   :  { %v6183_v22 = vpop.f32.mrf.mxu1  ;;  %10658 = vst [vmem:[#allocation28_spill] sm:$0xff] %v9640_v26 }
 0x3f0   :  { %v6408_v62 = vpop.f32.mrf.mxu0 }
 0x3f1   :  { %v3055_v23 = vpop.f32.mrf.mxu1  ;;  %v9659_v62 = vld [vmem:[%s10181_s5] ss:$0 sm:$0xff] }
 0x3f2   :  { %v9644_v16 = vadd.f32 %v3055_v23, %v2787_v30  ;;  %v9646_v56 = vpop.f32.mrf.mxu0 }
 0x3f3   :  { %v6184_v58 = vpop.f32.mrf.mxu1 }
 0x3f4   :  { %v6411_v6 = vpop.f32.mrf.mxu0  ;;  %v3393_v58 = vadd.f32 %v9182_v3, %v9469_v8 }
 0x3f5   :  { %v3060_v59 = vpop.f32.mrf.mxu1  ;;  %v3394_v6 = vadd.f32 %v9191_v27, %v9476_v43 }
 0x3f6   :  { %v9650_v20 = vadd.f32 %v3060_v59, %v2788_v47  ;;  %v9652_v22 = vpop.f32.mrf.mxu0 }
 0x3f7   :  { %v6187_v31 = vpop.f32.mrf.mxu1 }
 0x3f8   :  { %v6412_v61 = vpop.f32.mrf.mxu0 }
 0x3f9   :  { %v3063_v26 = vpop.f32.mrf.mxu1 }
 0x3fb   :  { %v6188_v40 = vpop.f32.mrf.mxu1 }
 0x3fd   :  { %v3569_v30 = vpop.f32.mrf.mxu1 }
 0x3fe   :  { %v3687_v23 = vadd.f32 %v3569_v30, %v3392_v7 }
 0x3ff   :  { %v6283_v28 = vpop.f32.mrf.mxu1 }
 0x400   :  { %v4014_v1 = vadd.f32 %v9471_v25, %v3687_v23  ;;  %v3395_v23 = vadd.f32 %v9205_v24, %v9485_v29 }
 0x401   :  { %v3572_v47 = vpop.f32.mrf.mxu1 }
 0x402   :  { %v9665_v61 = vadd.f32 %v9659_v62, %v4014_v1  ;;  %v3688_v26 = vadd.f32 %v3572_v47, %v3393_v58 }
 0x403   :  { %v6284_v59 = vpop.f32.mrf.mxu1 }
 0x404   :  { %v4079_v63 = vmin.f32 %v9665_v61, 20.0  ;;  %v4015_v18 = vadd.f32 %v9480_v60, %v3688_v26  ;;  %v3396_v26 = vadd.f32 %v9214_v54, %v9492_v14  ;;  %vm4340_vm7 = vcmp.gt.f32.partialorder %v9665_v61, 20.0 }
 0x405   :  { %v3577_v31 = vpop.f32.mrf.mxu1 }
 0x406   :  { %v4108_v40 = vmul.f32 1.442695, %v4079_v63  ;;  %v9672_v25 = vadd.f32 %v9659_v62, %v4015_v18  ;;  %v3689_v7 = vadd.f32 %v3577_v31, %v3394_v6  ;;  %v3397_v31 = vadd.f32 %v9226_v33, %v9500_v13 }
 0x407   :  { %v6287_v3 = vpop.f32.mrf.mxu1 }
 0x408   :  { %6667 = vpow2.f32 %v4108_v40  ;;  %v4080_v8 = vmin.f32 %v9672_v25, 20.0  ;;  %v4016_v30 = vadd.f32 %v9487_v32, %v3689_v7  ;;  %v9698_v3 = vld [vmem:[%s10183_s7] sm:$0xff]   ;;  %vm4341_vm3 = vcmp.gt.f32.partialorder %v9672_v25, 20.0 }
 0x409   :  { %v3580_v28 = vpop.f32.mrf.mxu1 }
 0x40a   :  { %v4110_v60 = vmul.f32 1.442695, %v4080_v8  ;;  %v9679_v1 = vadd.f32 %v9659_v62, %v4016_v30  ;;  %v3690_v27 = vadd.f32 %v3580_v28, %v3395_v23  ;;  %v9703_v8 = vld [vmem:[%s10183_s7 + $0x8] sm:$0xff]  }
 0x40b   :  { %v6288_v43 = vpop.f32.mrf.mxu1 }
 0x40c   :  { %6669 = vpow2.f32 %v4110_v60  ;;  %v4081_v58 = vmin.f32 %v9679_v1, 20.0  ;;  %v4017_v47 = vadd.f32 %v9496_v12, %v3690_v27  ;;  %v9712_v27 = vld [vmem:[%s10183_s7 + $0x10] sm:$0xff]   ;;  %vm4342_vm15 = vcmp.gt.f32.partialorder %v9679_v1, 20.0 }
 0x40d   :  { %v3585_v59 = vpop.f32.mrf.mxu1 }
 0x40e   :  { %v4112_v32 = vmul.f32 1.442695, %v4081_v58  ;;  %v9686_v63 = vadd.f32 %v9659_v62, %v4017_v47  ;;  %v3691_v24 = vadd.f32 %v3585_v59, %v3396_v26 }
 0x40f   :  { %v6291_v29 = vpop.f32.mrf.mxu1 }
 0x410   :  { %6671 = vpow2.f32 %v4112_v32  ;;  %v4082_v18 = vmin.f32 %v9686_v63, 20.0  ;;  %v4018_v6 = vadd.f32 %v9502_v52, %v3691_v24  ;;  %v3398_v52 = vadd.f32 %v9233_v36, %v9509_v19 }
 0x411   :  { %v3588_v40 = vpop.f32.mrf.mxu1  ;;  %v3399_v29 = vadd.f32 %v9246_v50, %v9517_v55  ;;  %vm4343_vm5 = vcmp.gt.f32.partialorder %v9686_v63, 20.0 }
 0x412   :  { %v4114_v12 = vmul.f32 1.442695, %v4082_v18  ;;  %v9693_v7 = vadd.f32 %v9659_v62, %v4018_v6  ;;  %v3692_v54 = vadd.f32 %v3588_v40, %v3397_v31 }
 0x413   :  { %v6292_v14 = vpop.f32.mrf.mxu1 }
 0x414   :  { %6673 = vpow2.f32 %v4114_v12  ;;  %v4083_v33 = vmin.f32 %v9693_v7, 20.0  ;;  %v4019_v13 = vadd.f32 %v9513_v2, %v3692_v54  ;;  %v9720_v2 = vld [vmem:[%s10183_s7 + $0x18] sm:$0xff]   ;;  %v9736_v14 = vld [vmem:[%s10183_s7 + $0x20] sm:$0xff]   ;;  %vm4344_vm13 = vcmp.gt.f32.partialorder %v9693_v7, 20.0 }
 0x415   :  { %v6668_v30 = vpop.eup %6667  ;;  %v3593_v23 = vpop.f32.mrf.mxu1  ;;  %v10670_v12 = vld [vmem:[#allocation72_spill] sm:$0xff] }
 0x416   :  { %v4166_v28 = vadd.f32 1.0, %v6668_v30  ;;  %v4116_v60 = vmul.f32 1.442695, %v4083_v33  ;;  %v9715_v43 = vadd.f32 %v9659_v62, %v4019_v13  ;;  %v3693_v58 = vadd.f32 %v3593_v23, %v3398_v52 }
 0x417   :  { %v6295_v59 = vpop.f32.mrf.mxu1  ;;  %v9823_v31 = vadd.f32 %v10670_v12, %v9596_v46  ;;  %v10673_v46 = vld [vmem:[#allocation23_spill] sm:$0xff] }
 0x418   :  { %v4195_v32 = vmul.f32 %v4166_v28, %v4166_v28  ;;  %6675 = vpow2.f32 %v4116_v60  ;;  %v4084_v24 = vmin.f32 %v9715_v43, 20.0  ;;  %v4020_v40 = vadd.f32 %v9519_v11, %v3693_v58  ;;  %v10661_v59 = vld [vmem:[#allocation20_spill] sm:$0xff] }
 0x419   :  { %v6670_v18 = vpop.eup %6669  ;;  %v3596_v54 = vpop.f32.mrf.mxu1  ;;  %v3400_v11 = vadd.f32 %v9253_v4, %v9524_v21  ;;  %v3401_v28 = vadd.f32 %v9264_v53, %v9532_v45  ;;  %v10659_v53 = vld [vmem:[#allocation31_spill] sm:$0xff]  ;;  %v9765_v55 = vadd.f32 %v10661_v59, %v9554_v37  ;;  %v10664_v59 = vld [vmem:[#allocation85_spill] sm:$0xff]  ;;  %v9834_v12 = vadd.f32 %v10673_v46, %v9608_v57 }
 0x41a   :  { %v4224_v33 = vadd.f32 1.0, %v4195_v32  ;;  %v4167_v13 = vadd.f32 1.0, %v6670_v18  ;;  %v4118_v52 = vmul.f32 1.442695, %v4084_v24  ;;  %v3694_v30 = vadd.f32 %v3596_v54, %v3399_v29  ;;  %v9751_v32 = vld [vmem:[%s10183_s7 + $0x28] sm:$0xff]  }
 0x41b   :  { %v9739_v50 = vadd.f32 %v9659_v62, %v4020_v40  ;;  %v6296_v23 = vpop.f32.mrf.mxu1  ;;  %v3402_v21 = vadd.f32 %v10659_v53, %v9539_v39  ;;  %v9781_v53 = vadd.f32 %v10664_v59, %v9566_v0  ;;  %v10665_v0 = vld [vmem:[#allocation12_spill] sm:$0xff]  ;;  %vm4345_vm6 = vcmp.gt.f32.partialorder %v9715_v43, 20.0 }
 0x41c   :  { %6677 = vrcp.f32 %v4224_v33  ;;  %v4196_v60 = vmul.f32 %v4167_v13, %v4167_v13  ;;  %v4021_v58 = vadd.f32 %v9528_v34, %v3694_v30 }
 0x41d   :  { %v6672_v24 = vpop.eup %6671  ;;  %6679 = vpow2.f32 %v4118_v52  ;;  %v4085_v29 = vmin.f32 %v9739_v50, 20.0  ;;  %v3601_v18 = vpop.f32.mrf.mxu1  ;;  %v10660_v52 = vld [vmem:[#allocation41_spill] sm:$0xff]  ;;  %vm4346_vm12 = vcmp.gt.f32.partialorder %v9739_v50, 20.0 }
 0x41e   :  { %v4225_v45 = vadd.f32 1.0, %v4196_v60  ;;  %v4168_v40 = vadd.f32 1.0, %v6672_v24  ;;  %v9758_v34 = vadd.f32 %v9659_v62, %v4021_v58  ;;  %v3695_v54 = vadd.f32 %v3601_v18, %v3400_v11  ;;  %v9772_v11 = vld [vmem:[%s10183_s7 + $0x30] sm:$0xff]   ;;  %v10662_v24 = vld [vmem:[#allocation11_spill] sm:$0xff] }
 0x41f   :  { %v4120_v33 = vmul.f32 1.442695, %v4085_v29  ;;  %v6299_v13 = vpop.f32.mrf.mxu1  ;;  %v3403_v23 = vadd.f32 %v10660_v52, %v9547_v51  ;;  %v10663_v18 = vld [vmem:[#allocation17_spill] sm:$0xff]  ;;  %v9786_v60 = vld [vmem:[%s10183_s7 + $0x38] sm:$0xff]  }
 0x420   :  { %6681 = vrcp.f32 %v4225_v45  ;;  %v4197_v4 = vmul.f32 %v4168_v40, %v4168_v40  ;;  %v4086_v39 = vmin.f32 %v9758_v34, 20.0  ;;  %v4022_v29 = vadd.f32 %v10662_v24, %v3695_v54 }
 0x421   :  { %v6674_v58 = vpop.eup %6673  ;;  %6683 = vpow2.f32 %v4120_v33  ;;  %v3604_v51 = vpop.f32.mrf.mxu1  ;;  %v9777_v37 = vadd.f32 %v10663_v18, %v9560_v10  ;;  %v9795_v18 = vadd.f32 %v10665_v0, %v9572_v17  ;;  %v9807_v17 = vld [vmem:[%s10183_s7 + $0x40] sm:$0xff]   ;;  %vm4347_vm4 = vcmp.gt.f32.partialorder %v9758_v34, 20.0 }
 0x422   :  { %v4226_v45 = vadd.f32 1.0, %v4197_v4  ;;  %v4169_v40 = vadd.f32 1.0, %v6674_v58  ;;  %v4122_v13 = vmul.f32 1.442695, %v4086_v39  ;;  %v3696_v52 = vadd.f32 %v3604_v51, %v3401_v28  ;;  %v10666_v28 = vld [vmem:[#allocation9_spill] sm:$0xff]  ;;  %v10669_v10 = vld [vmem:[#allocation19_spill] sm:$0xff] }
 0x423   :  { %v9789_v54 = vadd.f32 %v9659_v62, %v4022_v29  ;;  %v6300_v33 = vpop.f32.mrf.mxu1  ;;  %v10667_v58 = vld [vmem:[#allocation45_spill] sm:$0xff]  ;;  %v9819_v30 = vadd.f32 %v10669_v10, %v9590_v38  ;;  %v10672_v38 = vld [vmem:[#allocation18_spill] sm:$0xff] }
 0x424   :  { %6685 = vrcp.f32 %v4226_v45  ;;  %v4198_v4 = vmul.f32 %v4169_v40, %v4169_v40  ;;  %v4023_v39 = vadd.f32 %v10666_v28, %v3696_v52  ;;  %v9800_v51 = vadd.f32 %v10667_v58, %v9578_v48  ;;  %v10668_v45 = vld [vmem:[#allocation33_spill] sm:$0xff] }
 0x425   :  { %v6676_v59 = vpop.eup %6675  ;;  %6687 = vpow2.f32 %v4122_v13  ;;  %v4087_v29 = vmin.f32 %v9789_v54, 20.0  ;;  %v3609_v33 = vpop.f32.mrf.mxu1  ;;  %v9811_v40 = vadd.f32 %v10668_v45, %v9584_v15  ;;  %v9830_v10 = vadd.f32 %v10672_v38, %v9602_v44  ;;  %v10674_v44 = vld [vmem:[#allocation87_spill] sm:$0xff] }
 0x426   :  { %v4227_v52 = vadd.f32 1.0, %v4198_v4  ;;  %v4170_v0 = vadd.f32 1.0, %v6676_v59  ;;  %v9814_v48 = vadd.f32 %v9659_v62, %v4023_v39  ;;  %v3697_v13 = vadd.f32 %v3609_v33, %v3402_v21  ;;  %v4516_v15 = vpop.permute.xlu1 %4515  ;;  %v4519_v39 = vpop.permute.xlu0 %4518 }
 0x427   :  { %v4124_v28 = vmul.f32 1.442695, %v4087_v29  ;;  %v6303_v58 = vpop.f32.mrf.mxu1  ;;  %vm4601_vm0 = vcmp.eq.s32.totalorder %v4516_v15, 1  ;;  %v10671_v29 = vld [vmem:[#allocation24_spill] sm:$0xff]  ;;  %v9842_v38 = vadd.f32 %v10674_v44, %v9614_v5  ;;  %vm4602_vm1 = vcmp.eq.s32.totalorder %v4519_v39, 1 }
 0x428   :  { %6689 = vrcp.f32 %v4227_v52  ;;  %v4199_v4 = vmul.f32 %v4170_v0, %v4170_v0  ;;  %v4088_v59 = vmin.f32 %v9814_v48, 20.0  ;;  %v4024_v33 = vadd.f32 %v10671_v29, %v3697_v13 }
 0x429   :  { %v6678_v21 = vpop.eup %6677  ;;  %6691 = vpow2.f32 %v4124_v28  ;;  %v3612_v45 = vpop.f32.mrf.mxu1 }
 0x42a   :  { %v6680_v52 = vpop.eup %6679  ;;  %v4282_v0 = vmul.f32 2.0, %v6678_v21  ;;  %v4228_v58 = vadd.f32 1.0, %v4199_v4  ;;  %v4126_v24 = vmul.f32 1.442695, %v4088_v59  ;;  %v3698_v6 = vadd.f32 %v3612_v45, %v3403_v23  ;;  %v10675_v4 = vld [vmem:[#allocation52_spill] sm:$0xff] }
 0x42b   :  { %v4171_v28 = vadd.f32 1.0, %v6680_v52  ;;  %v9838_v13 = vadd.f32 %v9659_v62, %v4024_v33  ;;  %v6304_v29 = vpop.f32.mrf.mxu1  ;;  %v10676_v33 = vld [vmem:[#allocation14_spill] sm:$0xff] }
 0x42c   :  { %v4311_v57 = vsub.f32 1.0, %v4282_v0  ;;  %6693 = vrcp.f32 %v4228_v58  ;;  %v4025_v59 = vadd.f32 %v10675_v4, %v3698_v6  ;;  %v9849_v52 = vadd.f32 %v10676_v33, %v9620_v9  ;;  %v4522_v58 = vpop.permute.xlu1 %4521 }
 0x42d   :  { %v6682_v23 = vpop.eup %6681  ;;  %v4200_v21 = vmul.f32 %v4171_v28, %v4171_v28  ;;  %6695 = vpow2.f32 %v4126_v24  ;;  %v4089_v45 = vmin.f32 %v9838_v13, 20.0  ;;  %v3617_v46 = vpop.f32.mrf.mxu1  ;;  %vm4603_vm9 = vcmp.eq.s32.totalorder %v4522_v58, 1 }
 0x42e   :  { %v6684_v29 = vpop.eup %6683  ;;  %v4369_v5 = vsel %vm4340_vm7, 1.0, %v4311_v57  ;;  %v4283_v0 = vmul.f32 2.0, %v6682_v23  ;;  %v9854_v44 = vadd.f32 %v9659_v62, %v4025_v59  ;;  %v3699_v6 = vadd.f32 %v3617_v46, %v9765_v55  ;;  %v10677_v57 = vld [vmem:[#allocation27_spill] sm:$0xff] }
 0x42f   :  { %v4398_v24 = vmul.f32 %v4369_v5, %v9665_v61  ;;  %v4229_v28 = vadd.f32 1.0, %v4200_v21  ;;  %v4172_v4 = vadd.f32 1.0, %v6684_v29  ;;  %v4128_v26 = vmul.f32 1.442695, %v4089_v45  ;;  %v6307_v47 = vpop.f32.mrf.mxu1  ;;  %v10678_v61 = vld [vmem:[#allocation22_spill] sm:$0xff]  ;;  %v4525_v5 = vpop.permute.xlu0 %4524 }
 0x430   :  { %v4312_v9 = vsub.f32 1.0, %v4283_v0  ;;  %v4090_v33 = vmin.f32 %v9854_v44, 20.0  ;;  %v4026_v23 = vadd.f32 %v10677_v57, %v3699_v6  ;;  %v9864_v21 = vadd.f32 %v10678_v61, %v9626_v35 }
 0x431   :  { %v6686_v19 = vpop.eup %6685  ;;  %6697 = vrcp.f32 %v4229_v28  ;;  %v4201_v55 = vmul.f32 %v4172_v4, %v4172_v4  ;;  %v3620_v59 = vpop.f32.mrf.mxu1  ;;  %v4630_v47 = vsel %vm4601_vm0, %v4398_v24, 0.0  ;;  %vm4604_vm10 = vcmp.eq.s32.totalorder %v4525_v5, 1  ;;  %v10679_v24 = vld [vmem:[#allocation15_spill] sm:$0xff] }
 0x432   :  { %v6688_v45 = vpop.eup %6687  ;;  %v4370_v46 = vsel %vm4341_vm3, 1.0, %v4312_v9  ;;  %v4284_v29 = vmul.f32 2.0, %v6686_v19  ;;  %6699 = vpow2.f32 %v4128_v26  ;;  %v4130_v28 = vmul.f32 1.442695, %v4090_v33 }
 0x433   :  { %v4399_v0 = vmul.f32 %v4370_v46, %v9672_v25  ;;  %v4230_v6 = vadd.f32 1.0, %v4201_v55  ;;  %v4173_v57 = vadd.f32 1.0, %v6688_v45  ;;  %v6308_v4 = vpop.f32.mrf.mxu1  ;;  %v9871_v35 = vadd.f32 %v9659_v62, %v4026_v23 }
 0x434   :  { %v4313_v36 = vsub.f32 1.0, %v4284_v29  ;;  %v3700_v15 = vadd.f32 %v3620_v59, %v9777_v37  ;;  %v9876_v61 = vadd.f32 %v10679_v24, %v9632_v49  ;;  %v10680_v26 = vunpack.c.l.bf16 %v9698_v3  ;;  %v4528_v59 = vpop.permute.xlu1 %4527  ;;  %v10682_v24 = vld [vmem:[#allocation26_spill] sm:$0xff] }
 0x435   :  { %v6690_v19 = vpop.eup %6689  ;;  %v4631_v25 = vsel %vm4602_vm1, %v4399_v0, 0.0  ;;  %6701 = vrcp.f32 %v4230_v6  ;;  %v4202_v33 = vmul.f32 %v4173_v57, %v4173_v57  ;;  %v3625_v55 = vpop.f32.mrf.mxu1  ;;  %v10681_v23 = vunpack.c.h.bf16 %v9698_v3  ;;  %v10683_v3 = vld [vmem:[#allocation48_spill] sm:$0xff] }
 0x436   :  { %v4717_v9 = vadd.f32 %v10680_v26, %v4630_v47  ;;  %v6692_v45 = vpop.eup %6691  ;;  %v4371_v37 = vsel %vm4342_vm15, 1.0, %v4313_v36  ;;  %v4285_v49 = vmul.f32 2.0, %v6690_v19  ;;  %6703 = vpow2.f32 %v4130_v28 }
 0x437   :  { %v4718_v46 = vadd.f32 %v10681_v23, %v4631_v25  ;;  %v4400_v29 = vmul.f32 %v4371_v37, %v9679_v1  ;;  %v4231_v47 = vadd.f32 1.0, %v4202_v33  ;;  %v4174_v39 = vadd.f32 1.0, %v6692_v45  ;;  %v6311_v4 = vpop.f32.mrf.mxu1 }
 0x438   :  { %v4091_v0 = vmin.f32 %v9871_v35, 20.0  ;;  %vm4605_vm14 = vcmp.eq.s32.totalorder %v4528_v59, 1  ;;  %v4314_v57 = vsub.f32 1.0, %v4285_v49  ;;  %v4027_v26 = vadd.f32 %v10682_v24, %v3700_v15  ;;  %v4531_v49 = vpop.permute.xlu0 %4530 }
 0x439   :  { %v5324_v6 = vpack.c.bf16 %v4718_v46, %v4717_v9  ;;  %v9891_v25 = vadd.f32 %v10683_v3, %v9638_v41  ;;  %v6694_v36 = vpop.eup %6693  ;;  %v4632_v28 = vsel %vm4603_vm9, %v4400_v29, 0.0  ;;  %6705 = vrcp.f32 %v4231_v47  ;;  %v3628_v33 = vpop.f32.mrf.mxu1 }
 0x43a   :  { %v4203_v19 = vmul.f32 %v4174_v39, %v4174_v39  ;;  %v4132_v1 = vmul.f32 1.442695, %v4091_v0  ;;  %v6696_v45 = vpop.eup %6695  ;;  %v4372_v9 = vsel %vm4343_vm5, 1.0, %v4314_v57  ;;  %v4286_v15 = vmul.f32 2.0, %v6694_v36 }
 0x43b   :  { %5325 = vst [vmem:[%s10184_s8] sm:$0xff] %v5324_v6   ;;  %v9901_v41 = vadd.f32 %v9659_v62, %v4027_v26  ;;  %v4401_v58 = vmul.f32 %v4372_v9, %v9686_v63  ;;  %v4175_v46 = vadd.f32 1.0, %v6696_v45  ;;  %v6312_v37 = vpop.f32.mrf.mxu1  ;;  %v10684_v29 = vunpack.c.l.bf16 %v9703_v8 }
 0x43c   :  { %v4232_v23 = vadd.f32 1.0, %v4203_v19  ;;  %6707 = vpow2.f32 %v4132_v1  ;;  %v4315_v39 = vsub.f32 1.0, %v4286_v15  ;;  %v3701_v4 = vadd.f32 %v3625_v55, %v9781_v53  ;;  %v10686_v1 = vld [vmem:[#allocation16_spill] sm:$0xff]  ;;  %v10687_v15 = vld [vmem:[#allocation30_spill] sm:$0xff] }
 0x43d   :  { %v4719_v47 = vadd.f32 %v10684_v29, %v4632_v28  ;;  %v4092_v0 = vmin.f32 %v9901_v41, 20.0  ;;  %vm4606_vm11 = vcmp.eq.s32.totalorder %v4531_v49, 1  ;;  %v4633_v6 = vsel %vm4604_vm10, %v4401_v58, 0.0  ;;  %v3633_v24 = vpop.f32.mrf.mxu1  ;;  %v10690_v49 = vld [vmem:[#allocation29_spill] sm:$0xff] }
 0x43e   :  { %6709 = vrcp.f32 %v4232_v23  ;;  %v4204_v57 = vmul.f32 %v4175_v46, %v4175_v46  ;;  %v3702_v63 = vadd.f32 %v3628_v33, %v9795_v18  ;;  %v6698_v26 = vpop.eup %6697  ;;  %v10685_v3 = vunpack.c.h.bf16 %v9703_v8  ;;  %v4534_v18 = vpop.permute.xlu1 %4533 }
 0x43f   :  { %v4373_v28 = vsel %vm4344_vm13, 1.0, %v4315_v39  ;;  %v4134_v19 = vmul.f32 1.442695, %v4092_v0  ;;  %v4028_v45 = vadd.f32 %v10686_v1, %v3701_v4  ;;  %v6700_v9 = vpop.eup %6699  ;;  %v4287_v5 = vmul.f32 2.0, %v6698_v26  ;;  %v6315_v23 = vpop.f32.mrf.mxu1 }
 0x440   :  { %v4720_v36 = vadd.f32 %v10685_v3, %v4633_v6  ;;  %v4402_v53 = vmul.f32 %v4373_v28, %v9693_v7  ;;  %v4233_v55 = vadd.f32 1.0, %v4204_v57  ;;  %v4029_v58 = vadd.f32 %v10687_v15, %v3702_v63  ;;  %v4537_v28 = vpop.permute.xlu0 %4536 }
 0x441   :  { %v4176_v46 = vadd.f32 1.0, %v6700_v9  ;;  %6711 = vpow2.f32 %v4134_v19  ;;  %v9918_v8 = vadd.f32 %v9659_v62, %v4028_v45  ;;  %vm4607_vm8 = vcmp.eq.s32.totalorder %v4534_v18, 1  ;;  %v3636_v7 = vpop.f32.mrf.mxu1 }
 0x442   :  { %v5329_v33 = vpack.c.bf16 %v4720_v36, %v4719_v47  ;;  %v4634_v37 = vsel %vm4605_vm14, %v4402_v53, 0.0  ;;  %v4316_v29 = vsub.f32 1.0, %v4287_v5  ;;  %6713 = vrcp.f32 %v4233_v55  ;;  %v6702_v0 = vpop.eup %6701 }
 0x443   :  { %v9922_v39 = vadd.f32 %v9659_v62, %v4029_v58  ;;  %v4205_v47 = vmul.f32 %v4176_v46, %v4176_v46  ;;  %v4093_v4 = vmin.f32 %v9918_v8, 20.0  ;;  %v6704_v59 = vpop.eup %6703  ;;  %v10688_v6 = vunpack.c.l.bf16 %v9712_v27  ;;  %v6316_v36 = vpop.f32.mrf.mxu1 }
 0x444   :  { %5404 = vst [vmem:[%s10184_s8 + $0x8] sm:$0xff] %v5329_v33   ;;  %v4374_v63 = vsel %vm4345_vm6, 1.0, %v4316_v29  ;;  %v4288_v26 = vmul.f32 2.0, %v6702_v0  ;;  %v4177_v45 = vadd.f32 1.0, %v6704_v59  ;;  %vm4608_vm2 = vcmp.eq.s32.totalorder %v4537_v28, 1  ;;  %v4543_v18 = vpop.permute.xlu0 %4542 }
 0x445   :  { %v4721_v57 = vadd.f32 %v10688_v6, %v4634_v37  ;;  %v4094_v3 = vmin.f32 %v9922_v39, 20.0  ;;  %v4403_v19 = vmul.f32 %v4374_v63, %v9715_v43  ;;  %v4234_v1 = vadd.f32 1.0, %v4205_v47  ;;  %v3641_v58 = vpop.f32.mrf.mxu1 }
 0x446   :  { %v4136_v9 = vmul.f32 1.442695, %v4093_v4  ;;  %v4317_v53 = vsub.f32 1.0, %v4288_v26  ;;  %v3703_v55 = vadd.f32 %v3633_v24, %v9800_v51  ;;  %v3704_v15 = vadd.f32 %v3636_v7, %v9811_v40  ;;  %v6706_v23 = vpop.eup %6705  ;;  %v4540_v24 = vpop.permute.xlu1 %4539 }
 0x447   :  { %v4138_v5 = vmul.f32 1.442695, %v4094_v3  ;;  %v4635_v33 = vsel %vm4606_vm11, %v4403_v19, 0.0  ;;  %6715 = vrcp.f32 %v4234_v1  ;;  %v4206_v46 = vmul.f32 %v4177_v45, %v4177_v45  ;;  %v6319_v4 = vpop.f32.mrf.mxu1  ;;  %v10692_v45 = vld [vmem:[#allocation32_spill] sm:$0xff] }
 0x448   :  { %v3705_v37 = vadd.f32 %v3641_v58, %v9819_v30  ;;  %v10689_v43 = vunpack.c.h.bf16 %v9712_v27  ;;  %v4375_v0 = vsel %vm4346_vm12, 1.0, %v4317_v53  ;;  %v4289_v47 = vmul.f32 2.0, %v6706_v23  ;;  %v10691_v27 = vld [vmem:[#allocation36_spill] sm:$0xff] }
 0x449   :  { %6717 = vpow2.f32 %v4136_v9  ;;  %v6708_v51 = vpop.eup %6707  ;;  %v4404_v40 = vmul.f32 %v4375_v0, %v9739_v50  ;;  %v4235_v7 = vadd.f32 1.0, %v4206_v46  ;;  %v4030_v59 = vadd.f32 %v10690_v49, %v3703_v55  ;;  %v3644_v3 = vpop.f32.mrf.mxu1 }
 0x44a   :  { %v4722_v29 = vadd.f32 %v10689_v43, %v4635_v33  ;;  %6719 = vpow2.f32 %v4138_v5  ;;  %vm4609_vm0 = vcmp.eq.s32.totalorder %v4540_v24, 1  ;;  %v4318_v30 = vsub.f32 1.0, %v4289_v47 }
 0x44b   :  { %v4178_v63 = vadd.f32 1.0, %v6708_v51  ;;  %v4031_v26 = vadd.f32 %v10691_v27, %v3704_v15  ;;  %v6710_v36 = vpop.eup %6709  ;;  %v4636_v19 = vsel %vm4607_vm8, %v4404_v40, 0.0  ;;  %6721 = vrcp.f32 %v4235_v7  ;;  %v6320_v5 = vpop.f32.mrf.mxu1 }
 0x44c   :  { %v5334_v6 = vpack.c.bf16 %v4722_v29, %v4721_v57  ;;  %v9949_v1 = vadd.f32 %v9659_v62, %v4030_v59  ;;  %v4032_v50 = vadd.f32 %v10692_v45, %v3705_v37  ;;  %v4376_v57 = vsel %vm4347_vm4, 1.0, %v4318_v30  ;;  %v10695_v45 = vld [vmem:[#allocation74_spill] sm:$0xff] }
 0x44d   :  { %v4290_v9 = vmul.f32 2.0, %v6710_v36  ;;  %vm4348_vm7 = vcmp.gt.f32.partialorder %v9789_v54, 20.0  ;;  %v4207_v53 = vmul.f32 %v4178_v63, %v4178_v63  ;;  %v10693_v55 = vunpack.c.l.bf16 %v9720_v2  ;;  %v3649_v47 = vpop.f32.mrf.mxu1 }
 0x44e   :  { %5405 = vst [vmem:[%s10184_s8 + $0x10] sm:$0xff] %v5334_v6   ;;  %v4405_v58 = vmul.f32 %v4376_v57, %v9758_v34  ;;  %v4095_v23 = vmin.f32 %v9949_v1, 20.0  ;;  %v9963_v33 = vadd.f32 %v9659_v62, %v4031_v26  ;;  %v6712_v46 = vpop.eup %6711  ;;  %vm4610_vm1 = vcmp.eq.s32.totalorder %v4543_v18, 1 }
 0x44f   :  { %v4723_v15 = vadd.f32 %v10693_v55, %v4636_v19  ;;  %v4319_v37 = vsub.f32 1.0, %v4290_v9  ;;  %v4236_v43 = vadd.f32 1.0, %v4207_v53  ;;  %v9966_v29 = vadd.f32 %v9659_v62, %v4032_v50  ;;  %v6714_v4 = vpop.eup %6713  ;;  %v6323_v63 = vpop.f32.mrf.mxu1  ;;  %v10696_v55 = vld [vmem:[#allocation21_spill] sm:$0xff] }
 0x450   :  { %v3706_v0 = vadd.f32 %v3644_v3, %v9823_v31  ;;  %v4637_v51 = vsel %vm4608_vm2, %v4405_v58, 0.0  ;;  %v4179_v40 = vadd.f32 1.0, %v6712_v46  ;;  %v4140_v34 = vmul.f32 1.442695, %v4095_v23  ;;  %v4546_v50 = vpop.permute.xlu1 %4545 }
 0x451   :  { %v4096_v7 = vmin.f32 %v9963_v33, 20.0  ;;  %v10694_v49 = vunpack.c.h.bf16 %v9720_v2  ;;  %v4377_v6 = vsel %vm4348_vm7, 1.0, %v4319_v37  ;;  %v4291_v30 = vmul.f32 2.0, %v6714_v4  ;;  %v3652_v19 = vpop.f32.mrf.mxu1 }
 0x452   :  { %6723 = vrcp.f32 %v4236_v43  ;;  %v4406_v27 = vmul.f32 %v4377_v6, %v9789_v54  ;;  %v4208_v31 = vmul.f32 %v4179_v40, %v4179_v40  ;;  %v4097_v36 = vmin.f32 %v9966_v29, 20.0  ;;  %v4549_v43 = vpop.permute.xlu0 %4548 }
 0x453   :  { %v4724_v59 = vadd.f32 %v10694_v49, %v4637_v51  ;;  %6725 = vpow2.f32 %v4140_v34  ;;  %v4142_v26 = vmul.f32 1.442695, %v4096_v7  ;;  %v4320_v3 = vsub.f32 1.0, %v4291_v30 }
 0x454   :  { %v9979_v2 = vadd.f32 %v10695_v45, %v9644_v16  ;;  %v4638_v57 = vsel %vm4609_vm0, %v4406_v27, 0.0  ;;  %vm4349_vm3 = vcmp.gt.f32.partialorder %v9814_v48, 20.0  ;;  %v4237_v9 = vadd.f32 1.0, %v4208_v31  ;;  %v6716_v54 = vpop.eup %6715 }
 0x455   :  { %v5339_v28 = vpack.c.bf16 %v4724_v59, %v4723_v15  ;;  %6727 = vpow2.f32 %v4142_v26  ;;  %vm4611_vm9 = vcmp.eq.s32.totalorder %v4546_v50, 1  ;;  %v4378_v53 = vsel %vm4349_vm3, 1.0, %v4320_v3  ;;  %v6324_v15 = vpop.f32.mrf.mxu1  ;;  %v10698_v59 = vld [vmem:[#allocation37_spill] sm:$0xff] }
 0x456   :  { %vm4350_vm15 = vcmp.gt.f32.partialorder %v9838_v13, 20.0  ;;  %v4144_v5 = vmul.f32 1.442695, %v4097_v36  ;;  %v4033_v16 = vadd.f32 %v10696_v55, %v3706_v0  ;;  %v6718_v58 = vpop.eup %6717  ;;  %v4407_v24 = vmul.f32 %v4378_v53, %v9814_v48  ;;  %v10700_v55 = vld [vmem:[#allocation35_spill] sm:$0xff] }
 0x457   :  { %5406 = vst [vmem:[%s10184_s8 + $0x18] sm:$0xff] %v5339_v28   ;;  %v4292_v23 = vmul.f32 2.0, %v6716_v54  ;;  %6729 = vrcp.f32 %v4237_v9  ;;  %v3707_v46 = vadd.f32 %v3649_v47, %v9830_v10  ;;  %v6720_v37 = vpop.eup %6719  ;;  %v10697_v4 = vunpack.c.l.bf16 %v9736_v14  ;;  %v3657_v7 = vpop.f32.mrf.mxu1 }
 0x458   :  { %v4180_v40 = vadd.f32 1.0, %v6718_v58  ;;  %6731 = vpow2.f32 %v4144_v5  ;;  %v9993_v34 = vadd.f32 %v9659_v62, %v4033_v16  ;;  %vm4612_vm5 = vcmp.eq.s32.totalorder %v4549_v43, 1  ;;  %v6722_v30 = vpop.eup %6721 }
 0x459   :  { %v4725_v51 = vadd.f32 %v10697_v4, %v4638_v57  ;;  %v4639_v0 = vsel %vm4610_vm1, %v4407_v24, 0.0  ;;  %v4321_v49 = vsub.f32 1.0, %v4292_v23  ;;  %v4181_v48 = vadd.f32 1.0, %v6720_v37  ;;  %v6327_v26 = vpop.f32.mrf.mxu1 }
 0x45a   :  { %v4034_v6 = vadd.f32 %v10698_v59, %v3707_v46  ;;  %v10699_v10 = vunpack.c.h.bf16 %v9736_v14  ;;  %v4209_v63 = vmul.f32 %v4180_v40, %v4180_v40  ;;  %v4098_v27 = vmin.f32 %v9993_v34, 20.0  ;;  %v4555_v59 = vpop.permute.xlu0 %4554 }
 0x45b   :  { %v3708_v31 = vadd.f32 %v3652_v19, %v9834_v12  ;;  %v4379_v28 = vsel %vm4350_vm15, 1.0, %v4321_v49  ;;  %v4293_v3 = vmul.f32 2.0, %v6722_v30  ;;  %v4210_v18 = vmul.f32 %v4181_v48, %v4181_v48  ;;  %v3660_v54 = vpop.f32.mrf.mxu1  ;;  %v4552_v19 = vpop.permute.xlu1 %4551 }
 0x45c   :  { %v4726_v47 = vadd.f32 %v10699_v10, %v4639_v0  ;;  %v10004_v36 = vadd.f32 %v9659_v62, %v4034_v6  ;;  %v4408_v57 = vmul.f32 %v4379_v28, %v9838_v13  ;;  %v4238_v9 = vadd.f32 1.0, %v4209_v63 }
 0x45d   :  { %v4146_v14 = vmul.f32 1.442695, %v4098_v27  ;;  %v4322_v53 = vsub.f32 1.0, %v4293_v3  ;;  %vm4351_vm10 = vcmp.gt.f32.partialorder %v9854_v44, 20.0  ;;  %v4239_v5 = vadd.f32 1.0, %v4210_v18  ;;  %v6328_v15 = vpop.f32.mrf.mxu1 }
 0x45e   :  { %v5344_v45 = vpack.c.bf16 %v4726_v47, %v4725_v51  ;;  %v4099_v12 = vmin.f32 %v10004_v36, 20.0  ;;  %vm4352_vm13 = vcmp.gt.f32.partialorder %v9871_v35, 20.0  ;;  %6733 = vrcp.f32 %v4238_v9 }
 0x45f   :  { %v4035_v16 = vadd.f32 %v10700_v55, %v3708_v31  ;;  %v3709_v13 = vadd.f32 %v3657_v7, %v9842_v38  ;;  %v6724_v58 = vpop.eup %6723  ;;  %vm4613_vm14 = vcmp.eq.s32.totalorder %v4552_v19, 1  ;;  %v4640_v24 = vsel %vm4611_vm9, %v4408_v57, 0.0  ;;  %v3665_v0 = vpop.f32.mrf.mxu1  ;;  %v10701_v38 = vld [vmem:[#allocation42_spill] sm:$0xff] }
 0x460   :  { %5407 = vst [vmem:[%s10184_s8 + $0x20] sm:$0xff] %v5344_v45   ;;  %v4380_v23 = vsel %vm4351_vm10, 1.0, %v4322_v53  ;;  %6735 = vrcp.f32 %v4239_v5  ;;  %v4148_v46 = vmul.f32 1.442695, %v4099_v12  ;;  %v6726_v37 = vpop.eup %6725  ;;  %v4294_v51 = vmul.f32 2.0, %v6724_v58 }
 0x461   :  { %v4409_v4 = vmul.f32 %v4380_v23, %v9854_v44  ;;  %6737 = vpow2.f32 %v4146_v14  ;;  %v10018_v40 = vadd.f32 %v9659_v62, %v4035_v16  ;;  %v4182_v49 = vadd.f32 1.0, %v6726_v37  ;;  %v6331_v63 = vpop.f32.mrf.mxu1  ;;  %v4558_v23 = vpop.permute.xlu1 %4557 }
 0x462   :  { %6739 = vpow2.f32 %v4148_v46  ;;  %v4036_v7 = vadd.f32 %v10701_v38, %v3709_v13  ;;  %v3710_v48 = vadd.f32 %v3660_v54, %v9849_v52  ;;  %v6728_v50 = vpop.eup %6727  ;;  %v10702_v6 = vunpack.c.l.bf16 %v9751_v32 }
 0x463   :  { %v4641_v10 = vsel %vm4612_vm5, %v4409_v4, 0.0  ;;  %v4323_v44 = vsub.f32 1.0, %v4294_v51  ;;  %v4100_v47 = vmin.f32 %v10018_v40, 20.0  ;;  %vm4614_vm6 = vcmp.eq.s32.totalorder %v4555_v59, 1  ;;  %v3668_v9 = vpop.f32.mrf.mxu1  ;;  %v10704_v4 = vld [vmem:[#allocation43_spill] sm:$0xff] }
 0x464   :  { %v4727_v30 = vadd.f32 %v10702_v6, %v4640_v24  ;;  %v10703_v27 = vunpack.c.h.bf16 %v9751_v32  ;;  %v4211_v26 = vmul.f32 %v4182_v49, %v4182_v49  ;;  %v4183_v28 = vadd.f32 1.0, %v6728_v50  ;;  %v6730_v52 = vpop.eup %6729  ;;  %v4561_v49 = vpop.permute.xlu0 %4560  ;;  %v10064_v59 = vld [vmem:[%s10181_s5] ss:$0 sm:$0xff] }
 0x465   :  { %v10029_v3 = vadd.f32 %v9659_v62, %v4036_v7  ;;  %v4381_v18 = vsel %vm4352_vm13, 1.0, %v4323_v44  ;;  %v4150_v45 = vmul.f32 1.442695, %v4100_v47  ;;  %v4037_v43 = vadd.f32 %v9628_v42, %v3710_v48  ;;  %v6732_v14 = vpop.eup %6731  ;;  %v6332_v13 = vpop.f32.mrf.mxu1  ;;  %v10706_v47 = vld [vmem:[#allocation28_spill] sm:$0xff] }
 0x466   :  { %v4728_v31 = vadd.f32 %v10703_v27, %v4641_v10  ;;  %v3711_v57 = vadd.f32 %v3665_v0, %v9864_v21  ;;  %v4410_v32 = vmul.f32 %v4381_v18, %v9871_v35  ;;  %v4295_v53 = vmul.f32 2.0, %v6730_v52 }
 0x467   :  { %v4240_v5 = vadd.f32 1.0, %v4211_v26  ;;  %v4212_v12 = vmul.f32 %v4183_v28, %v4183_v28  ;;  %v4184_v55 = vadd.f32 1.0, %v6732_v14  ;;  %6741 = vpow2.f32 %v4150_v45  ;;  %v3673_v24 = vpop.f32.mrf.mxu1 }
 0x468   :  { %v5349_v54 = vpack.c.bf16 %v4728_v31, %v4727_v30  ;;  %v4101_v16 = vmin.f32 %v10029_v3, 20.0  ;;  %v4324_v42 = vsub.f32 1.0, %v4295_v53  ;;  %vm4353_vm11 = vcmp.gt.f32.partialorder %v9901_v41, 20.0 }
 0x469   :  { %vm4354_vm8 = vcmp.gt.f32.partialorder %v9918_v8, 20.0  ;;  %6743 = vrcp.f32 %v4240_v5  ;;  %v4642_v21 = vsel %vm4613_vm14, %v4410_v32, 0.0  ;;  %v4241_v35 = vadd.f32 1.0, %v4212_v12  ;;  %v6335_v7 = vpop.f32.mrf.mxu1 }
 0x46a   :  { %5408 = vst [vmem:[%s10184_s8 + $0x28] sm:$0xff] %v5349_v54   ;;  %v4213_v15 = vmul.f32 %v4184_v55, %v4184_v55  ;;  %v4152_v58 = vmul.f32 1.442695, %v4101_v16  ;;  %v4382_v46 = vsel %vm4353_vm11, 1.0, %v4324_v42  ;;  %v10044_v37 = vadd.f32 %v9659_v62, %v4037_v43 }
 0x46b   :  { %v4038_v51 = vadd.f32 %v10704_v4, %v3711_v57  ;;  %v3712_v0 = vadd.f32 %v3668_v9, %v9876_v61  ;;  %vm4615_vm12 = vcmp.eq.s32.totalorder %v4558_v23, 1  ;;  %v4411_v38 = vmul.f32 %v4382_v46, %v9901_v41  ;;  %v6734_v48 = vpop.eup %6733  ;;  %v3676_v27 = vpop.f32.mrf.mxu1 }
 0x46c   :  { %vm4355_vm4 = vcmp.gt.f32.partialorder %v9922_v39, 20.0  ;;  %6745 = vrcp.f32 %v4241_v35  ;;  %v4242_v19 = vadd.f32 1.0, %v4213_v15  ;;  %vm4616_vm2 = vcmp.eq.s32.totalorder %v4561_v49, 1  ;;  %v10708_v35 = vld [vmem:[#allocation25_spill] sm:$0xff] }
 0x46d   :  { %v10705_v50 = vunpack.c.l.bf16 %v9772_v11  ;;  %6747 = vpow2.f32 %v4152_v58  ;;  %v4102_v30 = vmin.f32 %v10044_v37, 20.0  ;;  %v10054_v10 = vadd.f32 %v9659_v62, %v4038_v51  ;;  %v6736_v61 = vpop.eup %6735  ;;  %v6336_v54 = vpop.f32.mrf.mxu1 }
 0x46e   :  { %v4643_v44 = vsel %vm4614_vm6, %v4411_v38, 0.0  ;;  %v4296_v41 = vmul.f32 2.0, %v6734_v48  ;;  %6749 = vrcp.f32 %v4242_v19  ;;  %v4039_v63 = vadd.f32 %v10706_v47, %v3712_v0  ;;  %v6738_v31 = vpop.eup %6737  ;;  %v4564_v58 = vpop.permute.xlu1 %4563 }
 0x46f   :  { %v4729_v6 = vadd.f32 %v10705_v50, %v4642_v21  ;;  %v10707_v26 = vunpack.c.h.bf16 %v9772_v11  ;;  %v4297_v52 = vmul.f32 2.0, %v6736_v61  ;;  %v4154_v18 = vmul.f32 1.442695, %v4102_v30  ;;  %v6740_v43 = vpop.eup %6739  ;;  %v3681_v13 = vpop.f32.mrf.mxu1 }
 0x470   :  { %v4103_v45 = vmin.f32 %v10054_v10, 20.0  ;;  %v4325_v57 = vsub.f32 1.0, %v4296_v41  ;;  %v4185_v62 = vadd.f32 1.0, %v6738_v31  ;;  %v10067_v9 = vadd.f32 %v10064_v59, %v4039_v63 }
 0x471   :  { %v4730_v28 = vadd.f32 %v10707_v26, %v4643_v44  ;;  %v3713_v14 = vadd.f32 %v3673_v24, %v9891_v25  ;;  %v4326_v32 = vsub.f32 1.0, %v4297_v52  ;;  %v4186_v53 = vadd.f32 1.0, %v6740_v43  ;;  %v6339_v51 = vpop.f32.mrf.mxu1 }
 0x472   :  { %6751 = vpow2.f32 %v4154_v18  ;;  %v4383_v5 = vsel %vm4354_vm8, 1.0, %v4325_v57  ;;  %v4214_v12 = vmul.f32 %v4185_v62, %v4185_v62  ;;  %v4156_v55 = vmul.f32 1.442695, %v4103_v45 }
 0x473   :  { %v5354_v11 = vpack.c.bf16 %v4730_v28, %v4729_v6  ;;  %v4104_v16 = vmin.f32 %v10067_v9, 20.0  ;;  %v4412_v42 = vmul.f32 %v4383_v5, %v9918_v8  ;;  %v4384_v25 = vsel %vm4355_vm4, 1.0, %v4326_v32  ;;  %v3684_v30 = vpop.f32.mrf.mxu1 }
 0x474   :  { %v4215_v21 = vmul.f32 %v4186_v53, %v4186_v53  ;;  %v3420_v15 = vadd.f32 %v10708_v35, %v9650_v20  ;;  %v4413_v24 = vmul.f32 %v4384_v25, %v9922_v39  ;;  %v4243_v46 = vadd.f32 1.0, %v4214_v12  ;;  %v6742_v0 = vpop.eup %6741 }
 0x475   :  { %5409 = vst [vmem:[%s10184_s8 + $0x30] sm:$0xff] %v5354_v11   ;;  %6753 = vpow2.f32 %v4156_v55  ;;  %v4158_v4 = vmul.f32 1.442695, %v4104_v16  ;;  %vm4617_vm0 = vcmp.eq.s32.totalorder %v4564_v58, 1  ;;  %v4644_v38 = vsel %vm4615_vm12, %v4412_v42, 0.0  ;;  %v6340_v63 = vpop.f32.mrf.mxu1 }
 0x476   :  { %v4244_v19 = vadd.f32 1.0, %v4215_v21  ;;  %v4040_v8 = vadd.f32 %v9646_v56, %v3713_v14  ;;  %v3714_v7 = vadd.f32 %v3676_v27, %v9979_v2  ;;  %v6744_v48 = vpop.eup %6743  ;;  %v10709_v50 = vunpack.c.l.bf16 %v9786_v60 }
 0x477   :  { %v4645_v6 = vsel %vm4616_vm2, %v4413_v24, 0.0  ;;  %6755 = vrcp.f32 %v4243_v46  ;;  %v4187_v39 = vadd.f32 1.0, %v6742_v0  ;;  %v10710_v61 = vunpack.c.h.bf16 %v9786_v60  ;;  %v4008_v43 = vpop.f32.mrf.mxu1 }
 0x478   :  { %v4731_v20 = vadd.f32 %v10709_v50, %v4644_v38  ;;  %v4298_v41 = vmul.f32 2.0, %v6744_v48  ;;  %6757 = vrcp.f32 %v4244_v19  ;;  %v10091_v23 = vadd.f32 %v10064_v59, %v4040_v8 }
 0x479   :  { %v4732_v44 = vadd.f32 %v10710_v61, %v4645_v6  ;;  %v5300_v56 = vunpack.c.h.bf16 %v9807_v17  ;;  %v4216_v2 = vmul.f32 %v4187_v39, %v4187_v39  ;;  %6759 = vpow2.f32 %v4158_v4  ;;  %v6746_v49 = vpop.eup %6745  ;;  %v6415_v5 = vpop.f32.mrf.mxu1  ;;  %v5399_v61 = vld [vmem:[%s10183_s7 + $0x48] sm:$0xff]  }
 0x47a   :  { %v4041_v47 = vadd.f32 %v9652_v22, %v3714_v7  ;;  %v4327_v31 = vsub.f32 1.0, %v4298_v41  ;;  %v4105_v26 = vmin.f32 %v10091_v23, 20.0  ;;  %v3715_v28 = vadd.f32 %v3681_v13, %v3420_v15  ;;  %v6748_v60 = vpop.eup %6747  ;;  %v4567_v13 = vpop.permute.xlu0 %4566 }
 0x47b   :  { %v5359_v27 = vpack.c.bf16 %v4732_v44, %v4731_v20  ;;  %vm4356_vm7 = vcmp.gt.f32.partialorder %v9949_v1, 20.0  ;;  %v4299_v52 = vmul.f32 2.0, %v6746_v49  ;;  %v4245_v18 = vadd.f32 1.0, %v4216_v2  ;;  %v6750_v57 = vpop.eup %6749 }
 0x47c   :  { %v10098_v45 = vadd.f32 %v10064_v59, %v4041_v47  ;;  %v4385_v22 = vsel %vm4356_vm7, 1.0, %v4327_v31  ;;  %v4188_v62 = vadd.f32 1.0, %v6748_v60  ;;  %v4160_v14 = vmul.f32 1.442695, %v4105_v26 }
 0x47d   :  { %5410 = vst [vmem:[%s10184_s8 + $0x38] sm:$0xff] %v5359_v27   ;;  %v4042_v54 = vadd.f32 %v4008_v43, %v3715_v28  ;;  %v4414_v11 = vmul.f32 %v4385_v22, %v9949_v1  ;;  %v4328_v32 = vsub.f32 1.0, %v4299_v52  ;;  %v4300_v53 = vmul.f32 2.0, %v6750_v57  ;;  %v4011_v1 = vpop.f32.mrf.mxu1 }
 0x47e   :  { %6761 = vrcp.f32 %v4245_v18  ;;  %vm4357_vm1 = vcmp.gt.f32.partialorder %v9963_v33, 20.0  ;;  %v4217_v12 = vmul.f32 %v4188_v62, %v4188_v62  ;;  %v4106_v55 = vmin.f32 %v10098_v45, 20.0  ;;  %v4573_v18 = vpop.permute.xlu0 %4572 }
 0x47f   :  { %6763 = vpow2.f32 %v4160_v14  ;;  %v6752_v16 = vpop.eup %6751  ;;  %v4646_v42 = vsel %vm4617_vm0, %v4414_v11, 0.0  ;;  %v4386_v25 = vsel %vm4357_vm1, 1.0, %v4328_v32  ;;  %v4329_v21 = vsub.f32 1.0, %v4300_v53  ;;  %v6416_v38 = vpop.f32.mrf.mxu1  ;;  %v5400_v53 = vld [vmem:[%s10183_s7 + $0x50] sm:$0xff]  }
 0x480   :  { %v10108_v35 = vadd.f32 %v10064_v59, %v4042_v54  ;;  %vm4618_vm3 = vcmp.eq.s32.totalorder %v4567_v13, 1  ;;  %v4415_v15 = vmul.f32 %v4386_v25, %v9963_v33  ;;  %v4246_v24 = vadd.f32 1.0, %v4217_v12 }
 0x481   :  { %v4189_v46 = vadd.f32 1.0, %v6752_v16  ;;  %v10711_v4 = vunpack.c.l.bf16 %v9807_v17  ;;  %vm4358_vm9 = vcmp.gt.f32.partialorder %v9966_v29, 20.0  ;;  %v4162_v0 = vmul.f32 1.442695, %v4106_v55  ;;  %v4570_v17 = vpop.permute.xlu1 %4569 }
 0x482   :  { %v4107_v58 = vmin.f32 %v10108_v35, 20.0  ;;  %v6754_v19 = vpop.eup %6753  ;;  %v4647_v8 = vsel %vm4618_vm3, %v4415_v15, 0.0  ;;  %v4387_v7 = vsel %vm4358_vm9, 1.0, %v4329_v21  ;;  %6765 = vrcp.f32 %v4246_v24  ;;  %v4579_v24 = vpop.permute.xlu0 %4578 }
 0x483   :  { %v4733_v51 = vadd.f32 %v10711_v4, %v4646_v42  ;;  %v4218_v59 = vmul.f32 %v4189_v46, %v4189_v46  ;;  %v4734_v48 = vadd.f32 %v5300_v56, %v4647_v8  ;;  %v4190_v50 = vadd.f32 1.0, %v6754_v19 }
 0x484   :  { %6767 = vpow2.f32 %v4162_v0  ;;  %v4164_v33 = vmul.f32 1.442695, %v4107_v58  ;;  %v6756_v20 = vpop.eup %6755  ;;  %vm4619_vm15 = vcmp.eq.s32.totalorder %v4570_v17, 1  ;;  %v4416_v47 = vmul.f32 %v4387_v7, %v9966_v29 }
 0x485   :  { %v4247_v6 = vadd.f32 1.0, %v4218_v59  ;;  %v6758_v39 = vpop.eup %6757  ;;  %v5364_v30 = vpack.c.bf16 %v4734_v48, %v4733_v51  ;;  %v4301_v44 = vmul.f32 2.0, %v6756_v20  ;;  %v4219_v41 = vmul.f32 %v4190_v50, %v4190_v50  ;;  %v4576_v12 = vpop.permute.xlu1 %4575 }
 0x486   :  { %v6760_v2 = vpop.eup %6759  ;;  %v4302_v63 = vmul.f32 2.0, %v6758_v39  ;;  %v5303_v31 = vunpack.c.l.bf16 %v5399_v61  ;;  %vm4359_vm5 = vcmp.gt.f32.partialorder %v9993_v34, 20.0  ;;  %v5304_v26 = vunpack.c.h.bf16 %v5399_v61  ;;  %v5401_v39 = vld [vmem:[%s10183_s7 + $0x58] sm:$0xff]  }
 0x487   :  { %6769 = vrcp.f32 %v4247_v6  ;;  %5411 = vst [vmem:[%s10184_s8 + $0x40] sm:$0xff] %v5364_v30   ;;  %v4330_v56 = vsub.f32 1.0, %v4301_v44  ;;  %v4248_v49 = vadd.f32 1.0, %v4219_v41  ;;  %v4191_v27 = vadd.f32 1.0, %v6760_v2 }
 0x488   :  { %6771 = vpow2.f32 %v4164_v33  ;;  %v4331_v28 = vsub.f32 1.0, %v4302_v63  ;;  %vm4360_vm10 = vcmp.gt.f32.partialorder %v10004_v36, 20.0  ;;  %v4648_v43 = vsel %vm4619_vm15, %v4416_v47, 0.0 }
 0x489   :  { %v4388_v60 = vsel %vm4359_vm5, 1.0, %v4330_v56  ;;  %6773 = vrcp.f32 %v4248_v49  ;;  %v4220_v29 = vmul.f32 %v4191_v27, %v4191_v27  ;;  %vm4620_vm13 = vcmp.eq.s32.totalorder %v4573_v18, 1  ;;  %v4582_v41 = vpop.permute.xlu1 %4581  ;;  %v4585_v49 = vpop.permute.xlu0 %4584 }
 0x48a   :  { %v4417_v57 = vmul.f32 %v4388_v60, %v9993_v34  ;;  %v4389_v22 = vsel %vm4360_vm10, 1.0, %v4331_v28  ;;  %v4735_v55 = vadd.f32 %v5303_v31, %v4648_v43  ;;  %vm4621_vm14 = vcmp.eq.s32.totalorder %v4576_v12, 1 }
 0x48b   :  { %v6762_v52 = vpop.eup %6761  ;;  %v4249_v54 = vadd.f32 1.0, %v4220_v29  ;;  %v4418_v32 = vmul.f32 %v4389_v22, %v10004_v36  ;;  %vm4361_vm6 = vcmp.gt.f32.partialorder %v10018_v40, 20.0  ;;  %v5307_v21 = vunpack.c.l.bf16 %v5400_v53 }
 0x48c   :  { %v6764_v62 = vpop.eup %6763  ;;  %v4303_v14 = vmul.f32 2.0, %v6762_v52  ;;  %v4649_v11 = vsel %vm4620_vm13, %v4417_v57, 0.0  ;;  %v5308_v15 = vunpack.c.h.bf16 %v5400_v53  ;;  %vm4622_vm11 = vcmp.eq.s32.totalorder %v4579_v24, 1 }
 0x48d   :  { %v4192_v5 = vadd.f32 1.0, %v6764_v62  ;;  %v4736_v16 = vadd.f32 %v5304_v26, %v4649_v11  ;;  %6775 = vrcp.f32 %v4249_v54  ;;  %v4650_v46 = vsel %vm4621_vm14, %v4418_v32, 0.0  ;;  %v5402_v62 = vld [vmem:[%s10183_s7 + $0x60] sm:$0xff]   ;;  %v4591_v12 = vpop.permute.xlu0 %4590 }
 0x48e   :  { %v4332_v13 = vsub.f32 1.0, %v4303_v14  ;;  %v4737_v7 = vadd.f32 %v5307_v21, %v4650_v46  ;;  %vm4362_vm8 = vcmp.gt.f32.partialorder %v10029_v3, 20.0  ;;  %vm4363_vm12 = vcmp.gt.f32.partialorder %v10044_v37, 20.0 }
 0x48f   :  { %v4221_v34 = vmul.f32 %v4192_v5, %v4192_v5  ;;  %v6766_v42 = vpop.eup %6765  ;;  %v5369_v25 = vpack.c.bf16 %v4736_v16, %v4735_v55  ;;  %vm4623_vm4 = vcmp.eq.s32.totalorder %v4582_v41, 1  ;;  %v5312_v56 = vunpack.c.h.bf16 %v5401_v39 }
 0x490   :  { %v4390_v1 = vsel %vm4361_vm6, 1.0, %v4332_v13  ;;  %v4304_v51 = vmul.f32 2.0, %v6766_v42  ;;  %vm4624_vm2 = vcmp.eq.s32.totalorder %v4585_v49, 1  ;;  %vm4364_vm0 = vcmp.gt.f32.partialorder %v10054_v10, 20.0 }
 0x491   :  { %v6768_v36 = vpop.eup %6767  ;;  %v4419_v4 = vmul.f32 %v4390_v1, %v10018_v40  ;;  %v4250_v0 = vadd.f32 1.0, %v4221_v34  ;;  %5412 = vst [vmem:[%s10184_s8 + $0x48] sm:$0xff] %v5369_v25   ;;  %vm4365_vm7 = vcmp.gt.f32.partialorder %v10067_v9, 20.0  ;;  %v5315_v32 = vunpack.c.l.bf16 %v5402_v62 }
 0x492   :  { %v4193_v58 = vadd.f32 1.0, %v6768_v36  ;;  %v4333_v19 = vsub.f32 1.0, %v4304_v51  ;;  %v5316_v5 = vunpack.c.h.bf16 %v5402_v62  ;;  %vm4626_vm3 = vcmp.eq.s32.totalorder %v4591_v12, 1 }
 0x493   :  { %v4651_v38 = vsel %vm4622_vm11, %v4419_v4, 0.0  ;;  %6777 = vrcp.f32 %v4250_v0  ;;  %vm4366_vm9 = vcmp.gt.f32.partialorder %v10091_v23, 20.0  ;;  %v5403_v4 = vld [vmem:[%s10183_s7 + $0x68] sm:$0xff]   ;;  %v4597_v0 = vpop.permute.xlu0 %4596  ;;  %vm4367_vm5 = vcmp.gt.f32.partialorder %v10098_v45, 20.0 }
 0x494   :  { %v6770_v8 = vpop.eup %6769  ;;  %v4738_v59 = vadd.f32 %v5308_v15, %v4651_v38  ;;  %v4222_v48 = vmul.f32 %v4193_v58, %v4193_v58  ;;  %v4391_v33 = vsel %vm4362_vm8, 1.0, %v4333_v19  ;;  %v5319_v58 = vunpack.c.l.bf16 %v5403_v4 }
 0x495   :  { %v6772_v50 = vpop.eup %6771  ;;  %v4305_v40 = vmul.f32 2.0, %v6770_v8  ;;  %v4420_v6 = vmul.f32 %v4391_v33, %v10029_v3  ;;  %v5311_v3 = vunpack.c.l.bf16 %v5401_v39  ;;  %v5320_v19 = vunpack.c.h.bf16 %v5403_v4 }
 0x496   :  { %v5374_v20 = vpack.c.bf16 %v4738_v59, %v4737_v7  ;;  %v4251_v17 = vadd.f32 1.0, %v4222_v48  ;;  %v4194_v30 = vadd.f32 1.0, %v6772_v50  ;;  %v6774_v61 = vpop.eup %6773  ;;  %v4687_v59 = vld [vmem:[%s10183_s7 + $0x70] sm:$0xf]  ;;  %vm4628_vm10 = vcmp.eq.s32.totalorder %v4597_v0, 1 }
 0x497   :  { %v4334_v44 = vsub.f32 1.0, %v4305_v40  ;;  %v4306_v2 = vmul.f32 2.0, %v6774_v61  ;;  %v4652_v27 = vsel %vm4623_vm4, %v4420_v6, 0.0  ;;  %vm4368_vm13 = vcmp.gt.f32.partialorder %v10108_v35, 20.0 }
 0x498   :  { %5413 = vst [vmem:[%s10184_s8 + $0x50] sm:$0xff] %v5374_v20   ;;  %6779 = vrcp.f32 %v4251_v17  ;;  %v4223_v47 = vmul.f32 %v4194_v30, %v4194_v30  ;;  %v4739_v43 = vadd.f32 %v5311_v3, %v4652_v27  ;;  %v4716_v39 = vunpack.c.l.bf16 %v4687_v59 }
 0x499   :  { %v4392_v63 = vsel %vm4363_vm12, 1.0, %v4334_v44  ;;  %v4335_v26 = vsub.f32 1.0, %v4306_v2 }
 0x49a   :  { %v4421_v31 = vmul.f32 %v4392_v63, %v10044_v37  ;;  %v4252_v28 = vadd.f32 1.0, %v4223_v47  ;;  %v6776_v60 = vpop.eup %6775  ;;  %v4588_v37 = vpop.permute.xlu1 %4587 }
 0x49b   :  { %v4393_v52 = vsel %vm4364_vm0, 1.0, %v4335_v26  ;;  %v4307_v18 = vmul.f32 2.0, %v6776_v60  ;;  %vm4625_vm1 = vcmp.eq.s32.totalorder %v4588_v37, 1 }
 0x49c   :  { %v4653_v29 = vsel %vm4624_vm2, %v4421_v31, 0.0  ;;  %6781 = vrcp.f32 %v4252_v28  ;;  %v4422_v22 = vmul.f32 %v4393_v52, %v10054_v10 }
 0x49d   :  { %v4740_v57 = vadd.f32 %v5312_v56, %v4653_v29  ;;  %v4336_v14 = vsub.f32 1.0, %v4307_v18 }
 0x49e   :  { %v4654_v10 = vsel %vm4625_vm1, %v4422_v22, 0.0  ;;  %v4594_v24 = vpop.permute.xlu1 %4593 }
 0x49f   :  { %v5379_v54 = vpack.c.bf16 %v4740_v57, %v4739_v43  ;;  %v4394_v53 = vsel %vm4365_vm7, 1.0, %v4336_v14  ;;  %v4741_v42 = vadd.f32 %v5315_v32, %v4654_v10  ;;  %vm4627_vm15 = vcmp.eq.s32.totalorder %v4594_v24, 1 }
 0x4a0   :  { %v6778_v11 = vpop.eup %6777  ;;  %v4423_v55 = vmul.f32 %v4394_v53, %v10067_v9 }
 0x4a1   :  { %5414 = vst [vmem:[%s10184_s8 + $0x58] sm:$0xff] %v5379_v54   ;;  %v4308_v16 = vmul.f32 2.0, %v6778_v11 }
 0x4a2   :  { %v4655_v13 = vsel %vm4626_vm3, %v4423_v55, 0.0  ;;  %v4600_v50 = vpop.permute.xlu1 %4599 }
 0x4a3   :  { %v4337_v34 = vsub.f32 1.0, %v4308_v16  ;;  %v4742_v25 = vadd.f32 %v5316_v5, %v4655_v13  ;;  %vm4629_vm14 = vcmp.eq.s32.totalorder %v4600_v50, 1 }
 0x4a5   :  { %v6780_v21 = vpop.eup %6779  ;;  %v4395_v1 = vsel %vm4366_vm9, 1.0, %v4337_v34  ;;  %v5384_v15 = vpack.c.bf16 %v4742_v25, %v4741_v42 }
 0x4a6   :  { %v4309_v36 = vmul.f32 2.0, %v6780_v21  ;;  %v4424_v46 = vmul.f32 %v4395_v1, %v10091_v23 }
 0x4a7   :  { %5415 = vst [vmem:[%s10184_s8 + $0x60] sm:$0xff] %v5384_v15  }
 0x4a8   :  { %v4338_v9 = vsub.f32 1.0, %v4309_v36  ;;  %v4656_v7 = vsel %vm4627_vm15, %v4424_v46, 0.0 }
 0x4a9   :  { %v6782_v51 = vpop.eup %6781  ;;  %v4743_v40 = vadd.f32 %v5319_v58, %v4656_v7 }
 0x4aa   :  { %v4396_v38 = vsel %vm4367_vm5, 1.0, %v4338_v9  ;;  %v4310_v8 = vmul.f32 2.0, %v6782_v51 }
 0x4ab   :  { %v4425_v23 = vmul.f32 %v4396_v38, %v10098_v45 }
 0x4ac   :  { %v4339_v48 = vsub.f32 1.0, %v4310_v8 }
 0x4ad   :  { %v4657_v33 = vsel %vm4628_vm10, %v4425_v23, 0.0 }
 0x4ae   :  { %v4744_v20 = vadd.f32 %v5320_v19, %v4657_v33  ;;  %v4397_v6 = vsel %vm4368_vm13, 1.0, %v4339_v48 }
 0x4af   :  { %v4426_v17 = vmul.f32 %v4397_v6, %v10108_v35 }
 0x4b0   :  { %v5389_v30 = vpack.c.bf16 %v4744_v20, %v4743_v40 }
 0x4b1   :  { %v4658_v61 = vsel %vm4629_vm14, %v4426_v17, 0.0 }
 0x4b2   :  { %5416 = vst [vmem:[%s10184_s8 + $0x68] sm:$0xff] %v5389_v30   ;;  %v4745_v45 = vadd.f32 %v4716_v39, %v4658_v61 }
 0x4b4   :  { %v5264_v44 = vpack.c.bf16 %v4745_v45, %v4745_v45 }
 0x4b6   :  { %4891 = vst [vmem:[%s10184_s8 + $0x70] sm:$0xf] %v5264_v44 }
 0x4b7   :  { %4896 = vsyncmov [#allocation4] }
 0x4ba   :  { %s4897_s5 = vpop.sfrf %4896 }
 0x4bb   :  { %p5234_p0 = scmp.ne.s32.totalorder %s4897_s5, 0 }
 0x4bd   :  { %4901 = shalt.err (%p5234_p0)  }
 0x4be   :  { %4903 = vsyncmov [#allocation4 + $0x1] }
 0x4c1   :  { %s4904_s30 = vpop.sfrf %4903 }
 0x4c2   :  { %p5235_p1 = scmp.ne.s32.totalorder %s4904_s30, 0 }
 0x4c4   :  { %4908 = shalt.err (%p5235_p1)  }

</bundles_post_ra>
